<compile_context>
chip_gen: v7x
topology: tpu7x:2x2x1
jax: 0.10.0
libtpu: 0.0.40
codegen_flags: <defaults>
</compile_context>

<pallas_src>
import functools
import math

import jax
import jax.numpy as jnp
from jax.experimental import pallas as pl
from jax.experimental.pallas import tpu as pltpu


# ------------------------------ Pallas kernels ------------------------------

def _dual_1x1_kernel(x_ref, w1_ref, b1_ref, w2_ref, b2_ref, o1_ref, o2_ref):
    """y1 = SiLU(x @ W1 + b1), y2 = SiLU(x @ W2 + b2) from a single read of x."""
    x = x_ref[...]
    y1 = jnp.dot(x, w1_ref[...], preferred_element_type=jnp.float32) + b1_ref[...]
    y1 = y1 * jax.nn.sigmoid(y1)
    o1_ref[...] = y1.astype(o1_ref.dtype)
    y2 = jnp.dot(x, w2_ref[...], preferred_element_type=jnp.float32) + b2_ref[...]
    y2 = y2 * jax.nn.sigmoid(y2)
    o2_ref[...] = y2.astype(o2_ref.dtype)


def _multi_in_1x1_kernel(*refs, n_in):
    """out = SiLU( sum_i x_i @ W_i + b )  ==  SiLU( concat(x_i) @ W + b )."""
    x_refs = refs[:n_in]
    w_refs = refs[n_in:2 * n_in]
    b_ref = refs[2 * n_in]
    o_ref = refs[2 * n_in + 1]
    acc = jnp.dot(x_refs[0][...], w_refs[0][...], preferred_element_type=jnp.float32)
    for xr, wr in zip(x_refs[1:], w_refs[1:]):
        acc = acc + jnp.dot(xr[...], wr[...], preferred_element_type=jnp.float32)
    y = acc + b_ref[...]
    y = y * jax.nn.sigmoid(y)
    o_ref[...] = y.astype(o_ref.dtype)


def _conv3x3_kernel(x_ref, w_ref, b_ref, mask_ref, *rest, H, W, act, has_res):
    """Direct 3x3 conv (stride 1, pad 1) on a zero-padded, row-flattened image.

    x_ref:    (1, P, Cin)   P = (H+2)*(W+2) + 2   (1 margin row each side)
    w_ref:    (9, Cin, Cout)  tap order k = 3*dy + dx, BN scale folded in
    b_ref:    (1, Cout)       folded BN bias (fp32)
    mask_ref: (H*(W+2), 1)    1.0 on real columns, 0.0 on width-pad columns
    rest:     [res_ref,] out_ref      res/out are (1, P, Cout) in the same layout
    """
    if has_res:
        r_ref, o_ref = rest
    else:
        (o_ref,) = rest
        r_ref = None
    wp = W + 2
    hw = H * wp                 # rows computed (valid image rows x padded width)
    row0 = wp + 1               # where those rows live inside the padded layout

    # nine shift-offset matmuls accumulated in fp32 (no im2col materialisation)
    acc = jnp.dot(x_ref[0, 0:hw, :], w_ref[0], preferred_element_type=jnp.float32)
    for k in range(1, 9):
        dy, dx = divmod(k, 3)
        s = dy * wp + dx
        acc = acc + jnp.dot(x_ref[0, s:s + hw, :], w_ref[k],
                            preferred_element_type=jnp.float32)

    y = acc + b_ref[...]
    if act:                     # SiLU
        y = y * jax.nn.sigmoid(y)
    if has_res:                 # shortcut added after activation (BasicBlock)
        y = y + r_ref[0, row0:row0 + hw, :].astype(jnp.float32)

    # Zero the width-padding columns so this output is directly consumable as a
    # zero-padded input by the next 3x3 conv (no wrapper re-pad between convs).
    y = y * mask_ref[...]
    o_ref[...] = jnp.zeros(o_ref.shape, o_ref.dtype)
    o_ref[0, row0:row0 + hw, :] = y.astype(o_ref.dtype)


# ------------------------------ kernel wrappers ------------------------------

_SEM = pltpu.CompilerParams(dimension_semantics=("parallel",))


def dual_conv1x1(x, p1, p2, *, tm=256):
    """conv1 & conv2 (1x1 + folded BN + SiLU) fused in one kernel.  x: (M, Cin) bf16."""
    M, cin = x.shape
    c1 = p1["w"].shape[1]
    c2 = p2["w"].shape[1]
    mp = pl.cdiv(M, tm) * tm
    if mp != M:
        x = jnp.pad(x, ((0, mp - M), (0, 0)))
    ce = pl.CostEstimate(flops=2 * mp * cin * (c1 + c2),
                         transcendentals=mp * (c1 + c2),
                         bytes_accessed=2 * (mp * cin + cin * (c1 + c2) + mp * (c1 + c2)))
    y1, y2 = pl.pallas_call(
        _dual_1x1_kernel,
        out_shape=(jax.ShapeDtypeStruct((mp, c1), jnp.bfloat16),
                   jax.ShapeDtypeStruct((mp, c2), jnp.bfloat16)),
        grid=(mp // tm,),
        in_specs=[
            pl.BlockSpec((tm, cin), lambda i: (i, 0)),
            pl.BlockSpec((cin, c1), lambda i: (0, 0)),
            pl.BlockSpec((1, c1), lambda i: (0, 0)),
            pl.BlockSpec((cin, c2), lambda i: (0, 0)),
            pl.BlockSpec((1, c2), lambda i: (0, 0)),
        ],
        out_specs=(pl.BlockSpec((tm, c1), lambda i: (i, 0)),
                   pl.BlockSpec((tm, c2), lambda i: (i, 0))),
        compiler_params=_SEM,
        cost_estimate=ce,
    )(x, p1["w"], p1["bias"], p2["w"], p2["bias"])
    if mp != M:
        y1, y2 = y1[:M], y2[:M]
    return y1, y2


def concat_conv1x1(xs, p, *, tm=256):
    """conv3: SiLU( concat(xs, axis=-1) @ W + b ) without materialising the concat."""
    M = xs[0].shape[0]
    cout = p["ws"][0].shape[1]
    n_in = len(xs)
    mp = pl.cdiv(M, tm) * tm
    if mp != M:
        xs = [jnp.pad(x, ((0, mp - M), (0, 0))) for x in xs]
    k_tot = sum(int(x.shape[1]) for x in xs)
    ce = pl.CostEstimate(flops=2 * mp * k_tot * cout,
                         transcendentals=mp * cout,
                         bytes_accessed=2 * (mp * k_tot + k_tot * cout + mp * cout))
    in_specs = ([pl.BlockSpec((tm, int(x.shape[1])), lambda i: (i, 0)) for x in xs]
                + [pl.BlockSpec(tuple(w.shape), lambda i: (0, 0)) for w in p["ws"]]
                + [pl.BlockSpec((1, cout), lambda i: (0, 0))])
    out = pl.pallas_call(
        functools.partial(_multi_in_1x1_kernel, n_in=n_in),
        out_shape=jax.ShapeDtypeStruct((mp, cout), jnp.bfloat16),
        grid=(mp // tm,),
        in_specs=in_specs,
        out_specs=pl.BlockSpec((tm, cout), lambda i: (i, 0)),
        compiler_params=_SEM,
        cost_estimate=ce,
    )(*xs, *p["ws"], p["bias"])
    if mp != M:
        out = out[:M]
    return out


def conv3x3(x_pad, p, *, H, W, act=True, residual=None):
    """Direct 3x3 conv + folded BN (+SiLU, + optional post-act residual).

    x_pad / residual / output are in the zero-padded, row-flattened layout
    (N, (H+2)*(W+2)+2, C) produced by `to_padded_layout` / this function.
    Grid is over batch; one whole (padded) image block stays in VMEM per step.
    """
    # TODO(synk): for very large H*W, tile over image rows with a 1-row halo
    # (manual DMA) instead of whole-image blocks so a single image need not fit VMEM.
    n_img, prows, cin = x_pad.shape
    cout = p["w"].shape[-1]
    wp = W + 2
    hw = H * wp
    # 0/1 mask that zeroes the width-padding columns of the computed rows.
    col = jnp.arange(hw, dtype=jnp.int32) % wp
    mask = ((col >= 1) & (col <= W)).astype(jnp.float32).reshape(hw, 1)

    in_specs = [
        pl.BlockSpec((1, prows, cin), lambda b: (b, 0, 0)),
        pl.BlockSpec((9, cin, cout), lambda b: (0, 0, 0)),
        pl.BlockSpec((1, cout), lambda b: (0, 0)),
        pl.BlockSpec((hw, 1), lambda b: (0, 0)),
    ]
    args = [x_pad, p["w"], p["bias"], mask]
    if residual is not None:
        in_specs.append(pl.BlockSpec((1, prows, cout), lambda b: (b, 0, 0)))
        args.append(residual)

    bytes_acc = 2 * (n_img * prows * (cin + cout) + 9 * cin * cout)
    if residual is not None:
        bytes_acc += 2 * n_img * prows * cout
    ce = pl.CostEstimate(flops=2 * n_img * hw * 9 * cin * cout,
                         transcendentals=n_img * hw * cout,
                         bytes_accessed=bytes_acc)
    kernel = functools.partial(_conv3x3_kernel, H=H, W=W, act=act,
                               has_res=residual is not None)
    return pl.pallas_call(
        kernel,
        out_shape=jax.ShapeDtypeStruct((n_img, prows, cout), jnp.bfloat16),
        grid=(n_img,),
        in_specs=in_specs,
        out_specs=pl.BlockSpec((1, prows, cout), lambda b: (b, 0, 0)),
        compiler_params=_SEM,
        cost_estimate=ce,
    )(*args)


# --------------------------- layout helpers (XLA) ---------------------------

def to_padded_layout(x_flat, N, H, W):
    """(N*H*W, C) -> (N, (H+2)*(W+2)+2, C): spatial zero pad, row-flatten, 1 margin row."""
    C = x_flat.shape[-1]
    x = x_flat.reshape(N, H, W, C)
    x = jnp.pad(x, ((0, 0), (1, 1), (1, 1), (0, 0)))
    x = x.reshape(N, (H + 2) * (W + 2), C)
    return jnp.pad(x, ((0, 0), (1, 1), (0, 0)))


def from_padded_layout(x_pad, N, H, W):
    """(N, (H+2)*(W+2)+2, C) -> (N*H*W, C): crop margins and spatial padding."""
    C = x_pad.shape[-1]
    x = x_pad[:, 1:-1, :].reshape(N, H + 2, W + 2, C)
    return x[:, 1:H + 1, 1:W + 1, :].reshape(N * H * W, C)


# ------------------------------ parameter init ------------------------------

def _fold_conv_bn(key, cin, cout, ksize):
    """Deterministic Conv2d(bias=False)+BatchNorm2d, BN folded into (w, bias).

    Returns w: (ksize*ksize, cin, cout) fp32 (tap order k = 3*ky + kx) and
    bias: (1, cout) fp32.  Scale is folded into the weight's output columns.
    """
    kw, kg, kb, km, kv = jax.random.split(key, 5)
    fan_in = cin * ksize * ksize
    w = jax.random.normal(kw, (cout, cin, ksize, ksize), jnp.float32) / math.sqrt(fan_in)
    gamma = 1.0 + 0.1 * jax.random.normal(kg, (cout,), jnp.float32)
    beta = 0.1 * jax.random.normal(kb, (cout,), jnp.float32)
    mean = 0.1 * jax.random.normal(km, (cout,), jnp.float32)
    var = 0.5 + jax.random.uniform(kv, (cout,), jnp.float32)
    scale = gamma / jnp.sqrt(var + 1e-5)
    bias = beta - mean * scale
    w = jnp.transpose(w, (2, 3, 1, 0)).reshape(ksize * ksize, cin, cout)
    w = w * scale[None, None, :]          # fold BN scale into weight columns
    return w, bias.reshape(1, cout)


def init_csp_stage_params(key, ch_in, ch_out, n, ch_hidden_ratio=1.0):
    ch_first = ch_out // 2
    ch_mid = ch_out - ch_first
    ch_hidden = int(ch_mid * ch_hidden_ratio)
    keys = jax.random.split(key, 3 + 3 * n)

    w1, b1 = _fold_conv_bn(keys[0], ch_in, ch_first, 1)
    w2, b2 = _fold_conv_bn(keys[1], ch_in, ch_mid, 1)
    params = {
        "conv1": {"w": w1[0].astype(jnp.bfloat16), "bias": b1},
        "conv2": {"w": w2[0].astype(jnp.bfloat16), "bias": b2},
        "blocks": [],
    }
    for i in range(n):
        k0, k1, k2 = keys[3 + 3 * i: 6 + 3 * i]
        # RepConv = SiLU( bn(conv3x3(x)) + bn(conv1x1(x)) ); with BN folded the
        # 1x1 branch merges exactly into the centre tap of the 3x3 weight.
        w3, b3 = _fold_conv_bn(k0, ch_mid, ch_hidden, 3)
        wp, bp = _fold_conv_bn(k1, ch_mid, ch_hidden, 1)
        w3 = w3.at[4].add(wp[0])
        rep = {"w": w3.astype(jnp.bfloat16), "bias": b3 + bp}
        # Conv(ch_hidden -> ch_mid, 3x3) + BN + SiLU
        wc, bc = _fold_conv_bn(k2, ch_hidden, ch_mid, 3)
        params["blocks"].append({"rep": rep,
                                 "conv1": {"w": wc.astype(jnp.bfloat16), "bias": bc}})
    # conv3: 1x1 over concat([y1, block outs...]); keep the weight split by
    # input-channel group so the kernel accumulates without an HBM concat.
    w3c, b3c = _fold_conv_bn(keys[2], ch_mid * n + ch_first, ch_out, 1)
    w3c = w3c[0]
    splits = [ch_first] + [ch_mid] * n
    ws, off = [], 0
    for s in splits:
        ws.append(w3c[off:off + s].astype(jnp.bfloat16))
        off += s
    params["conv3"] = {"ws": ws, "bias": b3c}
    return params


# --------------------------------- forward ----------------------------------

def csp_stage_forward(x_nchw, params):
    """CSPStage forward.  x_nchw: (N, Cin, H, W) -> (N, Cout, H, W) fp32."""
    x = jnp.transpose(x_nchw, (0, 2, 3, 1))          # NHWC
    N, H, W, cin = x.shape
    x_flat = x.reshape(N * H * W, cin).astype(jnp.bfloat16)

    # conv1 / conv2 (1x1 + BN + SiLU on the same input) -> one dual-output kernel
    y1, y2 = dual_conv1x1(x_flat, params["conv1"], params["conv2"])

    mid = [y1]
    cur = to_padded_layout(y2, N, H, W)              # padded layout for 3x3 convs
    for blk in params["blocks"]:
        # RepConv (merged single 3x3) + SiLU
        t = conv3x3(cur, blk["rep"], H=H, W=W, act=True)
        # Conv 3x3 + BN + SiLU, then shortcut:  cur = cur + SiLU(conv(t))
        cur = conv3x3(t, blk["conv1"], H=H, W=W, act=True, residual=cur)
        mid.append(from_padded_layout(cur, N, H, W))

    # conv3: 1x1 over the channel concat, computed as an accumulating kernel
    out = concat_conv1x1(mid, params["conv3"])
    out = out.astype(jnp.float32).reshape(N, H, W, -1)
    return jnp.transpose(out, (0, 3, 1, 2))          # back to NCHW


# ----------------------------------- main ------------------------------------

if __name__ == "__main__":
    key = jax.random.PRNGKey(0)
    kx, kp = jax.random.split(key)

    # Small config: batch=2, ch_in=4, spatial 16x16, ch_out=8, n=2 blocks.
    N, CH_IN, H, W = 2, 4, 16, 16
    CH_OUT, N_BLOCKS = 8, 2

    x = jax.random.normal(kx, (N, CH_IN, H, W), jnp.float32)   # NCHW, like PyTorch
    params = init_csp_stage_params(kp, CH_IN, CH_OUT, N_BLOCKS)

    out = jax.jit(csp_stage_forward)(x, params)
    out = jax.block_until_ready(out)
    assert out.shape == (N, CH_OUT, H, W), out.shape
    print("KERNEL_OK")
</pallas_src>

<mosaic_0001>
module attributes {stable_mosaic.version = 11 : i64} {
  func.func @_dual_1x1_kernel(%arg0: i32, %arg1: memref<256x4xbf16, #tpu.memory_space<vmem>>, %arg2: memref<4x4xbf16, #tpu.memory_space<vmem>>, %arg3: memref<1x4xf32, #tpu.memory_space<vmem>>, %arg4: memref<4x4xbf16, #tpu.memory_space<vmem>>, %arg5: memref<1x4xf32, #tpu.memory_space<vmem>>, %arg6: memref<256x4xbf16, #tpu.memory_space<vmem>>, %arg7: memref<256x4xbf16, #tpu.memory_space<vmem>>) attributes {dimension_semantics = [#tpu.dimension_semantics<parallel>], iteration_bounds = array<i64: 2>, scalar_prefetch = 0 : i64, scratch_operands = 0 : i64, tpu.core_type = #tpu.core_type<tc>, window_params = [{transform_indices = @transform_0, window_bounds = array<i64: 256, 4>}, {pipeline_mode = #tpu.pipeline_mode<synchronous>, transform_indices = @transform_1, window_bounds = array<i64: 4, 4>}, {pipeline_mode = #tpu.pipeline_mode<synchronous>, transform_indices = @transform_2, window_bounds = array<i64: 1, 4>}, {pipeline_mode = #tpu.pipeline_mode<synchronous>, transform_indices = @transform_3, window_bounds = array<i64: 4, 4>}, {pipeline_mode = #tpu.pipeline_mode<synchronous>, transform_indices = @transform_4, window_bounds = array<i64: 1, 4>}, {transform_indices = @transform_5, window_bounds = array<i64: 256, 4>}, {transform_indices = @transform_6, window_bounds = array<i64: 256, 4>}]} {
    %c0 = arith.constant 0 : index
    %c0_0 = arith.constant 0 : index
    %0 = vector.load %arg1[%c0, %c0_0] : memref<256x4xbf16, #tpu.memory_space<vmem>>, vector<256x4xbf16>
    %c0_1 = arith.constant 0 : index
    %c0_2 = arith.constant 0 : index
    %1 = vector.load %arg2[%c0_1, %c0_2] : memref<4x4xbf16, #tpu.memory_space<vmem>>, vector<4x4xbf16>
    %cst = arith.constant dense<0.000000e+00> : vector<256x4xf32>
    %2 = tpu.matmul %0, %1, %cst {dimension_numbers = #tpu.dot_dimension_numbers<[1], [0], [0], [1], [0, 0, 1, 1], [], []>} : vector<256x4xbf16>, vector<4x4xbf16>, vector<256x4xf32> -> vector<256x4xf32>
    %c0_3 = arith.constant 0 : index
    %c0_4 = arith.constant 0 : index
    %3 = vector.load %arg3[%c0_3, %c0_4] : memref<1x4xf32, #tpu.memory_space<vmem>>, vector<1x4xf32>
    %4 = vector.broadcast %3 : vector<1x4xf32> to vector<256x4xf32>
    %5 = arith.addf %2, %4 : vector<256x4xf32>
    %6 = arith.negf %5 : vector<256x4xf32>
    %7 = math.exp %6 : vector<256x4xf32>
    %cst_5 = arith.constant 1.000000e+00 : f32
    %8 = vector.broadcast %cst_5 : f32 to vector<256x4xf32>
    %9 = arith.addf %8, %7 : vector<256x4xf32>
    %10 = arith.divf %8, %9 : vector<256x4xf32>
    %11 = arith.mulf %5, %10 : vector<256x4xf32>
    %12 = arith.truncf %11 : vector<256x4xf32> to vector<256x4xbf16>
    %c0_6 = arith.constant 0 : index
    %c0_7 = arith.constant 0 : index
    %13 = vector.load %arg6[%c0_6, %c0_7] : memref<256x4xbf16, #tpu.memory_space<vmem>>, vector<256x4xbf16>
    tpu.vector_store %arg6[%c0_6, %c0_7], %12 {strides = array<i32>} : memref<256x4xbf16, #tpu.memory_space<vmem>>, vector<256x4xbf16>,
    %c0_8 = arith.constant 0 : index
    %c0_9 = arith.constant 0 : index
    %14 = vector.load %arg4[%c0_8, %c0_9] : memref<4x4xbf16, #tpu.memory_space<vmem>>, vector<4x4xbf16>
    %cst_10 = arith.constant dense<0.000000e+00> : vector<256x4xf32>
    %15 = tpu.matmul %0, %14, %cst_10 {dimension_numbers = #tpu.dot_dimension_numbers<[1], [0], [0], [1], [0, 0, 1, 1], [], []>} : vector<256x4xbf16>, vector<4x4xbf16>, vector<256x4xf32> -> vector<256x4xf32>
    %c0_11 = arith.constant 0 : index
    %c0_12 = arith.constant 0 : index
    %16 = vector.load %arg5[%c0_11, %c0_12] : memref<1x4xf32, #tpu.memory_space<vmem>>, vector<1x4xf32>
    %17 = vector.broadcast %16 : vector<1x4xf32> to vector<256x4xf32>
    %18 = arith.addf %15, %17 : vector<256x4xf32>
    %19 = arith.negf %18 : vector<256x4xf32>
    %20 = math.exp %19 : vector<256x4xf32>
    %cst_13 = arith.constant 1.000000e+00 : f32
    %21 = vector.broadcast %cst_13 : f32 to vector<256x4xf32>
    %22 = arith.addf %21, %20 : vector<256x4xf32>
    %23 = arith.divf %21, %22 : vector<256x4xf32>
    %24 = arith.mulf %18, %23 : vector<256x4xf32>
    %25 = arith.truncf %24 : vector<256x4xf32> to vector<256x4xbf16>
    %c0_14 = arith.constant 0 : index
    %c0_15 = arith.constant 0 : index
    %26 = vector.load %arg7[%c0_14, %c0_15] : memref<256x4xbf16, #tpu.memory_space<vmem>>, vector<256x4xbf16>
    tpu.vector_store %arg7[%c0_14, %c0_15], %25 {strides = array<i32>} : memref<256x4xbf16, #tpu.memory_space<vmem>>, vector<256x4xbf16>,
    return
  }
  func.func @transform_0(%arg0: i32) -> (i32, i32) {
    %c0_i32 = arith.constant 0 : i32
    %c0_i32_0 = arith.constant 0 : i32
    return %arg0, %c0_i32 : i32, i32
  }
  func.func @transform_1(%arg0: i32) -> (i32, i32) {
    %c0_i32 = arith.constant 0 : i32
    %c0_i32_0 = arith.constant 0 : i32
    %c0_i32_1 = arith.constant 0 : i32
    return %c0_i32, %c0_i32_0 : i32, i32
  }
  func.func @transform_2(%arg0: i32) -> (i32, i32) {
    %c0_i32 = arith.constant 0 : i32
    %c0_i32_0 = arith.constant 0 : i32
    %c0_i32_1 = arith.constant 0 : i32
    return %c0_i32, %c0_i32_0 : i32, i32
  }
  func.func @transform_3(%arg0: i32) -> (i32, i32) {
    %c0_i32 = arith.constant 0 : i32
    %c0_i32_0 = arith.constant 0 : i32
    %c0_i32_1 = arith.constant 0 : i32
    return %c0_i32, %c0_i32_0 : i32, i32
  }
  func.func @transform_4(%arg0: i32) -> (i32, i32) {
    %c0_i32 = arith.constant 0 : i32
    %c0_i32_0 = arith.constant 0 : i32
    %c0_i32_1 = arith.constant 0 : i32
    return %c0_i32, %c0_i32_0 : i32, i32
  }
  func.func @transform_5(%arg0: i32) -> (i32, i32) {
    %c0_i32 = arith.constant 0 : i32
    %c0_i32_0 = arith.constant 0 : i32
    return %arg0, %c0_i32 : i32, i32
  }
  func.func @transform_6(%arg0: i32) -> (i32, i32) {
    %c0_i32 = arith.constant 0 : i32
    %c0_i32_0 = arith.constant 0 : i32
    return %arg0, %c0_i32 : i32, i32
  }
}

module attributes {stable_mosaic.version = 11 : i64} {
  func.func @_conv3x3_kernel(%arg0: i32, %arg1: memref<1x326x4xbf16, #tpu.memory_space<vmem>>, %arg2: memref<9x4x4xbf16, #tpu.memory_space<vmem>>, %arg3: memref<1x4xf32, #tpu.memory_space<vmem>>, %arg4: memref<288x1xf32, #tpu.memory_space<vmem>>, %arg5: memref<1x326x4xbf16, #tpu.memory_space<vmem>>) attributes {dimension_semantics = [#tpu.dimension_semantics<parallel>], iteration_bounds = array<i64: 2>, scalar_prefetch = 0 : i64, scratch_operands = 0 : i64, tpu.core_type = #tpu.core_type<tc>, window_params = [{transform_indices = @transform_0, window_bounds = array<i64: 1, 326, 4>}, {pipeline_mode = #tpu.pipeline_mode<synchronous>, transform_indices = @transform_1, window_bounds = array<i64: 9, 4, 4>}, {pipeline_mode = #tpu.pipeline_mode<synchronous>, transform_indices = @transform_2, window_bounds = array<i64: 1, 4>}, {pipeline_mode = #tpu.pipeline_mode<synchronous>, transform_indices = @transform_3, window_bounds = array<i64: 288, 1>}, {transform_indices = @transform_4, window_bounds = array<i64: 1, 326, 4>}]} {
    %c0 = arith.constant 0 : index
    %c0_0 = arith.constant 0 : index
    %c0_1 = arith.constant 0 : index
    %0 = vector.load %arg1[%c0, %c0_0, %c0_1] : memref<1x326x4xbf16, #tpu.memory_space<vmem>>, vector<1x288x4xbf16>
    %1 = vector.shape_cast %0 : vector<1x288x4xbf16> to vector<288x4xbf16>
    %c0_2 = arith.constant 0 : index
    %c0_3 = arith.constant 0 : index
    %c0_4 = arith.constant 0 : index
    %2 = vector.load %arg2[%c0_2, %c0_3, %c0_4] : memref<9x4x4xbf16, #tpu.memory_space<vmem>>, vector<1x4x4xbf16>
    %3 = vector.shape_cast %2 : vector<1x4x4xbf16> to vector<4x4xbf16>
    %cst = arith.constant dense<0.000000e+00> : vector<288x4xf32>
    %4 = tpu.matmul %1, %3, %cst {dimension_numbers = #tpu.dot_dimension_numbers<[1], [0], [0], [1], [0, 0, 1, 1], [], []>} : vector<288x4xbf16>, vector<4x4xbf16>, vector<288x4xf32> -> vector<288x4xf32>
    %c0_5 = arith.constant 0 : index
    %c1 = arith.constant 1 : index
    %c0_6 = arith.constant 0 : index
    %5 = vector.load %arg1[%c0_5, %c1, %c0_6] : memref<1x326x4xbf16, #tpu.memory_space<vmem>>, vector<1x288x4xbf16>
    %6 = vector.shape_cast %5 : vector<1x288x4xbf16> to vector<288x4xbf16>
    %c1_7 = arith.constant 1 : index
    %c0_8 = arith.constant 0 : index
    %c0_9 = arith.constant 0 : index
    %7 = vector.load %arg2[%c1_7, %c0_8, %c0_9] : memref<9x4x4xbf16, #tpu.memory_space<vmem>>, vector<1x4x4xbf16>
    %8 = vector.shape_cast %7 : vector<1x4x4xbf16> to vector<4x4xbf16>
    %cst_10 = arith.constant dense<0.000000e+00> : vector<288x4xf32>
    %9 = tpu.matmul %6, %8, %cst_10 {dimension_numbers = #tpu.dot_dimension_numbers<[1], [0], [0], [1], [0, 0, 1, 1], [], []>} : vector<288x4xbf16>, vector<4x4xbf16>, vector<288x4xf32> -> vector<288x4xf32>
    %10 = arith.addf %4, %9 : vector<288x4xf32>
    %c0_11 = arith.constant 0 : index
    %c2 = arith.constant 2 : index
    %c0_12 = arith.constant 0 : index
    %11 = vector.load %arg1[%c0_11, %c2, %c0_12] : memref<1x326x4xbf16, #tpu.memory_space<vmem>>, vector<1x288x4xbf16>
    %12 = vector.shape_cast %11 : vector<1x288x4xbf16> to vector<288x4xbf16>
    %c2_13 = arith.constant 2 : index
    %c0_14 = arith.constant 0 : index
    %c0_15 = arith.constant 0 : index
    %13 = vector.load %arg2[%c2_13, %c0_14, %c0_15] : memref<9x4x4xbf16, #tpu.memory_space<vmem>>, vector<1x4x4xbf16>
    %14 = vector.shape_cast %13 : vector<1x4x4xbf16> to vector<4x4xbf16>
    %cst_16 = arith.constant dense<0.000000e+00> : vector<288x4xf32>
    %15 = tpu.matmul %12, %14, %cst_16 {dimension_numbers = #tpu.dot_dimension_numbers<[1], [0], [0], [1], [0, 0, 1, 1], [], []>} : vector<288x4xbf16>, vector<4x4xbf16>, vector<288x4xf32> -> vector<288x4xf32>
    %16 = arith.addf %10, %15 : vector<288x4xf32>
    %c0_17 = arith.constant 0 : index
    %c18 = arith.constant 18 : index
    %c0_18 = arith.constant 0 : index
    %17 = vector.load %arg1[%c0_17, %c18, %c0_18] : memref<1x326x4xbf16, #tpu.memory_space<vmem>>, vector<1x288x4xbf16>
    %18 = vector.shape_cast %17 : vector<1x288x4xbf16> to vector<288x4xbf16>
    %c3 = arith.constant 3 : index
    %c0_19 = arith.constant 0 : index
    %c0_20 = arith.constant 0 : index
    %19 = vector.load %arg2[%c3, %c0_19, %c0_20] : memref<9x4x4xbf16, #tpu.memory_space<vmem>>, vector<1x4x4xbf16>
    %20 = vector.shape_cast %19 : vector<1x4x4xbf16> to vector<4x4xbf16>
    %cst_21 = arith.constant dense<0.000000e+00> : vector<288x4xf32>
    %21 = tpu.matmul %18, %20, %cst_21 {dimension_numbers = #tpu.dot_dimension_numbers<[1], [0], [0], [1], [0, 0, 1, 1], [], []>} : vector<288x4xbf16>, vector<4x4xbf16>, vector<288x4xf32> -> vector<288x4xf32>
    %22 = arith.addf %16, %21 : vector<288x4xf32>
    %c0_22 = arith.constant 0 : index
    %c19 = arith.constant 19 : index
    %c0_23 = arith.constant 0 : index
    %23 = vector.load %arg1[%c0_22, %c19, %c0_23] : memref<1x326x4xbf16, #tpu.memory_space<vmem>>, vector<1x288x4xbf16>
    %24 = vector.shape_cast %23 : vector<1x288x4xbf16> to vector<288x4xbf16>
    %c4 = arith.constant 4 : index
    %c0_24 = arith.constant 0 : index
    %c0_25 = arith.constant 0 : index
    %25 = vector.load %arg2[%c4, %c0_24, %c0_25] : memref<9x4x4xbf16, #tpu.memory_space<vmem>>, vector<1x4x4xbf16>
    %26 = vector.shape_cast %25 : vector<1x4x4xbf16> to vector<4x4xbf16>
    %cst_26 = arith.constant dense<0.000000e+00> : vector<288x4xf32>
    %27 = tpu.matmul %24, %26, %cst_26 {dimension_numbers = #tpu.dot_dimension_numbers<[1], [0], [0], [1], [0, 0, 1, 1], [], []>} : vector<288x4xbf16>, vector<4x4xbf16>, vector<288x4xf32> -> vector<288x4xf32>
    %28 = arith.addf %22, %27 : vector<288x4xf32>
    %c0_27 = arith.constant 0 : index
    %c20 = arith.constant 20 : index
    %c0_28 = arith.constant 0 : index
    %29 = vector.load %arg1[%c0_27, %c20, %c0_28] : memref<1x326x4xbf16, #tpu.memory_space<vmem>>, vector<1x288x4xbf16>
    %30 = vector.shape_cast %29 : vector<1x288x4xbf16> to vector<288x4xbf16>
    %c5 = arith.constant 5 : index
    %c0_29 = arith.constant 0 : index
    %c0_30 = arith.constant 0 : index
    %31 = vector.load %arg2[%c5, %c0_29, %c0_30] : memref<9x4x4xbf16, #tpu.memory_space<vmem>>, vector<1x4x4xbf16>
    %32 = vector.shape_cast %31 : vector<1x4x4xbf16> to vector<4x4xbf16>
    %cst_31 = arith.constant dense<0.000000e+00> : vector<288x4xf32>
    %33 = tpu.matmul %30, %32, %cst_31 {dimension_numbers = #tpu.dot_dimension_numbers<[1], [0], [0], [1], [0, 0, 1, 1], [], []>} : vector<288x4xbf16>, vector<4x4xbf16>, vector<288x4xf32> -> vector<288x4xf32>
    %34 = arith.addf %28, %33 : vector<288x4xf32>
    %c0_32 = arith.constant 0 : index
    %c36 = arith.constant 36 : index
    %c0_33 = arith.constant 0 : index
    %35 = vector.load %arg1[%c0_32, %c36, %c0_33] : memref<1x326x4xbf16, #tpu.memory_space<vmem>>, vector<1x288x4xbf16>
    %36 = vector.shape_cast %35 : vector<1x288x4xbf16> to vector<288x4xbf16>
    %c6 = arith.constant 6 : index
    %c0_34 = arith.constant 0 : index
    %c0_35 = arith.constant 0 : index
    %37 = vector.load %arg2[%c6, %c0_34, %c0_35] : memref<9x4x4xbf16, #tpu.memory_space<vmem>>, vector<1x4x4xbf16>
    %38 = vector.shape_cast %37 : vector<1x4x4xbf16> to vector<4x4xbf16>
    %cst_36 = arith.constant dense<0.000000e+00> : vector<288x4xf32>
    %39 = tpu.matmul %36, %38, %cst_36 {dimension_numbers = #tpu.dot_dimension_numbers<[1], [0], [0], [1], [0, 0, 1, 1], [], []>} : vector<288x4xbf16>, vector<4x4xbf16>, vector<288x4xf32> -> vector<288x4xf32>
    %40 = arith.addf %34, %39 : vector<288x4xf32>
    %c0_37 = arith.constant 0 : index
    %c37 = arith.constant 37 : index
    %c0_38 = arith.constant 0 : index
    %41 = vector.load %arg1[%c0_37, %c37, %c0_38] : memref<1x326x4xbf16, #tpu.memory_space<vmem>>, vector<1x288x4xbf16>
    %42 = vector.shape_cast %41 : vector<1x288x4xbf16> to vector<288x4xbf16>
    %c7 = arith.constant 7 : index
    %c0_39 = arith.constant 0 : index
    %c0_40 = arith.constant 0 : index
    %43 = vector.load %arg2[%c7, %c0_39, %c0_40] : memref<9x4x4xbf16, #tpu.memory_space<vmem>>, vector<1x4x4xbf16>
    %44 = vector.shape_cast %43 : vector<1x4x4xbf16> to vector<4x4xbf16>
    %cst_41 = arith.constant dense<0.000000e+00> : vector<288x4xf32>
    %45 = tpu.matmul %42, %44, %cst_41 {dimension_numbers = #tpu.dot_dimension_numbers<[1], [0], [0], [1], [0, 0, 1, 1], [], []>} : vector<288x4xbf16>, vector<4x4xbf16>, vector<288x4xf32> -> vector<288x4xf32>
    %46 = arith.addf %40, %45 : vector<288x4xf32>
    %c0_42 = arith.constant 0 : index
    %c38 = arith.constant 38 : index
    %c0_43 = arith.constant 0 : index
    %47 = vector.load %arg1[%c0_42, %c38, %c0_43] : memref<1x326x4xbf16, #tpu.memory_space<vmem>>, vector<1x288x4xbf16>
    %48 = vector.shape_cast %47 : vector<1x288x4xbf16> to vector<288x4xbf16>
    %c8 = arith.constant 8 : index
    %c0_44 = arith.constant 0 : index
    %c0_45 = arith.constant 0 : index
    %49 = vector.load %arg2[%c8, %c0_44, %c0_45] : memref<9x4x4xbf16, #tpu.memory_space<vmem>>, vector<1x4x4xbf16>
    %50 = vector.shape_cast %49 : vector<1x4x4xbf16> to vector<4x4xbf16>
    %cst_46 = arith.constant dense<0.000000e+00> : vector<288x4xf32>
    %51 = tpu.matmul %48, %50, %cst_46 {dimension_numbers = #tpu.dot_dimension_numbers<[1], [0], [0], [1], [0, 0, 1, 1], [], []>} : vector<288x4xbf16>, vector<4x4xbf16>, vector<288x4xf32> -> vector<288x4xf32>
    %52 = arith.addf %46, %51 : vector<288x4xf32>
    %c0_47 = arith.constant 0 : index
    %c0_48 = arith.constant 0 : index
    %53 = vector.load %arg3[%c0_47, %c0_48] : memref<1x4xf32, #tpu.memory_space<vmem>>, vector<1x4xf32>
    %54 = vector.broadcast %53 : vector<1x4xf32> to vector<288x4xf32>
    %55 = arith.addf %52, %54 : vector<288x4xf32>
    %56 = arith.negf %55 : vector<288x4xf32>
    %57 = math.exp %56 : vector<288x4xf32>
    %cst_49 = arith.constant 1.000000e+00 : f32
    %58 = vector.broadcast %cst_49 : f32 to vector<288x4xf32>
    %59 = arith.addf %58, %57 : vector<288x4xf32>
    %60 = arith.divf %58, %59 : vector<288x4xf32>
    %61 = arith.mulf %55, %60 : vector<288x4xf32>
    %c0_50 = arith.constant 0 : index
    %c0_51 = arith.constant 0 : index
    %62 = vector.load %arg4[%c0_50, %c0_51] : memref<288x1xf32, #tpu.memory_space<vmem>>, vector<288x1xf32>
    %63 = vector.broadcast %62 : vector<288x1xf32> to vector<288x4xf32>
    %64 = arith.mulf %61, %63 : vector<288x4xf32>
    %cst_52 = arith.constant 0.000000e+00 : bf16
    %65 = vector.broadcast %cst_52 : bf16 to vector<1x326x4xbf16>
    %c0_53 = arith.constant 0 : index
    %c0_54 = arith.constant 0 : index
    %c0_55 = arith.constant 0 : index
    %66 = vector.load %arg5[%c0_53, %c0_54, %c0_55] : memref<1x326x4xbf16, #tpu.memory_space<vmem>>, vector<1x326x4xbf16>
    tpu.vector_store %arg5[%c0_53, %c0_54, %c0_55], %65 {strides = array<i32>} : memref<1x326x4xbf16, #tpu.memory_space<vmem>>, vector<1x326x4xbf16>,
    %67 = arith.truncf %64 : vector<288x4xf32> to vector<288x4xbf16>
    %c0_56 = arith.constant 0 : index
    %c19_57 = arith.constant 19 : index
    %c0_58 = arith.constant 0 : index
    %68 = vector.load %arg5[%c0_56, %c19_57, %c0_58] : memref<1x326x4xbf16, #tpu.memory_space<vmem>>, vector<1x288x4xbf16>
    %69 = vector.shape_cast %68 : vector<1x288x4xbf16> to vector<288x4xbf16>
    %70 = vector.shape_cast %67 : vector<288x4xbf16> to vector<1x288x4xbf16>
    tpu.vector_store %arg5[%c0_56, %c19_57, %c0_58], %70 {strides = array<i32>} : memref<1x326x4xbf16, #tpu.memory_space<vmem>>, vector<1x288x4xbf16>,
    return
  }
  func.func @transform_0(%arg0: i32) -> (i32, i32, i32) {
    %c0_i32 = arith.constant 0 : i32
    %c0_i32_0 = arith.constant 0 : i32
    %c0_i32_1 = arith.constant 0 : i32
    return %arg0, %c0_i32, %c0_i32_0 : i32, i32, i32
  }
  func.func @transform_1(%arg0: i32) -> (i32, i32, i32) {
    %c0_i32 = arith.constant 0 : i32
    %c0_i32_0 = arith.constant 0 : i32
    %c0_i32_1 = arith.constant 0 : i32
    %c0_i32_2 = arith.constant 0 : i32
    return %c0_i32, %c0_i32_0, %c0_i32_1 : i32, i32, i32
  }
  func.func @transform_2(%arg0: i32) -> (i32, i32) {
    %c0_i32 = arith.constant 0 : i32
    %c0_i32_0 = arith.constant 0 : i32
    %c0_i32_1 = arith.constant 0 : i32
    return %c0_i32, %c0_i32_0 : i32, i32
  }
  func.func @transform_3(%arg0: i32) -> (i32, i32) {
    %c0_i32 = arith.constant 0 : i32
    %c0_i32_0 = arith.constant 0 : i32
    %c0_i32_1 = arith.constant 0 : i32
    return %c0_i32, %c0_i32_0 : i32, i32
  }
  func.func @transform_4(%arg0: i32) -> (i32, i32, i32) {
    %c0_i32 = arith.constant 0 : i32
    %c0_i32_0 = arith.constant 0 : i32
    %c0_i32_1 = arith.constant 0 : i32
    return %arg0, %c0_i32, %c0_i32_0 : i32, i32, i32
  }
}

module attributes {stable_mosaic.version = 11 : i64} {
  func.func @_conv3x3_kernel(%arg0: i32, %arg1: memref<1x326x4xbf16, #tpu.memory_space<vmem>>, %arg2: memref<9x4x4xbf16, #tpu.memory_space<vmem>>, %arg3: memref<1x4xf32, #tpu.memory_space<vmem>>, %arg4: memref<288x1xf32, #tpu.memory_space<vmem>>, %arg5: memref<1x326x4xbf16, #tpu.memory_space<vmem>>, %arg6: memref<1x326x4xbf16, #tpu.memory_space<vmem>>) attributes {dimension_semantics = [#tpu.dimension_semantics<parallel>], iteration_bounds = array<i64: 2>, scalar_prefetch = 0 : i64, scratch_operands = 0 : i64, tpu.core_type = #tpu.core_type<tc>, window_params = [{transform_indices = @transform_0, window_bounds = array<i64: 1, 326, 4>}, {pipeline_mode = #tpu.pipeline_mode<synchronous>, transform_indices = @transform_1, window_bounds = array<i64: 9, 4, 4>}, {pipeline_mode = #tpu.pipeline_mode<synchronous>, transform_indices = @transform_2, window_bounds = array<i64: 1, 4>}, {pipeline_mode = #tpu.pipeline_mode<synchronous>, transform_indices = @transform_3, window_bounds = array<i64: 288, 1>}, {transform_indices = @transform_4, window_bounds = array<i64: 1, 326, 4>}, {transform_indices = @transform_5, window_bounds = array<i64: 1, 326, 4>}]} {
    %c0 = arith.constant 0 : index
    %c0_0 = arith.constant 0 : index
    %c0_1 = arith.constant 0 : index
    %0 = vector.load %arg1[%c0, %c0_0, %c0_1] : memref<1x326x4xbf16, #tpu.memory_space<vmem>>, vector<1x288x4xbf16>
    %1 = vector.shape_cast %0 : vector<1x288x4xbf16> to vector<288x4xbf16>
    %c0_2 = arith.constant 0 : index
    %c0_3 = arith.constant 0 : index
    %c0_4 = arith.constant 0 : index
    %2 = vector.load %arg2[%c0_2, %c0_3, %c0_4] : memref<9x4x4xbf16, #tpu.memory_space<vmem>>, vector<1x4x4xbf16>
    %3 = vector.shape_cast %2 : vector<1x4x4xbf16> to vector<4x4xbf16>
    %cst = arith.constant dense<0.000000e+00> : vector<288x4xf32>
    %4 = tpu.matmul %1, %3, %cst {dimension_numbers = #tpu.dot_dimension_numbers<[1], [0], [0], [1], [0, 0, 1, 1], [], []>} : vector<288x4xbf16>, vector<4x4xbf16>, vector<288x4xf32> -> vector<288x4xf32>
    %c0_5 = arith.constant 0 : index
    %c1 = arith.constant 1 : index
    %c0_6 = arith.constant 0 : index
    %5 = vector.load %arg1[%c0_5, %c1, %c0_6] : memref<1x326x4xbf16, #tpu.memory_space<vmem>>, vector<1x288x4xbf16>
    %6 = vector.shape_cast %5 : vector<1x288x4xbf16> to vector<288x4xbf16>
    %c1_7 = arith.constant 1 : index
    %c0_8 = arith.constant 0 : index
    %c0_9 = arith.constant 0 : index
    %7 = vector.load %arg2[%c1_7, %c0_8, %c0_9] : memref<9x4x4xbf16, #tpu.memory_space<vmem>>, vector<1x4x4xbf16>
    %8 = vector.shape_cast %7 : vector<1x4x4xbf16> to vector<4x4xbf16>
    %cst_10 = arith.constant dense<0.000000e+00> : vector<288x4xf32>
    %9 = tpu.matmul %6, %8, %cst_10 {dimension_numbers = #tpu.dot_dimension_numbers<[1], [0], [0], [1], [0, 0, 1, 1], [], []>} : vector<288x4xbf16>, vector<4x4xbf16>, vector<288x4xf32> -> vector<288x4xf32>
    %10 = arith.addf %4, %9 : vector<288x4xf32>
    %c0_11 = arith.constant 0 : index
    %c2 = arith.constant 2 : index
    %c0_12 = arith.constant 0 : index
    %11 = vector.load %arg1[%c0_11, %c2, %c0_12] : memref<1x326x4xbf16, #tpu.memory_space<vmem>>, vector<1x288x4xbf16>
    %12 = vector.shape_cast %11 : vector<1x288x4xbf16> to vector<288x4xbf16>
    %c2_13 = arith.constant 2 : index
    %c0_14 = arith.constant 0 : index
    %c0_15 = arith.constant 0 : index
    %13 = vector.load %arg2[%c2_13, %c0_14, %c0_15] : memref<9x4x4xbf16, #tpu.memory_space<vmem>>, vector<1x4x4xbf16>
    %14 = vector.shape_cast %13 : vector<1x4x4xbf16> to vector<4x4xbf16>
    %cst_16 = arith.constant dense<0.000000e+00> : vector<288x4xf32>
    %15 = tpu.matmul %12, %14, %cst_16 {dimension_numbers = #tpu.dot_dimension_numbers<[1], [0], [0], [1], [0, 0, 1, 1], [], []>} : vector<288x4xbf16>, vector<4x4xbf16>, vector<288x4xf32> -> vector<288x4xf32>
    %16 = arith.addf %10, %15 : vector<288x4xf32>
    %c0_17 = arith.constant 0 : index
    %c18 = arith.constant 18 : index
    %c0_18 = arith.constant 0 : index
    %17 = vector.load %arg1[%c0_17, %c18, %c0_18] : memref<1x326x4xbf16, #tpu.memory_space<vmem>>, vector<1x288x4xbf16>
    %18 = vector.shape_cast %17 : vector<1x288x4xbf16> to vector<288x4xbf16>
    %c3 = arith.constant 3 : index
    %c0_19 = arith.constant 0 : index
    %c0_20 = arith.constant 0 : index
    %19 = vector.load %arg2[%c3, %c0_19, %c0_20] : memref<9x4x4xbf16, #tpu.memory_space<vmem>>, vector<1x4x4xbf16>
    %20 = vector.shape_cast %19 : vector<1x4x4xbf16> to vector<4x4xbf16>
    %cst_21 = arith.constant dense<0.000000e+00> : vector<288x4xf32>
    %21 = tpu.matmul %18, %20, %cst_21 {dimension_numbers = #tpu.dot_dimension_numbers<[1], [0], [0], [1], [0, 0, 1, 1], [], []>} : vector<288x4xbf16>, vector<4x4xbf16>, vector<288x4xf32> -> vector<288x4xf32>
    %22 = arith.addf %16, %21 : vector<288x4xf32>
    %c0_22 = arith.constant 0 : index
    %c19 = arith.constant 19 : index
    %c0_23 = arith.constant 0 : index
    %23 = vector.load %arg1[%c0_22, %c19, %c0_23] : memref<1x326x4xbf16, #tpu.memory_space<vmem>>, vector<1x288x4xbf16>
    %24 = vector.shape_cast %23 : vector<1x288x4xbf16> to vector<288x4xbf16>
    %c4 = arith.constant 4 : index
    %c0_24 = arith.constant 0 : index
    %c0_25 = arith.constant 0 : index
    %25 = vector.load %arg2[%c4, %c0_24, %c0_25] : memref<9x4x4xbf16, #tpu.memory_space<vmem>>, vector<1x4x4xbf16>
    %26 = vector.shape_cast %25 : vector<1x4x4xbf16> to vector<4x4xbf16>
    %cst_26 = arith.constant dense<0.000000e+00> : vector<288x4xf32>
    %27 = tpu.matmul %24, %26, %cst_26 {dimension_numbers = #tpu.dot_dimension_numbers<[1], [0], [0], [1], [0, 0, 1, 1], [], []>} : vector<288x4xbf16>, vector<4x4xbf16>, vector<288x4xf32> -> vector<288x4xf32>
    %28 = arith.addf %22, %27 : vector<288x4xf32>
    %c0_27 = arith.constant 0 : index
    %c20 = arith.constant 20 : index
    %c0_28 = arith.constant 0 : index
    %29 = vector.load %arg1[%c0_27, %c20, %c0_28] : memref<1x326x4xbf16, #tpu.memory_space<vmem>>, vector<1x288x4xbf16>
    %30 = vector.shape_cast %29 : vector<1x288x4xbf16> to vector<288x4xbf16>
    %c5 = arith.constant 5 : index
    %c0_29 = arith.constant 0 : index
    %c0_30 = arith.constant 0 : index
    %31 = vector.load %arg2[%c5, %c0_29, %c0_30] : memref<9x4x4xbf16, #tpu.memory_space<vmem>>, vector<1x4x4xbf16>
    %32 = vector.shape_cast %31 : vector<1x4x4xbf16> to vector<4x4xbf16>
    %cst_31 = arith.constant dense<0.000000e+00> : vector<288x4xf32>
    %33 = tpu.matmul %30, %32, %cst_31 {dimension_numbers = #tpu.dot_dimension_numbers<[1], [0], [0], [1], [0, 0, 1, 1], [], []>} : vector<288x4xbf16>, vector<4x4xbf16>, vector<288x4xf32> -> vector<288x4xf32>
    %34 = arith.addf %28, %33 : vector<288x4xf32>
    %c0_32 = arith.constant 0 : index
    %c36 = arith.constant 36 : index
    %c0_33 = arith.constant 0 : index
    %35 = vector.load %arg1[%c0_32, %c36, %c0_33] : memref<1x326x4xbf16, #tpu.memory_space<vmem>>, vector<1x288x4xbf16>
    %36 = vector.shape_cast %35 : vector<1x288x4xbf16> to vector<288x4xbf16>
    %c6 = arith.constant 6 : index
    %c0_34 = arith.constant 0 : index
    %c0_35 = arith.constant 0 : index
    %37 = vector.load %arg2[%c6, %c0_34, %c0_35] : memref<9x4x4xbf16, #tpu.memory_space<vmem>>, vector<1x4x4xbf16>
    %38 = vector.shape_cast %37 : vector<1x4x4xbf16> to vector<4x4xbf16>
    %cst_36 = arith.constant dense<0.000000e+00> : vector<288x4xf32>
    %39 = tpu.matmul %36, %38, %cst_36 {dimension_numbers = #tpu.dot_dimension_numbers<[1], [0], [0], [1], [0, 0, 1, 1], [], []>} : vector<288x4xbf16>, vector<4x4xbf16>, vector<288x4xf32> -> vector<288x4xf32>
    %40 = arith.addf %34, %39 : vector<288x4xf32>
    %c0_37 = arith.constant 0 : index
    %c37 = arith.constant 37 : index
    %c0_38 = arith.constant 0 : index
    %41 = vector.load %arg1[%c0_37, %c37, %c0_38] : memref<1x326x4xbf16, #tpu.memory_space<vmem>>, vector<1x288x4xbf16>
    %42 = vector.shape_cast %41 : vector<1x288x4xbf16> to vector<288x4xbf16>
    %c7 = arith.constant 7 : index
    %c0_39 = arith.constant 0 : index
    %c0_40 = arith.constant 0 : index
    %43 = vector.load %arg2[%c7, %c0_39, %c0_40] : memref<9x4x4xbf16, #tpu.memory_space<vmem>>, vector<1x4x4xbf16>
    %44 = vector.shape_cast %43 : vector<1x4x4xbf16> to vector<4x4xbf16>
    %cst_41 = arith.constant dense<0.000000e+00> : vector<288x4xf32>
    %45 = tpu.matmul %42, %44, %cst_41 {dimension_numbers = #tpu.dot_dimension_numbers<[1], [0], [0], [1], [0, 0, 1, 1], [], []>} : vector<288x4xbf16>, vector<4x4xbf16>, vector<288x4xf32> -> vector<288x4xf32>
    %46 = arith.addf %40, %45 : vector<288x4xf32>
    %c0_42 = arith.constant 0 : index
    %c38 = arith.constant 38 : index
    %c0_43 = arith.constant 0 : index
    %47 = vector.load %arg1[%c0_42, %c38, %c0_43] : memref<1x326x4xbf16, #tpu.memory_space<vmem>>, vector<1x288x4xbf16>
    %48 = vector.shape_cast %47 : vector<1x288x4xbf16> to vector<288x4xbf16>
    %c8 = arith.constant 8 : index
    %c0_44 = arith.constant 0 : index
    %c0_45 = arith.constant 0 : index
    %49 = vector.load %arg2[%c8, %c0_44, %c0_45] : memref<9x4x4xbf16, #tpu.memory_space<vmem>>, vector<1x4x4xbf16>
    %50 = vector.shape_cast %49 : vector<1x4x4xbf16> to vector<4x4xbf16>
    %cst_46 = arith.constant dense<0.000000e+00> : vector<288x4xf32>
    %51 = tpu.matmul %48, %50, %cst_46 {dimension_numbers = #tpu.dot_dimension_numbers<[1], [0], [0], [1], [0, 0, 1, 1], [], []>} : vector<288x4xbf16>, vector<4x4xbf16>, vector<288x4xf32> -> vector<288x4xf32>
    %52 = arith.addf %46, %51 : vector<288x4xf32>
    %c0_47 = arith.constant 0 : index
    %c0_48 = arith.constant 0 : index
    %53 = vector.load %arg3[%c0_47, %c0_48] : memref<1x4xf32, #tpu.memory_space<vmem>>, vector<1x4xf32>
    %54 = vector.broadcast %53 : vector<1x4xf32> to vector<288x4xf32>
    %55 = arith.addf %52, %54 : vector<288x4xf32>
    %56 = arith.negf %55 : vector<288x4xf32>
    %57 = math.exp %56 : vector<288x4xf32>
    %cst_49 = arith.constant 1.000000e+00 : f32
    %58 = vector.broadcast %cst_49 : f32 to vector<288x4xf32>
    %59 = arith.addf %58, %57 : vector<288x4xf32>
    %60 = arith.divf %58, %59 : vector<288x4xf32>
    %61 = arith.mulf %55, %60 : vector<288x4xf32>
    %c0_50 = arith.constant 0 : index
    %c19_51 = arith.constant 19 : index
    %c0_52 = arith.constant 0 : index
    %62 = vector.load %arg5[%c0_50, %c19_51, %c0_52] : memref<1x326x4xbf16, #tpu.memory_space<vmem>>, vector<1x288x4xbf16>
    %63 = vector.shape_cast %62 : vector<1x288x4xbf16> to vector<288x4xbf16>
    %64 = arith.extf %63 : vector<288x4xbf16> to vector<288x4xf32>
    %65 = arith.addf %61, %64 : vector<288x4xf32>
    %c0_53 = arith.constant 0 : index
    %c0_54 = arith.constant 0 : index
    %66 = vector.load %arg4[%c0_53, %c0_54] : memref<288x1xf32, #tpu.memory_space<vmem>>, vector<288x1xf32>
    %67 = vector.broadcast %66 : vector<288x1xf32> to vector<288x4xf32>
    %68 = arith.mulf %65, %67 : vector<288x4xf32>
    %cst_55 = arith.constant 0.000000e+00 : bf16
    %69 = vector.broadcast %cst_55 : bf16 to vector<1x326x4xbf16>
    %c0_56 = arith.constant 0 : index
    %c0_57 = arith.constant 0 : index
    %c0_58 = arith.constant 0 : index
    %70 = vector.load %arg6[%c0_56, %c0_57, %c0_58] : memref<1x326x4xbf16, #tpu.memory_space<vmem>>, vector<1x326x4xbf16>
    tpu.vector_store %arg6[%c0_56, %c0_57, %c0_58], %69 {strides = array<i32>} : memref<1x326x4xbf16, #tpu.memory_space<vmem>>, vector<1x326x4xbf16>,
    %71 = arith.truncf %68 : vector<288x4xf32> to vector<288x4xbf16>
    %c0_59 = arith.constant 0 : index
    %c19_60 = arith.constant 19 : index
    %c0_61 = arith.constant 0 : index
    %72 = vector.load %arg6[%c0_59, %c19_60, %c0_61] : memref<1x326x4xbf16, #tpu.memory_space<vmem>>, vector<1x288x4xbf16>
    %73 = vector.shape_cast %72 : vector<1x288x4xbf16> to vector<288x4xbf16>
    %74 = vector.shape_cast %71 : vector<288x4xbf16> to vector<1x288x4xbf16>
    tpu.vector_store %arg6[%c0_59, %c19_60, %c0_61], %74 {strides = array<i32>} : memref<1x326x4xbf16, #tpu.memory_space<vmem>>, vector<1x288x4xbf16>,
    return
  }
  func.func @transform_0(%arg0: i32) -> (i32, i32, i32) {
    %c0_i32 = arith.constant 0 : i32
    %c0_i32_0 = arith.constant 0 : i32
    %c0_i32_1 = arith.constant 0 : i32
    return %arg0, %c0_i32, %c0_i32_0 : i32, i32, i32
  }
  func.func @transform_1(%arg0: i32) -> (i32, i32, i32) {
    %c0_i32 = arith.constant 0 : i32
    %c0_i32_0 = arith.constant 0 : i32
    %c0_i32_1 = arith.constant 0 : i32
    %c0_i32_2 = arith.constant 0 : i32
    return %c0_i32, %c0_i32_0, %c0_i32_1 : i32, i32, i32
  }
  func.func @transform_2(%arg0: i32) -> (i32, i32) {
    %c0_i32 = arith.constant 0 : i32
    %c0_i32_0 = arith.constant 0 : i32
    %c0_i32_1 = arith.constant 0 : i32
    return %c0_i32, %c0_i32_0 : i32, i32
  }
  func.func @transform_3(%arg0: i32) -> (i32, i32) {
    %c0_i32 = arith.constant 0 : i32
    %c0_i32_0 = arith.constant 0 : i32
    %c0_i32_1 = arith.constant 0 : i32
    return %c0_i32, %c0_i32_0 : i32, i32
  }
  func.func @transform_4(%arg0: i32) -> (i32, i32, i32) {
    %c0_i32 = arith.constant 0 : i32
    %c0_i32_0 = arith.constant 0 : i32
    %c0_i32_1 = arith.constant 0 : i32
    return %arg0, %c0_i32, %c0_i32_0 : i32, i32, i32
  }
  func.func @transform_5(%arg0: i32) -> (i32, i32, i32) {
    %c0_i32 = arith.constant 0 : i32
    %c0_i32_0 = arith.constant 0 : i32
    %c0_i32_1 = arith.constant 0 : i32
    return %arg0, %c0_i32, %c0_i32_0 : i32, i32, i32
  }
}

module attributes {stable_mosaic.version = 11 : i64} {
  func.func @_multi_in_1x1_kernel(%arg0: i32, %arg1: memref<256x4xbf16, #tpu.memory_space<vmem>>, %arg2: memref<256x4xbf16, #tpu.memory_space<vmem>>, %arg3: memref<256x4xbf16, #tpu.memory_space<vmem>>, %arg4: memref<4x8xbf16, #tpu.memory_space<vmem>>, %arg5: memref<4x8xbf16, #tpu.memory_space<vmem>>, %arg6: memref<4x8xbf16, #tpu.memory_space<vmem>>, %arg7: memref<1x8xf32, #tpu.memory_space<vmem>>, %arg8: memref<256x8xbf16, #tpu.memory_space<vmem>>) attributes {dimension_semantics = [#tpu.dimension_semantics<parallel>], iteration_bounds = array<i64: 2>, scalar_prefetch = 0 : i64, scratch_operands = 0 : i64, tpu.core_type = #tpu.core_type<tc>, window_params = [{transform_indices = @transform_0, window_bounds = array<i64: 256, 4>}, {transform_indices = @transform_1, window_bounds = array<i64: 256, 4>}, {transform_indices = @transform_2, window_bounds = array<i64: 256, 4>}, {pipeline_mode = #tpu.pipeline_mode<synchronous>, transform_indices = @transform_3, window_bounds = array<i64: 4, 8>}, {pipeline_mode = #tpu.pipeline_mode<synchronous>, transform_indices = @transform_4, window_bounds = array<i64: 4, 8>}, {pipeline_mode = #tpu.pipeline_mode<synchronous>, transform_indices = @transform_5, window_bounds = array<i64: 4, 8>}, {pipeline_mode = #tpu.pipeline_mode<synchronous>, transform_indices = @transform_6, window_bounds = array<i64: 1, 8>}, {transform_indices = @transform_7, window_bounds = array<i64: 256, 8>}]} {
    %c0 = arith.constant 0 : index
    %c0_0 = arith.constant 0 : index
    %0 = vector.load %arg1[%c0, %c0_0] : memref<256x4xbf16, #tpu.memory_space<vmem>>, vector<256x4xbf16>
    %c0_1 = arith.constant 0 : index
    %c0_2 = arith.constant 0 : index
    %1 = vector.load %arg4[%c0_1, %c0_2] : memref<4x8xbf16, #tpu.memory_space<vmem>>, vector<4x8xbf16>
    %cst = arith.constant dense<0.000000e+00> : vector<256x8xf32>
    %2 = tpu.matmul %0, %1, %cst {dimension_numbers = #tpu.dot_dimension_numbers<[1], [0], [0], [1], [0, 0, 1, 1], [], []>} : vector<256x4xbf16>, vector<4x8xbf16>, vector<256x8xf32> -> vector<256x8xf32>
    %c0_3 = arith.constant 0 : index
    %c0_4 = arith.constant 0 : index
    %3 = vector.load %arg2[%c0_3, %c0_4] : memref<256x4xbf16, #tpu.memory_space<vmem>>, vector<256x4xbf16>
    %c0_5 = arith.constant 0 : index
    %c0_6 = arith.constant 0 : index
    %4 = vector.load %arg5[%c0_5, %c0_6] : memref<4x8xbf16, #tpu.memory_space<vmem>>, vector<4x8xbf16>
    %cst_7 = arith.constant dense<0.000000e+00> : vector<256x8xf32>
    %5 = tpu.matmul %3, %4, %cst_7 {dimension_numbers = #tpu.dot_dimension_numbers<[1], [0], [0], [1], [0, 0, 1, 1], [], []>} : vector<256x4xbf16>, vector<4x8xbf16>, vector<256x8xf32> -> vector<256x8xf32>
    %6 = arith.addf %2, %5 : vector<256x8xf32>
    %c0_8 = arith.constant 0 : index
    %c0_9 = arith.constant 0 : index
    %7 = vector.load %arg3[%c0_8, %c0_9] : memref<256x4xbf16, #tpu.memory_space<vmem>>, vector<256x4xbf16>
    %c0_10 = arith.constant 0 : index
    %c0_11 = arith.constant 0 : index
    %8 = vector.load %arg6[%c0_10, %c0_11] : memref<4x8xbf16, #tpu.memory_space<vmem>>, vector<4x8xbf16>
    %cst_12 = arith.constant dense<0.000000e+00> : vector<256x8xf32>
    %9 = tpu.matmul %7, %8, %cst_12 {dimension_numbers = #tpu.dot_dimension_numbers<[1], [0], [0], [1], [0, 0, 1, 1], [], []>} : vector<256x4xbf16>, vector<4x8xbf16>, vector<256x8xf32> -> vector<256x8xf32>
    %10 = arith.addf %6, %9 : vector<256x8xf32>
    %c0_13 = arith.constant 0 : index
    %c0_14 = arith.constant 0 : index
    %11 = vector.load %arg7[%c0_13, %c0_14] : memref<1x8xf32, #tpu.memory_space<vmem>>, vector<1x8xf32>
    %12 = vector.broadcast %11 : vector<1x8xf32> to vector<256x8xf32>
    %13 = arith.addf %10, %12 : vector<256x8xf32>
    %14 = arith.negf %13 : vector<256x8xf32>
    %15 = math.exp %14 : vector<256x8xf32>
    %cst_15 = arith.constant 1.000000e+00 : f32
    %16 = vector.broadcast %cst_15 : f32 to vector<256x8xf32>
    %17 = arith.addf %16, %15 : vector<256x8xf32>
    %18 = arith.divf %16, %17 : vector<256x8xf32>
    %19 = arith.mulf %13, %18 : vector<256x8xf32>
    %20 = arith.truncf %19 : vector<256x8xf32> to vector<256x8xbf16>
    %c0_16 = arith.constant 0 : index
    %c0_17 = arith.constant 0 : index
    %21 = vector.load %arg8[%c0_16, %c0_17] : memref<256x8xbf16, #tpu.memory_space<vmem>>, vector<256x8xbf16>
    tpu.vector_store %arg8[%c0_16, %c0_17], %20 {strides = array<i32>} : memref<256x8xbf16, #tpu.memory_space<vmem>>, vector<256x8xbf16>,
    return
  }
  func.func @transform_0(%arg0: i32) -> (i32, i32) {
    %c0_i32 = arith.constant 0 : i32
    %c0_i32_0 = arith.constant 0 : i32
    return %arg0, %c0_i32 : i32, i32
  }
  func.func @transform_1(%arg0: i32) -> (i32, i32) {
    %c0_i32 = arith.constant 0 : i32
    %c0_i32_0 = arith.constant 0 : i32
    return %arg0, %c0_i32 : i32, i32
  }
  func.func @transform_2(%arg0: i32) -> (i32, i32) {
    %c0_i32 = arith.constant 0 : i32
    %c0_i32_0 = arith.constant 0 : i32
    return %arg0, %c0_i32 : i32, i32
  }
  func.func @transform_3(%arg0: i32) -> (i32, i32) {
    %c0_i32 = arith.constant 0 : i32
    %c0_i32_0 = arith.constant 0 : i32
    %c0_i32_1 = arith.constant 0 : i32
    return %c0_i32, %c0_i32_0 : i32, i32
  }
  func.func @transform_4(%arg0: i32) -> (i32, i32) {
    %c0_i32 = arith.constant 0 : i32
    %c0_i32_0 = arith.constant 0 : i32
    %c0_i32_1 = arith.constant 0 : i32
    return %c0_i32, %c0_i32_0 : i32, i32
  }
  func.func @transform_5(%arg0: i32) -> (i32, i32) {
    %c0_i32 = arith.constant 0 : i32
    %c0_i32_0 = arith.constant 0 : i32
    %c0_i32_1 = arith.constant 0 : i32
    return %c0_i32, %c0_i32_0 : i32, i32
  }
  func.func @transform_6(%arg0: i32) -> (i32, i32) {
    %c0_i32 = arith.constant 0 : i32
    %c0_i32_0 = arith.constant 0 : i32
    %c0_i32_1 = arith.constant 0 : i32
    return %c0_i32, %c0_i32_0 : i32, i32
  }
  func.func @transform_7(%arg0: i32) -> (i32, i32) {
    %c0_i32 = arith.constant 0 : i32
    %c0_i32_0 = arith.constant 0 : i32
    return %arg0, %c0_i32 : i32, i32
  }
}

</mosaic_0001>

<bundles_post_ra>
// kernel: csp_stage_forward.6
= control target key start
LH: loop header
LB: loop body
LE: loop exit
PB: predicated region body
PF: predicated region fallthrough
CT: control target
= control target key end

     0   :  { %s2319_s21 = smov 0   ;;  %s2976_s0 = inlined_call_operand.vmem [shape: bf16[512,4], index: 0, kind: input, shape index: {}]   ;;  %s2977_s1 = inlined_call_operand.vmem [shape: bf16[4,4], index: 1, kind: input, shape index: {}]   ;;  %s2978_s2 = inlined_call_operand.vmem [shape: f32[1,4], index: 2, kind: input, shape index: {}]   ;;  %s2979_s3 = inlined_call_operand.vmem [shape: bf16[4,4], index: 3, kind: input, shape index: {}]   ;;  %s2980_s4 = inlined_call_operand.vmem [shape: f32[1,4], index: 4, kind: input, shape index: {}]   ;;  %s2981_s5 = inlined_call_operand.vmem [shape: bf16[512,4], index: 5, kind: output, shape index: {0}]   ;;  %s2982_s6 = inlined_call_operand.vmem [shape: bf16[512,4], index: 6, kind: output, shape index: {1}]  }
   0x1 LB: > { %s1635_s22 = sadd.s32 4294967295, %s2282_s21   ;;  %p1639_p0 = scmp.ge.s32.totalorder %s2282_s21, 1  ;;  %s2282_s21 = sphi %s2319_s21, %s17_s21  }
   0x2   : > { %p216_p1 = scmp.lt.s32.totalorder %s2282_s21, 3 }
   0x4   : > { %p217_p2 = pnand %p1639_p0, %p216_p1 }
   0x6   : > { %220 = sbr.rel (%p217_p2) target bundleno = 384 (0x180), region = 40 }
   0xd   : > { %v302_v0 = vld [vmem:[%s2977_s1] sm:$0x3]  ;;  %vm439_vm0 = vcmask 1041408   ;;  %s1640_s27 = sshll.u32 %s1635_s22, 5  ;;  %vm390_vm1 = vcmask 31744   ;;  %vm956_vm2 = vcmask 27648  }
   0xe   : > { %v989_v1 = vld [vmem:[%s2979_s3] sm:$0x3]  ;;  %1992 = vmatprep.subr.msk.bf16.mxu0 %vm439_vm0, %v302_v0  ;;  %v441_v2 = vsel %vm439_vm0, %v302_v0, 0  ;;  %p252_p3 = scmp.lt.s32.totalorder %s1640_s27, 63 }
   0xf   : > { %1993 = vmatprep.subr.msk.bf16.mxu1 %vm439_vm0, %v989_v1  ;;  %v998_v3 = vsel %vm439_vm0, %v989_v1, 0  ;;  %1925 = vmatpush3.bf16.msra.mxu0 %v441_v2  ;;  %v2392_v20 = vld [vmem:[%s2978_s2] ss:$0 sm:$0xff] }
  0x10   : > { %1959 = vmatpush3.bf16.msra.mxu1 %v998_v3  ;;  %s2992_s27 = smov (!%p252_p3, %s1640_s27), 63  ;;  %v2397_v21 = vld [vmem:[%s2980_s4] ss:$0 sm:$0xff] }
  0x11   : > { %s2333_s28 = sshll.u32 %s2992_s27, 2 }
  0x12   : > { %s2339_s7 = scalar_lea.vmem %s2976_s0, %s2333_s28  ;;  %s2505_s14 = scalar_lea.vmem %s2981_s5, %s2333_s28 }
  0x13   : > { %v2002_v4 = vld [vmem:[%s2339_s7] sm:$0xff]   ;;  %v2003_v5 = vld [vmem:[%s2339_s7 + $0x8] sm:$0xff]   ;;  %v2004_v6 = vld [vmem:[%s2339_s7 + $0x10] sm:$0xff]   ;;  %s2516_s17 = scalar_lea.vmem %s2982_s6, %s2333_s28 }
  0x14   : > { %1926 = vmatprep.mubr.msk.bf16.mxu0 %vm390_vm1, %v2002_v4  ;;  %1960 = vmatprep.mubr.msk.bf16.mxu1 %vm390_vm1, %v2002_v4  ;;  %v2005_v7 = vld [vmem:[%s2339_s7 + $0x18] sm:$0xff]   ;;  %v2006_v8 = vld [vmem:[%s2339_s7 + $0x20] sm:$0xff]   ;;  %v2007_v9 = vld [vmem:[%s2339_s7 + $0x28] sm:$0xff]  }
  0x15   : > { %1927 = vmatmul.mubr.msk.bf16.vlgmr.msra.gmra.mrb[0].mxu0 %vm390_vm1, %v2003_v5  ;;  %1961 = vmatmul.mubr.msk.bf16.vlgmr.msra.gmra.mrb[0].mxu1 %vm390_vm1, %v2003_v5  ;;  %v2008_v10 = vld [vmem:[%s2339_s7 + $0x30] sm:$0xff]   ;;  %v2009_v11 = vld [vmem:[%s2339_s7 + $0x38] sm:$0xff]   ;;  %v2010_v12 = vld [vmem:[%s2339_s7 + $0x40] sm:$0xff]  }
  0x16   : > { %1930 = vmatprep.mubr.msk.bf16.mxu0 %vm390_vm1, %v2004_v6  ;;  %1964 = vmatprep.mubr.msk.bf16.mxu1 %vm390_vm1, %v2004_v6  ;;  %v2011_v13 = vld [vmem:[%s2339_s7 + $0x48] sm:$0xff]   ;;  %v2012_v14 = vld [vmem:[%s2339_s7 + $0x50] sm:$0xff]   ;;  %v2013_v15 = vld [vmem:[%s2339_s7 + $0x58] sm:$0xff]  }
  0x17   : > { %v2014_v16 = vld [vmem:[%s2339_s7 + $0x60] sm:$0xff]   ;;  %v2015_v17 = vld [vmem:[%s2339_s7 + $0x68] sm:$0xff]   ;;  %v2016_v18 = vld [vmem:[%s2339_s7 + $0x70] sm:$0xff]  }
  0x18   : > { %v2017_v19 = vld [vmem:[%s2339_s7 + $0x78] sm:$0xff]  }
  0x1d   : > { %1931 = vmatmul.mubr.msk.bf16.gmra.mrb[4].mxu0 %vm390_vm1, %v2005_v7  ;;  %1965 = vmatmul.mubr.msk.bf16.gmra.mrb[4].mxu1 %vm390_vm1, %v2005_v7 }
  0x1e   : > { %1934 = vmatprep.mubr.msk.bf16.mxu0 %vm390_vm1, %v2006_v8  ;;  %1968 = vmatprep.mubr.msk.bf16.mxu1 %vm390_vm1, %v2006_v8 }
  0x25   : > { %1935 = vmatmul.mubr.msk.bf16.gmra.mrb[8].mxu0 %vm390_vm1, %v2007_v9  ;;  %1969 = vmatmul.mubr.msk.bf16.gmra.mrb[8].mxu1 %vm390_vm1, %v2007_v9 }
  0x26   : > { %1938 = vmatprep.mubr.msk.bf16.mxu0 %vm390_vm1, %v2008_v10  ;;  %1972 = vmatprep.mubr.msk.bf16.mxu1 %vm390_vm1, %v2008_v10 }
  0x2d   : > { %1939 = vmatmul.mubr.msk.bf16.gmra.mrb[12].mxu0 %vm390_vm1, %v2009_v11  ;;  %1973 = vmatmul.mubr.msk.bf16.gmra.mrb[12].mxu1 %vm390_vm1, %v2009_v11 }
  0x2e   : > { %1942 = vmatprep.mubr.msk.bf16.mxu0 %vm390_vm1, %v2010_v12  ;;  %1976 = vmatprep.mubr.msk.bf16.mxu1 %vm390_vm1, %v2010_v12 }
  0x35   : > { %1943 = vmatmul.mubr.msk.bf16.gmra.mrb[16].mxu0 %vm390_vm1, %v2011_v13  ;;  %1977 = vmatmul.mubr.msk.bf16.gmra.mrb[16].mxu1 %vm390_vm1, %v2011_v13 }
  0x36   : > { %1946 = vmatprep.mubr.msk.bf16.mxu0 %vm390_vm1, %v2012_v14  ;;  %1980 = vmatprep.mubr.msk.bf16.mxu1 %vm390_vm1, %v2012_v14 }
  0x3d   : > { %1947 = vmatmul.mubr.msk.bf16.gmra.mrb[20].mxu0 %vm390_vm1, %v2013_v15  ;;  %1981 = vmatmul.mubr.msk.bf16.gmra.mrb[20].mxu1 %vm390_vm1, %v2013_v15 }
  0x3e   : > { %1950 = vmatprep.mubr.msk.bf16.mxu0 %vm390_vm1, %v2014_v16  ;;  %1984 = vmatprep.mubr.msk.bf16.mxu1 %vm390_vm1, %v2014_v16 }
  0x45   : > { %1951 = vmatmul.mubr.msk.bf16.gmra.mrb[24].mxu0 %vm390_vm1, %v2015_v17  ;;  %1985 = vmatmul.mubr.msk.bf16.gmra.mrb[24].mxu1 %vm390_vm1, %v2015_v17 }
  0x46   : > { %1954 = vmatprep.mubr.msk.bf16.mxu0 %vm390_vm1, %v2016_v18  ;;  %1988 = vmatprep.mubr.msk.bf16.mxu1 %vm390_vm1, %v2016_v18 }
  0x4d   : > { %1955 = vmatmul.mubr.msk.bf16.gmra.mrb[28].mxu0 %vm390_vm1, %v2017_v19  ;;  %1989 = vmatmul.mubr.msk.bf16.gmra.mrb[28].mxu1 %vm390_vm1, %v2017_v19 }
  0xe8   : > { %v1928_v22 = vpop.f32.mrb[0].mxu0  ;;  %v1962_v23 = vpop.f32.mrb[0].mxu1 }
  0xe9   : > { %v2400_v24 = vadd.f32 %v1928_v22, %v2392_v20  ;;  %v2403_v25 = vadd.f32 %v1962_v23, %v2397_v21  ;;  %v477_v26 = vpop.f32.mrb[1].mxu0  ;;  %v1034_v27 = vpop.f32.mrb[1].mxu1 }
  0xea   : > { %v2406_v28 = vadd.f32 %v2392_v20, %v477_v26  ;;  %v2409_v29 = vadd.f32 %v2397_v21, %v1034_v27  ;;  %v1929_v30 = vpop.f32.mrb[2].mxu0  ;;  %v1963_v31 = vpop.f32.mrb[2].mxu1 }
  0xeb   : > { %v1681_v32 = vmul.f32 -1.442695, %v2400_v24  ;;  %v1762_v33 = vmul.f32 -1.442695, %v2403_v25  ;;  %v2414_v34 = vadd.f32 %v1929_v30, %v2392_v20  ;;  %v2417_v35 = vadd.f32 %v1963_v31, %v2397_v21  ;;  %v480_v36 = vpop.f32.mrb[3].mxu0  ;;  %v1037_v37 = vpop.f32.mrb[3].mxu1 }
  0xec   : > { %v1679_v38 = vmul.f32 -1.442695, %v2406_v28  ;;  %v1760_v39 = vmul.f32 -1.442695, %v2409_v29  ;;  %v2422_v40 = vadd.f32 %v2392_v20, %v480_v36  ;;  %v2425_v41 = vadd.f32 %v2397_v21, %v1037_v37 }
  0xed   : > { %2018 = vpow2.f32 %v1681_v32  ;;  %v1682_v42 = vmul.f32 -1.442695, %v2414_v34  ;;  %v1763_v43 = vmul.f32 -1.442695, %v2417_v35 }
  0xee   : > { %2020 = vpow2.f32 %v1762_v33  ;;  %v1680_v44 = vmul.f32 -1.442695, %v2422_v40  ;;  %v1761_v45 = vmul.f32 -1.442695, %v2425_v41 }
  0xef   : > { %2022 = vpow2.f32 %v1679_v38 }
  0xf0   : > { %2024 = vpow2.f32 %v1760_v39  ;;  %v1932_v46 = vpop.f32.mrb[4].mxu0  ;;  %v1966_v47 = vpop.f32.mrb[4].mxu1 }
  0xf1   : > { %2026 = vpow2.f32 %v1682_v42  ;;  %v2432_v48 = vadd.f32 %v1932_v46, %v2392_v20  ;;  %v2435_v49 = vadd.f32 %v1966_v47, %v2397_v21  ;;  %v493_v50 = vpop.f32.mrb[5].mxu0  ;;  %v1050_v51 = vpop.f32.mrb[5].mxu1 }
  0xf2   : > { %2028 = vpow2.f32 %v1763_v43  ;;  %v2438_v52 = vadd.f32 %v2392_v20, %v493_v50  ;;  %v2441_v53 = vadd.f32 %v2397_v21, %v1050_v51  ;;  %v1933_v54 = vpop.f32.mrb[6].mxu0  ;;  %v1967_v55 = vpop.f32.mrb[6].mxu1 }
  0xf3   : > { %2030 = vpow2.f32 %v1680_v44  ;;  %v1685_v56 = vmul.f32 -1.442695, %v2432_v48  ;;  %v1766_v57 = vmul.f32 -1.442695, %v2435_v49  ;;  %v2446_v58 = vadd.f32 %v1933_v54, %v2392_v20  ;;  %v496_v59 = vpop.f32.mrb[7].mxu0  ;;  %v1053_v60 = vpop.f32.mrb[7].mxu1 }
  0xf4   : > { %2032 = vpow2.f32 %v1761_v45  ;;  %v1683_v61 = vmul.f32 -1.442695, %v2438_v52  ;;  %v1764_v62 = vmul.f32 -1.442695, %v2441_v53  ;;  %v2452_v18 = vadd.f32 %v1967_v55, %v2397_v21 }
  0xf5   : > { %2034 = vpow2.f32 %v1685_v56  ;;  %v1686_v63 = vmul.f32 -1.442695, %v2446_v58  ;;  %v2455_v26 = vadd.f32 %v2392_v20, %v496_v59  ;;  %v2458_v31 = vadd.f32 %v2397_v21, %v1053_v60 }
  0xf6   : > { %2036 = vpow2.f32 %v1766_v57  ;;  %v1767_v39 = vmul.f32 -1.442695, %v2452_v18 }
  0xf7   : > { %v2019_v0 = vpop.eup %2018  ;;  %2038 = vpow2.f32 %v1683_v61  ;;  %v1684_v46 = vmul.f32 -1.442695, %v2455_v26  ;;  %v1765_v56 = vmul.f32 -1.442695, %v2458_v31 }
  0xf8   : > { %v2021_v1 = vpop.eup %2020  ;;  %v702_v2 = vadd.f32 1.0, %v2019_v0  ;;  %2040 = vpow2.f32 %v1764_v62  ;;  %v1936_v3 = vpop.f32.mrb[8].mxu0 }
  0xf9   : > { %v1970_v4 = vpop.f32.mrb[8].mxu1  ;;  %v2023_v5 = vpop.eup %2022  ;;  %v1259_v6 = vadd.f32 1.0, %v2021_v1  ;;  %2042 = vpow2.f32 %v1686_v63  ;;  %v2461_v36 = vadd.f32 %v1936_v3, %v2392_v20 }
  0xfa   : > { %v509_v7 = vpop.f32.mrb[9].mxu0  ;;  %v1066_v8 = vpop.f32.mrb[9].mxu1  ;;  %2044 = vrcp.f32 %v702_v2  ;;  %v700_v10 = vadd.f32 1.0, %v2023_v5  ;;  %v2465_v42 = vadd.f32 %v1970_v4, %v2397_v21 }
  0xfb   : > { %v2025_v9 = vpop.eup %2024  ;;  %v1937_v11 = vpop.f32.mrb[10].mxu0  ;;  %2046 = vrcp.f32 %v1259_v6  ;;  %v2471_v47 = vadd.f32 %v2392_v20, %v509_v7  ;;  %v2479_v57 = vadd.f32 %v2397_v21, %v1066_v8  ;;  %v1689_v63 = vmul.f32 -1.442695, %v2461_v36 }
  0xfc   : > { %v1971_v12 = vpop.f32.mrb[10].mxu1  ;;  %v2027_v13 = vpop.eup %2026  ;;  %v1257_v14 = vadd.f32 1.0, %v2025_v9  ;;  %2048 = vrcp.f32 %v700_v10  ;;  %v1770_v4 = vmul.f32 -1.442695, %v2465_v42  ;;  %v2492_v5 = vadd.f32 %v1937_v11, %v2392_v20 }
  0xfd   : > { %v512_v15 = vpop.f32.mrb[11].mxu0  ;;  %v2029_v16 = vpop.eup %2028  ;;  %v703_v17 = vadd.f32 1.0, %v2027_v13  ;;  %v1687_v9 = vmul.f32 -1.442695, %v2471_v47  ;;  %v2499_v10 = vadd.f32 %v1971_v12, %v2397_v21 }
  0xfe   : > { %v1069_v19 = vpop.f32.mrb[11].mxu1  ;;  %v2031_v22 = vpop.eup %2030  ;;  %2050 = vrcp.f32 %v1257_v14  ;;  %v1260_v23 = vadd.f32 1.0, %v2029_v16  ;;  %v1768_v14 = vmul.f32 -1.442695, %v2479_v57 }
  0xff   : > { %v2033_v27 = vpop.eup %2032  ;;  %2052 = vrcp.f32 %v703_v17  ;;  %v701_v30 = vadd.f32 1.0, %v2031_v22  ;;  %v2520_v22 = vadd.f32 %v2397_v21, %v1069_v19 }
 0x100   : > { %v2035_v32 = vpop.eup %2034  ;;  %2054 = vrcp.f32 %v1260_v23  ;;  %v1258_v33 = vadd.f32 1.0, %v2033_v27  ;;  %v2467_v43 = vpop.f32.mrb[12].mxu0 }
 0x101   : > { %v2037_v37 = vpop.eup %2036  ;;  %2056 = vrcp.f32 %v701_v30  ;;  %v706_v38 = vadd.f32 1.0, %v2035_v32  ;;  %v2473_v50 = vpop.f32.mrb[12].mxu1 }
 0x102   : > { %v2039_v44 = vpop.eup %2038  ;;  %2058 = vrcp.f32 %v1258_v33  ;;  %v1263_v45 = vadd.f32 1.0, %v2037_v37  ;;  %v2475_v51 = vpop.f32.mrb[13].mxu0  ;;  %v1771_v37 = vmul.f32 -1.442695, %v2499_v10 }
 0x103   : > { %v2041_v54 = vpop.eup %2040  ;;  %2060 = vrcp.f32 %v706_v38  ;;  %v704_v55 = vadd.f32 1.0, %v2039_v44  ;;  %v2481_v59 = vpop.f32.mrb[13].mxu1 }
 0x104   : > { %v2483_v60 = vpop.f32.mrb[14].mxu0  ;;  %v2043_v61 = vpop.eup %2042  ;;  %2062 = vrcp.f32 %v1263_v45  ;;  %v1261_v62 = vadd.f32 1.0, %v2041_v54 }
 0x105   : > { %v2486_v0 = vpop.f32.mrb[14].mxu1  ;;  %v2488_v1 = vpop.f32.mrb[15].mxu0  ;;  %2064 = vrcp.f32 %v704_v55  ;;  %v707_v3 = vadd.f32 1.0, %v2043_v61 }
 0x106   : > { %v2045_v2 = vpop.eup %2044  ;;  %v2494_v6 = vpop.f32.mrb[15].mxu1  ;;  %2066 = vrcp.f32 %v1261_v62 }
 0x107   : > { %v2047_v7 = vpop.eup %2046  ;;  %v798_v8 = vmul.f32 %v2045_v2, %v2400_v24  ;;  %2068 = vrcp.f32 %v707_v3  ;;  %v2510_v24 = vadd.f32 %v2392_v20, %v512_v15  ;;  %v1690_v15 = vmul.f32 -1.442695, %v2492_v5 }
 0x108   : > { %v2049_v13 = vpop.eup %2048  ;;  %v1355_v11 = vmul.f32 %v2047_v7, %v2403_v25  ;;  %2070 = vpow2.f32 %v1767_v39  ;;  %v2524_v30 = vpop.f32.mrb[16].mxu0 }
 0x109   : > { %v2051_v16 = vpop.eup %2050  ;;  %v1828_v17 = vpack.c.bf16 %v798_v8, %v798_v8  ;;  %v796_v12 = vmul.f32 %v2049_v13, %v2406_v28  ;;  %2072 = vpow2.f32 %v1684_v46  ;;  %v2526_v32 = vpop.f32.mrb[16].mxu1  ;;  %v2541_v46 = vadd.f32 %v2467_v43, %v2392_v20 }
 0x10a   : > { %v2053_v25 = vpop.eup %2052  ;;  %v1860_v23 = vpack.c.bf16 %v1355_v11, %v1355_v11  ;;  %v1353_v27 = vmul.f32 %v2051_v16, %v2409_v29  ;;  %2074 = vpow2.f32 %v1765_v56  ;;  %v2532_v38 = vpop.f32.mrb[17].mxu0  ;;  %v1769_v8 = vmul.f32 -1.442695, %v2520_v22 }
 0x10b   : > { %v2055_v33 = vpop.eup %2054  ;;  %959 = vst.msk [vmem:[%s2505_s14 + $0x8] sm:$0xf] %vm956_vm2, %v1828_v17  ;;  %v1826_v28 = vpack.c.bf16 %v796_v12, %v796_v12  ;;  %v799_v19 = vmul.f32 %v2053_v25, %v2414_v34  ;;  %v2534_v29 = vpop.f32.mrb[17].mxu1  ;;  %2076 = vpow2.f32 %v1689_v63 }
 0x10c   : > { %v2057_v39 = vpop.eup %2056  ;;  %1515 = vst.msk [vmem:[%s2516_s17 + $0x8] sm:$0xf] %vm956_vm2, %v1860_v23  ;;  %v1858_v44 = vpack.c.bf16 %v1353_v27, %v1353_v27  ;;  %v1356_v45 = vmul.f32 %v2055_v33, %v2417_v35  ;;  %v2543_v34 = vpop.f32.mrb[18].mxu0  ;;  %2078 = vpow2.f32 %v1770_v4  ;;  %v2552_v35 = vadd.f32 %v2473_v50, %v2397_v21 }
 0x10d   : > { %v2545_v54 = vpop.f32.mrb[18].mxu1  ;;  %v2059_v55 = vpop.eup %2058  ;;  %957 = vst.msk [vmem:[%s2505_s14] sm:$0xf] %vm956_vm2, %v1826_v28  ;;  %v1829_v56 = vpack.c.bf16 %v799_v19, %v799_v19  ;;  %v797_v61 = vmul.f32 %v2057_v39, %v2422_v40  ;;  %2080 = vpow2.f32 %v1687_v9  ;;  %v1688_v40 = vmul.f32 -1.442695, %v2510_v24 }
 0x10e   : > { %v2554_v62 = vpop.f32.mrb[19].mxu0  ;;  %v2556_v43 = vpop.f32.mrb[19].mxu1  ;;  %1513 = vst.msk [vmem:[%s2516_s17] sm:$0xf] %vm956_vm2, %v1858_v44  ;;  %v1861_v2 = vpack.c.bf16 %v1356_v45, %v1356_v45  ;;  %v1354_v3 = vmul.f32 %v2059_v55, %v2425_v41  ;;  %2082 = vpow2.f32 %v1768_v14  ;;  %v1693_v9 = vmul.f32 -1.442695, %v2541_v46 }
 0x10f   : > { %v2061_v63 = vpop.eup %2060  ;;  %960 = vst.msk [vmem:[%s2505_s14 + $0xc] sm:$0xf] %vm956_vm2, %v1829_v56  ;;  %v1827_v50 = vpack.c.bf16 %v797_v61, %v797_v61  ;;  %2084 = vpow2.f32 %v1690_v15  ;;  %v1774_v14 = vmul.f32 -1.442695, %v2552_v35 }
 0x110   : > { %v2063_v4 = vpop.eup %2062  ;;  %v802_v7 = vmul.f32 %v2061_v63, %v2432_v48  ;;  %1516 = vst.msk [vmem:[%s2516_s17 + $0xc] sm:$0xf] %vm956_vm2, %v1861_v2  ;;  %v1859_v11 = vpack.c.bf16 %v1354_v3, %v1354_v3  ;;  %2086 = vpow2.f32 %v1771_v37  ;;  %v2577_v23 = vpop.f32.mrb[20].mxu0 }
 0x111   : > { %v2065_v13 = vpop.eup %2064  ;;  %v1359_v41 = vmul.f32 %v2063_v4, %v2435_v49  ;;  %958 = vst.msk [vmem:[%s2505_s14 + $0x4] sm:$0xf] %vm956_vm2, %v1827_v50  ;;  %2088 = vpow2.f32 %v1688_v40  ;;  %v2579_v27 = vpop.f32.mrb[20].mxu1  ;;  %v2606_v50 = vadd.f32 %v2392_v20, %v2475_v51  ;;  %v2615_v51 = vadd.f32 %v2397_v21, %v2481_v59 }
 0x112   : > { %v2067_v16 = vpop.eup %2066  ;;  %v1832_v17 = vpack.c.bf16 %v802_v7, %v802_v7  ;;  %v800_v48 = vmul.f32 %v2065_v13, %v2438_v52  ;;  %1514 = vst.msk [vmem:[%s2516_s17 + $0x4] sm:$0xf] %vm956_vm2, %v1859_v11  ;;  %2090 = vpow2.f32 %v1769_v8  ;;  %v2584_v28 = vpop.f32.mrb[21].mxu0 }
 0x113   : > { %v2069_v12 = vpop.eup %2068  ;;  %v1864_v25 = vpack.c.bf16 %v1359_v41, %v1359_v41  ;;  %v1357_v49 = vmul.f32 %v2067_v16, %v2441_v53  ;;  %v2586_v19 = vpop.f32.mrb[21].mxu1  ;;  %2092 = vpow2.f32 %v1693_v9 }
 0x114   : > { %v2071_v15 = vpop.eup %2070  ;;  %963 = vst.msk [vmem:[%s2505_s14 + $0x18] sm:$0xf] %vm956_vm2, %v1832_v17  ;;  %v1830_v52 = vpack.c.bf16 %v800_v48, %v800_v48  ;;  %v803_v33 = vmul.f32 %v2069_v12, %v2446_v58  ;;  %v2590_v44 = vpop.f32.mrb[22].mxu0  ;;  %2094 = vpow2.f32 %v1774_v14  ;;  %v1691_v12 = vmul.f32 -1.442695, %v2606_v50 }
 0x115   : > { %v2073_v37 = vpop.eup %2072  ;;  %1519 = vst.msk [vmem:[%s2516_s17 + $0x18] sm:$0xf] %vm956_vm2, %v1864_v25  ;;  %v1862_v53 = vpack.c.bf16 %v1357_v49, %v1357_v49  ;;  %v1264_v39 = vadd.f32 1.0, %v2071_v15  ;;  %v2592_v45 = vpop.f32.mrb[22].mxu1 }
 0x116   : > { %v2075_v55 = vpop.eup %2074  ;;  %961 = vst.msk [vmem:[%s2505_s14 + $0x10] sm:$0xf] %vm956_vm2, %v1830_v52  ;;  %v1833_v58 = vpack.c.bf16 %v803_v33, %v803_v33  ;;  %v705_v56 = vadd.f32 1.0, %v2073_v37  ;;  %v2596_v61 = vpop.f32.mrb[23].mxu0  ;;  %v2623_v33 = vadd.f32 %v2483_v60, %v2392_v20  ;;  %v2627_v37 = vadd.f32 %v2486_v0, %v2397_v21 }
 0x117   : > { %v2598_v63 = vpop.f32.mrb[23].mxu1  ;;  %v2077_v2 = vpop.eup %2076  ;;  %1517 = vst.msk [vmem:[%s2516_s17 + $0x10] sm:$0xf] %vm956_vm2, %v1862_v53  ;;  %2096 = vrcp.f32 %v1264_v39  ;;  %v1262_v3 = vadd.f32 1.0, %v2075_v55 }
 0x118   : > { %v2079_v40 = vpop.eup %2078  ;;  %964 = vst.msk [vmem:[%s2505_s14 + $0x1c] sm:$0xf] %vm956_vm2, %v1833_v58  ;;  %2098 = vrcp.f32 %v705_v56  ;;  %v710_v4 = vadd.f32 1.0, %v2077_v2  ;;  %v2608_v16 = vpop.f32.mrb[24].mxu0  ;;  %v2635_v58 = vadd.f32 %v2392_v20, %v2488_v1  ;;  %v2639_v56 = vadd.f32 %v2397_v21, %v2494_v6 }
 0x119   : > { %v2081_v7 = vpop.eup %2080  ;;  %2100 = vrcp.f32 %v1262_v3  ;;  %v1267_v8 = vadd.f32 1.0, %v2079_v40  ;;  %v2610_v17 = vpop.f32.mrb[24].mxu1  ;;  %v2647_v40 = vadd.f32 %v2524_v30, %v2392_v20  ;;  %v1772_v6 = vmul.f32 -1.442695, %v2615_v51 }
 0x11a   : > { %v2083_v13 = vpop.eup %2082  ;;  %2102 = vrcp.f32 %v710_v4  ;;  %v708_v11 = vadd.f32 1.0, %v2081_v7  ;;  %v2617_v25 = vpop.f32.mrb[25].mxu0  ;;  %v2651_v4 = vadd.f32 %v2526_v32, %v2397_v21  ;;  %v1775_v30 = vmul.f32 -1.442695, %v2627_v37 }
 0x11b   : > { %v2085_v41 = vpop.eup %2084  ;;  %2104 = vrcp.f32 %v1267_v8  ;;  %v1265_v9 = vadd.f32 1.0, %v2083_v13  ;;  %v2619_v49 = vpop.f32.mrb[25].mxu1  ;;  %v2656_v8 = vadd.f32 %v2392_v20, %v2532_v38  ;;  %v1697_v38 = vmul.f32 -1.442695, %v2647_v40 }
 0x11c   : > { %v2087_v48 = vpop.eup %2086  ;;  %2106 = vrcp.f32 %v708_v11  ;;  %v711_v14 = vadd.f32 1.0, %v2085_v41  ;;  %v2629_v53 = vpop.f32.mrb[26].mxu0  ;;  %v1694_v41 = vmul.f32 -1.442695, %v2623_v33 }
 0x11d   : > { %v2089_v15 = vpop.eup %2088  ;;  %2108 = vrcp.f32 %v1265_v9  ;;  %v1268_v52 = vadd.f32 1.0, %v2087_v48  ;;  %v2631_v39 = vpop.f32.mrb[26].mxu1  ;;  %v1692_v48 = vmul.f32 -1.442695, %v2635_v58 }
 0x11e   : > { %v2091_v59 = vpop.eup %2090  ;;  %2110 = vrcp.f32 %v711_v14  ;;  %v709_v55 = vadd.f32 1.0, %v2089_v15  ;;  %v2641_v60 = vpop.f32.mrb[27].mxu0  ;;  %v1773_v14 = vmul.f32 -1.442695, %v2639_v56 }
 0x11f   : > { %v2643_v2 = vpop.f32.mrb[27].mxu1  ;;  %v2093_v0 = vpop.eup %2092  ;;  %2112 = vrcp.f32 %v1268_v52  ;;  %v1266_v3 = vadd.f32 1.0, %v2091_v59  ;;  %v1778_v59 = vmul.f32 -1.442695, %v2651_v4 }
 0x120   : > { %2983 = vst [vmem:[#allocation2_spill] sm:$0xff] %v2643_v2  ;;  %v2095_v1 = vpop.eup %2094  ;;  %2114 = vrcp.f32 %v709_v55  ;;  %v714_v7 = vadd.f32 1.0, %v2093_v0  ;;  %v2666_v55 = vpop.f32.mrb[28].mxu0 }
 0x121   : > { %v2097_v13 = vpop.eup %2096  ;;  %2116 = vrcp.f32 %v1266_v3  ;;  %v1271_v11 = vadd.f32 1.0, %v2095_v1  ;;  %v2668_v0 = vpop.f32.mrb[28].mxu1 }
 0x122   : > { %v2099_v9 = vpop.eup %2098  ;;  %v1360_v32 = vmul.f32 %v2097_v13, %v2452_v18  ;;  %2118 = vrcp.f32 %v714_v7  ;;  %2984 = vst [vmem:[#allocation3_spill] sm:$0xff] %v2668_v0  ;;  %v1695_v7 = vmul.f32 -1.442695, %v2656_v8  ;;  %v2672_v13 = vpop.f32.mrb[29].mxu0  ;;  %v2679_v0 = vadd.f32 %v2397_v21, %v2534_v29 }
 0x123   : > { %v2101_v15 = vpop.eup %2100  ;;  %v801_v52 = vmul.f32 %v2099_v9, %v2455_v26  ;;  %2120 = vrcp.f32 %v1271_v11  ;;  %v2674_v26 = vpop.f32.mrb[29].mxu1 }
 0x124   : > { %v2103_v3 = vpop.eup %2102  ;;  %v1865_v18 = vpack.c.bf16 %v1360_v32, %v1360_v32  ;;  %v1358_v1 = vmul.f32 %v2101_v15, %v2458_v31  ;;  %2122 = vpow2.f32 %v1691_v12  ;;  %2985 = vst [vmem:[#allocation4_spill] sm:$0xff] %v2674_v26  ;;  %v2681_v32 = vpop.f32.mrb[30].mxu0 }
 0x125   : > { %v2105_v11 = vpop.eup %2104  ;;  %v1831_v9 = vpack.c.bf16 %v801_v52, %v801_v52  ;;  %v806_v2 = vmul.f32 %v2103_v3, %v2461_v36  ;;  %2124 = vpow2.f32 %v1772_v6  ;;  %v2683_v31 = vpop.f32.mrb[30].mxu1  ;;  %v2690_v36 = vadd.f32 %v2543_v34, %v2392_v20 }
 0x126   : > { %2986 = vst [vmem:[#allocation5_spill] sm:$0xff] %v2683_v31  ;;  %v2107_v12 = vpop.eup %2106  ;;  %1520 = vst.msk [vmem:[%s2516_s17 + $0x1c] sm:$0xf] %vm956_vm2, %v1865_v18  ;;  %v1863_v15 = vpack.c.bf16 %v1358_v1, %v1358_v1  ;;  %v1363_v26 = vmul.f32 %v2105_v11, %v2465_v42  ;;  %2126 = vpow2.f32 %v1694_v41  ;;  %v2692_v6 = vpop.f32.mrb[31].mxu0  ;;  %v2701_v42 = vadd.f32 %v2545_v54, %v2397_v21 }
 0x127   : > { %v2694_v29 = vpop.f32.mrb[31].mxu1  ;;  %v2109_v52 = vpop.eup %2108  ;;  %962 = vst.msk [vmem:[%s2505_s14 + $0x14] sm:$0xf] %vm956_vm2, %v1831_v9  ;;  %v1836_v3 = vpack.c.bf16 %v806_v2, %v806_v2  ;;  %v804_v31 = vmul.f32 %v2107_v12, %v2471_v47  ;;  %2128 = vpow2.f32 %v1775_v30  ;;  %v2708_v1 = vadd.f32 %v2392_v20, %v2554_v62 }
 0x128   : > { %v2111_v41 = vpop.eup %2110  ;;  %1518 = vst.msk [vmem:[%s2516_s17 + $0x14] sm:$0xf] %vm956_vm2, %v1863_v15  ;;  %v1868_v34 = vpack.c.bf16 %v1363_v26, %v1363_v26  ;;  %v1361_v18 = vmul.f32 %v2109_v52, %v2479_v57  ;;  %2130 = vpow2.f32 %v1692_v48  ;;  %v1776_v54 = vmul.f32 -1.442695, %v2679_v0 }
 0x129   : > { %v2113_v2 = vpop.eup %2112  ;;  %967 = vst.msk [vmem:[%s2505_s14 + $0x28] sm:$0xf] %vm956_vm2, %v1836_v3  ;;  %v1834_v47 = vpack.c.bf16 %v804_v31, %v804_v31  ;;  %v807_v30 = vmul.f32 %v2111_v41, %v2492_v5  ;;  %2132 = vpow2.f32 %v1773_v14  ;;  %v1698_v62 = vmul.f32 -1.442695, %v2690_v36 }
 0x12a   : > { %v2115_v11 = vpop.eup %2114  ;;  %1523 = vst.msk [vmem:[%s2516_s17 + $0x28] sm:$0xf] %vm956_vm2, %v1868_v34  ;;  %v1866_v57 = vpack.c.bf16 %v1361_v18, %v1361_v18  ;;  %v1364_v48 = vmul.f32 %v2113_v2, %v2499_v10  ;;  %2134 = vpow2.f32 %v1697_v38  ;;  %v1779_v14 = vmul.f32 -1.442695, %v2701_v42 }
 0x12b   : > { %v2117_v26 = vpop.eup %2116  ;;  %965 = vst.msk [vmem:[%s2505_s14 + $0x20] sm:$0xf] %vm956_vm2, %v1834_v47  ;;  %v1837_v9 = vpack.c.bf16 %v807_v30, %v807_v30  ;;  %v805_v5 = vmul.f32 %v2115_v11, %v2510_v24  ;;  %2136 = vpow2.f32 %v1778_v59  ;;  %v1696_v38 = vmul.f32 -1.442695, %v2708_v1 }
 0x12c   : > { %v2119_v31 = vpop.eup %2118  ;;  %1521 = vst.msk [vmem:[%s2516_s17 + $0x20] sm:$0xf] %vm956_vm2, %v1866_v57  ;;  %v1869_v12 = vpack.c.bf16 %v1364_v48, %v1364_v48  ;;  %v1362_v10 = vmul.f32 %v2117_v26, %v2520_v22  ;;  %2138 = vpow2.f32 %v1695_v7  ;;  %v2742_v48 = vadd.f32 %v2397_v21, %v2556_v43 }
 0x12d   : > { %v2121_v15 = vpop.eup %2120  ;;  %968 = vst.msk [vmem:[%s2505_s14 + $0x2c] sm:$0xf] %vm956_vm2, %v1837_v9  ;;  %v1835_v52 = vpack.c.bf16 %v805_v5, %v805_v5  ;;  %v810_v24 = vmul.f32 %v2119_v31, %v2541_v46  ;;  %2140 = vpow2.f32 %v1776_v54 }
 0x12e   : > { %v2123_v59 = vpop.eup %2122  ;;  %1524 = vst.msk [vmem:[%s2516_s17 + $0x2c] sm:$0xf] %vm956_vm2, %v1869_v12  ;;  %v1867_v3 = vpack.c.bf16 %v1362_v10, %v1362_v10  ;;  %v1367_v41 = vmul.f32 %v2121_v15, %v2552_v35  ;;  %2142 = vpow2.f32 %v1698_v62  ;;  %v2746_v12 = vadd.f32 %v2577_v23, %v2392_v20 }
 0x12f   : > { %v2125_v22 = vpop.eup %2124  ;;  %966 = vst.msk [vmem:[%s2505_s14 + $0x24] sm:$0xf] %vm956_vm2, %v1835_v52  ;;  %v1840_v7 = vpack.c.bf16 %v810_v24, %v810_v24  ;;  %v712_v34 = vadd.f32 1.0, %v2123_v59  ;;  %2144 = vpow2.f32 %v1779_v14  ;;  %v2750_v10 = vadd.f32 %v2579_v27, %v2397_v21 }
 0x130   : > { %v2127_v18 = vpop.eup %2126  ;;  %1522 = vst.msk [vmem:[%s2516_s17 + $0x24] sm:$0xf] %vm956_vm2, %v1867_v3  ;;  %v1872_v46 = vpack.c.bf16 %v1367_v41, %v1367_v41  ;;  %v1269_v2 = vadd.f32 1.0, %v2125_v22  ;;  %2146 = vpow2.f32 %v1696_v38  ;;  %v1777_v15 = vmul.f32 -1.442695, %v2742_v48 }
 0x131   : > { %v2129_v47 = vpop.eup %2128  ;;  %971 = vst.msk [vmem:[%s2505_s14 + $0x38] sm:$0xf] %vm956_vm2, %v1840_v7  ;;  %2148 = vrcp.f32 %v712_v34  ;;  %v715_v30 = vadd.f32 1.0, %v2127_v18  ;;  %v2755_v52 = vadd.f32 %v2392_v20, %v2584_v28  ;;  %v2759_v23 = vadd.f32 %v2397_v21, %v2586_v19 }
 0x132   : > { %v2131_v35 = vpop.eup %2130  ;;  %1527 = vst.msk [vmem:[%s2516_s17 + $0x38] sm:$0xf] %vm956_vm2, %v1872_v46  ;;  %2150 = vrcp.f32 %v1269_v2  ;;  %v1272_v54 = vadd.f32 1.0, %v2129_v47  ;;  %v2763_v27 = vadd.f32 %v2590_v44, %v2392_v20  ;;  %v2767_v22 = vadd.f32 %v2592_v45, %v2397_v21 }
 0x133   : > { %v2133_v11 = vpop.eup %2132  ;;  %2152 = vrcp.f32 %v715_v30  ;;  %v713_v57 = vadd.f32 1.0, %v2131_v35  ;;  %v2771_v28 = vadd.f32 %v2392_v20, %v2596_v61  ;;  %v1701_v19 = vmul.f32 -1.442695, %v2746_v12 }
 0x134   : > { %v2135_v62 = vpop.eup %2134  ;;  %2154 = vrcp.f32 %v1272_v54  ;;  %v1270_v26 = vadd.f32 1.0, %v2133_v11  ;;  %v1782_v18 = vmul.f32 -1.442695, %v2750_v10  ;;  %v1699_v2 = vmul.f32 -1.442695, %v2755_v52 }
 0x135   : > { %v2137_v9 = vpop.eup %2136  ;;  %2156 = vrcp.f32 %v713_v57  ;;  %v718_v5 = vadd.f32 1.0, %v2135_v62  ;;  %v2778_v45 = vadd.f32 %v2397_v21, %v2598_v63  ;;  %v1780_v30 = vmul.f32 -1.442695, %v2759_v23 }
 0x136   : > { %v2139_v14 = vpop.eup %2138  ;;  %2158 = vrcp.f32 %v1270_v26  ;;  %v1275_v31 = vadd.f32 1.0, %v2137_v9  ;;  %v1702_v35 = vmul.f32 -1.442695, %v2763_v27  ;;  %v1783_v57 = vmul.f32 -1.442695, %v2767_v22 }
 0x137   : > { %v2141_v38 = vpop.eup %2140  ;;  %2160 = vrcp.f32 %v718_v5  ;;  %v716_v43 = vadd.f32 1.0, %v2139_v14  ;;  %v1700_v62 = vmul.f32 -1.442695, %v2771_v28 }
 0x138   : > { %v2143_v24 = vpop.eup %2142  ;;  %2162 = vrcp.f32 %v1275_v31  ;;  %v1273_v59 = vadd.f32 1.0, %v2141_v38 }
 0x139   : > { %v2145_v3 = vpop.eup %2144  ;;  %2164 = vrcp.f32 %v716_v43  ;;  %v719_v41 = vadd.f32 1.0, %v2143_v24 }
 0x13a   : > { %v2147_v7 = vpop.eup %2146  ;;  %2166 = vrcp.f32 %v1273_v59  ;;  %v1276_v34 = vadd.f32 1.0, %v2145_v3  ;;  %v2805_v59 = vadd.f32 %v2392_v20, %v2617_v25 }
 0x13b   : > { %v2149_v44 = vpop.eup %2148  ;;  %2168 = vrcp.f32 %v719_v41  ;;  %v717_v46 = vadd.f32 1.0, %v2147_v7 }
 0x13c   : > { %v2151_v47 = vpop.eup %2150  ;;  %v808_v61 = vmul.f32 %v2149_v44, %v2606_v50  ;;  %2170 = vrcp.f32 %v1276_v34  ;;  %v2789_v50 = vadd.f32 %v2608_v16, %v2392_v20  ;;  %v2798_v16 = vadd.f32 %v2610_v17, %v2397_v21 }
 0x13d   : > { %v2153_v54 = vpop.eup %2152  ;;  %v1365_v11 = vmul.f32 %v2151_v47, %v2615_v51  ;;  %2172 = vrcp.f32 %v717_v46  ;;  %v1781_v51 = vmul.f32 -1.442695, %v2778_v45  ;;  %v2812_v17 = vadd.f32 %v2397_v21, %v2619_v49 }
 0x13e   : > { %v2155_v26 = vpop.eup %2154  ;;  %v1838_v63 = vpack.c.bf16 %v808_v61, %v808_v61  ;;  %v811_v9 = vmul.f32 %v2153_v54, %v2623_v33  ;;  %2174 = vpow2.f32 %v1777_v15  ;;  %v1705_v20 = vmul.f32 -1.442695, %v2789_v50 }
 0x13f   : > { %v2157_v5 = vpop.eup %2156  ;;  %v1870_v14 = vpack.c.bf16 %v1365_v11, %v1365_v11  ;;  %v1368_v31 = vmul.f32 %v2155_v26, %v2627_v37  ;;  %2176 = vpow2.f32 %v1701_v19  ;;  %v1786_v21 = vmul.f32 -1.442695, %v2798_v16 }
 0x140   : > { %v2159_v38 = vpop.eup %2158  ;;  %969 = vst.msk [vmem:[%s2505_s14 + $0x30] sm:$0xf] %vm956_vm2, %v1838_v63  ;;  %v1841_v43 = vpack.c.bf16 %v811_v9, %v811_v9  ;;  %v809_v24 = vmul.f32 %v2157_v5, %v2635_v58  ;;  %2178 = vpow2.f32 %v1782_v18  ;;  %v1703_v44 = vmul.f32 -1.442695, %v2805_v59 }
 0x141   : > { %v2161_v33 = vpop.eup %2160  ;;  %1525 = vst.msk [vmem:[%s2516_s17 + $0x30] sm:$0xf] %vm956_vm2, %v1870_v14  ;;  %v1873_v37 = vpack.c.bf16 %v1368_v31, %v1368_v31  ;;  %v1366_v15 = vmul.f32 %v2159_v38, %v2639_v56  ;;  %2180 = vpow2.f32 %v1699_v2  ;;  %v1784_v47 = vmul.f32 -1.442695, %v2812_v17 }
 0x142   : > { %v2163_v3 = vpop.eup %2162  ;;  %972 = vst.msk [vmem:[%s2505_s14 + $0x3c] sm:$0xf] %vm956_vm2, %v1841_v43  ;;  %v1839_v58 = vpack.c.bf16 %v809_v24, %v809_v24  ;;  %v814_v41 = vmul.f32 %v2161_v33, %v2647_v40  ;;  %2182 = vpow2.f32 %v1780_v30 }
 0x143   : > { %v2165_v7 = vpop.eup %2164  ;;  %1528 = vst.msk [vmem:[%s2516_s17 + $0x3c] sm:$0xf] %vm956_vm2, %v1873_v37  ;;  %v1871_v56 = vpack.c.bf16 %v1366_v15, %v1366_v15  ;;  %v1371_v34 = vmul.f32 %v2163_v3, %v2651_v4  ;;  %2184 = vpow2.f32 %v1702_v35  ;;  %v2274_v3 = vld [vmem:[%s2978_s2] ss:$0 sm:$0xff] }
 0x144   : > { %v2167_v25 = vpop.eup %2166  ;;  %970 = vst.msk [vmem:[%s2505_s14 + $0x34] sm:$0xf] %vm956_vm2, %v1839_v58  ;;  %v1844_v40 = vpack.c.bf16 %v814_v41, %v814_v41  ;;  %v812_v19 = vmul.f32 %v2165_v7, %v2656_v8  ;;  %2186 = vpow2.f32 %v1783_v57  ;;  %v2848_v58 = vadd.f32 %v2274_v3, %v2629_v53  ;;  %v2275_v41 = vld [vmem:[%s2980_s4] ss:$0 sm:$0xff] }
 0x145   : > { %v2169_v49 = vpop.eup %2168  ;;  %1526 = vst.msk [vmem:[%s2516_s17 + $0x34] sm:$0xf] %vm956_vm2, %v1871_v56  ;;  %v1876_v18 = vpack.c.bf16 %v1371_v34, %v1371_v34  ;;  %v1369_v4 = vmul.f32 %v2167_v25, %v2679_v0  ;;  %2188 = vpow2.f32 %v1700_v62  ;;  %v2854_v7 = vadd.f32 %v2275_v41, %v2631_v39  ;;  %v2987_v25 = vld [vmem:[#allocation2_spill] sm:$0xff] }
 0x146   : > { %v2171_v46 = vpop.eup %2170  ;;  %975 = vst.msk [vmem:[%s2505_s14 + $0x48] sm:$0xf] %vm956_vm2, %v1844_v40  ;;  %v1842_v2 = vpack.c.bf16 %v812_v19, %v812_v19  ;;  %v815_v8 = vmul.f32 %v2169_v49, %v2690_v36  ;;  %2190 = vpow2.f32 %v1781_v51  ;;  %v2860_v40 = vadd.f32 %v2275_v41, %v2987_v25  ;;  %v2988_v49 = vld [vmem:[#allocation3_spill] sm:$0xff] }
 0x147   : > { %v2173_v61 = vpop.eup %2172  ;;  %1531 = vst.msk [vmem:[%s2516_s17 + $0x48] sm:$0xf] %vm956_vm2, %v1876_v18  ;;  %v1874_v30 = vpack.c.bf16 %v1369_v4, %v1369_v4  ;;  %v1372_v0 = vmul.f32 %v2171_v46, %v2701_v42  ;;  %2192 = vpow2.f32 %v1705_v20  ;;  %v2857_v20 = vadd.f32 %v2274_v3, %v2641_v60  ;;  %v2989_v60 = vld [vmem:[#allocation4_spill] sm:$0xff] }
 0x148   : > { %v2175_v35 = vpop.eup %2174  ;;  %973 = vst.msk [vmem:[%s2505_s14 + $0x40] sm:$0xf] %vm956_vm2, %v1842_v2  ;;  %v1845_v54 = vpack.c.bf16 %v815_v8, %v815_v8  ;;  %v813_v11 = vmul.f32 %v2173_v61, %v2708_v1  ;;  %2194 = vpow2.f32 %v1786_v21  ;;  %v2863_v21 = vadd.f32 %v2274_v3, %v2666_v55 }
 0x149   : > { %v2177_v36 = vpop.eup %2176  ;;  %1529 = vst.msk [vmem:[%s2516_s17 + $0x40] sm:$0xf] %vm956_vm2, %v1874_v30  ;;  %v1877_v57 = vpack.c.bf16 %v1372_v0, %v1372_v0  ;;  %v1274_v62 = vadd.f32 1.0, %v2175_v35  ;;  %2196 = vpow2.f32 %v1703_v44  ;;  %v2866_v18 = vadd.f32 %v2275_v41, %v2988_v49 }
 0x14a   : > { %v2179_v26 = vpop.eup %2178  ;;  %976 = vst.msk [vmem:[%s2505_s14 + $0x4c] sm:$0xf] %vm956_vm2, %v1845_v54  ;;  %v1843_v42 = vpack.c.bf16 %v813_v11, %v813_v11  ;;  %v722_v63 = vadd.f32 1.0, %v2177_v36  ;;  %2198 = vpow2.f32 %v1784_v47  ;;  %v2869_v44 = vadd.f32 %v2274_v3, %v2672_v13 }
 0x14b   : > { %v2181_v9 = vpop.eup %2180  ;;  %1532 = vst.msk [vmem:[%s2516_s17 + $0x4c] sm:$0xf] %vm956_vm2, %v1877_v57  ;;  %2200 = vrcp.f32 %v1274_v62  ;;  %v1279_v5 = vadd.f32 1.0, %v2179_v26  ;;  %v2872_v46 = vadd.f32 %v2275_v41, %v2989_v60  ;;  %v1706_v47 = vmul.f32 -1.442695, %v2848_v58 }
 0x14c   : > { %v2183_v1 = vpop.eup %2182  ;;  %974 = vst.msk [vmem:[%s2505_s14 + $0x44] sm:$0xf] %vm956_vm2, %v1843_v42  ;;  %2202 = vrcp.f32 %v722_v63  ;;  %v720_v14 = vadd.f32 1.0, %v2181_v9  ;;  %v1787_v55 = vmul.f32 -1.442695, %v2854_v7 }
 0x14d   : > { %v2185_v31 = vpop.eup %2184  ;;  %2204 = vrcp.f32 %v1279_v5  ;;  %v1277_v51 = vadd.f32 1.0, %v2183_v1  ;;  %v1704_v0 = vmul.f32 -1.442695, %v2857_v20  ;;  %v1785_v35 = vmul.f32 -1.442695, %v2860_v40 }
 0x14e   : > { %v2187_v38 = vpop.eup %2186  ;;  %2206 = vrcp.f32 %v720_v14  ;;  %v723_v43 = vadd.f32 1.0, %v2185_v31  ;;  %v1709_v11 = vmul.f32 -1.442695, %v2863_v21  ;;  %v1790_v36 = vmul.f32 -1.442695, %v2866_v18 }
 0x14f   : > { %v2189_v24 = vpop.eup %2188  ;;  %2208 = vrcp.f32 %v1277_v51  ;;  %v1280_v33 = vadd.f32 1.0, %v2187_v38  ;;  %v1707_v26 = vmul.f32 -1.442695, %v2869_v44  ;;  %v1788_v42 = vmul.f32 -1.442695, %v2872_v46 }
 0x150   : > { %v2191_v37 = vpop.eup %2190  ;;  %2210 = vrcp.f32 %v723_v43  ;;  %v721_v15 = vadd.f32 1.0, %v2189_v24 }
 0x151   : > { %v2193_v56 = vpop.eup %2192  ;;  %2212 = vrcp.f32 %v1280_v33  ;;  %v1278_v34 = vadd.f32 1.0, %v2191_v37  ;;  %v2902_v37 = vadd.f32 %v2275_v41, %v2694_v29 }
 0x152   : > { %v2195_v19 = vpop.eup %2194  ;;  %2214 = vrcp.f32 %v721_v15  ;;  %v726_v53 = vadd.f32 1.0, %v2193_v56 }
 0x153   : > { %v2197_v39 = vpop.eup %2196  ;;  %2216 = vrcp.f32 %v1278_v34  ;;  %v1283_v4 = vadd.f32 1.0, %v2195_v19 }
 0x154   : > { %v2199_v2 = vpop.eup %2198  ;;  %2218 = vrcp.f32 %v726_v53  ;;  %v724_v8 = vadd.f32 1.0, %v2197_v39  ;;  %v1789_v39 = vmul.f32 -1.442695, %v2902_v37 }
 0x155   : > { %v2201_v61 = vpop.eup %2200  ;;  %2220 = vrcp.f32 %v1283_v4  ;;  %v1281_v30 = vadd.f32 1.0, %v2199_v2 }
 0x156   : > { %v2203_v54 = vpop.eup %2202  ;;  %v1370_v13 = vmul.f32 %v2201_v61, %v2742_v48  ;;  %2222 = vrcp.f32 %v724_v8  ;;  %v2886_v48 = vadd.f32 %v2274_v3, %v2681_v32  ;;  %v2896_v32 = vadd.f32 %v2274_v3, %v2692_v6 }
 0x157   : > { %v2205_v57 = vpop.eup %2204  ;;  %v818_v62 = vmul.f32 %v2203_v54, %v2746_v12  ;;  %2224 = vrcp.f32 %v1281_v30  ;;  %v2990_v12 = vld [vmem:[#allocation5_spill] sm:$0xff] }
 0x158   : > { %v2207_v63 = vpop.eup %2206  ;;  %v1875_v9 = vpack.c.bf16 %v1370_v13, %v1370_v13  ;;  %v1375_v5 = vmul.f32 %v2205_v57, %v2750_v10  ;;  %2226 = vpow2.f32 %v1706_v47  ;;  %v2890_v51 = vadd.f32 %v2275_v41, %v2990_v12 }
 0x159   : > { %v2209_v1 = vpop.eup %2208  ;;  %v1848_v14 = vpack.c.bf16 %v818_v62, %v818_v62  ;;  %v816_v31 = vmul.f32 %v2207_v63, %v2755_v52  ;;  %2228 = vpow2.f32 %v1787_v55  ;;  %v1710_v6 = vmul.f32 -1.442695, %v2886_v48 }
 0x15a   : > { %v2211_v38 = vpop.eup %2210  ;;  %1530 = vst.msk [vmem:[%s2516_s17 + $0x44] sm:$0xf] %vm956_vm2, %v1875_v9  ;;  %v1880_v43 = vpack.c.bf16 %v1375_v5, %v1375_v5  ;;  %v1373_v24 = vmul.f32 %v2209_v1, %v2759_v23  ;;  %2230 = vpow2.f32 %v1704_v0  ;;  %v1791_v29 = vmul.f32 -1.442695, %v2890_v51 }
 0x15b   : > { %v2213_v10 = vpop.eup %2212  ;;  %979 = vst.msk [vmem:[%s2505_s14 + $0x58] sm:$0xf] %vm956_vm2, %v1848_v14  ;;  %v1846_v52 = vpack.c.bf16 %v816_v31, %v816_v31  ;;  %v819_v33 = vmul.f32 %v2211_v38, %v2763_v27  ;;  %2232 = vpow2.f32 %v1785_v35  ;;  %v1708_v19 = vmul.f32 -1.442695, %v2896_v32 }
 0x15c   : > { %v2215_v15 = vpop.eup %2214  ;;  %1535 = vst.msk [vmem:[%s2516_s17 + $0x58] sm:$0xf] %vm956_vm2, %v1880_v43  ;;  %v1878_v23 = vpack.c.bf16 %v1373_v24, %v1373_v24  ;;  %v1376_v56 = vmul.f32 %v2213_v10, %v2767_v22  ;;  %2234 = vpow2.f32 %v1709_v11 }
 0x15d   : > { %v2217_v3 = vpop.eup %2216  ;;  %977 = vst.msk [vmem:[%s2505_s14 + $0x50] sm:$0xf] %vm956_vm2, %v1846_v52  ;;  %v1849_v34 = vpack.c.bf16 %v819_v33, %v819_v33  ;;  %v817_v27 = vmul.f32 %v2215_v15, %v2771_v28  ;;  %2236 = vpow2.f32 %v1790_v36 }
 0x15e   : > { %v2219_v41 = vpop.eup %2218  ;;  %1533 = vst.msk [vmem:[%s2516_s17 + $0x50] sm:$0xf] %vm956_vm2, %v1878_v23  ;;  %v1881_v25 = vpack.c.bf16 %v1376_v56, %v1376_v56  ;;  %v1374_v22 = vmul.f32 %v2217_v3, %v2778_v45  ;;  %2238 = vpow2.f32 %v1707_v26 }
 0x15f   : > { %v2221_v53 = vpop.eup %2220  ;;  %980 = vst.msk [vmem:[%s2505_s14 + $0x5c] sm:$0xf] %vm956_vm2, %v1849_v34  ;;  %v1847_v49 = vpack.c.bf16 %v817_v27, %v817_v27  ;;  %v822_v28 = vmul.f32 %v2219_v41, %v2789_v50  ;;  %2240 = vpow2.f32 %v1788_v42 }
 0x160   : > { %v2223_v4 = vpop.eup %2222  ;;  %1536 = vst.msk [vmem:[%s2516_s17 + $0x5c] sm:$0xf] %vm956_vm2, %v1881_v25  ;;  %v1879_v60 = vpack.c.bf16 %v1374_v22, %v1374_v22  ;;  %v1379_v45 = vmul.f32 %v2221_v53, %v2798_v16  ;;  %2242 = vpow2.f32 %v1710_v6 }
 0x161   : > { %v2225_v2 = vpop.eup %2224  ;;  %978 = vst.msk [vmem:[%s2505_s14 + $0x54] sm:$0xf] %vm956_vm2, %v1847_v49  ;;  %v1852_v8 = vpack.c.bf16 %v822_v28, %v822_v28  ;;  %v820_v47 = vmul.f32 %v2223_v4, %v2805_v59  ;;  %2244 = vpow2.f32 %v1791_v29 }
 0x162   : > { %v2227_v50 = vpop.eup %2226  ;;  %1534 = vst.msk [vmem:[%s2516_s17 + $0x54] sm:$0xf] %vm956_vm2, %v1879_v60  ;;  %v1884_v55 = vpack.c.bf16 %v1379_v45, %v1379_v45  ;;  %v1377_v61 = vmul.f32 %v2225_v2, %v2812_v17  ;;  %2246 = vpow2.f32 %v1708_v19 }
 0x163   : > { %v2229_v30 = vpop.eup %2228  ;;  %983 = vst.msk [vmem:[%s2505_s14 + $0x68] sm:$0xf] %vm956_vm2, %v1852_v8  ;;  %v1850_v16 = vpack.c.bf16 %v820_v47, %v820_v47  ;;  %v727_v0 = vadd.f32 1.0, %v2227_v50  ;;  %2248 = vpow2.f32 %v1789_v39 }
 0x164   : > { %v2231_v35 = vpop.eup %2230  ;;  %1539 = vst.msk [vmem:[%s2516_s17 + $0x68] sm:$0xf] %vm956_vm2, %v1884_v55  ;;  %v1882_v59 = vpack.c.bf16 %v1377_v61, %v1377_v61  ;;  %v1284_v54 = vadd.f32 1.0, %v2229_v30 }
 0x165   : > { %v2233_v13 = vpop.eup %2232  ;;  %981 = vst.msk [vmem:[%s2505_s14 + $0x60] sm:$0xf] %vm956_vm2, %v1850_v16  ;;  %2250 = vrcp.f32 %v727_v0  ;;  %v725_v11 = vadd.f32 1.0, %v2231_v35 }
 0x166   : > { %v2235_v36 = vpop.eup %2234  ;;  %1537 = vst.msk [vmem:[%s2516_s17 + $0x60] sm:$0xf] %vm956_vm2, %v1882_v59  ;;  %2252 = vrcp.f32 %v1284_v54  ;;  %v1282_v17 = vadd.f32 1.0, %v2233_v13 }
 0x167   : > { %v2237_v57 = vpop.eup %2236  ;;  %2254 = vrcp.f32 %v725_v11  ;;  %v730_v62 = vadd.f32 1.0, %v2235_v36 }
 0x168   : > { %v2239_v26 = vpop.eup %2238  ;;  %2256 = vrcp.f32 %v1282_v17  ;;  %v1287_v42 = vadd.f32 1.0, %v2237_v57 }
 0x169   : > { %v2241_v63 = vpop.eup %2240  ;;  %2258 = vrcp.f32 %v730_v62  ;;  %v728_v9 = vadd.f32 1.0, %v2239_v26 }
 0x16a   : > { %v2243_v5 = vpop.eup %2242  ;;  %2260 = vrcp.f32 %v1287_v42  ;;  %v1285_v1 = vadd.f32 1.0, %v2241_v63 }
 0x16b   : > { %v2245_v14 = vpop.eup %2244  ;;  %2262 = vrcp.f32 %v728_v9  ;;  %v731_v31 = vadd.f32 1.0, %v2243_v5 }
 0x16c   : > { %v2247_v12 = vpop.eup %2246  ;;  %2264 = vrcp.f32 %v1285_v1  ;;  %v1288_v38 = vadd.f32 1.0, %v2245_v14 }
 0x16d   : > { %v2249_v43 = vpop.eup %2248  ;;  %2266 = vrcp.f32 %v731_v31  ;;  %v729_v24 = vadd.f32 1.0, %v2247_v12 }
 0x16e   : > { %2268 = vrcp.f32 %v1288_v38  ;;  %v1286_v10 = vadd.f32 1.0, %v2249_v43 }
 0x16f   : > { %v2251_v52 = vpop.eup %2250  ;;  %2270 = vrcp.f32 %v729_v24 }
 0x170   : > { %v2253_v33 = vpop.eup %2252  ;;  %v823_v15 = vmul.f32 %v2251_v52, %v2848_v58  ;;  %2272 = vrcp.f32 %v1286_v10 }
 0x171   : > { %v2255_v23 = vpop.eup %2254  ;;  %v1380_v56 = vmul.f32 %v2253_v33, %v2854_v7 }
 0x172   : > { %v2257_v6 = vpop.eup %2256  ;;  %v1853_v3 = vpack.c.bf16 %v823_v15, %v823_v15  ;;  %v821_v34 = vmul.f32 %v2255_v23, %v2857_v20 }
 0x173   : > { %v2259_v27 = vpop.eup %2258  ;;  %v1885_v29 = vpack.c.bf16 %v1380_v56, %v1380_v56  ;;  %v1378_v41 = vmul.f32 %v2257_v6, %v2860_v40 }
 0x174   : > { %v2261_v25 = vpop.eup %2260  ;;  %984 = vst.msk [vmem:[%s2505_s14 + $0x6c] sm:$0xf] %vm956_vm2, %v1853_v3  ;;  %v1851_v22 = vpack.c.bf16 %v821_v34, %v821_v34  ;;  %v826_v58 = vmul.f32 %v2259_v27, %v2863_v21 }
 0x175   : > { %v2263_v19 = vpop.eup %2262  ;;  %1540 = vst.msk [vmem:[%s2516_s17 + $0x6c] sm:$0xf] %vm956_vm2, %v1885_v29  ;;  %v1883_v7 = vpack.c.bf16 %v1378_v41, %v1378_v41  ;;  %v1383_v53 = vmul.f32 %v2261_v25, %v2866_v18 }
 0x176   : > { %v2265_v20 = vpop.eup %2264  ;;  %982 = vst.msk [vmem:[%s2505_s14 + $0x64] sm:$0xf] %vm956_vm2, %v1851_v22  ;;  %v1856_v49 = vpack.c.bf16 %v826_v58, %v826_v58  ;;  %v824_v40 = vmul.f32 %v2263_v19, %v2869_v44 }
 0x177   : > { %v2267_v28 = vpop.eup %2266  ;;  %1538 = vst.msk [vmem:[%s2516_s17 + $0x64] sm:$0xf] %vm956_vm2, %v1883_v7  ;;  %v1888_v39 = vpack.c.bf16 %v1383_v53, %v1383_v53  ;;  %v1381_v21 = vmul.f32 %v2265_v20, %v2872_v46 }
 0x178   : > { %v2269_v4 = vpop.eup %2268  ;;  %987 = vst.msk [vmem:[%s2505_s14 + $0x78] sm:$0xf] %vm956_vm2, %v1856_v49  ;;  %v1854_v18 = vpack.c.bf16 %v824_v40, %v824_v40  ;;  %v827_v60 = vmul.f32 %v2267_v28, %v2886_v48 }
 0x179   : > { %v2271_v45 = vpop.eup %2270  ;;  %1543 = vst.msk [vmem:[%s2516_s17 + $0x78] sm:$0xf] %vm956_vm2, %v1888_v39  ;;  %v1886_v44 = vpack.c.bf16 %v1381_v21, %v1381_v21  ;;  %v1384_v2 = vmul.f32 %v2269_v4, %v2890_v51 }
 0x17a   : > { %v2273_v8 = vpop.eup %2272  ;;  %985 = vst.msk [vmem:[%s2505_s14 + $0x70] sm:$0xf] %vm956_vm2, %v1854_v18  ;;  %v1857_v46 = vpack.c.bf16 %v827_v60, %v827_v60  ;;  %v825_v47 = vmul.f32 %v2271_v45, %v2896_v32 }
 0x17b   : > { %1541 = vst.msk [vmem:[%s2516_s17 + $0x70] sm:$0xf] %vm956_vm2, %v1886_v44  ;;  %v1889_v50 = vpack.c.bf16 %v1384_v2, %v1384_v2  ;;  %v1382_v55 = vmul.f32 %v2273_v8, %v2902_v37 }
 0x17c   : > { %988 = vst.msk [vmem:[%s2505_s14 + $0x7c] sm:$0xf] %vm956_vm2, %v1857_v46  ;;  %v1855_v48 = vpack.c.bf16 %v825_v47, %v825_v47 }
 0x17d   : > { %1544 = vst.msk [vmem:[%s2516_s17 + $0x7c] sm:$0xf] %vm956_vm2, %v1889_v50  ;;  %v1887_v61 = vpack.c.bf16 %v1382_v55, %v1382_v55 }
 0x17e   : > { %986 = vst.msk [vmem:[%s2505_s14 + $0x74] sm:$0xf] %vm956_vm2, %v1855_v48 }
 0x17f   : > { %1542 = vst.msk [vmem:[%s2516_s17 + $0x74] sm:$0xf] %vm956_vm2, %v1887_v61 }
 0x180 PF: > { %s17_s21 = sadd.s32 1, %s2282_s21  }
 0x181   : > { %p14_p4 = scmp.ge.s32.totalorder %s17_s21, 4  }
 0x183   :  { %16 = sbr.rel (!%p14_p4) target bundleno = 1 (0x1), region = 82 }

// kernel: csp_stage_forward.11
= control target key start
LH: loop header
LB: loop body
LE: loop exit
PB: predicated region body
PF: predicated region fallthrough
CT: control target
= control target key end

     0   :  { %s2503_s24 = smov 0   ;;  %s2896_s0 = inlined_call_operand.vmem [shape: bf16[512,4], index: 0, kind: input, shape index: {}]   ;;  %s2897_s1 = inlined_call_operand.vmem [shape: bf16[512,4], index: 1, kind: input, shape index: {}]   ;;  %s2898_s2 = inlined_call_operand.vmem [shape: bf16[512,4], index: 2, kind: input, shape index: {}]   ;;  %s2899_s3 = inlined_call_operand.vmem [shape: bf16[4,8], index: 3, kind: input, shape index: {}]   ;;  %s2900_s4 = inlined_call_operand.vmem [shape: bf16[4,8], index: 4, kind: input, shape index: {}]   ;;  %s2901_s5 = inlined_call_operand.vmem [shape: bf16[4,8], index: 5, kind: input, shape index: {}]   ;;  %s2902_s6 = inlined_call_operand.vmem [shape: f32[1,8], index: 6, kind: input, shape index: {}]   ;;  %s2903_s7 = inlined_call_operand.vmem [shape: bf16[512,8], index: 7, kind: output, shape index: {}]  }
   0x1 LB: > { %s1840_s25 = sadd.s32 4294967295, %s2461_s24   ;;  %p1844_p0 = scmp.ge.s32.totalorder %s2461_s24, 1  ;;  %s2461_s24 = sphi %s2503_s24, %s17_s24  }
   0x2   : > { %p260_p1 = scmp.lt.s32.totalorder %s2461_s24, 3 }
   0x4   : > { %p261_p2 = pnand %p1844_p0, %p260_p1 }
   0x5   : > { %v392_v0 = vld [vmem:[%s2900_s4] sm:$0x3] (!%p261_p2)  ;;  %vm522_vm0 = vcmask (!%p261_p2), 1041408   ;;  %s1845_s30 = sshll.u32 (!%p261_p2), %s1840_s25, 5  ;;  %vm473_vm1 = vcmask (!%p261_p2), 31744   ;;  %vm1727_vm2 = vcmask (!%p261_p2), 60416  }
   0x6   : > { %264 = sbr.rel (%p261_p2) target bundleno = 362 (0x16a), region = 48  ;;  %v359_v1 = vld [vmem:[%s2899_s3] sm:$0x3] (!%p261_p2)  ;;  %2267 = vmatprep.subr.msk.bf16.mxu1 (!%p261_p2), %vm522_vm0, %v392_v0  ;;  %v524_v2 = vsel (!%p261_p2), %vm522_vm0, %v392_v0, 0  ;;  %p303_p3 = scmp.lt.s32.totalorder (!%p261_p2), %s1845_s30, 63 }
   0x7   : > { %2268 = vmatprep.subr.msk.bf16.mxu0 (!%p261_p2), %vm522_vm0, %v359_v1  ;;  %v816_v3 = vsel (!%p261_p2), %vm522_vm0, %v359_v1, 0  ;;  %v1011_v4 = vld [vmem:[%s2901_s5] sm:$0x3] (!%p261_p2)  ;;  %2100 = vmatpush3.bf16.msra.mxu1 (!%p261_p2), %v524_v2 }
   0x8   : > { %2134 = vmatpush3.bf16.msra.mxu0 (!%p261_p2), %v816_v3  ;;  %2269 = vmatprep.subr.msk.bf16.mxu1 (!%p261_p2), %vm522_vm0, %v359_v1  ;;  %v1141_v9 = vsel (!%p261_p2), %vm522_vm0, %v1011_v4, 0 }
   0x9   : > { %2270 = vmatprep.subr.msk.bf16.mxu0 (!%p261_p2), %vm522_vm0, %v1011_v4 }
   0xd   : > { %s2905_s30 = smov (!%p303_p3, %s1845_s30), 63 }
   0xe   : > { %s2526_s10 = sshll.u32 %s2905_s30, 2 }
   0xf   : > { %s2532_s13 = scalar_lea.vmem %s2897_s1, %s2526_s10  ;;  %s2538_s16 = scalar_lea.vmem %s2896_s0, %s2526_s10 }
  0x10   : > { %v2279_v5 = vld [vmem:[%s2532_s13] sm:$0xff]   ;;  %v2281_v7 = vld [vmem:[%s2532_s13 + $0x8] sm:$0xff]   ;;  %v2283_v10 = vld [vmem:[%s2532_s13 + $0x10] sm:$0xff]   ;;  %s2567_s19 = scalar_lea.vmem %s2898_s2, %s2526_s10  ;;  %s2731_s25 = scalar_lea.vmem %s2903_s7, %s2526_s10 }
  0x11   : > { %v2280_v6 = vld [vmem:[%s2538_s16] sm:$0xff]   ;;  %2101 = vmatprep.mubr.msk.bf16.mxu1 %vm473_vm1, %v2279_v5  ;;  %v2282_v8 = vld [vmem:[%s2538_s16 + $0x8] sm:$0xff]   ;;  %v2284_v11 = vld [vmem:[%s2538_s16 + $0x10] sm:$0xff]  }
  0x12   : > { %2135 = vmatprep.mubr.msk.bf16.mxu0 %vm473_vm1, %v2280_v6  ;;  %2102 = vmatmul.mubr.msk.bf16.vlgmr.msra.gmra.mrb[0].mxu1 %vm473_vm1, %v2281_v7  ;;  %v2285_v12 = vld [vmem:[%s2532_s13 + $0x18] sm:$0xff]   ;;  %v2287_v14 = vld [vmem:[%s2532_s13 + $0x20] sm:$0xff]   ;;  %v2289_v16 = vld [vmem:[%s2532_s13 + $0x28] sm:$0xff]  }
  0x13   : > { %2202 = vmatpush3.bf16.msra.mxu1 %v816_v3  ;;  %2136 = vmatmul.mubr.msk.bf16.vlgmr.msra.gmra.mrb[0].mxu0 %vm473_vm1, %v2282_v8  ;;  %v2286_v13 = vld [vmem:[%s2538_s16 + $0x18] sm:$0xff]   ;;  %v2288_v15 = vld [vmem:[%s2538_s16 + $0x20] sm:$0xff]   ;;  %v2290_v17 = vld [vmem:[%s2538_s16 + $0x28] sm:$0xff]  }
  0x14   : > { %2168 = vmatpush3.bf16.msra.mxu0 %v1141_v9  ;;  %2105 = vmatprep.mubr.msk.bf16.mxu1 %vm473_vm1, %v2283_v10  ;;  %v2291_v18 = vld [vmem:[%s2532_s13 + $0x30] sm:$0xff]   ;;  %v2293_v20 = vld [vmem:[%s2532_s13 + $0x38] sm:$0xff]   ;;  %v2295_v22 = vld [vmem:[%s2532_s13 + $0x40] sm:$0xff]  }
  0x15   : > { %2139 = vmatprep.mubr.msk.bf16.mxu0 %vm473_vm1, %v2284_v11  ;;  %v2292_v19 = vld [vmem:[%s2538_s16 + $0x30] sm:$0xff]   ;;  %v2294_v21 = vld [vmem:[%s2538_s16 + $0x38] sm:$0xff]   ;;  %v2296_v23 = vld [vmem:[%s2567_s19] sm:$0xff]  }
  0x16   : > { %v2297_v24 = vld [vmem:[%s2532_s13 + $0x48] sm:$0xff]   ;;  %v2299_v26 = vld [vmem:[%s2532_s13 + $0x50] sm:$0xff]   ;;  %v2301_v28 = vld [vmem:[%s2532_s13 + $0x58] sm:$0xff]  }
  0x17   : > { %v2298_v25 = vld [vmem:[%s2567_s19 + $0x8] sm:$0xff]   ;;  %v2300_v27 = vld [vmem:[%s2567_s19 + $0x10] sm:$0xff]   ;;  %v2302_v29 = vld [vmem:[%s2567_s19 + $0x18] sm:$0xff]  }
  0x18   : > { %v2303_v30 = vld [vmem:[%s2532_s13 + $0x60] sm:$0xff]   ;;  %v2305_v32 = vld [vmem:[%s2532_s13 + $0x68] sm:$0xff]   ;;  %v2307_v34 = vld [vmem:[%s2532_s13 + $0x70] sm:$0xff]  }
  0x19   : > { %v2304_v31 = vld [vmem:[%s2567_s19 + $0x20] sm:$0xff]   ;;  %v2306_v33 = vld [vmem:[%s2567_s19 + $0x28] sm:$0xff]   ;;  %v2308_v35 = vld [vmem:[%s2567_s19 + $0x30] sm:$0xff]  }
  0x1a   : > { %2106 = vmatmul.mubr.msk.bf16.gmra.mrb[4].mxu1 %vm473_vm1, %v2285_v12  ;;  %v2309_v36 = vld [vmem:[%s2532_s13 + $0x78] sm:$0xff]   ;;  %v2311_v38 = vld [vmem:[%s2538_s16 + $0x40] sm:$0xff]   ;;  %v2313_v40 = vld [vmem:[%s2538_s16 + $0x48] sm:$0xff]  }
  0x1b   : > { %2140 = vmatmul.mubr.msk.bf16.gmra.mrb[4].mxu0 %vm473_vm1, %v2286_v13  ;;  %2109 = vmatprep.mubr.msk.bf16.mxu1 %vm473_vm1, %v2287_v14  ;;  %v2310_v37 = vld [vmem:[%s2567_s19 + $0x38] sm:$0xff]   ;;  %v2312_v39 = vld [vmem:[%s2567_s19 + $0x40] sm:$0xff]   ;;  %v2314_v41 = vld [vmem:[%s2567_s19 + $0x48] sm:$0xff]  }
  0x1c   : > { %2143 = vmatprep.mubr.msk.bf16.mxu0 %vm473_vm1, %v2288_v15  ;;  %v2315_v42 = vld [vmem:[%s2538_s16 + $0x50] sm:$0xff]   ;;  %v2317_v44 = vld [vmem:[%s2538_s16 + $0x58] sm:$0xff]   ;;  %v2319_v46 = vld [vmem:[%s2538_s16 + $0x60] sm:$0xff]  }
  0x1d   : > { %v2316_v43 = vld [vmem:[%s2567_s19 + $0x50] sm:$0xff]   ;;  %v2318_v45 = vld [vmem:[%s2567_s19 + $0x58] sm:$0xff]   ;;  %v2320_v47 = vld [vmem:[%s2567_s19 + $0x60] sm:$0xff]  }
  0x1e   : > { %v2321_v48 = vld [vmem:[%s2538_s16 + $0x68] sm:$0xff]   ;;  %v2323_v50 = vld [vmem:[%s2538_s16 + $0x70] sm:$0xff]   ;;  %v2325_v52 = vld [vmem:[%s2538_s16 + $0x78] sm:$0xff]  }
  0x1f   : > { %v2322_v49 = vld [vmem:[%s2567_s19 + $0x68] sm:$0xff]   ;;  %v2324_v51 = vld [vmem:[%s2567_s19 + $0x70] sm:$0xff]   ;;  %v2326_v53 = vld [vmem:[%s2567_s19 + $0x78] sm:$0xff]  }
  0x20   : > { %v2656_v7 = vld [vmem:[%s2902_s6] ss:$0 sm:$0xff] }
  0x22   : > { %2110 = vmatmul.mubr.msk.bf16.gmra.mrb[8].mxu1 %vm473_vm1, %v2289_v16 }
  0x23   : > { %2144 = vmatmul.mubr.msk.bf16.gmra.mrb[8].mxu0 %vm473_vm1, %v2290_v17  ;;  %2113 = vmatprep.mubr.msk.bf16.mxu1 %vm473_vm1, %v2291_v18 }
  0x24   : > { %2147 = vmatprep.mubr.msk.bf16.mxu0 %vm473_vm1, %v2292_v19 }
  0x2a   : > { %2114 = vmatmul.mubr.msk.bf16.gmra.mrb[12].mxu1 %vm473_vm1, %v2293_v20 }
  0x2b   : > { %2148 = vmatmul.mubr.msk.bf16.gmra.mrb[12].mxu0 %vm473_vm1, %v2294_v21  ;;  %2117 = vmatprep.mubr.msk.bf16.mxu1 %vm473_vm1, %v2295_v22 }
  0x2c   : > { %2169 = vmatprep.mubr.msk.bf16.mxu0 %vm473_vm1, %v2296_v23 }
  0x32   : > { %2118 = vmatmul.mubr.msk.bf16.gmra.mrb[16].mxu1 %vm473_vm1, %v2297_v24 }
  0x33   : > { %2170 = vmatmul.mubr.msk.bf16.vlgmr.msra.gmra.mrb[0].mxu0 %vm473_vm1, %v2298_v25  ;;  %2121 = vmatprep.mubr.msk.bf16.mxu1 %vm473_vm1, %v2299_v26 }
  0x34   : > { %2173 = vmatprep.mubr.msk.bf16.mxu0 %vm473_vm1, %v2300_v27 }
  0x3a   : > { %2122 = vmatmul.mubr.msk.bf16.gmra.mrb[20].mxu1 %vm473_vm1, %v2301_v28 }
  0x3b   : > { %2174 = vmatmul.mubr.msk.bf16.gmra.mrb[4].mxu0 %vm473_vm1, %v2302_v29  ;;  %2125 = vmatprep.mubr.msk.bf16.mxu1 %vm473_vm1, %v2303_v30 }
  0x3c   : > { %2177 = vmatprep.mubr.msk.bf16.mxu0 %vm473_vm1, %v2304_v31 }
  0x42   : > { %2126 = vmatmul.mubr.msk.bf16.gmra.mrb[24].mxu1 %vm473_vm1, %v2305_v32 }
  0x43   : > { %2178 = vmatmul.mubr.msk.bf16.gmra.mrb[8].mxu0 %vm473_vm1, %v2306_v33  ;;  %2129 = vmatprep.mubr.msk.bf16.mxu1 %vm473_vm1, %v2307_v34 }
  0x44   : > { %2181 = vmatprep.mubr.msk.bf16.mxu0 %vm473_vm1, %v2308_v35 }
  0x4a   : > { %2130 = vmatmul.mubr.msk.bf16.gmra.mrb[28].mxu1 %vm473_vm1, %v2309_v36 }
  0x4b   : > { %2182 = vmatmul.mubr.msk.bf16.gmra.mrb[12].mxu0 %vm473_vm1, %v2310_v37  ;;  %2151 = vmatprep.mubr.msk.bf16.mxu1 %vm473_vm1, %v2311_v38 }
  0x4c   : > { %2185 = vmatprep.mubr.msk.bf16.mxu0 %vm473_vm1, %v2312_v39 }
  0x52   : > { %2152 = vmatmul.mubr.msk.bf16.vlgmr.msra.gmra.mrb[16].mxu1 %vm473_vm1, %v2313_v40 }
  0x53   : > { %2186 = vmatmul.mubr.msk.bf16.gmra.mrb[16].mxu0 %vm473_vm1, %v2314_v41  ;;  %2155 = vmatprep.mubr.msk.bf16.mxu1 %vm473_vm1, %v2315_v42 }
  0x54   : > { %2189 = vmatprep.mubr.msk.bf16.mxu0 %vm473_vm1, %v2316_v43 }
  0x5a   : > { %2156 = vmatmul.mubr.msk.bf16.gmra.mrb[20].mxu1 %vm473_vm1, %v2317_v44 }
  0x5b   : > { %2190 = vmatmul.mubr.msk.bf16.gmra.mrb[20].mxu0 %vm473_vm1, %v2318_v45  ;;  %2159 = vmatprep.mubr.msk.bf16.mxu1 %vm473_vm1, %v2319_v46 }
  0x5c   : > { %2193 = vmatprep.mubr.msk.bf16.mxu0 %vm473_vm1, %v2320_v47 }
  0x62   : > { %2160 = vmatmul.mubr.msk.bf16.gmra.mrb[24].mxu1 %vm473_vm1, %v2321_v48 }
  0x63   : > { %2194 = vmatmul.mubr.msk.bf16.gmra.mrb[24].mxu0 %vm473_vm1, %v2322_v49  ;;  %2163 = vmatprep.mubr.msk.bf16.mxu1 %vm473_vm1, %v2323_v50 }
  0x64   : > { %2197 = vmatprep.mubr.msk.bf16.mxu0 %vm473_vm1, %v2324_v51 }
  0x6a   : > { %2164 = vmatmul.mubr.msk.bf16.gmra.mrb[28].mxu1 %vm473_vm1, %v2325_v52 }
  0x6b   : > { %2198 = vmatmul.mubr.msk.bf16.gmra.mrb[28].mxu0 %vm473_vm1, %v2326_v53 }
  0xe5   : > { %v2103_v54 = vpop.f32.mrb[0].mxu1 }
  0xe6   : > { %v560_v55 = vpop.f32.mrb[1].mxu1 }
  0xe7   : > { %v2104_v56 = vpop.f32.mrb[2].mxu1 }
  0xe8   : > { %v563_v57 = vpop.f32.mrb[3].mxu1 }
  0xed   : > { %v2107_v58 = vpop.f32.mrb[4].mxu1 }
  0xee   : > { %v576_v59 = vpop.f32.mrb[5].mxu1 }
  0xef   : > { %v2108_v60 = vpop.f32.mrb[6].mxu1 }
  0xf0   : > { %v579_v61 = vpop.f32.mrb[7].mxu1 }
  0xf5   : > { %v2111_v62 = vpop.f32.mrb[8].mxu1 }
  0xf6   : > { %v592_v63 = vpop.f32.mrb[9].mxu1 }
  0xf7   : > { %v2112_v0 = vpop.f32.mrb[10].mxu1 }
  0xf8   : > { %v2643_v1 = vpop.f32.mrb[11].mxu1 }
  0xfd   : > { %v2645_v2 = vpop.f32.mrb[12].mxu1 }
  0xfe   : > { %v2647_v3 = vpop.f32.mrb[13].mxu1 }
  0xff   : > { %v2649_v4 = vpop.f32.mrb[14].mxu1 }
 0x100   : > { %v2651_v5 = vpop.f32.mrb[15].mxu1 }
 0x106   : > { %v2171_v6 = vpop.f32.mrb[0].mxu0 }
 0x107   : > { %v2203_v8 = vadd.f32 %v2171_v6, %v2103_v54  ;;  %v1177_v9 = vpop.f32.mrb[1].mxu0 }
 0x108   : > { %v2204_v10 = vadd.f32 %v1177_v9, %v560_v55  ;;  %v2172_v11 = vpop.f32.mrb[2].mxu0 }
 0x109   : > { %v2659_v12 = vadd.f32 %v2203_v8, %v2656_v7  ;;  %v2205_v13 = vadd.f32 %v2172_v11, %v2104_v56  ;;  %v1180_v14 = vpop.f32.mrb[3].mxu0 }
 0x10a   : > { %v2662_v15 = vadd.f32 %v2204_v10, %v2656_v7  ;;  %v2206_v16 = vadd.f32 %v1180_v14, %v563_v57 }
 0x10b   : > { %v1952_v17 = vmul.f32 -1.442695, %v2659_v12  ;;  %v2666_v18 = vadd.f32 %v2205_v13, %v2656_v7 }
 0x10c   : > { %v1950_v19 = vmul.f32 -1.442695, %v2662_v15  ;;  %v2670_v20 = vadd.f32 %v2206_v16, %v2656_v7 }
 0x10d   : > { %2327 = vpow2.f32 %v1952_v17  ;;  %v1953_v21 = vmul.f32 -1.442695, %v2666_v18 }
 0x10e   : > { %2329 = vpow2.f32 %v1950_v19  ;;  %v1951_v22 = vmul.f32 -1.442695, %v2670_v20  ;;  %v2175_v23 = vpop.f32.mrb[4].mxu0 }
 0x10f   : > { %2331 = vpow2.f32 %v1953_v21  ;;  %v2207_v24 = vadd.f32 %v2175_v23, %v2107_v58  ;;  %v1193_v25 = vpop.f32.mrb[5].mxu0 }
 0x110   : > { %2333 = vpow2.f32 %v1951_v22  ;;  %v2208_v26 = vadd.f32 %v1193_v25, %v576_v59  ;;  %v2176_v27 = vpop.f32.mrb[6].mxu0 }
 0x111   : > { %v2675_v28 = vadd.f32 %v2207_v24, %v2656_v7  ;;  %v2209_v29 = vadd.f32 %v2176_v27, %v2108_v60  ;;  %v1196_v30 = vpop.f32.mrb[7].mxu0 }
 0x112   : > { %v2678_v31 = vadd.f32 %v2208_v26, %v2656_v7  ;;  %v2210_v32 = vadd.f32 %v1196_v30, %v579_v61 }
 0x113   : > { %v1956_v33 = vmul.f32 -1.442695, %v2675_v28  ;;  %v2682_v34 = vadd.f32 %v2209_v29, %v2656_v7 }
 0x114   : > { %v1954_v35 = vmul.f32 -1.442695, %v2678_v31  ;;  %v2686_v36 = vadd.f32 %v2210_v32, %v2656_v7 }
 0x115   : > { %2335 = vpow2.f32 %v1956_v33  ;;  %v1957_v37 = vmul.f32 -1.442695, %v2682_v34 }
 0x116   : > { %2337 = vpow2.f32 %v1954_v35  ;;  %v1955_v38 = vmul.f32 -1.442695, %v2686_v36  ;;  %v2179_v39 = vpop.f32.mrb[8].mxu0 }
 0x117   : > { %v2328_v40 = vpop.eup %2327  ;;  %2339 = vpow2.f32 %v1957_v37  ;;  %v2211_v41 = vadd.f32 %v2179_v39, %v2111_v62  ;;  %v1209_v42 = vpop.f32.mrb[9].mxu0 }
 0x118   : > { %v2330_v43 = vpop.eup %2329  ;;  %v1473_v44 = vadd.f32 1.0, %v2328_v40  ;;  %2341 = vpow2.f32 %v1955_v38  ;;  %v2212_v45 = vadd.f32 %v1209_v42, %v592_v63  ;;  %v2180_v46 = vpop.f32.mrb[10].mxu0 }
 0x119   : > { %v2332_v47 = vpop.eup %2331  ;;  %v1471_v48 = vadd.f32 1.0, %v2330_v43  ;;  %v2691_v49 = vadd.f32 %v2211_v41, %v2656_v7  ;;  %v2213_v50 = vadd.f32 %v2180_v46, %v2112_v0  ;;  %v1212_v51 = vpop.f32.mrb[11].mxu0 }
 0x11a   : > { %v2334_v52 = vpop.eup %2333  ;;  %2343 = vrcp.f32 %v1473_v44  ;;  %v1474_v53 = vadd.f32 1.0, %v2332_v47  ;;  %v2694_v54 = vadd.f32 %v2212_v45, %v2656_v7  ;;  %v2214_v55 = vadd.f32 %v1212_v51, %v2643_v1 }
 0x11b   : > { %2345 = vrcp.f32 %v1471_v48  ;;  %v1472_v56 = vadd.f32 1.0, %v2334_v52  ;;  %v1960_v57 = vmul.f32 -1.442695, %v2691_v49  ;;  %v2699_v58 = vadd.f32 %v2213_v50, %v2656_v7 }
 0x11c   : > { %2347 = vrcp.f32 %v1474_v53  ;;  %v1958_v59 = vmul.f32 -1.442695, %v2694_v54  ;;  %v2703_v60 = vadd.f32 %v2214_v55, %v2656_v7 }
 0x11d   : > { %2349 = vrcp.f32 %v1472_v56  ;;  %v1961_v61 = vmul.f32 -1.442695, %v2699_v58 }
 0x11e   : > { %2351 = vpow2.f32 %v1960_v57  ;;  %v1959_v62 = vmul.f32 -1.442695, %v2703_v60  ;;  %v2183_v63 = vpop.f32.mrb[12].mxu0 }
 0x11f   : > { %v2336_v0 = vpop.eup %2335  ;;  %2353 = vpow2.f32 %v1958_v59  ;;  %v2215_v1 = vadd.f32 %v2183_v63, %v2645_v2  ;;  %v1225_v6 = vpop.f32.mrb[13].mxu0 }
 0x120   : > { %v2338_v8 = vpop.eup %2337  ;;  %v1477_v9 = vadd.f32 1.0, %v2336_v0  ;;  %2355 = vpow2.f32 %v1961_v61  ;;  %v2216_v10 = vadd.f32 %v1225_v6, %v2647_v3  ;;  %v2184_v11 = vpop.f32.mrb[14].mxu0 }
 0x121   : > { %v2340_v13 = vpop.eup %2339  ;;  %v1475_v14 = vadd.f32 1.0, %v2338_v8  ;;  %2357 = vpow2.f32 %v1959_v62  ;;  %v2710_v16 = vadd.f32 %v2215_v1, %v2656_v7  ;;  %v2217_v17 = vadd.f32 %v2184_v11, %v2649_v4  ;;  %v1228_v19 = vpop.f32.mrb[15].mxu0 }
 0x122   : > { %v2342_v21 = vpop.eup %2341  ;;  %2359 = vrcp.f32 %v1477_v9  ;;  %v1478_v22 = vadd.f32 1.0, %v2340_v13  ;;  %v2714_v2 = vadd.f32 %v2216_v10, %v2656_v7  ;;  %v2218_v23 = vadd.f32 %v1228_v19, %v2651_v5 }
 0x123   : > { %2361 = vrcp.f32 %v1475_v14  ;;  %v1476_v3 = vadd.f32 1.0, %v2342_v21  ;;  %v1964_v24 = vmul.f32 -1.442695, %v2710_v16  ;;  %v2719_v25 = vadd.f32 %v2217_v17, %v2656_v7 }
 0x124   : > { %v2344_v26 = vpop.eup %2343  ;;  %2363 = vrcp.f32 %v1478_v22  ;;  %v1962_v4 = vmul.f32 -1.442695, %v2714_v2  ;;  %v2723_v27 = vadd.f32 %v2218_v23, %v2656_v7 }
 0x125   : > { %v2346_v29 = vpop.eup %2345  ;;  %v1569_v30 = vmul.f32 %v2344_v26, %v2659_v12  ;;  %2365 = vrcp.f32 %v1476_v3  ;;  %v1965_v5 = vmul.f32 -1.442695, %v2719_v25  ;;  %v2153_v32 = vpop.f32.mrb[16].mxu1 }
 0x126   : > { %v2348_v33 = vpop.eup %2347  ;;  %v1567_v35 = vmul.f32 %v2346_v29, %v2662_v15  ;;  %2367 = vpow2.f32 %v1964_v24  ;;  %v1963_v37 = vmul.f32 -1.442695, %v2723_v27  ;;  %v2187_v38 = vpop.f32.mrb[16].mxu0 }
 0x127   : > { %v916_v39 = vpop.f32.mrb[17].mxu1  ;;  %v2350_v12 = vpop.eup %2349  ;;  %v2018_v40 = vpack.c.bf16 %v1569_v30, %v1569_v30  ;;  %v1570_v41 = vmul.f32 %v2348_v33, %v2666_v18  ;;  %2369 = vpow2.f32 %v1962_v4  ;;  %v2219_v42 = vadd.f32 %v2187_v38, %v2153_v32 }
 0x128   : > { %v1241_v43 = vpop.f32.mrb[17].mxu0  ;;  %v2154_v44 = vpop.f32.mrb[18].mxu1  ;;  %v2016_v46 = vpack.c.bf16 %v1567_v35, %v1567_v35  ;;  %v1568_v47 = vmul.f32 %v2350_v12, %v2670_v20  ;;  %2371 = vpow2.f32 %v1965_v5 }
 0x129   : > { %v2352_v45 = vpop.eup %2351  ;;  %v2220_v15 = vadd.f32 %v1241_v43, %v916_v39  ;;  %v2188_v48 = vpop.f32.mrb[18].mxu0  ;;  %1730 = vst.msk [vmem:[%s2731_s25 + $0x8] sm:$0xf] %vm1727_vm2, %v2018_v40  ;;  %v2019_v52 = vpack.c.bf16 %v1570_v41, %v1570_v41  ;;  %2373 = vpow2.f32 %v1963_v37  ;;  %v2740_v18 = vadd.f32 %v2219_v42, %v2656_v7 }
 0x12a   : > { %v919_v50 = vpop.f32.mrb[19].mxu1  ;;  %v2354_v51 = vpop.eup %2353  ;;  %v1481_v53 = vadd.f32 1.0, %v2352_v45  ;;  %1728 = vst.msk [vmem:[%s2731_s25] sm:$0xf] %vm1727_vm2, %v2016_v46  ;;  %v2017_v20 = vpack.c.bf16 %v1568_v47, %v1568_v47  ;;  %v2221_v61 = vadd.f32 %v2188_v48, %v2154_v44 }
 0x12b   : > { %v1244_v55 = vpop.f32.mrb[19].mxu0  ;;  %v2356_v56 = vpop.eup %2355  ;;  %v1479_v57 = vadd.f32 1.0, %v2354_v51  ;;  %v2745_v59 = vadd.f32 %v2220_v15, %v2656_v7  ;;  %1731 = vst.msk [vmem:[%s2731_s25 + $0xc] sm:$0xf] %vm1727_vm2, %v2019_v52  ;;  %v1968_v0 = vmul.f32 -1.442695, %v2740_v18 }
 0x12c   : > { %v2358_v62 = vpop.eup %2357  ;;  %2375 = vrcp.f32 %v1481_v53  ;;  %v1482_v63 = vadd.f32 1.0, %v2356_v56  ;;  %v2222_v1 = vadd.f32 %v1244_v55, %v919_v50  ;;  %1729 = vst.msk [vmem:[%s2731_s25 + $0x4] sm:$0xf] %vm1727_vm2, %v2017_v20  ;;  %v2754_v10 = vadd.f32 %v2221_v61, %v2656_v7 }
 0x12d   : > { %v2360_v6 = vpop.eup %2359  ;;  %2377 = vrcp.f32 %v1479_v57  ;;  %v1480_v8 = vadd.f32 1.0, %v2358_v62  ;;  %v1966_v9 = vmul.f32 -1.442695, %v2745_v59  ;;  %v2157_v17 = vpop.f32.mrb[20].mxu1 }
 0x12e   : > { %v2362_v11 = vpop.eup %2361  ;;  %v1573_v13 = vmul.f32 %v2360_v6, %v2675_v28  ;;  %2379 = vrcp.f32 %v1482_v63  ;;  %v2758_v14 = vadd.f32 %v2222_v1, %v2656_v7  ;;  %v1969_v22 = vmul.f32 -1.442695, %v2754_v10  ;;  %v2191_v23 = vpop.f32.mrb[20].mxu0 }
 0x12f   : > { %v2364_v19 = vpop.eup %2363  ;;  %v1571_v21 = vmul.f32 %v2362_v11, %v2678_v31  ;;  %2381 = vrcp.f32 %v1480_v8  ;;  %v932_v3 = vpop.f32.mrb[21].mxu1  ;;  %v2223_v33 = vadd.f32 %v2191_v23, %v2157_v17 }
 0x130   : > { %v2366_v24 = vpop.eup %2365  ;;  %v2022_v26 = vpack.c.bf16 %v1573_v13, %v1573_v13  ;;  %v1574_v4 = vmul.f32 %v2364_v19, %v2682_v34  ;;  %2383 = vpow2.f32 %v1968_v0  ;;  %v1967_v28 = vmul.f32 -1.442695, %v2758_v14  ;;  %v1257_v29 = vpop.f32.mrb[21].mxu0 }
 0x131   : > { %v2158_v30 = vpop.f32.mrb[22].mxu1  ;;  %v2368_v5 = vpop.eup %2367  ;;  %v2020_v32 = vpack.c.bf16 %v1571_v21, %v1571_v21  ;;  %v1572_v31 = vmul.f32 %v2366_v24, %v2686_v36  ;;  %2385 = vpow2.f32 %v1966_v9  ;;  %v2224_v12 = vadd.f32 %v1257_v29, %v932_v3 }
 0x132   : > { %v2192_v35 = vpop.f32.mrb[22].mxu0  ;;  %v935_v37 = vpop.f32.mrb[23].mxu1  ;;  %1734 = vst.msk [vmem:[%s2731_s25 + $0x18] sm:$0xf] %vm1727_vm2, %v2022_v26  ;;  %v2023_v39 = vpack.c.bf16 %v1574_v4, %v1574_v4  ;;  %v1485_v34 = vadd.f32 1.0, %v2368_v5  ;;  %2387 = vpow2.f32 %v1969_v22  ;;  %v2770_v36 = vadd.f32 %v2223_v33, %v2656_v7 }
 0x133   : > { %v2370_v38 = vpop.eup %2369  ;;  %v1260_v40 = vpop.f32.mrb[23].mxu0  ;;  %1732 = vst.msk [vmem:[%s2731_s25 + $0x10] sm:$0xf] %vm1727_vm2, %v2020_v32  ;;  %v2021_v42 = vpack.c.bf16 %v1572_v31, %v1572_v31  ;;  %2389 = vpow2.f32 %v1967_v28  ;;  %v2775_v46 = vadd.f32 %v2224_v12, %v2656_v7  ;;  %v2225_v47 = vadd.f32 %v2192_v35, %v2158_v30 }
 0x134   : > { %v2372_v41 = vpop.eup %2371  ;;  %v1483_v43 = vadd.f32 1.0, %v2370_v38  ;;  %1735 = vst.msk [vmem:[%s2731_s25 + $0x1c] sm:$0xf] %vm1727_vm2, %v2023_v39  ;;  %2391 = vrcp.f32 %v1485_v34  ;;  %v1972_v48 = vmul.f32 -1.442695, %v2770_v36  ;;  %v2226_v50 = vadd.f32 %v1260_v40, %v935_v37 }
 0x135   : > { %v2374_v44 = vpop.eup %2373  ;;  %v1486_v45 = vadd.f32 1.0, %v2372_v41  ;;  %1733 = vst.msk [vmem:[%s2731_s25 + $0x14] sm:$0xf] %vm1727_vm2, %v2021_v42  ;;  %v1970_v52 = vmul.f32 -1.442695, %v2775_v46  ;;  %v2782_v53 = vadd.f32 %v2225_v47, %v2656_v7  ;;  %v2161_v55 = vpop.f32.mrb[24].mxu1 }
 0x136   : > { %2393 = vrcp.f32 %v1483_v43  ;;  %v1484_v15 = vadd.f32 1.0, %v2374_v44  ;;  %v2376_v51 = vpop.eup %2375  ;;  %v2786_v57 = vadd.f32 %v2226_v50, %v2656_v7  ;;  %v2195_v61 = vpop.f32.mrb[24].mxu0 }
 0x137   : > { %2395 = vrcp.f32 %v1486_v45  ;;  %v2378_v56 = vpop.eup %2377  ;;  %v1577_v20 = vmul.f32 %v2376_v51, %v2691_v49  ;;  %v948_v62 = vpop.f32.mrb[25].mxu1  ;;  %v1973_v1 = vmul.f32 -1.442695, %v2782_v53  ;;  %v2227_v6 = vadd.f32 %v2195_v61, %v2161_v55 }
 0x138   : > { %2397 = vrcp.f32 %v1484_v15  ;;  %v2380_v63 = vpop.eup %2379  ;;  %v1575_v0 = vmul.f32 %v2378_v56, %v2694_v54  ;;  %v1273_v8 = vpop.f32.mrb[25].mxu0  ;;  %v1971_v17 = vmul.f32 -1.442695, %v2786_v57 }
 0x139   : > { %2399 = vpow2.f32 %v1972_v48  ;;  %v2162_v9 = vpop.f32.mrb[26].mxu1  ;;  %v2382_v11 = vpop.eup %2381  ;;  %v2026_v13 = vpack.c.bf16 %v1577_v20, %v1577_v20  ;;  %v1578_v49 = vmul.f32 %v2380_v63, %v2699_v58  ;;  %v2794_v3 = vadd.f32 %v2227_v6, %v2656_v7 }
 0x13a   : > { %2401 = vpow2.f32 %v1970_v52  ;;  %v2196_v19 = vpop.f32.mrb[26].mxu0  ;;  %v951_v21 = vpop.f32.mrb[27].mxu1  ;;  %v2024_v23 = vpack.c.bf16 %v1575_v0, %v1575_v0  ;;  %v1576_v54 = vmul.f32 %v2382_v11, %v2703_v60  ;;  %v2228_v28 = vadd.f32 %v1273_v8, %v948_v62 }
 0x13b   : > { %v2384_v22 = vpop.eup %2383  ;;  %2403 = vpow2.f32 %v1973_v1  ;;  %v1276_v24 = vpop.f32.mrb[27].mxu0  ;;  %1738 = vst.msk [vmem:[%s2731_s25 + $0x28] sm:$0xf] %vm1727_vm2, %v2026_v13  ;;  %v2027_v58 = vpack.c.bf16 %v1578_v49, %v1578_v49  ;;  %v1976_v60 = vmul.f32 -1.442695, %v2794_v3  ;;  %v2229_v32 = vadd.f32 %v2196_v19, %v2162_v9 }
 0x13c   : > { %v2386_v26 = vpop.eup %2385  ;;  %v1489_v4 = vadd.f32 1.0, %v2384_v22  ;;  %2405 = vpow2.f32 %v1971_v17  ;;  %1736 = vst.msk [vmem:[%s2731_s25 + $0x20] sm:$0xf] %vm1727_vm2, %v2024_v23  ;;  %v2025_v30 = vpack.c.bf16 %v1576_v54, %v1576_v54  ;;  %v2804_v35 = vadd.f32 %v2228_v28, %v2656_v7 }
 0x13d   : > { %v2388_v29 = vpop.eup %2387  ;;  %v1487_v5 = vadd.f32 1.0, %v2386_v26  ;;  %1739 = vst.msk [vmem:[%s2731_s25 + $0x2c] sm:$0xf] %vm1727_vm2, %v2027_v58  ;;  %v2230_v37 = vadd.f32 %v1276_v24, %v951_v21  ;;  %v2809_v34 = vadd.f32 %v2229_v32, %v2656_v7  ;;  %v2165_v12 = vpop.f32.mrb[28].mxu1 }
 0x13e   : > { %v2390_v31 = vpop.eup %2389  ;;  %2407 = vrcp.f32 %v1489_v4  ;;  %v1490_v33 = vadd.f32 1.0, %v2388_v29  ;;  %1737 = vst.msk [vmem:[%s2731_s25 + $0x24] sm:$0xf] %vm1727_vm2, %v2025_v30  ;;  %v1974_v42 = vmul.f32 -1.442695, %v2804_v35  ;;  %v2199_v44 = vpop.f32.mrb[28].mxu0 }
 0x13f   : > { %v2392_v38 = vpop.eup %2391  ;;  %2409 = vrcp.f32 %v1487_v5  ;;  %v1488_v39 = vadd.f32 1.0, %v2390_v31  ;;  %v2814_v43 = vadd.f32 %v2230_v37, %v2656_v7  ;;  %v964_v45 = vpop.f32.mrb[29].mxu1  ;;  %v1977_v48 = vmul.f32 -1.442695, %v2809_v34 }
 0x140   : > { %v2394_v40 = vpop.eup %2393  ;;  %v1581_v41 = vmul.f32 %v2392_v38, %v2710_v16  ;;  %2411 = vrcp.f32 %v1490_v33  ;;  %v2231_v50 = vadd.f32 %v2199_v44, %v2165_v12  ;;  %v1289_v51 = vpop.f32.mrb[29].mxu0 }
 0x141   : > { %v2396_v47 = vpop.eup %2395  ;;  %v1579_v15 = vmul.f32 %v2394_v40, %v2714_v2  ;;  %2413 = vrcp.f32 %v1488_v39  ;;  %v2166_v52 = vpop.f32.mrb[30].mxu1  ;;  %v1975_v20 = vmul.f32 -1.442695, %v2814_v43  ;;  %v2232_v11 = vadd.f32 %v1289_v51, %v964_v45 }
 0x142   : > { %v2398_v55 = vpop.eup %2397  ;;  %v2030_v16 = vpack.c.bf16 %v1581_v41, %v1581_v41  ;;  %v1582_v56 = vmul.f32 %v2396_v47, %v2719_v25  ;;  %2415 = vpow2.f32 %v1976_v60  ;;  %v2200_v61 = vpop.f32.mrb[30].mxu0  ;;  %v2822_v1 = vadd.f32 %v2231_v50, %v2656_v7 }
 0x143   : > { %v967_v62 = vpop.f32.mrb[31].mxu1  ;;  %v2400_v63 = vpop.eup %2399  ;;  %v2028_v0 = vpack.c.bf16 %v1579_v15, %v1579_v15  ;;  %v1580_v2 = vmul.f32 %v2398_v55, %v2723_v27  ;;  %2417 = vpow2.f32 %v1974_v42  ;;  %v2832_v22 = vadd.f32 %v2232_v11, %v2656_v7 }
 0x144   : > { %v1292_v6 = vpop.f32.mrb[31].mxu0  ;;  %v2402_v8 = vpop.eup %2401  ;;  %1742 = vst.msk [vmem:[%s2731_s25 + $0x38] sm:$0xf] %vm1727_vm2, %v2030_v16  ;;  %v2031_v25 = vpack.c.bf16 %v1582_v56, %v1582_v56  ;;  %v1493_v9 = vadd.f32 1.0, %v2400_v63  ;;  %2419 = vpow2.f32 %v1977_v48  ;;  %v1980_v27 = vmul.f32 -1.442695, %v2822_v1 }
 0x145   : > { %v2404_v13 = vpop.eup %2403  ;;  %1740 = vst.msk [vmem:[%s2731_s25 + $0x30] sm:$0xf] %vm1727_vm2, %v2028_v0  ;;  %v2029_v49 = vpack.c.bf16 %v1580_v2, %v1580_v2  ;;  %v1491_v17 = vadd.f32 1.0, %v2402_v8  ;;  %2421 = vpow2.f32 %v1975_v20  ;;  %v2233_v23 = vadd.f32 %v2200_v61, %v2166_v52 }
 0x146   : > { %v2406_v19 = vpop.eup %2405  ;;  %1743 = vst.msk [vmem:[%s2731_s25 + $0x3c] sm:$0xf] %vm1727_vm2, %v2031_v25  ;;  %2423 = vrcp.f32 %v1493_v9  ;;  %v1494_v21 = vadd.f32 1.0, %v2404_v13  ;;  %v2234_v24 = vadd.f32 %v1292_v6, %v967_v62  ;;  %v1978_v58 = vmul.f32 -1.442695, %v2832_v22 }
 0x147   : > { %1741 = vst.msk [vmem:[%s2731_s25 + $0x34] sm:$0xf] %vm1727_vm2, %v2029_v49  ;;  %2425 = vrcp.f32 %v1491_v17  ;;  %v1492_v54 = vadd.f32 1.0, %v2406_v19  ;;  %v2838_v4 = vadd.f32 %v2233_v23, %v2656_v7 }
 0x148   : > { %v2408_v26 = vpop.eup %2407  ;;  %2427 = vrcp.f32 %v1494_v21  ;;  %v2842_v30 = vadd.f32 %v2234_v24, %v2656_v7 }
 0x149   : > { %v2410_v28 = vpop.eup %2409  ;;  %v1585_v29 = vmul.f32 %v2408_v26, %v2740_v18  ;;  %2429 = vrcp.f32 %v1492_v54  ;;  %v1981_v32 = vmul.f32 -1.442695, %v2838_v4 }
 0x14a   : > { %v2412_v5 = vpop.eup %2411  ;;  %v1583_v60 = vmul.f32 %v2410_v28, %v2745_v59  ;;  %2431 = vpow2.f32 %v1980_v27  ;;  %v1979_v18 = vmul.f32 -1.442695, %v2842_v30 }
 0x14b   : > { %v2414_v31 = vpop.eup %2413  ;;  %v2034_v33 = vpack.c.bf16 %v1585_v29, %v1585_v29  ;;  %v1586_v37 = vmul.f32 %v2412_v5, %v2754_v10  ;;  %2433 = vpow2.f32 %v1978_v58 }
 0x14c   : > { %v2416_v38 = vpop.eup %2415  ;;  %v2032_v39 = vpack.c.bf16 %v1583_v60, %v1583_v60  ;;  %v1584_v7 = vmul.f32 %v2414_v31, %v2758_v14  ;;  %2435 = vpow2.f32 %v1981_v32 }
 0x14d   : > { %v2418_v12 = vpop.eup %2417  ;;  %1746 = vst.msk [vmem:[%s2731_s25 + $0x48] sm:$0xf] %vm1727_vm2, %v2034_v33  ;;  %v2035_v59 = vpack.c.bf16 %v1586_v37, %v1586_v37  ;;  %v1497_v40 = vadd.f32 1.0, %v2416_v38  ;;  %2437 = vpow2.f32 %v1979_v18 }
 0x14e   : > { %v2420_v41 = vpop.eup %2419  ;;  %1744 = vst.msk [vmem:[%s2731_s25 + $0x40] sm:$0xf] %vm1727_vm2, %v2032_v39  ;;  %v2033_v10 = vpack.c.bf16 %v1584_v7, %v1584_v7  ;;  %v1495_v42 = vadd.f32 1.0, %v2418_v12 }
 0x14f   : > { %v2422_v44 = vpop.eup %2421  ;;  %1747 = vst.msk [vmem:[%s2731_s25 + $0x4c] sm:$0xf] %vm1727_vm2, %v2035_v59  ;;  %2439 = vrcp.f32 %v1497_v40  ;;  %v1498_v45 = vadd.f32 1.0, %v2420_v41 }
 0x150   : > { %v2424_v47 = vpop.eup %2423  ;;  %1745 = vst.msk [vmem:[%s2731_s25 + $0x44] sm:$0xf] %vm1727_vm2, %v2033_v10  ;;  %2441 = vrcp.f32 %v1495_v42  ;;  %v1496_v14 = vadd.f32 1.0, %v2422_v44 }
 0x151   : > { %v2426_v15 = vpop.eup %2425  ;;  %v1589_v48 = vmul.f32 %v2424_v47, %v2770_v36  ;;  %2443 = vrcp.f32 %v1498_v45 }
 0x152   : > { %v2428_v50 = vpop.eup %2427  ;;  %v1587_v51 = vmul.f32 %v2426_v15, %v2775_v46  ;;  %2445 = vrcp.f32 %v1496_v14 }
 0x153   : > { %v2430_v52 = vpop.eup %2429  ;;  %v2038_v55 = vpack.c.bf16 %v1589_v48, %v1589_v48  ;;  %v1590_v16 = vmul.f32 %v2428_v50, %v2782_v53 }
 0x154   : > { %v2432_v56 = vpop.eup %2431  ;;  %v2036_v20 = vpack.c.bf16 %v1587_v51, %v1587_v51  ;;  %v1588_v61 = vmul.f32 %v2430_v52, %v2786_v57 }
 0x155   : > { %v2434_v62 = vpop.eup %2433  ;;  %1750 = vst.msk [vmem:[%s2731_s25 + $0x58] sm:$0xf] %vm1727_vm2, %v2038_v55  ;;  %v2039_v36 = vpack.c.bf16 %v1590_v16, %v1590_v16  ;;  %v1501_v63 = vadd.f32 1.0, %v2432_v56 }
 0x156   : > { %v2436_v0 = vpop.eup %2435  ;;  %1748 = vst.msk [vmem:[%s2731_s25 + $0x50] sm:$0xf] %vm1727_vm2, %v2036_v20  ;;  %v2037_v46 = vpack.c.bf16 %v1588_v61, %v1588_v61  ;;  %v1499_v2 = vadd.f32 1.0, %v2434_v62 }
 0x157   : > { %v2438_v6 = vpop.eup %2437  ;;  %1751 = vst.msk [vmem:[%s2731_s25 + $0x5c] sm:$0xf] %vm1727_vm2, %v2039_v36  ;;  %2447 = vrcp.f32 %v1501_v63  ;;  %v1502_v53 = vadd.f32 1.0, %v2436_v0 }
 0x158   : > { %1749 = vst.msk [vmem:[%s2731_s25 + $0x54] sm:$0xf] %vm1727_vm2, %v2037_v46  ;;  %2449 = vrcp.f32 %v1499_v2  ;;  %v1500_v57 = vadd.f32 1.0, %v2438_v6 }
 0x159   : > { %v2440_v8 = vpop.eup %2439  ;;  %2451 = vrcp.f32 %v1502_v53 }
 0x15a   : > { %v2442_v25 = vpop.eup %2441  ;;  %v1593_v9 = vmul.f32 %v2440_v8, %v2794_v3  ;;  %2453 = vrcp.f32 %v1500_v57 }
 0x15b   : > { %v2444_v11 = vpop.eup %2443  ;;  %v1591_v13 = vmul.f32 %v2442_v25, %v2804_v35 }
 0x15c   : > { %v2446_v49 = vpop.eup %2445  ;;  %v2042_v17 = vpack.c.bf16 %v1593_v9, %v1593_v9  ;;  %v1594_v27 = vmul.f32 %v2444_v11, %v2809_v34 }
 0x15d   : > { %v2040_v19 = vpack.c.bf16 %v1591_v13, %v1591_v13  ;;  %v1592_v21 = vmul.f32 %v2446_v49, %v2814_v43 }
 0x15e   : > { %1754 = vst.msk [vmem:[%s2731_s25 + $0x68] sm:$0xf] %vm1727_vm2, %v2042_v17  ;;  %v2043_v23 = vpack.c.bf16 %v1594_v27, %v1594_v27 }
 0x15f   : > { %1752 = vst.msk [vmem:[%s2731_s25 + $0x60] sm:$0xf] %vm1727_vm2, %v2040_v19  ;;  %v2041_v54 = vpack.c.bf16 %v1592_v21, %v1592_v21 }
 0x160   : > { %1755 = vst.msk [vmem:[%s2731_s25 + $0x6c] sm:$0xf] %vm1727_vm2, %v2043_v23 }
 0x161   : > { %v2448_v3 = vpop.eup %2447  ;;  %1753 = vst.msk [vmem:[%s2731_s25 + $0x64] sm:$0xf] %vm1727_vm2, %v2041_v54 }
 0x162   : > { %v2450_v35 = vpop.eup %2449  ;;  %v1597_v34 = vmul.f32 %v2448_v3, %v2822_v1 }
 0x163   : > { %v2452_v24 = vpop.eup %2451  ;;  %v1595_v43 = vmul.f32 %v2450_v35, %v2832_v22 }
 0x164   : > { %v2454_v26 = vpop.eup %2453  ;;  %v2046_v58 = vpack.c.bf16 %v1597_v34, %v1597_v34  ;;  %v1598_v28 = vmul.f32 %v2452_v24, %v2838_v4 }
 0x165   : > { %v2044_v29 = vpack.c.bf16 %v1595_v43, %v1595_v43  ;;  %v1596_v5 = vmul.f32 %v2454_v26, %v2842_v30 }
 0x166   : > { %1758 = vst.msk [vmem:[%s2731_s25 + $0x78] sm:$0xf] %vm1727_vm2, %v2046_v58  ;;  %v2047_v60 = vpack.c.bf16 %v1598_v28, %v1598_v28 }
 0x167   : > { %1756 = vst.msk [vmem:[%s2731_s25 + $0x70] sm:$0xf] %vm1727_vm2, %v2044_v29  ;;  %v2045_v32 = vpack.c.bf16 %v1596_v5, %v1596_v5 }
 0x168   : > { %1759 = vst.msk [vmem:[%s2731_s25 + $0x7c] sm:$0xf] %vm1727_vm2, %v2047_v60 }
 0x169   : > { %1757 = vst.msk [vmem:[%s2731_s25 + $0x74] sm:$0xf] %vm1727_vm2, %v2045_v32 }
 0x16a PF: > { %s17_s24 = sadd.s32 1, %s2461_s24  }
 0x16b   : > { %p14_p4 = scmp.ge.s32.totalorder %s17_s24, 4  }
 0x16d   :  { %16 = sbr.rel (!%p14_p4) target bundleno = 1 (0x1), region = 84 }

// kernel: csp_stage_forward.7
= control target key start
LH: loop header
LB: loop body
LE: loop exit
PB: predicated region body
PF: predicated region fallthrough
CT: control target
= control target key end

     0   :  { %s6272_s15 = smov 0   ;;  %s7889_s0 = inlined_call_operand.vmem [shape: bf16[2,326,4], index: 0, kind: input, shape index: {}]   ;;  %s7890_s1 = inlined_call_operand.vmem [shape: bf16[9,4,4], index: 1, kind: input, shape index: {}]   ;;  %s7891_s2 = inlined_call_operand.vmem [shape: f32[1,4], index: 2, kind: input, shape index: {}]   ;;  %s7892_s3 = inlined_call_operand.vmem [shape: f32[288,1], index: 3, kind: input, shape index: {}]   ;;  %s7893_s4 = inlined_call_operand.vmem [shape: bf16[2,326,4], index: 4, kind: output, shape index: {}]  }
   0x1 LB: > { %s4845_s16 = sadd.s32 4294967295, %s6244_s15   ;;  %p4849_p0 = scmp.ge.s32.totalorder %s6244_s15, 1  ;;  %s6244_s15 = sphi %s6272_s15, %s14_s15  }
   0x2   : > { %p162_p1 = scmp.lt.s32.totalorder %s6244_s15, 3 }
   0x4   : > { %p163_p2 = pnand %p4849_p0, %p162_p1 }
   0x6   : > { %166 = sbr.rel (%p163_p2) target bundleno = 678 (0x2a6), region = 36 }
   0xd   : > { %vm536_vm0 = vcmask 1041408   ;;  %v4966_v0 = vld [vmem:[%s7890_s1 + $0x8] sm:$0x3]  ;;  %v4852_v1 = vld [vmem:[%s7890_s1 + $0x2] sm:$0x3]  ;;  %p188_p3 = scmp.lt.s32.totalorder %s4845_s16, 1 }
   0xe   : > { %6002 = vmatprep.subr.msk.bf16.mxu0 %vm536_vm0, %v4966_v0  ;;  %5998 = vmatprep.subr.msk.bf16.mxu1 %vm536_vm0, %v4852_v1  ;;  %v6289_v2 = vsel %vm536_vm0, %v4966_v0, 0  ;;  %v538_v3 = vsel %vm536_vm0, %v4852_v1, 0  ;;  %v4986_v4 = vld [vmem:[%s7890_s1 + $0xa] sm:$0x3]  ;;  %v235_v5 = vld [vmem:[%s7890_s1] sm:$0x3] }
   0xf   : > { %5519 = vmatpush3.bf16.msra.mxu0 %v6289_v2  ;;  %5367 = vmatpush3.bf16.msra.mxu1 %v538_v3  ;;  %s7905_s16 = smov (!%p188_p3, %s4845_s16), 1  ;;  %vm332_vm1 = vsmask.f32 7424  ;;  %vm481_vm2 = vcmask 31744   ;;  %v6312_v6 = vsel %vm536_vm0, %v4986_v4, 0  ;;  %v754_v12 = vsel %vm536_vm0, %v235_v5, 0 }
  0x10   : > { %6004 = vmatprep.subr.msk.bf16.mxu0 %vm536_vm0, %v4986_v4  ;;  %s6008_s25 = smul.u32 164, %s7905_s16  ;;  %5999 = vmatprep.subr.msk.bf16.mxu1 %vm536_vm0, %v235_v5  ;;  %vm1692_vm3 = vsmask.f32 6400  ;;  %v6360_v39 = vld [vmem:[%s7890_s1 + $0x4] sm:$0x3]  ;;  %vm2139_vm4 = vcmask 1045504  }
  0x11   : > { %v6394_v1 = vld [vmem:[%s7890_s1 + $0xc] sm:$0x3]  ;;  %vm939_vm5 = vcmask 1046528   ;;  %vm2892_vm6 = vsmask.f32 5376  ;;  %vm3339_vm7 = vcmask 1044480  }
  0x12   : > { %s6309_s28 = scalar_lea.vmem %s7889_s0, %s6008_s25  ;;  %s7203_s24 = scalar_lea.vmem %s7893_s4, %s6008_s25  ;;  %vm4194_vm8 = vcmask 27648   ;;  %vm4744_vm9 = vcmask 27649   ;;  %vm4745_vm10 = vsmask.f32 7942  ;;  %vm4345_vm11 = vsmask.f32 1280 }
  0x13   : > { %v199_v7 = vld [vmem:[%s6309_s28] sm:$0xf]  ;;  %v6316_v8 = vld [vmem:[%s6309_s28 + $0x4] sm:$0xf]  ;;  %v6322_v10 = vld [vmem:[%s6309_s28 + $0x8] sm:$0xff]   ;;  %vm4235_vm15 = vcmask 26624  }
  0x14   : > { %v6319_v9 = vcombine.low %v199_v7, %v6316_v8  ;;  %v1247_v11 = vld [vmem:[%s6309_s28 + $0x8] sm:$0xe]  ;;  %v6327_v13 = vld [vmem:[%s6309_s28 + $0xc] sm:$0xf]  ;;  %v341_v16 = vshll.u32 %v6322_v10, 16  ;;  %v345_v17 = vshrl.u32 %v6322_v10, 16  ;;  %vm7466_vm13 = vmand %vm4744_vm9, %vm4745_vm10 }
  0x15   : > { %v6334_v18 = vld [vmem:[%s6309_s28 + $0x10] sm:$0xff]   ;;  %v6340_v20 = vcombine.low %v1247_v11, %v6327_v13  ;;  %v6348_v28 = vld [vmem:[%s6309_s28 + $0x18] sm:$0xff]   ;;  %v6354_v34 = vld [vmem:[%s6309_s28 + $0x20] sm:$0xff]   ;;  %vm4346_vm12 = vsmask.f32 5392 }
  0x16   : > { %v334_v14 = vshrl.u32 %v6319_v9, 16  ;;  %v336_v15 = vshll.u32 %v6319_v9, 16  ;;  %v6337_v19 = vld [vmem:[%s6309_s28 + $0x10] sm:$0xff]   ;;  %v343_v22 = vrot.slane %v341_v16, 1  ;;  %v1702_v23 = vshrl.u32 %v6334_v18, 16  ;;  %v6351_v33 = vld [vmem:[%s6309_s28 + $0x18] sm:$0xff]   ;;  %vm7478_vm14 = vmor %vm4345_vm11, %vm4346_vm12 }
  0x17   : > { %v1705_v24 = vshll.u32 %v6334_v18, 16  ;;  %v1694_v25 = vshrl.u32 %v6340_v20, 16  ;;  %v1697_v26 = vshll.u32 %v6340_v20, 16  ;;  %v349_v27 = vshll.u32 %v6337_v19, 16  ;;  %v6369_v48 = vld [vmem:[%s6309_s28 + $0x20] sm:$0xff]   ;;  %v6372_v49 = vld [vmem:[%s6309_s28 + $0x28] sm:$0xff]  }
  0x18   : > { %v338_v21 = vrot.slane %v336_v15, 1  ;;  %v347_v30 = vor.u32 %v345_v17, %v343_v22  ;;  %v1704_v31 = vrot.slane %v1702_v23, 1  ;;  %v1711_v38 = vshrl.u32 %v6348_v28, 16  ;;  %v6378_v54 = vld [vmem:[%s6309_s28 + $0x28] sm:$0xff]   ;;  %v6384_v59 = vld [vmem:[%s6309_s28 + $0x30] sm:$0xff]   ;;  %v6408_v23 = vld [vmem:[%s6309_s28 + $0x38] sm:$0xff]  }
  0x19   : > { %v1707_v32 = vrot.slane %v1705_v24, 2  ;;  %v1696_v35 = vrot.slane %v1694_v25, 1  ;;  %v1699_v36 = vrot.slane %v1697_v26, 2  ;;  %v351_v37 = vrot.slane %v349_v27, 1  ;;  %v6389_v0 = vld [vmem:[%s6309_s28 + $0x30] sm:$0xff]  }
  0x1a   : > { %v339_v29 = vor.u32 %v338_v21, %v334_v14  ;;  %v1714_v42 = vshll.u32 %v6348_v28, 16  ;;  %v353_v43 = vshrl.u32 %v6337_v19, 16  ;;  %v1713_v46 = vrot.slane %v1711_v38, 1 }
  0x1b   : > { %v1708_v41 = vor.u32 %v1707_v32, %v1704_v31  ;;  %v1700_v44 = vor.u32 %v1699_v36, %v1696_v35  ;;  %v352_v45 = vsel %vm332_vm1, %v347_v30, %v351_v37  ;;  %v357_v47 = vshll.u32 %v6351_v33, 16  ;;  %v6417_v35 = vld [vmem:[%s6309_s28 + $0x38] sm:$0xff]  }
  0x1c   : > { %v344_v40 = vsel %vm332_vm1, %v339_v29, %v343_v22  ;;  %v1716_v50 = vrot.slane %v1714_v42, 2  ;;  %v355_v51 = vor.u32 %v353_v43, %v351_v37  ;;  %v1720_v52 = vshrl.u32 %v6354_v34, 16 }
  0x1d   : > { %5368 = vmatprep.mubr.msk.bf16.mxu1 %vm481_vm2, %v344_v40  ;;  %v1723_v53 = vshll.u32 %v6354_v34, 16  ;;  %v1709_v55 = vsel %vm1692_vm3, %v1700_v44, %v1708_v41  ;;  %v359_v56 = vrot.slane %v357_v47, 1  ;;  %v361_v57 = vshrl.u32 %v6351_v33, 16  ;;  %v6428_v44 = vld [vmem:[%s6309_s28 + $0x40] sm:$0xff]  }
  0x1e   : > { %5369 = vmatmul.mubr.msk.bf16.vlgmr.msra.gmra.mrb[0].mxu1 %vm481_vm2, %v352_v45  ;;  %v365_v58 = vshll.u32 %v6369_v48, 16  ;;  %5520 = vmatprep.mubr.msk.bf16.mxu0 %vm481_vm2, %v1709_v55  ;;  %v1717_v60 = vor.u32 %v1716_v50, %v1713_v46  ;;  %v1722_v61 = vrot.slane %v1720_v52, 1  ;;  %v1729_v63 = vshrl.u32 %v6372_v49, 16 }
  0x1f   : > { %5405 = vmatpush3.bf16.msra.mxu1 %v754_v12  ;;  %v1725_v62 = vrot.slane %v1723_v53, 2  ;;  %v360_v3 = vsel %vm332_vm1, %v355_v51, %v359_v56  ;;  %v363_v4 = vor.u32 %v361_v57, %v359_v56  ;;  %v1732_v7 = vshll.u32 %v6372_v49, 16  ;;  %v6433_v51 = vld [vmem:[%s6309_s28 + $0x40] sm:$0xff]  }
  0x20   : > { %6000 = vmatprep.subr.msk.bf16.mxu1 %vm536_vm0, %v6360_v39  ;;  %v367_v5 = vrot.slane %v365_v58, 1  ;;  %v1718_v11 = vsel %vm1692_vm3, %v1708_v41, %v1717_v60  ;;  %5372 = vmatprep.mubr.msk.bf16.mxu1 %vm481_vm2, %v360_v3  ;;  %v1731_v14 = vrot.slane %v1729_v63, 1  ;;  %v369_v15 = vshrl.u32 %v6369_v48, 16  ;;  %v6444_v63 = vld [vmem:[%s6309_s28 + $0x48] sm:$0xff]  }
  0x21   : > { %v1726_v12 = vor.u32 %v1725_v62, %v1722_v61  ;;  %5521 = vmatmul.mubr.msk.bf16.vlgmr.msra.gmra.mrb[0].mxu0 %vm481_vm2, %v1718_v11  ;;  %v1734_v17 = vrot.slane %v1732_v7, 2  ;;  %v373_v21 = vshll.u32 %v6378_v54, 16  ;;  %v1738_v22 = vshrl.u32 %v6384_v59, 16  ;;  %v6441_v62 = vld [vmem:[%s6309_s28 + $0x48] sm:$0xff]  }
  0x22   : > { %v368_v16 = vsel %vm332_vm1, %v363_v4, %v367_v5  ;;  %5557 = vmatpush3.bf16.msra.mxu0 %v6312_v6  ;;  %v371_v25 = vor.u32 %v369_v15, %v367_v5  ;;  %v1741_v26 = vshll.u32 %v6384_v59, 16  ;;  %v377_v27 = vshrl.u32 %v6378_v54, 16 }
  0x23   : > { %v1727_v24 = vsel %vm1692_vm3, %v1717_v60, %v1726_v12  ;;  %v1735_v29 = vor.u32 %v1734_v17, %v1731_v14  ;;  %v375_v30 = vrot.slane %v373_v21, 1  ;;  %v1740_v31 = vrot.slane %v1738_v22, 1  ;;  %6005 = vmatprep.subr.msk.bf16.mxu0 %vm536_vm0, %v6394_v1  ;;  %v6453_v14 = vld [vmem:[%s6309_s28 + $0x50] sm:$0xff]  }
  0x24   : > { %5524 = vmatprep.mubr.msk.bf16.mxu0 %vm481_vm2, %v1727_v24  ;;  %v381_v32 = vshll.u32 %v6389_v0, 16  ;;  %v1743_v6 = vrot.slane %v1741_v26, 2  ;;  %v1747_v36 = vshrl.u32 %v6408_v23, 16  ;;  %v1750_v37 = vshll.u32 %v6408_v23, 16 }
  0x25   : > { %v385_v38 = vshrl.u32 %v6389_v0, 16  ;;  %v1736_v40 = vsel %vm1692_vm3, %v1726_v12, %v1735_v29  ;;  %v376_v41 = vsel %vm332_vm1, %v371_v25, %v375_v30  ;;  %v379_v42 = vor.u32 %v377_v27, %v375_v30  ;;  %v6461_v25 = vld [vmem:[%s6309_s28 + $0x50] sm:$0xff]  }
  0x26   : > { %5373 = vmatmul.mubr.msk.bf16.gmra.mrb[4].mxu1 %vm481_vm2, %v368_v16  ;;  %v383_v43 = vrot.slane %v381_v32, 1  ;;  %v1744_v45 = vor.u32 %v1743_v6, %v1740_v31  ;;  %v1749_v46 = vrot.slane %v1747_v36, 1  ;;  %v1752_v47 = vrot.slane %v1750_v37, 2 }
  0x27   : > { %5376 = vmatprep.mubr.msk.bf16.mxu1 %vm481_vm2, %v376_v41  ;;  %v389_v50 = vshll.u32 %v6417_v35, 16  ;;  %v1756_v55 = vshrl.u32 %v6428_v44, 16  ;;  %v1759_v56 = vshll.u32 %v6428_v44, 16  ;;  %v393_v61 = vshrl.u32 %v6417_v35, 16  ;;  %v6471_v41 = vld [vmem:[%s6309_s28 + $0x58] sm:$0xff]  }
  0x28   : > { %v384_v52 = vsel %vm332_vm1, %v379_v42, %v383_v43  ;;  %v387_v53 = vor.u32 %v385_v38, %v383_v43  ;;  %v1745_v57 = vsel %vm1692_vm3, %v1735_v29, %v1744_v45  ;;  %v1753_v58 = vor.u32 %v1752_v47, %v1749_v46  ;;  %v6466_v29 = vld [vmem:[%s6309_s28 + $0x58] sm:$0xff]  }
  0x29   : > { %v391_v60 = vrot.slane %v389_v50, 1  ;;  %5525 = vmatmul.mubr.msk.bf16.gmra.mrb[4].mxu0 %vm481_vm2, %v1736_v40  ;;  %v1758_v3 = vrot.slane %v1756_v55, 1  ;;  %v1761_v4 = vrot.slane %v1759_v56, 2  ;;  %v397_v5 = vshll.u32 %v6433_v51, 16 }
  0x2a   : > { %v401_v7 = vshrl.u32 %v6433_v51, 16  ;;  %5528 = vmatprep.mubr.msk.bf16.mxu0 %vm481_vm2, %v1745_v57  ;;  %v1765_v12 = vshrl.u32 %v6441_v62, 16  ;;  %v1768_v16 = vshll.u32 %v6441_v62, 16  ;;  %v405_v17 = vshll.u32 %v6444_v63, 16  ;;  %v2133_v57 = vld [vmem:[%s6309_s28 + $0x8] sm:$0xc] }
  0x2b   : > { %v392_v11 = vsel %vm332_vm1, %v387_v53, %v391_v60  ;;  %v1762_v15 = vor.u32 %v1761_v4, %v1758_v3  ;;  %v399_v21 = vrot.slane %v397_v5, 1  ;;  %v1774_v22 = vshrl.u32 %v6453_v14, 16 }
  0x2c   : > { %v1777_v24 = vshll.u32 %v6453_v14, 16  ;;  %v1754_v26 = vsel %vm1692_vm3, %v1744_v45, %v1753_v58  ;;  %v395_v27 = vor.u32 %v393_v61, %v391_v60  ;;  %v1767_v30 = vrot.slane %v1765_v12, 1 }
  0x2d   : > { %v1770_v31 = vrot.slane %v1768_v16, 2  ;;  %v403_v32 = vor.u32 %v401_v7, %v399_v21  ;;  %v407_v6 = vrot.slane %v405_v17, 1  ;;  %v1763_v36 = vsel %vm1692_vm3, %v1753_v58, %v1762_v15  ;;  %v6485_v58 = vld [vmem:[%s6309_s28 + $0x60] sm:$0xff]  }
  0x2e   : > { %5377 = vmatmul.mubr.msk.bf16.gmra.mrb[8].mxu1 %vm481_vm2, %v384_v52  ;;  %v1776_v37 = vrot.slane %v1774_v22, 1  ;;  %v1779_v38 = vrot.slane %v1777_v24, 2  ;;  %v413_v40 = vshll.u32 %v6461_v25, 16  ;;  %v400_v42 = vsel %vm332_vm1, %v395_v27, %v399_v21 }
  0x2f   : > { %5380 = vmatprep.mubr.msk.bf16.mxu1 %vm481_vm2, %v392_v11  ;;  %v409_v43 = vshrl.u32 %v6444_v63, 16  ;;  %v1783_v45 = vshrl.u32 %v6466_v29, 16  ;;  %v1786_v46 = vshll.u32 %v6466_v29, 16  ;;  %v1771_v47 = vor.u32 %v1770_v31, %v1767_v30  ;;  %v6490_v11 = vld [vmem:[%s6309_s28 + $0x68] sm:$0xff]  }
  0x30   : > { %v408_v50 = vsel %vm332_vm1, %v403_v32, %v407_v6  ;;  %v417_v52 = vshrl.u32 %v6461_v25, 16  ;;  %v421_v53 = vshll.u32 %v6471_v41, 16  ;;  %v1780_v55 = vor.u32 %v1779_v38, %v1776_v37  ;;  %v6507_v32 = vld [vmem:[%s6309_s28 + $0x70] sm:$0xff]  }
  0x31   : > { %5529 = vmatmul.mubr.msk.bf16.gmra.mrb[8].mxu0 %vm481_vm2, %v1754_v26  ;;  %v415_v56 = vrot.slane %v413_v40, 1  ;;  %v411_v60 = vor.u32 %v409_v43, %v407_v6  ;;  %v1785_v61 = vrot.slane %v1783_v45, 1  ;;  %v1788_v3 = vrot.slane %v1786_v46, 2  ;;  %v6513_v40 = vld [vmem:[%s6309_s28 + $0x78] sm:$0xff]  }
  0x32   : > { %5532 = vmatprep.mubr.msk.bf16.mxu0 %vm481_vm2, %v1763_v36  ;;  %v1772_v4 = vsel %vm1692_vm3, %v1762_v15, %v1771_v47  ;;  %v423_v7 = vrot.slane %v421_v53, 1  ;;  %v1781_v12 = vsel %vm1692_vm3, %v1771_v47, %v1780_v55  ;;  %v4987_v16 = vcombine.low %v2133_v57, %v6327_v13 }
  0x33   : > { %v419_v5 = vor.u32 %v417_v52, %v415_v56  ;;  %v429_v17 = vshll.u32 %v6485_v58, 16  ;;  %v416_v21 = vsel %vm332_vm1, %v411_v60, %v415_v56  ;;  %v425_v22 = vshrl.u32 %v6471_v41, 16  ;;  %v6528_v56 = vld [vmem:[%s6309_s28 + $0x80] sm:$0xff]  }
  0x34   : > { %v6499_v15 = vor.u32 %v1788_v3, %v1785_v61  ;;  %v433_v26 = vshrl.u32 %v6485_v58, 16  ;;  %v437_v27 = vshll.u32 %v6490_v11, 16  ;;  %v2140_v13 = vrot.slane %v4987_v16, 2 }
  0x35   : > { %v424_v24 = vsel %vm332_vm1, %v419_v5, %v423_v7  ;;  %v2141_v30 = vrot.slane %v6334_v18, 2  ;;  %v431_v31 = vrot.slane %v429_v17, 1  ;;  %v427_v6 = vor.u32 %v425_v22, %v423_v7 }
  0x36   : > { %5381 = vmatmul.mubr.msk.bf16.gmra.mrb[12].mxu1 %vm481_vm2, %v400_v42  ;;  %v1790_v36 = vsel %vm1692_vm3, %v1780_v55, %v6499_v15  ;;  %v439_v38 = vrot.slane %v437_v27, 1  ;;  %v445_v18 = vshll.u32 %v6507_v32, 16  ;;  %v2143_v45 = vrot.slane %v6348_v28, 2  ;;  %v6558_v27 = vld [vmem:[%s6309_s28 + $0x90] ss:$0 sps:$4 sm:$0x11]  }
  0x37   : > { %5384 = vmatprep.mubr.msk.bf16.mxu1 %vm481_vm2, %v408_v50  ;;  %v435_v37 = vor.u32 %v433_v26, %v431_v31  ;;  %v2142_v42 = vsel %vm2139_vm4, %v2140_v13, %v2141_v30  ;;  %v432_v43 = vsel %vm332_vm1, %v427_v6, %v431_v31  ;;  %v441_v46 = vshrl.u32 %v6490_v11, 16 }
  0x38   : > { %v449_v50 = vshrl.u32 %v6507_v32, 16  ;;  %v453_v52 = vshll.u32 %v6513_v40, 16  ;;  %v2145_v53 = vrot.slane %v6354_v34, 2  ;;  %v447_v55 = vrot.slane %v445_v18, 1  ;;  %v6541_v34 = vld [vmem:[%s7890_s1 + $0xe] sm:$0x3] }
  0x39   : > { %5533 = vmatmul.mubr.msk.bf16.gmra.mrb[12].mxu0 %vm481_vm2, %v1772_v4  ;;  %v440_v47 = vsel %vm332_vm1, %v435_v37, %v439_v38  ;;  %v2671_v28 = vsel %vm536_vm0, %v6394_v1, 0  ;;  %v443_v57 = vor.u32 %v441_v46, %v439_v38  ;;  %v2144_v60 = vsel %vm2139_vm4, %v2141_v30, %v2143_v45  ;;  %v6535_v4 = vld [vmem:[%s6309_s28 + $0x88] sm:$0xff]  }
  0x3a   : > { %5536 = vmatprep.mubr.msk.bf16.mxu0 %vm481_vm2, %v1781_v12  ;;  %v451_v61 = vor.u32 %v449_v50, %v447_v55  ;;  %v455_v3 = vrot.slane %v453_v52, 1  ;;  %v2146_v5 = vsel %vm2139_vm4, %v2143_v45, %v2145_v53  ;;  %v461_v7 = vshll.u32 %v6528_v56, 16 }
  0x3b   : > { %v448_v1 = vsel %vm332_vm1, %v443_v57, %v447_v55  ;;  %v2147_v12 = vrot.slane %v6372_v49, 2  ;;  %v457_v16 = vshrl.u32 %v6513_v40, 16  ;;  %v469_v22 = vshll.u32 %v6535_v4, 16  ;;  %v6585_v55 = vld [vmem:[%s6309_s28 + $0x60] sm:$0xff]   ;;  %v6604_v57 = vld [vmem:[%s6309_s28 + $0x68] sm:$0xff]  }
  0x3c   : > { %v456_v17 = vsel %vm332_vm1, %v451_v61, %v455_v3  ;;  %v463_v26 = vrot.slane %v461_v7, 1  ;;  %v477_v37 = vshll.u32 %v6558_v27, 16  ;;  %v2151_v38 = vrot.slane %v6408_v23, 2  ;;  %v6622_v7 = vld [vmem:[%s6309_s28 + $0x78] sm:$0xff]  }
  0x3d   : > { %v459_v49 = vor.u32 %v457_v16, %v455_v3  ;;  %v2148_v13 = vsel %vm2139_vm4, %v2145_v53, %v2147_v12  ;;  %v471_v31 = vrot.slane %v469_v22, 1  ;;  %v2153_v18 = vrot.slane %v6428_v44, 2  ;;  %v6638_v22 = vld [vmem:[%s6309_s28 + $0x88] sm:$0xff]  }
  0x3e   : > { %5385 = vmatmul.mubr.msk.bf16.gmra.mrb[16].mxu1 %vm481_vm2, %v416_v21  ;;  %v465_v21 = vshrl.u32 %v6528_v56, 16  ;;  %v479_v45 = vrot.slane %v477_v37, 1  ;;  %v2155_v23 = vrot.slane %v6441_v62, 2  ;;  %v2157_v44 = vrot.slane %v6453_v14, 2 }
  0x3f   : > { %5388 = vmatprep.mubr.msk.bf16.mxu1 %vm481_vm2, %v424_v24  ;;  %v2149_v24 = vrot.slane %v6384_v59, 2  ;;  %v464_v59 = vsel %vm332_vm1, %v459_v49, %v463_v26  ;;  %v2159_v62 = vrot.slane %v6466_v29, 2  ;;  %v1032_v14 = vsel %vm536_vm0, %v6360_v39, 0 }
  0x40   : > { %v467_v30 = vor.u32 %v465_v21, %v463_v26  ;;  %v2156_v52 = vsel %vm2139_vm4, %v2153_v18, %v2155_v23  ;;  %v2158_v53 = vsel %vm2139_vm4, %v2155_v23, %v2157_v44  ;;  %v2163_v61 = vrot.slane %v6604_v57, 2  ;;  %v6642_v26 = vld [vmem:[%s6309_s28 + $0x90] sm:$0xff]  }
  0x41   : > { %5537 = vmatmul.mubr.msk.bf16.gmra.mrb[16].mxu0 %vm481_vm2, %v1790_v36  ;;  %v2150_v6 = vsel %vm2139_vm4, %v2147_v12, %v2149_v24  ;;  %v473_v36 = vshrl.u32 %v6535_v4, 16  ;;  %v2152_v46 = vsel %vm2139_vm4, %v2149_v24, %v2151_v38  ;;  %v2160_v29 = vsel %vm2139_vm4, %v2157_v44, %v2159_v62  ;;  %v6626_v12 = vld [vmem:[%s6309_s28 + $0x80] sm:$0xff]  }
  0x42   : > { %5558 = vmatprep.mubr.msk.bf16.mxu0 %vm481_vm2, %v2142_v42  ;;  %v472_v42 = vsel %vm332_vm1, %v467_v30, %v471_v31  ;;  %v2167_v16 = vrot.slane %v6622_v7, 2  ;;  %v2171_v49 = vrot.slane %v6638_v22, 2  ;;  %v2447_v30 = vld [vmem:[%s6309_s28 + $0x10] sm:$0xc] }
  0x46   : > { %5389 = vmatmul.mubr.msk.bf16.gmra.mrb[20].mxu1 %vm481_vm2, %v432_v43  ;;  %v475_v43 = vor.u32 %v473_v36, %v471_v31  ;;  %v6652_v31 = vld [vmem:[%s6309_s28 + $0x14] sm:$0xf] }
  0x47   : > { %5392 = vmatprep.mubr.msk.bf16.mxu1 %vm481_vm2, %v440_v47  ;;  %v2154_v47 = vsel %vm2139_vm4, %v2151_v38, %v2153_v18  ;;  %v6662_v37 = vcombine.low %v2447_v30, %v6652_v31  ;;  %v6665_v38 = vld [vmem:[%s6309_s28 + $0x18] sm:$0xff]  }
  0x48   : > { %v480_v50 = vsel %vm332_vm1, %v475_v43, %v479_v45  ;;  %v2580_v43 = vrot.slane %v6665_v38, 2 }
  0x49   : > { %5559 = vmatmul.mubr.msk.bf16.vlgmr.msra.gmra.mrb[0].mxu0 %vm481_vm2, %v2144_v60  ;;  %v6610_v60 = vld [vmem:[%s6309_s28 + $0x70] sm:$0xff]   ;;  %v2579_v18 = vrot.slane %v6662_v37, 2 }
  0x4a   : > { %5595 = vmatpush3.bf16.msra.mxu0 %v2671_v28  ;;  %5562 = vmatprep.mubr.msk.bf16.mxu0 %vm481_vm2, %v2146_v5  ;;  %v2161_v28 = vrot.slane %v6585_v55, 2  ;;  %v2165_v3 = vrot.slane %v6610_v60, 2 }
  0x4b   : > { %6006 = vmatprep.subr.msk.bf16.mxu0 %vm536_vm0, %v6541_v34 }
  0x4c   : > { %v2162_v39 = vsel %vm2139_vm4, %v2159_v62, %v2161_v28  ;;  %v2164_v5 = vsel %vm2139_vm4, %v2161_v28, %v2163_v61  ;;  %v2168_v21 = vsel %vm2139_vm4, %v2165_v3, %v2167_v16  ;;  %v3118_v62 = vsel %vm536_vm0, %v6541_v34, 0  ;;  %v6700_v28 = vld [vmem:[%s6309_s28 + $0x38] sm:$0xff]  }
  0x4e   : > { %5393 = vmatmul.mubr.msk.bf16.gmra.mrb[24].mxu1 %vm481_vm2, %v448_v1  ;;  %v2166_v1 = vsel %vm2139_vm4, %v2163_v61, %v2165_v3  ;;  %v2588_v61 = vrot.slane %v6700_v28, 2  ;;  %v6719_v3 = vld [vmem:[%s6309_s28 + $0x40] sm:$0xff]  }
  0x4f   : > { %5396 = vmatprep.mubr.msk.bf16.mxu1 %vm481_vm2, %v456_v17  ;;  %v2169_v17 = vrot.slane %v6626_v12, 2 }
  0x51   : > { %5563 = vmatmul.mubr.msk.bf16.gmra.mrb[4].mxu0 %vm481_vm2, %v2148_v13  ;;  %v2170_v24 = vsel %vm2139_vm4, %v2167_v16, %v2169_v17  ;;  %v2173_v13 = vrot.slane %v6642_v26, 2  ;;  %v933_v16 = vld [vmem:[%s6309_s28] sm:$0xe] }
  0x52   : > { %5566 = vmatprep.mubr.msk.bf16.mxu0 %vm481_vm2, %v2150_v6  ;;  %v2172_v6 = vsel %vm2139_vm4, %v2169_v17, %v2171_v49  ;;  %v2590_v17 = vrot.slane %v6719_v3, 2 }
  0x53   : > { %v2174_v36 = vsel %vm2139_vm4, %v2171_v49, %v2173_v13 }
  0x54   : > { %v2591_v49 = vsel %vm2139_vm4, %v2588_v61, %v2590_v17 }
  0x56   : > { %5397 = vmatmul.mubr.msk.bf16.gmra.mrb[28].mxu1 %vm481_vm2, %v464_v59  ;;  %v6658_v59 = vld [vmem:[%s6309_s28 + $0x98] ss:$0 sps:$4 sm:$0x33]  }
  0x57   : > { %5400 = vmatprep.mubr.msk.bf16.mxu1 %vm481_vm2, %v472_v42  ;;  %v2175_v42 = vrot.slane %v6658_v59, 2 }
  0x59   : > { %5567 = vmatmul.mubr.msk.bf16.gmra.mrb[8].mxu0 %vm481_vm2, %v2152_v46  ;;  %v2176_v45 = vsel %vm2139_vm4, %v2173_v13, %v2175_v42  ;;  %v6678_v46 = vld [vmem:[%s6309_s28 + $0x20] sm:$0xff]   ;;  %v6737_v13 = vld [vmem:[%s6309_s28 + $0x50] sm:$0xff]  }
  0x5a   : > { %5570 = vmatprep.mubr.msk.bf16.mxu0 %vm481_vm2, %v2154_v47  ;;  %v2581_v47 = vsel %vm2139_vm4, %v2579_v18, %v2580_v43  ;;  %v2582_v23 = vrot.slane %v6678_v46, 2  ;;  %v2594_v42 = vrot.slane %v6737_v13, 2 }
  0x5e   : > { %5401 = vmatmul.mubr.msk.bf16.gmra.mrb[32].mxu1 %vm481_vm2, %v480_v50  ;;  %v6682_v50 = vld [vmem:[%s6309_s28 + $0x28] sm:$0xff]  }
  0x5f   : > { %5406 = vmatprep.mubr.msk.bf16.mxu1 %vm481_vm2, %v6319_v9  ;;  %v6596_v9 = vld [vmem:[%s7890_s1 + $0x6] sm:$0x3]  ;;  %v2584_v44 = vrot.slane %v6682_v50, 2 }
  0x61   : > { %5571 = vmatmul.mubr.msk.bf16.gmra.mrb[12].mxu0 %vm481_vm2, %v2156_v52  ;;  %v2583_v52 = vsel %vm2139_vm4, %v2580_v43, %v2582_v23 }
  0x62   : > { %5574 = vmatprep.mubr.msk.bf16.mxu0 %vm481_vm2, %v2158_v53  ;;  %v6694_v53 = vld [vmem:[%s6309_s28 + $0x30] sm:$0xff]  }
  0x66   : > { %5407 = vmatmul.mubr.msk.bf16.vlgmr.msra.gmra.mrb[0].mxu1 %vm481_vm2, %v6322_v10 }
  0x67   : > { %5410 = vmatprep.mubr.msk.bf16.mxu1 %vm481_vm2, %v6337_v19  ;;  %5443 = vmatpush3.bf16.msra.mxu1 %v1032_v14  ;;  %v2585_v14 = vsel %vm2139_vm4, %v2582_v23, %v2584_v44  ;;  %v945_v23 = vrot.slane %v6351_v33, 1 }
  0x68   : > { %6001 = vmatprep.subr.msk.bf16.mxu1 %vm536_vm0, %v6596_v9 }
  0x69   : > { %5575 = vmatmul.mubr.msk.bf16.gmra.mrb[16].mxu0 %vm481_vm2, %v2160_v29  ;;  %v6705_v29 = vld [vmem:[%s7890_s1 + $0x10] sm:$0x3] }
  0x6a   : > { %5578 = vmatprep.mubr.msk.bf16.mxu0 %vm481_vm2, %v2162_v39  ;;  %v2586_v39 = vrot.slane %v6694_v53, 2 }
  0x6c   : > { %v2587_v34 = vsel %vm2139_vm4, %v2584_v44, %v2586_v39 }
  0x6e   : > { %5411 = vmatmul.mubr.msk.bf16.gmra.mrb[4].mxu1 %vm481_vm2, %v6351_v33 }
  0x6f   : > { %5414 = vmatprep.mubr.msk.bf16.mxu1 %vm481_vm2, %v6369_v48 }
  0x71   : > { %5579 = vmatmul.mubr.msk.bf16.gmra.mrb[20].mxu0 %vm481_vm2, %v2164_v5  ;;  %v2589_v5 = vsel %vm2139_vm4, %v2586_v39, %v2588_v61  ;;  %v1471_v39 = vsel %vm536_vm0, %v6596_v9, 0  ;;  %v947_v61 = vrot.slane %v6369_v48, 1  ;;  %v6226_v9 = vld [vmem:[%s7890_s1 + $0x8] sm:$0x3] }
  0x72   : > { %5582 = vmatprep.mubr.msk.bf16.mxu0 %vm481_vm2, %v2166_v1  ;;  %v6723_v1 = vld [vmem:[%s6309_s28 + $0x48] sm:$0xff]  }
  0x73   : > { %v948_v48 = vsel %vm939_vm5, %v945_v23, %v947_v61 }
  0x76   : > { %5415 = vmatmul.mubr.msk.bf16.gmra.mrb[8].mxu1 %vm481_vm2, %v6378_v54 }
  0x77   : > { %5418 = vmatprep.mubr.msk.bf16.mxu1 %vm481_vm2, %v6389_v0 }
  0x79   : > { %5583 = vmatmul.mubr.msk.bf16.gmra.mrb[24].mxu0 %vm481_vm2, %v2168_v21  ;;  %v4909_v21 = vcombine.low %v933_v16, %v6316_v8  ;;  %v6742_v8 = vld [vmem:[%s6309_s28 + $0x58] sm:$0xff]   ;;  %v949_v16 = vrot.slane %v6378_v54, 1 }
  0x7a   : > { %5586 = vmatprep.mubr.msk.bf16.mxu0 %vm481_vm2, %v2170_v24  ;;  %v2592_v24 = vrot.slane %v6723_v1, 2  ;;  %v2596_v43 = vrot.slane %v6742_v8, 2 }
  0x7b   : > { %v940_v30 = vrot.slane %v4909_v21, 1  ;;  %v6784_v21 = vld [vmem:[%s6309_s28 + $0x78] sm:$0xff]   ;;  %v950_v54 = vsel %vm939_vm5, %v947_v61, %v949_v16 }
  0x7c   : > { %v2597_v44 = vsel %vm2139_vm4, %v2594_v42, %v2596_v43 }
  0x7e   : > { %5419 = vmatmul.mubr.msk.bf16.gmra.mrb[12].mxu1 %vm481_vm2, %v6417_v35 }
  0x7f   : > { %5422 = vmatprep.mubr.msk.bf16.mxu1 %vm481_vm2, %v6433_v51 }
  0x81   : > { %5587 = vmatmul.mubr.msk.bf16.gmra.mrb[28].mxu0 %vm481_vm2, %v2172_v6  ;;  %v941_v6 = vrot.slane %v6322_v10, 1  ;;  %v943_v10 = vrot.slane %v6337_v19, 1 }
  0x82   : > { %5590 = vmatprep.mubr.msk.bf16.mxu0 %vm481_vm2, %v2174_v36  ;;  %v2593_v36 = vsel %vm2139_vm4, %v2590_v17, %v2592_v24 }
  0x83   : > { %v942_v18 = vsel %vm939_vm5, %v940_v30, %v941_v6  ;;  %v951_v30 = vrot.slane %v6389_v0, 1 }
  0x86   : > { %5423 = vmatmul.mubr.msk.bf16.gmra.mrb[16].mxu1 %vm481_vm2, %v6444_v63 }
  0x87   : > { %5426 = vmatprep.mubr.msk.bf16.mxu1 %vm481_vm2, %v6461_v25 }
  0x89   : > { %5591 = vmatmul.mubr.msk.bf16.gmra.mrb[32].mxu0 %vm481_vm2, %v2176_v45  ;;  %v2595_v45 = vsel %vm2139_vm4, %v2592_v24, %v2594_v42  ;;  %v953_v42 = vrot.slane %v6417_v35, 1  ;;  %v955_v35 = vrot.slane %v6433_v51, 1 }
  0x8a   : > { %5596 = vmatprep.mubr.msk.bf16.mxu0 %vm481_vm2, %v2581_v47  ;;  %v6755_v47 = vld [vmem:[%s6309_s28 + $0x60] sm:$0xff]  }
  0x8b   : > { %v2598_v19 = vrot.slane %v6755_v47, 2 }
  0x8e   : > { %5427 = vmatmul.mubr.msk.bf16.gmra.mrb[20].mxu1 %vm481_vm2, %v6471_v41 }
  0x8f   : > { %5430 = vmatprep.mubr.msk.bf16.mxu1 %vm481_vm2, %v6485_v58 }
  0x91   : > { %5597 = vmatmul.mubr.msk.bf16.vlgmr.msra.gmra.mrb[0].mxu0 %vm481_vm2, %v2583_v52  ;;  %v6760_v52 = vld [vmem:[%s6309_s28 + $0x68] sm:$0xff]  }
  0x92   : > { %5633 = vmatpush3.bf16.msra.mxu0 %v3118_v62  ;;  %5600 = vmatprep.mubr.msk.bf16.mxu0 %vm481_vm2, %v2585_v14  ;;  %v944_v62 = vsel %vm939_vm5, %v941_v6, %v943_v10  ;;  %v946_v14 = vsel %vm939_vm5, %v943_v10, %v945_v23  ;;  %v2600_v33 = vrot.slane %v6760_v52, 2  ;;  %v952_v10 = vsel %vm939_vm5, %v949_v16, %v951_v30 }
  0x93   : > { %6007 = vmatprep.subr.msk.bf16.mxu0 %vm536_vm0, %v6705_v29  ;;  %v2894_v16 = vshrl.u32 %v6662_v37, 16 }
  0x94   : > { %v2601_v17 = vsel %vm2139_vm4, %v2598_v19, %v2600_v33 }
  0x96   : > { %5431 = vmatmul.mubr.msk.bf16.gmra.mrb[24].mxu1 %vm481_vm2, %v6490_v11 }
  0x97   : > { %5434 = vmatprep.mubr.msk.bf16.mxu1 %vm481_vm2, %v6507_v32 }
  0x99   : > { %5601 = vmatmul.mubr.msk.bf16.gmra.mrb[4].mxu0 %vm481_vm2, %v2587_v34  ;;  %v2599_v34 = vsel %vm2139_vm4, %v2596_v43, %v2598_v19  ;;  %v6802_v43 = vld [vmem:[%s6309_s28 + $0x88] sm:$0xff]   ;;  %v957_v19 = vrot.slane %v6444_v63, 1  ;;  %v2897_v63 = vshll.u32 %v6662_v37, 16 }
  0x9a   : > { %5604 = vmatprep.mubr.msk.bf16.mxu0 %vm481_vm2, %v2589_v5  ;;  %v6775_v5 = vld [vmem:[%s6309_s28 + $0x70] sm:$0xff]   ;;  %v2608_v23 = vrot.slane %v6802_v43, 2 }
  0x9b   : > { %v2602_v24 = vrot.slane %v6775_v5, 2  ;;  %v958_v51 = vsel %vm939_vm5, %v955_v35, %v957_v19 }
  0x9d   : > { %v2603_v6 = vsel %vm2139_vm4, %v2600_v33, %v2602_v24  ;;  %v956_v33 = vsel %vm939_vm5, %v953_v42, %v955_v35  ;;  %v2914_v35 = vshll.u32 %v6678_v46, 16 }
  0x9e   : > { %5435 = vmatmul.mubr.msk.bf16.gmra.mrb[28].mxu1 %vm481_vm2, %v6513_v40 }
  0x9f   : > { %5438 = vmatprep.mubr.msk.bf16.mxu1 %vm481_vm2, %v6528_v56 }
  0xa1   : > { %5605 = vmatmul.mubr.msk.bf16.gmra.mrb[8].mxu0 %vm481_vm2, %v2591_v49  ;;  %v2604_v49 = vrot.slane %v6784_v21, 2 }
  0xa2   : > { %5608 = vmatprep.mubr.msk.bf16.mxu0 %vm481_vm2, %v2593_v36  ;;  %v6797_v36 = vld [vmem:[%s6309_s28 + $0x80] sm:$0xff]  }
  0xa3   : > { %v2606_v0 = vrot.slane %v6797_v36, 2 }
  0xa6   : > { %5439 = vmatmul.mubr.msk.bf16.gmra.mrb[32].mxu1 %vm481_vm2, %v6535_v4 }
  0xa7   : > { %5444 = vmatprep.mubr.msk.bf16.mxu1 %vm481_vm2, %v942_v18  ;;  %v2605_v18 = vsel %vm2139_vm4, %v2602_v24, %v2604_v49 }
  0xa9   : > { %5609 = vmatmul.mubr.msk.bf16.gmra.mrb[12].mxu0 %vm481_vm2, %v2595_v45  ;;  %v954_v45 = vsel %vm939_vm5, %v951_v30, %v953_v42  ;;  %v961_v30 = vrot.slane %v6471_v41, 1  ;;  %v2899_v42 = vrot.slane %v2897_v63, 3 }
  0xaa   : > { %5612 = vmatprep.mubr.msk.bf16.mxu0 %vm481_vm2, %v2597_v44  ;;  %v2607_v44 = vsel %vm2139_vm4, %v2604_v49, %v2606_v0  ;;  %v6078_v49 = vld [vmem:[%s6309_s28 + $0xa0] ss:$0 sps:$4 sm:$0x33]  }
  0xae   : > { %5445 = vmatmul.mubr.msk.bf16.vlgmr.msra.gmra.mrb[0].mxu1 %vm481_vm2, %v944_v62  ;;  %v6815_v62 = vld [vmem:[%s6309_s28 + $0x90] sm:$0xff]  }
  0xaf   : > { %5448 = vmatprep.mubr.msk.bf16.mxu1 %vm481_vm2, %v946_v14  ;;  %5481 = vmatpush3.bf16.msra.mxu1 %v1471_v39  ;;  %v6819_v14 = vld [vmem:[%s6309_s28 + $0x98] sm:$0xff]   ;;  %v2609_v39 = vsel %vm2139_vm4, %v2606_v0, %v2608_v23  ;;  %v2610_v61 = vrot.slane %v6815_v62, 2  ;;  %v3944_v0 = vld [vmem:[%s7892_s3 + $0x10] sm:$0xff] }
  0xb0   : > { %6003 = vmatprep.subr.msk.bf16.mxu1 %vm536_vm0, %v6226_v9  ;;  %v2902_v9 = vshrl.u32 %v6665_v38, 16 }
  0xb1   : > { %5613 = vmatmul.mubr.msk.bf16.gmra.mrb[16].mxu0 %vm481_vm2, %v2599_v34  ;;  %v2612_v34 = vrot.slane %v6819_v14, 2  ;;  %v2611_v24 = vsel %vm2139_vm4, %v2608_v23, %v2610_v61  ;;  %v2911_v23 = vshrl.u32 %v6678_v46, 16 }
  0xb2   : > { %5616 = vmatprep.mubr.msk.bf16.mxu0 %vm481_vm2, %v2601_v17  ;;  %v2905_v17 = vshll.u32 %v6665_v38, 16  ;;  %v2904_v37 = vrot.slane %v2902_v9, 2  ;;  %v2916_v9 = vrot.slane %v2914_v35, 3 }
  0xb3   : > { %v2913_v63 = vrot.slane %v2911_v23, 2 }
  0xb6   : > { %5449 = vmatmul.mubr.msk.bf16.gmra.mrb[4].mxu1 %vm481_vm2, %v948_v48  ;;  %v959_v48 = vrot.slane %v6461_v25, 1  ;;  %v3942_v25 = vld [vmem:[%s7892_s3] sm:$0xff] }
  0xb7   : > { %5452 = vmatprep.mubr.msk.bf16.mxu1 %vm481_vm2, %v950_v54  ;;  %v2613_v54 = vsel %vm2139_vm4, %v2610_v61, %v2612_v34  ;;  %v2923_v61 = vshll.u32 %v6682_v50, 16 }
  0xb8   : > { %v962_v41 = vsel %vm939_vm5, %v959_v48, %v961_v30 }
  0xb9   : > { %5617 = vmatmul.mubr.msk.bf16.gmra.mrb[20].mxu0 %vm481_vm2, %v2603_v6  ;;  %v2896_v6 = vrot.slane %v2894_v16, 2 }
  0xba   : > { %5620 = vmatprep.mubr.msk.bf16.mxu0 %vm481_vm2, %v2605_v18  ;;  %v2907_v18 = vrot.slane %v2905_v17, 3  ;;  %v965_v17 = vrot.slane %v6490_v11, 1 }
  0xbe   : > { %5453 = vmatmul.mubr.msk.bf16.gmra.mrb[8].mxu1 %vm481_vm2, %v952_v10  ;;  %v960_v10 = vsel %vm939_vm5, %v957_v19, %v959_v48  ;;  %v2900_v19 = vor.u32 %v2899_v42, %v2896_v6  ;;  %v3945_v6 = vld [vmem:[%s7892_s3 + $0x18] sm:$0xff]  ;;  %v2929_v42 = vshrl.u32 %v6694_v53, 16 }
  0xbf   : > { %5456 = vmatprep.mubr.msk.bf16.mxu1 %vm481_vm2, %v954_v45  ;;  %v2614_v45 = vrot.slane %v6078_v49, 2 }
  0xc0   : > { %v2931_v23 = vrot.slane %v2929_v42, 2 }
  0xc1   : > { %5621 = vmatmul.mubr.msk.bf16.gmra.mrb[24].mxu0 %vm481_vm2, %v2607_v44  ;;  %v7894_v44 = vmov 0   ;;  %v2615_v16 = vsel %vm2139_vm4, %v2612_v34, %v2614_v45  ;;  %v2917_v34 = vor.u32 %v2916_v9, %v2913_v63  ;;  %v967_v45 = vrot.slane %v6507_v32, 1 }
  0xc2   : > { %5624 = vmatprep.mubr.msk.bf16.mxu0 %vm481_vm2, %v2609_v39  ;;  %6019 = vset.pattern.permute.xlu1 %v7894_v44  ;;  %v2908_v39 = vor.u32 %v2907_v18, %v2904_v37  ;;  %v2932_v37 = vshll.u32 %v6694_v53, 16  ;;  %v2947_v32 = vshrl.u32 %v6719_v3, 16  ;;  %4197 = vst.msk [vmem:[%s7203_s24 + $0x8] sm:$0xf] %vm4194_vm8, %v7894_v44  ;;  %4195 = vst.msk [vmem:[%s7203_s24] sm:$0xf] %vm4194_vm8, %v7894_v44 }
  0xc3   : > { %6018 = vset.pattern.permute.xlu0 %v7894_v44  ;;  %3990 = vperm.xlu1 %6019, %v3944_v0   ;;  %v3947_v0 = vld [vmem:[%s7892_s3 + $0x28] sm:$0xff]  ;;  %v968_v63 = vsel %vm939_vm5, %v965_v17, %v967_v45  ;;  %4196 = vst.msk [vmem:[%s7203_s24 + $0x4] sm:$0xf] %vm4194_vm8, %v7894_v44  ;;  %4198 = vst.msk [vmem:[%s7203_s24 + $0xc] sm:$0xf] %vm4194_vm8, %v7894_v44 }
  0xc4   : > { %3980 = vperm.xlu0 %6018, %v3942_v25   ;;  %v2909_v48 = vsel %vm2892_vm6, %v2900_v19, %v2908_v39  ;;  %v3946_v25 = vld [vmem:[%s7892_s3 + $0x20] sm:$0xff]  ;;  %v2934_v35 = vrot.slane %v2932_v37, 3  ;;  %v969_v19 = vrot.slane %v6513_v40, 1  ;;  %v3949_v40 = vld [vmem:[%s7892_s3 + $0x38] sm:$0xff]  ;;  %v973_v37 = vrot.slane %v6535_v4, 1 }
  0xc5   : > { %4199 = vst.msk [vmem:[%s7203_s24 + $0x10] sm:$0xf] %vm4194_vm8, %v7894_v44  ;;  %4200 = vst.msk [vmem:[%s7203_s24 + $0x14] sm:$0xf] %vm4194_vm8, %v7894_v44 }
  0xc6   : > { %5457 = vmatmul.mubr.msk.bf16.gmra.mrb[12].mxu1 %vm481_vm2, %v956_v33  ;;  %v2920_v33 = vshrl.u32 %v6682_v50, 16  ;;  %v2935_v9 = vor.u32 %v2934_v35, %v2931_v23  ;;  %v2968_v23 = vshll.u32 %v6737_v13, 16  ;;  %4201 = vst.msk [vmem:[%s7203_s24 + $0x18] sm:$0xf] %vm4194_vm8, %v7894_v44  ;;  %4202 = vst.msk [vmem:[%s7203_s24 + $0x1c] sm:$0xf] %vm4194_vm8, %v7894_v44 }
  0xc7   : > { %5460 = vmatprep.mubr.msk.bf16.mxu1 %vm481_vm2, %v958_v51  ;;  %v963_v51 = vrot.slane %v6485_v58, 1  ;;  %v3943_v58 = vld [vmem:[%s7892_s3 + $0x8] sm:$0xff]  ;;  %3995 = vperm.xlu1 %6019, %v3945_v6   ;;  %v3950_v6 = vld [vmem:[%s7892_s3 + $0x40] sm:$0xff]  ;;  %4203 = vst.msk [vmem:[%s7203_s24 + $0x20] sm:$0xf] %vm4194_vm8, %v7894_v44 }
  0xc8   : > { %3985 = vperm.xlu0 %6018, %v3943_v58   ;;  %v971_v58 = vrot.slane %v6528_v56, 1  ;;  %v3953_v56 = vld [vmem:[%s7892_s3 + $0x58] sm:$0xff]  ;;  %4204 = vst.msk [vmem:[%s7203_s24 + $0x24] sm:$0xf] %vm4194_vm8, %v7894_v44  ;;  %4205 = vst.msk [vmem:[%s7203_s24 + $0x28] sm:$0xf] %vm4194_vm8, %v7894_v44 }
  0xc9   : > { %5625 = vmatmul.mubr.msk.bf16.gmra.mrb[28].mxu0 %vm481_vm2, %v2611_v24  ;;  %v2922_v24 = vrot.slane %v2920_v33, 2  ;;  %v964_v49 = vsel %vm939_vm5, %v961_v30, %v963_v51  ;;  %v966_v11 = vsel %vm939_vm5, %v963_v51, %v965_v17  ;;  %v2938_v30 = vshrl.u32 %v6700_v28, 16  ;;  %4206 = vst.msk [vmem:[%s7203_s24 + $0x2c] sm:$0xf] %vm4194_vm8, %v7894_v44  ;;  %4207 = vst.msk [vmem:[%s7203_s24 + $0x30] sm:$0xf] %vm4194_vm8, %v7894_v44 }
  0xca   : > { %5628 = vmatprep.mubr.msk.bf16.mxu0 %vm481_vm2, %v2613_v54  ;;  %v2925_v54 = vrot.slane %v2923_v61, 3  ;;  %v3432_v33 = vsel %vm536_vm0, %v6705_v29, 0  ;;  %v3948_v29 = vld [vmem:[%s7892_s3 + $0x30] sm:$0xff]  ;;  %v2956_v17 = vshrl.u32 %v6723_v1, 16  ;;  %v974_v4 = vsel %vm939_vm5, %v971_v58, %v973_v37  ;;  %4208 = vst.msk [vmem:[%s7203_s24 + $0x34] sm:$0xf] %vm4194_vm8, %v7894_v44 }
  0xcb   : > { %4005 = vperm.xlu1 %6019, %v3947_v0   ;;  %v2940_v51 = vrot.slane %v2938_v30, 2  ;;  %4209 = vst.msk [vmem:[%s7203_s24 + $0x38] sm:$0xf] %vm4194_vm8, %v7894_v44  ;;  %4210 = vst.msk [vmem:[%s7203_s24 + $0x3c] sm:$0xf] %vm4194_vm8, %v7894_v44  ;;  %vm4785_vm0 = vcmask 25600  }
  0xcc   : > { %v2926_v18 = vor.u32 %v2925_v54, %v2922_v24  ;;  %4000 = vperm.xlu0 %6018, %v3946_v25   ;;  %v2959_v54 = vshll.u32 %v6723_v1, 16  ;;  %v972_v25 = vsel %vm939_vm5, %v969_v19, %v971_v58  ;;  %v2983_v58 = vshrl.u32 %v6755_v47, 16  ;;  %4211 = vst.msk [vmem:[%s7203_s24 + $0x40] sm:$0xf] %vm4194_vm8, %v7894_v44  ;;  %4212 = vst.msk [vmem:[%s7203_s24 + $0x44] sm:$0xf] %vm4194_vm8, %v7894_v44 }
  0xcd   : > { %4213 = vst.msk [vmem:[%s7203_s24 + $0x48] sm:$0xf] %vm4194_vm8, %v7894_v44  ;;  %4214 = vst.msk [vmem:[%s7203_s24 + $0x4c] sm:$0xf] %vm4194_vm8, %v7894_v44 }
  0xce   : > { %5461 = vmatmul.mubr.msk.bf16.gmra.mrb[16].mxu1 %vm481_vm2, %v960_v10  ;;  %v2941_v10 = vshll.u32 %v6700_v28, 16  ;;  %v2927_v61 = vsel %vm2892_vm6, %v2917_v34, %v2926_v18  ;;  %v2936_v42 = vsel %vm2892_vm6, %v2926_v18, %v2935_v9  ;;  %v2961_v0 = vrot.slane %v2959_v54, 3  ;;  %v3952_v18 = vld [vmem:[%s7892_s3 + $0x50] sm:$0xff]  ;;  %4215 = vst.msk [vmem:[%s7203_s24 + $0x50] sm:$0xf] %vm4194_vm8, %v7894_v44  ;;  %vm4786_vm1 = vmand %vm4785_vm0, %vm4345_vm11 }
  0xcf   : > { %5464 = vmatprep.mubr.msk.bf16.mxu1 %vm481_vm2, %v962_v41  ;;  %v2918_v41 = vsel %vm2892_vm6, %v2908_v39, %v2917_v34  ;;  %v2950_v39 = vshll.u32 %v6719_v3, 16  ;;  %4015 = vperm.xlu1 %6019, %v3949_v40   ;;  %v2949_v34 = vrot.slane %v2947_v32, 2  ;;  %v1379_v40 = vrot.slane %v6340_v20, 1  ;;  %4216 = vst.msk [vmem:[%s7203_s24 + $0x54] sm:$0xf] %vm4194_vm8, %v7894_v44 }
  0xd0   : > { %4010 = vperm.xlu0 %6018, %v3948_v29   ;;  %v6227_v29 = vld [vmem:[%s6309_s28 + $0x10] sm:$0xff]   ;;  %4217 = vst.msk [vmem:[%s7203_s24 + $0x58] sm:$0xf] %vm4194_vm8, %v7894_v44  ;;  %4218 = vst.msk [vmem:[%s7203_s24 + $0x5c] sm:$0xf] %vm4194_vm8, %v7894_v44 }
  0xd1   : > { %5629 = vmatmul.mubr.msk.bf16.gmra.mrb[32].mxu0 %vm481_vm2, %v2615_v16  ;;  %v2943_v16 = vrot.slane %v2941_v10, 3  ;;  %v2958_v10 = vrot.slane %v2956_v17, 2  ;;  %4219 = vst.msk [vmem:[%s7203_s24 + $0x60] sm:$0xf] %vm4194_vm8, %v7894_v44  ;;  %4220 = vst.msk [vmem:[%s7203_s24 + $0x64] sm:$0xf] %vm4194_vm8, %v7894_v44 }
  0xd2   : > { %5634 = vmatprep.mubr.msk.bf16.mxu0 %vm481_vm2, %v2909_v48  ;;  %v970_v48 = vsel %vm939_vm5, %v967_v45, %v969_v19  ;;  %v2974_v19 = vshrl.u32 %v6742_v8, 16  ;;  %4221 = vst.msk [vmem:[%s7203_s24 + $0x68] sm:$0xf] %vm4194_vm8, %v7894_v44  ;;  %4222 = vst.msk [vmem:[%s7203_s24 + $0x6c] sm:$0xf] %vm4194_vm8, %v7894_v44 }
  0xd3   : > { %v2944_v24 = vor.u32 %v2943_v16, %v2940_v51  ;;  %v2962_v35 = vor.u32 %v2961_v0, %v2958_v10  ;;  %v3954_v51 = vld [vmem:[%s7892_s3 + $0x60] sm:$0xff]  ;;  %v6228_v0 = vld [vmem:[%s6309_s28 + $0x18] sm:$0xff]   ;;  %4223 = vst.msk [vmem:[%s7203_s24 + $0x70] sm:$0xf] %vm4194_vm8, %v7894_v44  ;;  %4224 = vst.msk [vmem:[%s7203_s24 + $0x74] sm:$0xf] %vm4194_vm8, %v7894_v44 }
  0xd4   : > { %4020 = vperm.xlu0 %6018, %v3950_v6   ;;  %v2976_v17 = vrot.slane %v2974_v19, 2  ;;  %v3958_v10 = vld [vmem:[%s7892_s3 + $0x80] sm:$0xff]  ;;  %4225 = vst.msk [vmem:[%s7203_s24 + $0x78] sm:$0xf] %vm4194_vm8, %v7894_v44  ;;  %4226 = vst.msk [vmem:[%s7203_s24 + $0x7c] sm:$0xf] %vm4194_vm8, %v7894_v44 }
  0xd5   : > { %v2945_v30 = vsel %vm2892_vm6, %v2935_v9, %v2944_v24  ;;  %v1380_v9 = vrot.slane %v6227_v29, 1  ;;  %v3010_v29 = vshrl.u32 %v6784_v21, 16  ;;  %4227 = vst.msk [vmem:[%s7203_s24 + $0x80] sm:$0xf] %vm4194_vm8, %v7894_v44  ;;  %4228 = vst.msk [vmem:[%s7203_s24 + $0x84] sm:$0xf] %vm4194_vm8, %v7894_v44 }
  0xd6   : > { %5465 = vmatmul.mubr.msk.bf16.gmra.mrb[20].mxu1 %vm481_vm2, %v964_v49  ;;  %v3951_v49 = vld [vmem:[%s7892_s3 + $0x48] sm:$0xff]  ;;  %4229 = vst.msk [vmem:[%s7203_s24 + $0x88] sm:$0xf] %vm4194_vm8, %v7894_v44  ;;  %4230 = vst.msk [vmem:[%s7203_s24 + $0x8c] sm:$0xf] %vm4194_vm8, %v7894_v44 }
  0xd7   : > { %5468 = vmatprep.mubr.msk.bf16.mxu1 %vm481_vm2, %v966_v11  ;;  %v2952_v11 = vrot.slane %v2950_v39, 3  ;;  %4025 = vperm.xlu1 %6019, %v3951_v49   ;;  %v2970_v39 = vrot.slane %v2968_v23, 3  ;;  %v1381_v6 = vsel %vm939_vm5, %v1379_v40, %v1380_v9  ;;  %4231 = vst.msk [vmem:[%s7203_s24 + $0x90] sm:$0xf] %vm4194_vm8, %v7894_v44  ;;  %4232 = vst.msk [vmem:[%s7203_s24 + $0x94] sm:$0xf] %vm4194_vm8, %v7894_v44 }
  0xd8   : > { %4030 = vperm.xlu0 %6018, %v3952_v18   ;;  %4233 = vst.msk [vmem:[%s7203_s24 + $0x98] sm:$0xf] %vm4194_vm8, %v7894_v44  ;;  %4234 = vst.msk [vmem:[%s7203_s24 + $0x9c] sm:$0xf] %vm4194_vm8, %v7894_v44 }
  0xd9   : > { %5635 = vmatmul.mubr.msk.bf16.vlgmr.msra.gmra.mrb[0].mxu0 %vm481_vm2, %v2918_v41  ;;  %v2953_v45 = vor.u32 %v2952_v11, %v2949_v34  ;;  %v2965_v41 = vshrl.u32 %v6737_v13, 16  ;;  %v2986_v34 = vshll.u32 %v6755_v47, 16 }
  0xda   : > { %5671 = vmatpush3.bf16.msra.mxu0 %v3432_v33  ;;  %5638 = vmatprep.mubr.msk.bf16.mxu0 %vm481_vm2, %v2927_v61  ;;  %v2977_v33 = vshll.u32 %v6742_v8, 16  ;;  %v3955_v61 = vld [vmem:[%s7892_s3 + $0x68] sm:$0xff] }
  0xdb   : > { %4035 = vperm.xlu1 %6019, %v3953_v56   ;;  %v2954_v16 = vsel %vm2892_vm6, %v2944_v24, %v2953_v45  ;;  %v2967_v32 = vrot.slane %v2965_v41, 2  ;;  %v3957_v24 = vld [vmem:[%s7892_s3 + $0x78] sm:$0xff]  ;;  %v2985_v56 = vrot.slane %v2983_v58, 2  ;;  %v2988_v18 = vrot.slane %v2986_v34, 3 }
  0xdc   : > { %v2979_v54 = vrot.slane %v2977_v33, 3  ;;  %4040 = vperm.xlu0 %6018, %v3954_v51   ;;  %v3960_v51 = vld [vmem:[%s7892_s3 + $0x90] sm:$0xff] }
  0xdd   : > { %v2971_v49 = vor.u32 %v2970_v39, %v2967_v32  ;;  %v3001_v32 = vshrl.u32 %v6775_v5, 16  ;;  %v3004_v39 = vshll.u32 %v6775_v5, 16 }
  0xde   : > { %5469 = vmatmul.mubr.msk.bf16.gmra.mrb[24].mxu1 %vm481_vm2, %v968_v63  ;;  %v975_v63 = vrot.slane %v6558_v27, 1  ;;  %v3956_v27 = vld [vmem:[%s7892_s3 + $0x70] sm:$0xff]  ;;  %v2980_v11 = vor.u32 %v2979_v54, %v2976_v17  ;;  %v3962_v17 = vld [vmem:[%s7892_s3 + $0xa0] sm:$0xff]  ;;  %v6230_v54 = vld [vmem:[%s6309_s28 + $0x28] sm:$0xff]  }
  0xdf   : > { %5472 = vmatprep.mubr.msk.bf16.mxu1 %vm481_vm2, %v970_v48  ;;  %v2963_v48 = vsel %vm2892_vm6, %v2953_v45, %v2962_v35  ;;  %4045 = vperm.xlu1 %6019, %v3955_v61   ;;  %v2972_v45 = vsel %vm2892_vm6, %v2962_v35, %v2971_v49  ;;  %v3961_v61 = vld [vmem:[%s7892_s3 + $0x98] sm:$0xff] }
  0xe0   : > { %v976_v20 = vsel %vm939_vm5, %v973_v37, %v975_v63  ;;  %4050 = vperm.xlu0 %6018, %v3956_v27   ;;  %v3959_v37 = vld [vmem:[%s7892_s3 + $0x88] sm:$0xff]  ;;  %v2981_v23 = vsel %vm2892_vm6, %v2971_v49, %v2980_v11  ;;  %v3006_v49 = vrot.slane %v3004_v39, 3 }
  0xe1   : > { %5639 = vmatmul.mubr.msk.bf16.gmra.mrb[4].mxu0 %vm481_vm2, %v2936_v42  ;;  %v2992_v42 = vshrl.u32 %v6760_v52, 16 }
  0xe2   : > { %5642 = vmatprep.mubr.msk.bf16.mxu0 %vm481_vm2, %v2945_v30  ;;  %v2995_v30 = vshll.u32 %v6760_v52, 16 }
  0xe3   : > { %4055 = vperm.xlu1 %6019, %v3957_v24   ;;  %v2994_v19 = vrot.slane %v2992_v42, 2  ;;  %v1386_v24 = vrot.slane %v6230_v54, 1  ;;  %v3012_v42 = vrot.slane %v3010_v29, 2 }
  0xe4   : > { %v2997_v33 = vrot.slane %v2995_v30, 3  ;;  %4060 = vperm.xlu0 %6018, %v3958_v10  }
  0xe6   : > { %5473 = vmatmul.mubr.msk.bf16.gmra.mrb[28].mxu1 %vm481_vm2, %v972_v25  ;;  %v1382_v25 = vrot.slane %v6228_v0, 1  ;;  %v2998_v40 = vor.u32 %v2997_v33, %v2994_v19  ;;  %v6232_v19 = vld [vmem:[%s6309_s28 + $0x38] sm:$0xff]  }
  0xe7   : > { %5476 = vmatprep.mubr.msk.bf16.mxu1 %vm481_vm2, %v974_v4  ;;  %v6229_v4 = vld [vmem:[%s6309_s28 + $0x20] sm:$0xff]   ;;  %4065 = vperm.xlu1 %6019, %v3959_v37   ;;  %v3965_v37 = vld [vmem:[%s7892_s3 + $0xb8] sm:$0xff]  ;;  %v1390_v33 = vrot.slane %v6232_v19, 1 }
  0xe8   : > { %v1384_v41 = vrot.slane %v6229_v4, 1  ;;  %v1383_v35 = vsel %vm939_vm5, %v1380_v9, %v1382_v25  ;;  %4070 = vperm.xlu0 %6018, %v3960_v51   ;;  %v3963_v9 = vld [vmem:[%s7892_s3 + $0xa8] sm:$0xff]  ;;  %v3031_v4 = vshll.u32 %v6802_v43, 16 }
  0xe9   : > { %5643 = vmatmul.mubr.msk.bf16.gmra.mrb[8].mxu0 %vm481_vm2, %v2954_v16  ;;  %v2989_v16 = vor.u32 %v2988_v18, %v2985_v56  ;;  %v3028_v18 = vshrl.u32 %v6802_v43, 16 }
  0xea   : > { %5646 = vmatprep.mubr.msk.bf16.mxu0 %vm481_vm2, %v2963_v48  ;;  %v1385_v63 = vsel %vm939_vm5, %v1382_v25, %v1384_v41  ;;  %v3013_v48 = vshll.u32 %v6784_v21, 16  ;;  %v3019_v25 = vshrl.u32 %v6797_v36, 16  ;;  %v3033_v29 = vrot.slane %v3031_v4, 3 }
  0xeb   : > { %4075 = vperm.xlu1 %6019, %v3961_v61   ;;  %v2990_v27 = vsel %vm2892_vm6, %v2980_v11, %v2989_v16  ;;  %v2999_v34 = vsel %vm2892_vm6, %v2989_v16, %v2998_v40  ;;  %v1387_v11 = vsel %vm939_vm5, %v1384_v41, %v1386_v24  ;;  %v3967_v41 = vld [vmem:[%s7892_s3 + $0xc8] sm:$0xff]  ;;  %v6233_v16 = vld [vmem:[%s6309_s28 + $0x40] sm:$0xff]   ;;  %v3030_v39 = vrot.slane %v3028_v18, 2 }
  0xec   : > { %v3015_v30 = vrot.slane %v3013_v48, 3  ;;  %4080 = vperm.xlu0 %6018, %v3962_v17   ;;  %v3021_v51 = vrot.slane %v3019_v25, 2  ;;  %v3969_v48 = vld [vmem:[%s7892_s3 + $0xd8] sm:$0xff]  ;;  %v7047_v25 = vld [vmem:[%s6309_s28 + $0xa0] ss:$0 sps:$4 sm:$0x77]  }
  0xee   : > { %5477 = vmatmul.mubr.msk.bf16.gmra.mrb[32].mxu1 %vm481_vm2, %v976_v20  ;;  %v3003_v20 = vrot.slane %v3001_v32, 2  ;;  %v3016_v56 = vor.u32 %v3015_v30, %v3012_v42  ;;  %v6234_v42 = vld [vmem:[%s6309_s28 + $0x48] sm:$0xff]  }
  0xef   : > { %5482 = vmatprep.mubr.msk.bf16.mxu1 %vm481_vm2, %v1381_v6  ;;  %v6231_v6 = vld [vmem:[%s6309_s28 + $0x30] sm:$0xff]   ;;  %4085 = vperm.xlu1 %6019, %v3963_v9   ;;  %v1394_v30 = vrot.slane %v6234_v42, 1  ;;  %v1402_v42 = vrot.slane %v6604_v57, 1 }
  0xf0   : > { %v1388_v58 = vrot.slane %v6231_v6, 1  ;;  %v3007_v10 = vor.u32 %v3006_v49, %v3003_v20  ;;  %v3968_v9 = vld [vmem:[%s7892_s3 + $0xd0] sm:$0xff]  ;;  %v3034_v20 = vor.u32 %v3033_v29, %v3030_v39  ;;  %v3046_v49 = vshrl.u32 %v6819_v14, 16  ;;  %v6236_v39 = vld [vmem:[%s6309_s28 + $0x58] sm:$0xff]  }
  0xf1   : > { %5647 = vmatmul.mubr.msk.bf16.gmra.mrb[12].mxu0 %vm481_vm2, %v2972_v45  ;;  %v3022_v45 = vshll.u32 %v6797_v36, 16  ;;  %v3049_v6 = vshll.u32 %v6819_v14, 16  ;;  %v1398_v29 = vrot.slane %v6236_v39, 1 }
  0xf2   : > { %5650 = vmatprep.mubr.msk.bf16.mxu0 %vm481_vm2, %v2981_v23  ;;  %v1389_v0 = vsel %vm939_vm5, %v1386_v24, %v1388_v58  ;;  %v3966_v23 = vld [vmem:[%s7892_s3 + $0xc0] sm:$0xff]  ;;  %v3008_v61 = vsel %vm2892_vm6, %v2998_v40, %v3007_v10  ;;  %v3017_v32 = vsel %vm2892_vm6, %v3007_v10, %v3016_v56  ;;  %v1391_v40 = vsel %vm939_vm5, %v1388_v58, %v1390_v33  ;;  %v3971_v58 = vld [vmem:[%s7892_s3 + $0xe8] sm:$0xff]  ;;  %v6235_v10 = vld [vmem:[%s6309_s28 + $0x50] sm:$0xff]  }
  0xf3   : > { %4095 = vperm.xlu1 %6019, %v3965_v37   ;;  %v3037_v24 = vshrl.u32 %v6815_v62, 16  ;;  %v3048_v18 = vrot.slane %v3046_v49, 2  ;;  %v3051_v4 = vrot.slane %v3049_v6, 3  ;;  %v3976_v49 = vld [vmem:[%s7892_s3 + $0x110] sm:$0xff] }
  0xf6   : > { %5483 = vmatmul.mubr.msk.bf16.vlgmr.msra.gmra.mrb[0].mxu1 %vm481_vm2, %v1383_v35  ;;  %v3024_v35 = vrot.slane %v3022_v45, 3 }
  0xf7   : > { %5486 = vmatprep.mubr.msk.bf16.mxu1 %vm481_vm2, %v1385_v63  ;;  %5709 = vmatpush3.bf16.msra.mxu1 %v6289_v2  ;;  %v3964_v2 = vld [vmem:[%s7892_s3 + $0xb0] sm:$0xff]  ;;  %v1392_v63 = vrot.slane %v6233_v16, 1 }
  0xf8   : > { %4090 = vperm.xlu0 %6018, %v3964_v2   ;;  %4105 = vperm.xlu1 %6019, %v3967_v41   ;;  %v3025_v17 = vor.u32 %v3024_v35, %v3021_v51  ;;  %v3039_v2 = vrot.slane %v3037_v24, 2  ;;  %v3973_v41 = vld [vmem:[%s7892_s3 + $0xf8] sm:$0xff]  ;;  %v3058_v51 = vshll.u32 %v7047_v25, 16  ;;  %v3052_v35 = vor.u32 %v3051_v4, %v3048_v18  ;;  %v3333_v16 = vld [vmem:[%s6309_s28 + $0x10] sm:$0x8] }
  0xf9   : > { %5651 = vmatmul.mubr.msk.bf16.gmra.mrb[16].mxu0 %vm481_vm2, %v2990_v27  ;;  %v1393_v54 = vsel %vm939_vm5, %v1390_v33, %v1392_v63  ;;  %v3040_v27 = vshll.u32 %v6815_v62, 16  ;;  %v5065_v24 = vcombine.low %v3333_v16, %v6652_v31  ;;  %v1408_v4 = vrot.slane %v6626_v12, 1  ;;  %v6081_v16 = vld [vmem:[%s6309_s28 + $0x98] ss:$0 sps:$4 sm:$0x11]  }
  0xfa   : > { %5654 = vmatprep.mubr.msk.bf16.mxu0 %vm481_vm2, %v2999_v34  ;;  %v3970_v34 = vld [vmem:[%s7892_s3 + $0xe0] sm:$0xff]  ;;  %v3026_v37 = vsel %vm2892_vm6, %v3016_v56, %v3025_v17  ;;  %v3035_v45 = vsel %vm2892_vm6, %v3025_v17, %v3034_v20  ;;  %v3972_v56 = vld [vmem:[%s7892_s3 + $0xf0] sm:$0xff]  ;;  %v1400_v17 = vrot.slane %v6585_v55, 1 }
  0xfb   : > { %v3340_v31 = vrot.slane %v5065_v24, 3  ;;  %v1813_v24 = vshll.u32 %v6610_v60, 16 }
  0xfc   : > { %4100 = vperm.xlu0 %6018, %v3966_v23   ;;  %4115 = vperm.xlu1 %6019, %v3969_v48   ;;  %v1395_v23 = vsel %vm939_vm5, %v1392_v63, %v1394_v30  ;;  %v3974_v63 = vld [vmem:[%s7892_s3 + $0x100] sm:$0xff] }
  0xfe   : > { %5487 = vmatmul.mubr.msk.bf16.gmra.mrb[4].mxu1 %vm481_vm2, %v1387_v11  ;;  %v3042_v11 = vrot.slane %v3040_v27, 3  ;;  %v3977_v27 = vld [vmem:[%s7892_s3 + $0x118] sm:$0xff] }
  0xff   : > { %5490 = vmatprep.mubr.msk.bf16.mxu1 %vm481_vm2, %v1389_v0  ;;  %v1396_v0 = vrot.slane %v6235_v10, 1 }
 0x100   : > { %4110 = vperm.xlu0 %6018, %v3968_v9   ;;  %4125 = vperm.xlu1 %6019, %v3971_v58   ;;  %v3043_v19 = vor.u32 %v3042_v11, %v3039_v2  ;;  %v1401_v58 = vsel %vm939_vm5, %v1398_v29, %v1400_v17  ;;  %v1403_v11 = vsel %vm939_vm5, %v1400_v17, %v1402_v42 }
 0x101   : > { %5655 = vmatmul.mubr.msk.bf16.gmra.mrb[20].mxu0 %vm481_vm2, %v3008_v61  ;;  %v1397_v33 = vsel %vm939_vm5, %v1394_v30, %v1396_v0  ;;  %v3055_v61 = vshrl.u32 %v7047_v25, 16 }
 0x102   : > { %5658 = vmatprep.mubr.msk.bf16.mxu0 %vm481_vm2, %v3017_v32  ;;  %v3975_v32 = vld [vmem:[%s7892_s3 + $0x108] sm:$0xff]  ;;  %v3044_v48 = vsel %vm2892_vm6, %v3034_v20, %v3043_v19  ;;  %v1399_v20 = vsel %vm939_vm5, %v1396_v0, %v1398_v29  ;;  %v3345_v0 = vrot.slane %v6682_v50, 3  ;;  %v3347_v50 = vrot.slane %v6694_v53, 3 }
 0x103   : > { %v3057_v9 = vrot.slane %v3055_v61, 2  ;;  %v1412_v61 = vrot.slane %v6642_v26, 1 }
 0x104   : > { %4120 = vperm.xlu0 %6018, %v3970_v34   ;;  %4135 = vperm.xlu1 %6019, %v3973_v41   ;;  %v3341_v34 = vrot.slane %v6665_v38, 3  ;;  %v3343_v38 = vrot.slane %v6678_v46, 3 }
 0x106   : > { %5491 = vmatmul.mubr.msk.bf16.gmra.mrb[8].mxu1 %vm481_vm2, %v1391_v40  ;;  %v3060_v40 = vrot.slane %v3058_v51, 3  ;;  %v3342_v2 = vsel %vm3339_vm7, %v3340_v31, %v3341_v34  ;;  %v3344_v18 = vsel %vm3339_vm7, %v3341_v34, %v3343_v38  ;;  %v3346_v41 = vsel %vm3339_vm7, %v3343_v38, %v3345_v0 }
 0x107   : > { %5494 = vmatprep.mubr.msk.bf16.mxu1 %vm481_vm2, %v1393_v54  ;;  %v3053_v54 = vsel %vm2892_vm6, %v3043_v19, %v3052_v35  ;;  %v1410_v19 = vrot.slane %v6638_v22, 1  ;;  %v1792_v51 = vshrl.u32 %v6585_v55, 16  ;;  %v1815_v31 = vrot.slane %v1813_v24, 2 }
 0x108   : > { %4130 = vperm.xlu0 %6018, %v3972_v56   ;;  %4145 = vperm.xlu1 %6019, %v3975_v32   ;;  %v3061_v6 = vor.u32 %v3060_v40, %v3057_v9  ;;  %v3351_v32 = vrot.slane %v6719_v3, 3  ;;  %v1801_v9 = vshrl.u32 %v6604_v57, 16  ;;  %v1804_v40 = vshll.u32 %v6604_v57, 16 }
 0x109   : > { %5659 = vmatmul.mubr.msk.bf16.gmra.mrb[24].mxu0 %vm481_vm2, %v3026_v37  ;;  %v1404_v37 = vrot.slane %v6610_v60, 1  ;;  %v1794_v39 = vrot.slane %v1792_v51, 1  ;;  %v1810_v3 = vshrl.u32 %v6610_v60, 16  ;;  %v3357_v34 = vrot.slane %v6742_v8, 3 }
 0x10a   : > { %5662 = vmatprep.mubr.msk.bf16.mxu0 %vm481_vm2, %v3035_v45  ;;  %v3062_v30 = vsel %vm2892_vm6, %v3052_v35, %v3061_v6  ;;  %v1406_v45 = vrot.slane %v6622_v7, 1  ;;  %v1795_v35 = vshll.u32 %v6585_v55, 16  ;;  %v1414_v55 = vrot.slane %v6081_v16, 1 }
 0x10b   : > { %v1405_v10 = vsel %vm939_vm5, %v1402_v42, %v1404_v37  ;;  %v3355_v6 = vrot.slane %v6737_v13, 3  ;;  %v1819_v42 = vshrl.u32 %v6622_v7, 16  ;;  %v1828_v13 = vshrl.u32 %v6626_v12, 16 }
 0x10c   : > { %4140 = vperm.xlu0 %6018, %v3974_v63   ;;  %4155 = vperm.xlu1 %6019, %v3977_v27   ;;  %v1407_v46 = vsel %vm939_vm5, %v1404_v37, %v1406_v45  ;;  %v1409_v56 = vsel %vm939_vm5, %v1406_v45, %v1408_v4  ;;  %v1413_v63 = vsel %vm939_vm5, %v1410_v19, %v1412_v61  ;;  %v1797_v29 = vrot.slane %v1795_v35, 2 }
 0x10d   : > { %v1821_v38 = vrot.slane %v1819_v42, 1  ;;  %v1830_v45 = vrot.slane %v1828_v13, 1  ;;  %v3363_v51 = vrot.slane %v6775_v5, 3  ;;  %v1855_v16 = vshrl.u32 %v6658_v59, 16 }
 0x10e   : > { %5495 = vmatmul.mubr.msk.bf16.gmra.mrb[12].mxu1 %vm481_vm2, %v1395_v23  ;;  %v3349_v23 = vrot.slane %v6700_v28, 3  ;;  %v1411_v28 = vsel %vm939_vm5, %v1408_v4, %v1410_v19  ;;  %v3361_v4 = vrot.slane %v6760_v52, 3 }
 0x10f   : > { %5498 = vmatprep.mubr.msk.bf16.mxu1 %vm481_vm2, %v1397_v33  ;;  %v3348_v33 = vsel %vm3339_vm7, %v3345_v0, %v3347_v50  ;;  %v3359_v0 = vrot.slane %v6755_v47, 3  ;;  %v1846_v47 = vshrl.u32 %v6642_v26, 16 }
 0x110   : > { %4150 = vperm.xlu0 %6018, %v3976_v49   ;;  %v3350_v53 = vsel %vm3339_vm7, %v3347_v50, %v3349_v23  ;;  %v3352_v17 = vsel %vm3339_vm7, %v3349_v23, %v3351_v32  ;;  %v1803_v49 = vrot.slane %v1801_v9, 1  ;;  %v1849_v23 = vshll.u32 %v6642_v26, 16 }
 0x111   : > { %5663 = vmatmul.mubr.msk.bf16.gmra.mrb[28].mxu0 %vm481_vm2, %v3044_v48  ;;  %v3353_v48 = vrot.slane %v6723_v1, 3  ;;  %v1415_v1 = vsel %vm939_vm5, %v1412_v61, %v1414_v55  ;;  %v3360_v50 = vsel %vm3339_vm7, %v3357_v34, %v3359_v0  ;;  %v3362_v19 = vsel %vm3339_vm7, %v3359_v0, %v3361_v4 }
 0x112   : > { %5666 = vmatprep.mubr.msk.bf16.mxu0 %vm481_vm2, %v3053_v54  ;;  %v1798_v54 = vor.u32 %v1797_v29, %v1794_v39  ;;  %v1848_v35 = vrot.slane %v1846_v47, 1  ;;  %v3367_v55 = vrot.slane %v6797_v36, 3  ;;  %v3371_v36 = vrot.slane %v6815_v62, 3 }
 0x113   : > { %v3354_v27 = vsel %vm3339_vm7, %v3351_v32, %v3353_v48  ;;  %v3356_v37 = vsel %vm3339_vm7, %v3353_v48, %v3355_v6  ;;  %v1858_v32 = vshll.u32 %v6658_v59, 16  ;;  %v1857_v48 = vrot.slane %v1855_v16, 1 }
 0x114   : > { %v1799_v57 = vsel %vm1692_vm3, %v6499_v15, %v1798_v54  ;;  %v1831_v15 = vshll.u32 %v6626_v12, 16 }
 0x116   : > { %5499 = vmatmul.mubr.msk.bf16.gmra.mrb[16].mxu1 %vm481_vm2, %v1399_v20  ;;  %v1806_v20 = vrot.slane %v1804_v40, 2  ;;  %v3369_v40 = vrot.slane %v6802_v43, 3  ;;  %v3373_v43 = vrot.slane %v6819_v14, 3 }
 0x117   : > { %5502 = vmatprep.mubr.msk.bf16.mxu1 %vm481_vm2, %v1401_v58  ;;  %v1812_v58 = vrot.slane %v1810_v3, 1 }
 0x118   : > { %v1807_v60 = vor.u32 %v1806_v20, %v1803_v49  ;;  %v3372_v24 = vsel %vm3339_vm7, %v3369_v40, %v3371_v36 }
 0x119   : > { %5667 = vmatmul.mubr.msk.bf16.gmra.mrb[32].mxu0 %vm481_vm2, %v3062_v30  ;;  %v1822_v30 = vshll.u32 %v6622_v7, 16 }
 0x11a   : > { %5672 = vmatprep.mubr.msk.bf16.mxu0 %vm481_vm2, %v3342_v2  ;;  %v1816_v2 = vor.u32 %v1815_v31, %v1812_v58  ;;  %v1808_v8 = vsel %vm1692_vm3, %v1798_v54, %v1807_v60  ;;  %v3370_v54 = vsel %vm3339_vm7, %v3367_v55, %v3369_v40 }
 0x11c   : > { %v1817_v7 = vsel %vm1692_vm3, %v1807_v60, %v1816_v2 }
 0x11e   : > { %5503 = vmatmul.mubr.msk.bf16.gmra.mrb[20].mxu1 %vm481_vm2, %v1403_v11  ;;  %v3358_v11 = vsel %vm3339_vm7, %v3355_v6, %v3357_v34 }
 0x11f   : > { %5506 = vmatprep.mubr.msk.bf16.mxu1 %vm481_vm2, %v1405_v10  ;;  %v1824_v10 = vrot.slane %v1822_v30, 2 }
 0x121   : > { %5673 = vmatmul.mubr.msk.bf16.vlgmr.msra.gmra.mrb[0].mxu0 %vm481_vm2, %v3344_v18  ;;  %v1833_v18 = vrot.slane %v1831_v15, 2  ;;  %v1825_v12 = vor.u32 %v1824_v10, %v1821_v38 }
 0x122   : > { %5676 = vmatprep.mubr.msk.bf16.mxu0 %vm481_vm2, %v3346_v41  ;;  %v1837_v41 = vshrl.u32 %v6638_v22, 16 }
 0x123   : > { %v1826_v52 = vsel %vm1692_vm3, %v1816_v2, %v1825_v12 }
 0x126   : > { %5507 = vmatmul.mubr.msk.bf16.gmra.mrb[24].mxu1 %vm481_vm2, %v1407_v46  ;;  %v1840_v46 = vshll.u32 %v6638_v22, 16 }
 0x127   : > { %5510 = vmatprep.mubr.msk.bf16.mxu1 %vm481_vm2, %v1409_v56  ;;  %v1834_v56 = vor.u32 %v1833_v18, %v1830_v45 }
 0x128   : > { %v1842_v61 = vrot.slane %v1840_v46, 2 }
 0x129   : > { %5677 = vmatmul.mubr.msk.bf16.gmra.mrb[4].mxu0 %vm481_vm2, %v3348_v33  ;;  %v1839_v33 = vrot.slane %v1837_v41, 1  ;;  %v1835_v22 = vsel %vm1692_vm3, %v1825_v12, %v1834_v56 }
 0x12a   : > { %5680 = vmatprep.mubr.msk.bf16.mxu0 %vm481_vm2, %v3350_v53  ;;  %v1851_v53 = vrot.slane %v1849_v23, 2 }
 0x12b   : > { %v1843_v26 = vor.u32 %v1842_v61, %v1839_v33 }
 0x12c   : > { %v1852_v39 = vor.u32 %v1851_v53, %v1848_v35 }
 0x12d   : > { %v1844_v29 = vsel %vm1692_vm3, %v1834_v56, %v1843_v26 }
 0x12e   : > { %5511 = vmatmul.mubr.msk.bf16.gmra.mrb[28].mxu1 %vm481_vm2, %v1411_v28  ;;  %v3365_v28 = vrot.slane %v6784_v21, 3  ;;  %v1860_v21 = vrot.slane %v1858_v32, 2  ;;  %v1853_v9 = vsel %vm1692_vm3, %v1843_v26, %v1852_v39 }
 0x12f   : > { %5514 = vmatprep.mubr.msk.bf16.mxu1 %vm481_vm2, %v1413_v63  ;;  %v3364_v63 = vsel %vm3339_vm7, %v3361_v4, %v3363_v51 }
 0x130   : > { %v3366_v5 = vsel %vm3339_vm7, %v3363_v51, %v3365_v28  ;;  %v1861_v59 = vor.u32 %v1860_v21, %v1857_v48 }
 0x131   : > { %5681 = vmatmul.mubr.msk.bf16.gmra.mrb[8].mxu0 %vm481_vm2, %v3352_v17  ;;  %v3368_v17 = vsel %vm3339_vm7, %v3365_v28, %v3367_v55 }
 0x132   : > { %5684 = vmatprep.mubr.msk.bf16.mxu0 %vm481_vm2, %v3354_v27  ;;  %v1862_v3 = vsel %vm1692_vm3, %v1852_v39, %v1861_v59  ;;  %v3374_v27 = vsel %vm3339_vm7, %v3371_v36, %v3373_v43 }
 0x136   : > { %5515 = vmatmul.mubr.msk.bf16.gmra.mrb[32].mxu1 %vm481_vm2, %v1415_v1  ;;  %v3375_v1 = vrot.slane %v7047_v25, 3 }
 0x137   : > { %5540 = vmatprep.mubr.msk.bf16.mxu1 %vm481_vm2, %v1799_v57 }
 0x138   : > { %v3376_v49 = vsel %vm3339_vm7, %v3373_v43, %v3375_v1 }
 0x139   : > { %5685 = vmatmul.mubr.msk.bf16.gmra.mrb[12].mxu0 %vm481_vm2, %v3356_v37 }
 0x13a   : > { %5688 = vmatprep.mubr.msk.bf16.mxu0 %vm481_vm2, %v3358_v11 }
 0x13e   : > { %5541 = vmatmul.mubr.msk.bf16.vlgmr.msra.gmra.mrb[20].mxu1 %vm481_vm2, %v1808_v8 }
 0x13f   : > { %5544 = vmatprep.mubr.msk.bf16.mxu1 %vm481_vm2, %v1817_v7  ;;  %v7346_v7 = vld [vmem:[%s7891_s2] ss:$0 sm:$0xff] }
 0x141   : > { %5689 = vmatmul.mubr.msk.bf16.gmra.mrb[16].mxu0 %vm481_vm2, %v3360_v50 }
 0x142   : > { %5692 = vmatprep.mubr.msk.bf16.mxu0 %vm481_vm2, %v3362_v19 }
 0x146   : > { %5545 = vmatmul.mubr.msk.bf16.gmra.mrb[24].mxu1 %vm481_vm2, %v1826_v52 }
 0x147   : > { %5548 = vmatprep.mubr.msk.bf16.mxu1 %vm481_vm2, %v1835_v22 }
 0x149   : > { %5693 = vmatmul.mubr.msk.bf16.gmra.mrb[20].mxu0 %vm481_vm2, %v3364_v63 }
 0x14a   : > { %5696 = vmatprep.mubr.msk.bf16.mxu0 %vm481_vm2, %v3366_v5 }
 0x14e   : > { %5549 = vmatmul.mubr.msk.bf16.gmra.mrb[28].mxu1 %vm481_vm2, %v1844_v29 }
 0x14f   : > { %5552 = vmatprep.mubr.msk.bf16.mxu1 %vm481_vm2, %v1853_v9 }
 0x151   : > { %5697 = vmatmul.mubr.msk.bf16.gmra.mrb[24].mxu0 %vm481_vm2, %v3368_v17 }
 0x152   : > { %5700 = vmatprep.mubr.msk.bf16.mxu0 %vm481_vm2, %v3370_v54 }
 0x156   : > { %5553 = vmatmul.mubr.msk.bf16.gmra.mrb[32].mxu1 %vm481_vm2, %v1862_v3 }
 0x159   : > { %5701 = vmatmul.mubr.msk.bf16.gmra.mrb[28].mxu0 %vm481_vm2, %v3372_v24 }
 0x15a   : > { %5704 = vmatprep.mubr.msk.bf16.mxu0 %vm481_vm2, %v3374_v27 }
 0x161   : > { %5705 = vmatmul.mubr.msk.bf16.gmra.mrb[32].mxu0 %vm481_vm2, %v3376_v49 }
 0x1c9   : > { %v5484_v62 = vpop.f32.mrb[0].mxu1 }
 0x1ca   : > { %v1507_v14 = vpop.f32.mrb[1].mxu1 }
 0x1cb   : > { %v5485_v25 = vpop.f32.mrb[2].mxu1 }
 0x1cc   : > { %v1510_v20 = vpop.f32.mrb[3].mxu1 }
 0x1d1   : > { %v5488_v6 = vpop.f32.mrb[4].mxu1 }
 0x1d2   : > { %v1523_v57 = vpop.f32.mrb[5].mxu1 }
 0x1d3   : > { %v5489_v58 = vpop.f32.mrb[6].mxu1 }
 0x1d4   : > { %v1526_v31 = vpop.f32.mrb[7].mxu1 }
 0x1d9   : > { %v5492_v34 = vpop.f32.mrb[8].mxu1 }
 0x1da   : > { %v1539_v60 = vpop.f32.mrb[9].mxu1 }
 0x1db   : > { %v5493_v42 = vpop.f32.mrb[10].mxu1 }
 0x1dc   : > { %v7325_v30 = vpop.f32.mrb[11].mxu1 }
 0x1e1   : > { %v7327_v37 = vpop.f32.mrb[12].mxu1 }
 0x1e2   : > { %v7329_v2 = vpop.f32.mrb[13].mxu1 }
 0x1e3   : > { %v7331_v13 = vpop.f32.mrb[14].mxu1 }
 0x1e4   : > { %v7333_v15 = vpop.f32.mrb[15].mxu1 }
 0x1e9   : > { %v7335_v11 = vpop.f32.mrb[16].mxu1 }
 0x1ea   : > { %v7337_v8 = vpop.f32.mrb[17].mxu1 }
 0x1eb   : > { %v7339_v38 = vpop.f32.mrb[18].mxu1 }
 0x1ec   : > { %v7341_v10 = vpop.f32.mrb[19].mxu1 }
 0x1f4   : > { %v5674_v0 = vpop.f32.mrb[0].mxu0 }
 0x1f5   : > { %v5710_v45 = vadd.f32 %v5674_v0, %v5484_v62  ;;  %v3468_v18 = vpop.f32.mrb[1].mxu0 }
 0x1f6   : > { %v5711_v4 = vadd.f32 %v3468_v18, %v1507_v14  ;;  %v5675_v12 = vpop.f32.mrb[2].mxu0 }
 0x1f7   : > { %v7349_v41 = vadd.f32 %v5710_v45, %v7346_v7  ;;  %v5712_v46 = vadd.f32 %v5675_v12, %v5485_v25  ;;  %v3471_v50 = vpop.f32.mrb[3].mxu0 }
 0x1f8   : > { %v7352_v56 = vadd.f32 %v5711_v4, %v7346_v7  ;;  %v5713_v47 = vadd.f32 %v3471_v50, %v1510_v20  ;;  %v3991_v4 = vpop.permute.xlu1 %3990 }
 0x1f9   : > { %v5087_v23 = vmul.f32 -1.442695, %v7349_v41  ;;  %v7356_v19 = vadd.f32 %v5712_v46, %v7346_v7 }
 0x1fa   : > { %v5085_v52 = vmul.f32 -1.442695, %v7352_v56  ;;  %v7360_v33 = vadd.f32 %v5713_v47, %v7346_v7 }
 0x1fb   : > { %6082 = vpow2.f32 %v5087_v23  ;;  %v5088_v61 = vmul.f32 -1.442695, %v7356_v19 }
 0x1fc   : > { %6084 = vpow2.f32 %v5085_v52  ;;  %v5086_v51 = vmul.f32 -1.442695, %v7360_v33  ;;  %v5678_v22 = vpop.f32.mrb[4].mxu0 }
 0x1fd   : > { %6086 = vpow2.f32 %v5088_v61  ;;  %v5714_v35 = vadd.f32 %v5678_v22, %v5488_v6  ;;  %v3484_v53 = vpop.f32.mrb[5].mxu0  ;;  %v7383_v6 = vpop.permute.xlu0 %3980 }
 0x1fe   : > { %6088 = vpow2.f32 %v5086_v51  ;;  %v5715_v28 = vadd.f32 %v3484_v53, %v1523_v57  ;;  %v5679_v26 = vpop.f32.mrb[6].mxu0 }
 0x1ff   : > { %v7365_v16 = vadd.f32 %v5714_v35, %v7346_v7  ;;  %v5716_v32 = vadd.f32 %v5679_v26, %v5489_v58  ;;  %v3487_v63 = vpop.f32.mrb[7].mxu0 }
 0x200   : > { %v7368_v39 = vadd.f32 %v5715_v28, %v7346_v7  ;;  %v5717_v5 = vadd.f32 %v3487_v63, %v1526_v31 }
 0x201   : > { %v5091_v29 = vmul.f32 -1.442695, %v7365_v16  ;;  %v7372_v48 = vadd.f32 %v5716_v32, %v7346_v7  ;;  %v7400_v52 = vpop.permute.xlu0 %3985 }
 0x202   : > { %v5089_v21 = vmul.f32 -1.442695, %v7368_v39  ;;  %v7376_v55 = vadd.f32 %v5717_v5, %v7346_v7 }
 0x203   : > { %6090 = vpow2.f32 %v5091_v29  ;;  %v5092_v9 = vmul.f32 -1.442695, %v7372_v48 }
 0x204   : > { %6092 = vpow2.f32 %v5089_v21  ;;  %v5090_v40 = vmul.f32 -1.442695, %v7376_v55  ;;  %v5682_v59 = vpop.f32.mrb[8].mxu0 }
 0x205   : > { %v6083_v17 = vpop.eup %6082  ;;  %6094 = vpow2.f32 %v5092_v9  ;;  %v5718_v54 = vadd.f32 %v5682_v59, %v5492_v34  ;;  %v3500_v3 = vpop.f32.mrb[9].mxu0 }
 0x206   : > { %v6085_v36 = vpop.eup %6084  ;;  %v3800_v43 = vadd.f32 1.0, %v6083_v17  ;;  %6096 = vpow2.f32 %v5090_v40  ;;  %v5719_v24 = vadd.f32 %v3500_v3, %v1539_v60  ;;  %v5683_v27 = vpop.f32.mrb[10].mxu0 }
 0x207   : > { %v6087_v1 = vpop.eup %6086  ;;  %v3798_v49 = vadd.f32 1.0, %v6085_v36  ;;  %v7381_v62 = vadd.f32 %v5718_v54, %v7346_v7  ;;  %v5720_v14 = vadd.f32 %v5683_v27, %v5493_v42  ;;  %v3503_v25 = vpop.f32.mrb[11].mxu0 }
 0x208   : > { %v6089_v20 = vpop.eup %6088  ;;  %6098 = vrcp.f32 %v3800_v43  ;;  %v3801_v57 = vadd.f32 1.0, %v6087_v1  ;;  %v7386_v58 = vadd.f32 %v5719_v24, %v7346_v7  ;;  %v5721_v31 = vadd.f32 %v3503_v25, %v7325_v30  ;;  %v3996_v54 = vpop.permute.xlu1 %3995 }
 0x209   : > { %6100 = vrcp.f32 %v3798_v49  ;;  %v3799_v34 = vadd.f32 1.0, %v6089_v20  ;;  %v5095_v60 = vmul.f32 -1.442695, %v7381_v62  ;;  %v7391_v0 = vadd.f32 %v5720_v14, %v7346_v7  ;;  %v7429_v49 = vpop.permute.xlu0 %4000 }
 0x20a   : > { %6102 = vrcp.f32 %v3801_v57  ;;  %v5093_v42 = vmul.f32 -1.442695, %v7386_v58  ;;  %v7395_v45 = vadd.f32 %v5721_v31, %v7346_v7 }
 0x20b   : > { %6104 = vrcp.f32 %v3799_v34  ;;  %v5096_v18 = vmul.f32 -1.442695, %v7391_v0 }
 0x20c   : > { %6106 = vpow2.f32 %v5095_v60  ;;  %v5094_v30 = vmul.f32 -1.442695, %v7395_v45  ;;  %v5686_v12 = vpop.f32.mrb[12].mxu0 }
 0x20d   : > { %v6091_v46 = vpop.eup %6090  ;;  %6108 = vpow2.f32 %v5093_v42  ;;  %v5722_v50 = vadd.f32 %v5686_v12, %v7327_v37  ;;  %v3516_v47 = vpop.f32.mrb[13].mxu0 }
 0x20e   : > { %v6093_v23 = vpop.eup %6092  ;;  %v3804_v61 = vadd.f32 1.0, %v6091_v46  ;;  %6110 = vpow2.f32 %v5096_v18  ;;  %v5723_v51 = vadd.f32 %v3516_v47, %v7329_v2  ;;  %v5687_v22 = vpop.f32.mrb[14].mxu0 }
 0x20f   : > { %v6095_v35 = vpop.eup %6094  ;;  %v3802_v53 = vadd.f32 1.0, %v6093_v23  ;;  %6112 = vpow2.f32 %v5094_v30  ;;  %v7404_v28 = vadd.f32 %v5722_v50, %v7346_v7  ;;  %v5724_v26 = vadd.f32 %v5687_v22, %v7331_v13  ;;  %v3519_v32 = vpop.f32.mrb[15].mxu0 }
 0x210   : > { %v6097_v37 = vpop.eup %6096  ;;  %6114 = vrcp.f32 %v3804_v61  ;;  %v3805_v5 = vadd.f32 1.0, %v6095_v35  ;;  %v7410_v29 = vadd.f32 %v5723_v51, %v7346_v7  ;;  %v5725_v2 = vadd.f32 %v3519_v32, %v7333_v15 }
 0x211   : > { %v7407_v63 = vpop.f32.mrb[20].mxu1  ;;  %6116 = vrcp.f32 %v3802_v53  ;;  %v3803_v9 = vadd.f32 1.0, %v6097_v37  ;;  %v5099_v40 = vmul.f32 -1.442695, %v7404_v28  ;;  %v7417_v59 = vadd.f32 %v5724_v26, %v7346_v7 }
 0x212   : > { %v7413_v21 = vpop.f32.mrb[21].mxu1  ;;  %v6099_v17 = vpop.eup %6098  ;;  %6118 = vrcp.f32 %v3805_v5  ;;  %v5097_v3 = vmul.f32 -1.442695, %v7410_v29  ;;  %v7423_v15 = vadd.f32 %v5725_v2, %v7346_v7 }
 0x213   : > { %v7419_v13 = vpop.f32.mrb[22].mxu1  ;;  %v6101_v43 = vpop.eup %6100  ;;  %v3908_v24 = vmul.f32 %v6099_v17, %v7349_v41  ;;  %6120 = vrcp.f32 %v3803_v9  ;;  %v5100_v27 = vmul.f32 -1.442695, %v7417_v59 }
 0x214   : > { %v7425_v36 = vpop.f32.mrb[23].mxu1  ;;  %v6103_v1 = vpop.eup %6102  ;;  %v3906_v14 = vmul.f32 %v6101_v43, %v7352_v56  ;;  %6122 = vpow2.f32 %v5099_v40  ;;  %v5098_v25 = vmul.f32 -1.442695, %v7423_v15 }
 0x215   : > { %v5690_v20 = vpop.f32.mrb[16].mxu0  ;;  %v6105_v57 = vpop.eup %6104  ;;  %v4160_v31 = vmul.f32 %v3991_v4, %v3908_v24  ;;  %v3909_v34 = vmul.f32 %v6103_v1, %v7356_v19  ;;  %6124 = vpow2.f32 %v5097_v3 }
 0x216   : > { %v5726_v41 = vadd.f32 %v5690_v20, %v7335_v11  ;;  %v3532_v60 = vpop.f32.mrb[17].mxu0  ;;  %v6107_v42 = vpop.eup %6106  ;;  %v4158_v18 = vmul.f32 %v7383_v6, %v3906_v14  ;;  %v3907_v30 = vmul.f32 %v6105_v57, %v7360_v33  ;;  %6126 = vpow2.f32 %v5100_v27 }
 0x217   : > { %v7438_v56 = vadd.f32 %v3532_v60, %v7337_v8  ;;  %v7440_v12 = vpop.f32.mrb[18].mxu0  ;;  %v6109_v46 = vpop.eup %6108  ;;  %v5161_v50 = vpack.c.bf16 %v4160_v31, %v4160_v31  ;;  %v4161_v4 = vmul.f32 %v3996_v54, %v3909_v34  ;;  %v3808_v47 = vadd.f32 1.0, %v6107_v42  ;;  %v4747_v42 = vld [vmem:[%s7203_s24 + $0x8] sm:$0xe] }
 0x218   : > { %6128 = vpow2.f32 %v5098_v25  ;;  %v7442_v19 = vpop.f32.mrb[19].mxu0  ;;  %v7446_v23 = vpop.eup %6110  ;;  %v5159_v33 = vpack.c.bf16 %v4158_v18, %v4158_v18  ;;  %v4159_v61 = vmul.f32 %v7400_v52, %v3907_v30  ;;  %v3806_v8 = vadd.f32 1.0, %v6109_v46 }
 0x219   : > { %v7444_v11 = vpop.f32.mrb[24].mxu1  ;;  %v7448_v6 = vpop.permute.xlu1 %4005  ;;  %v7452_v51 = vadd.f32 %v5726_v41, %v7346_v7  ;;  %v4368_v53 = vshrl.u32 %v5161_v50, 16  ;;  %v4371_v26 = vshll.u32 %v5161_v50, 16  ;;  %v5162_v32 = vpack.c.bf16 %v4161_v4, %v4161_v4 }
 0x21a   : > { %v7454_v22 = vpop.f32.mrb[25].mxu1  ;;  %v7456_v35 = vpop.eup %6112  ;;  %6130 = vrcp.f32 %v3808_v47  ;;  %v4349_v9 = vshrl.u32 %v5159_v33, 16  ;;  %v4352_v40 = vshll.u32 %v5159_v33, 16  ;;  %v5160_v17 = vpack.c.bf16 %v4159_v61, %v4159_v61 }
 0x21b   : > { %v7458_v37 = vpop.f32.mrb[26].mxu1  ;;  %v6115_v5 = vpop.eup %6114  ;;  %6132 = vrcp.f32 %v3806_v8  ;;  %v4370_v3 = vrot.slane %v4368_v53, 6  ;;  %v4373_v43 = vrot.slane %v4371_v26, 7  ;;  %v4378_v24 = vshrl.u32 %v5162_v32, 16 }
 0x21c   : > { %v4011_v2 = vpop.permute.xlu0 %4010  ;;  %v7460_v52 = vpop.f32.mrb[27].mxu1  ;;  %v4381_v27 = vshll.u32 %v5162_v32, 16  ;;  %v4351_v14 = vrot.slane %v4349_v9, 6  ;;  %v4354_v25 = vrot.slane %v4352_v40, 7  ;;  %v4358_v20 = vshrl.u32 %v5160_v17, 16 }
 0x21d   : > { %v6117_v54 = vpop.eup %6116  ;;  %v4361_v57 = vshll.u32 %v5160_v17, 16  ;;  %v7462_v31 = vpop.f32.mrb[20].mxu0  ;;  %v4374_v41 = vor.u32 %v4373_v43, %v4370_v3  ;;  %v4380_v18 = vrot.slane %v4378_v24, 6  ;;  %v3912_v46 = vmul.f32 %v6115_v5, %v7365_v16 }
 0x21e   : > { %v6119_v1 = vpop.eup %6118  ;;  %v4383_v30 = vrot.slane %v4381_v27, 7  ;;  %v7472_v50 = vpop.f32.mrb[21].mxu0  ;;  %v4355_v33 = vor.u32 %v4354_v25, %v4351_v14  ;;  %v4360_v8 = vrot.slane %v4358_v20, 6  ;;  %v3910_v26 = vmul.f32 %v6117_v54, %v7368_v39 }
 0x21f   : > { %v6121_v34 = vpop.eup %6120  ;;  %v4016_v47 = vpop.permute.xlu1 %4015  ;;  %v4363_v53 = vrot.slane %v4361_v57, 7  ;;  %v4376_v5 = vrot.slane %v4374_v41, 4  ;;  %v4164_v40 = vmul.f32 %v4011_v2, %v3912_v46  ;;  %v3913_v17 = vmul.f32 %v6119_v1, %v7372_v48 }
 0x220   : > { %v7474_v4 = vpop.eup %6122  ;;  %v7483_v32 = vpop.f32.mrb[22].mxu0  ;;  %v7487_v9 = vor.u32 %v4383_v30, %v4380_v18  ;;  %v4356_v39 = vrot.slane %v4355_v33, 4  ;;  %v4748_v54 = vsel %vm7466_vm13, %v4355_v33, %v4747_v42  ;;  %v4162_v25 = vmul.f32 %v7429_v49, %v3910_v26 }
 0x221   : > { %v7485_v16 = vpop.eup %6124  ;;  %v7490_v3 = vpop.f32.mrb[23].mxu0  ;;  %v4364_v14 = vor.u32 %v4363_v53, %v4360_v8  ;;  %4749 = vst [vmem:[%s7203_s24 + $0x8] sm:$0xe] %v4748_v54  ;;  %v5165_v57 = vpack.c.bf16 %v4164_v40, %v4164_v40  ;;  %v4165_v18 = vmul.f32 %v4016_v47, %v3913_v17  ;;  %v3911_v46 = vmul.f32 %v6121_v34, %v7376_v55 }
 0x222   : > { %v7492_v43 = vpop.f32.mrb[28].mxu1  ;;  %v7494_v24 = vpop.eup %6126  ;;  %v4385_v48 = vsel %vm7478_vm14, %v4376_v5, %v7487_v9  ;;  %v4386_v1 = vrot.slane %v7487_v9, 4  ;;  %v5163_v42 = vpack.c.bf16 %v4162_v25, %v4162_v25  ;;  %v3809_v5 = vadd.f32 1.0, %v7446_v23 }
 0x223   : > { %v4021_v27 = vpop.permute.xlu0 %4020  ;;  %v7499_v20 = vpop.f32.mrb[29].mxu1  ;;  %4752 = vst.msk [vmem:[%s7203_s24 + $0x14] sm:$0xf] %vm4194_vm8, %v4385_v48  ;;  %v4365_v49 = vsel %vm7478_vm14, %v4356_v39, %v4364_v14  ;;  %v4366_v60 = vrot.slane %v4364_v14, 4  ;;  %v4408_v53 = vshrl.u32 %v5165_v57, 16  ;;  %v4411_v26 = vshll.u32 %v5165_v57, 16 }
 0x224   : > { %v7501_v2 = vpop.eup %6128  ;;  %v7508_v30 = vpop.f32.mrb[30].mxu1  ;;  %4750 = vst.msk [vmem:[%s7203_s24 + $0xc] sm:$0xf] %vm4194_vm8, %v4365_v49  ;;  %v5166_v47 = vpack.c.bf16 %v4165_v18, %v4165_v18  ;;  %v4388_v17 = vshrl.u32 %v5163_v42, 16  ;;  %v4391_v39 = vshll.u32 %v5163_v42, 16  ;;  %v4163_v54 = vmul.f32 %v7448_v6, %v3911_v46 }
 0x225   : > { %7899 = vst [vmem:[#allocation2_spill] sm:$0xff] %v7508_v30  ;;  %v7515_v33 = vpop.f32.mrb[31].mxu1  ;;  %v6131_v8 = vpop.eup %6130  ;;  %v4375_v40 = vsel %vm7478_vm14, %v4366_v60, %v4374_v41  ;;  %v4410_v55 = vrot.slane %v4408_v53, 6  ;;  %v4413_v34 = vrot.slane %v4411_v26, 7  ;;  %6134 = vrcp.f32 %v3809_v5 }
 0x226   : > { %7900 = vst [vmem:[#allocation3_spill] sm:$0xff] %v7515_v33  ;;  %v6133_v9 = vpop.eup %6132  ;;  %v7523_v14 = vpop.f32.mrb[24].mxu0  ;;  %4751 = vst.msk [vmem:[%s7203_s24 + $0x10] sm:$0xf] %vm4194_vm8, %v4375_v40  ;;  %v4418_v25 = vshrl.u32 %v5166_v47, 16  ;;  %v4421_v48 = vshll.u32 %v5166_v47, 16  ;;  %v5164_v44 = vpack.c.bf16 %v4163_v54, %v4163_v54  ;;  %v3916_v41 = vmul.f32 %v6131_v8, %v7381_v62 }
 0x227   : > { %v7527_v57 = vpop.f32.mrb[25].mxu0  ;;  %v4031_v18 = vpop.permute.xlu0 %4030  ;;  %v4390_v23 = vrot.slane %v4388_v17, 6  ;;  %v4393_v49 = vrot.slane %v4391_v39, 7  ;;  %v4414_v42 = vor.u32 %v4413_v34, %v4410_v55  ;;  %v3914_v33 = vmul.f32 %v6133_v9, %v7386_v58 }
 0x228   : > { %v7530_v60 = vpop.f32.mrb[26].mxu0  ;;  %v4420_v6 = vrot.slane %v4418_v25, 6  ;;  %v4423_v46 = vrot.slane %v4421_v48, 7  ;;  %v4398_v47 = vshrl.u32 %v5164_v44, 16  ;;  %v4401_v30 = vshll.u32 %v5164_v44, 16 }
 0x229   : > { %v7533_v40 = vpop.f32.mrb[27].mxu0  ;;  %v7535_v53 = vpop.f32.mrb[32].mxu1  ;;  %v4394_v26 = vor.u32 %v4393_v49, %v4390_v23  ;;  %v4168_v17 = vmul.f32 %v4031_v18, %v3916_v41  ;;  %v4416_v54 = vrot.slane %v4414_v42, 4  ;;  %v4166_v8 = vmul.f32 %v4021_v27, %v3914_v33 }
 0x22a   : > { %v7537_v39 = vpop.f32.mrb[33].mxu1  ;;  %v4424_v62 = vor.u32 %v4423_v46, %v4420_v6  ;;  %v4400_v34 = vrot.slane %v4398_v47, 6  ;;  %v4403_v25 = vrot.slane %v4401_v30, 7  ;;  %v7549_v27 = vpop.permute.xlu1 %4025  ;;  %v3812_v30 = vadd.f32 1.0, %v7474_v4 }
 0x22b   : > { %v7539_v55 = vpop.f32.mrb[34].mxu1  ;;  %v4395_v58 = vsel %vm7478_vm14, %v4386_v1, %v4394_v26  ;;  %v4396_v9 = vrot.slane %v4394_v26, 4  ;;  %v5169_v23 = vpack.c.bf16 %v4168_v17, %v4168_v17  ;;  %v5167_v49 = vpack.c.bf16 %v4166_v8, %v4166_v8 }
 0x22c   : > { %v7543_v48 = vpop.f32.mrb[35].mxu1  ;;  %4753 = vst.msk [vmem:[%s7203_s24 + $0x18] sm:$0xf] %vm4194_vm8, %v4395_v58  ;;  %v4425_v44 = vsel %vm7478_vm14, %v4416_v54, %v4424_v62  ;;  %v4426_v18 = vrot.slane %v4424_v62, 4  ;;  %v4404_v33 = vor.u32 %v4403_v25, %v4400_v34  ;;  %v3807_v1 = vadd.f32 1.0, %v7456_v35  ;;  %v7556_v41 = vpop.f32.mrb[28].mxu0 }
 0x22d   : > { %4756 = vst.msk [vmem:[%s7203_s24 + $0x24] sm:$0xf] %vm4194_vm8, %v4425_v44  ;;  %v3810_v5 = vadd.f32 1.0, %v7485_v16  ;;  %v4448_v6 = vshrl.u32 %v5169_v23, 16  ;;  %v4451_v46 = vshll.u32 %v5169_v23, 16  ;;  %v4428_v26 = vshrl.u32 %v5167_v49, 16 }
 0x22e   : > { %v4431_v47 = vshll.u32 %v5167_v49, 16  ;;  %v7558_v17 = vpop.f32.mrb[29].mxu0  ;;  %v4405_v54 = vsel %vm7478_vm14, %v4396_v9, %v4404_v33  ;;  %v4406_v62 = vrot.slane %v4404_v33, 4  ;;  %6136 = vrcp.f32 %v3807_v1  ;;  %v4036_v1 = vpop.permute.xlu1 %4035 }
 0x22f   : > { %v3813_v35 = vadd.f32 1.0, %v7494_v24  ;;  %v7563_v8 = vpop.f32.mrb[30].mxu0  ;;  %4754 = vst.msk [vmem:[%s7203_s24 + $0x1c] sm:$0xf] %vm4194_vm8, %v4405_v54  ;;  %v4450_v4 = vrot.slane %v4448_v6, 6  ;;  %v4453_v16 = vrot.slane %v4451_v46, 7  ;;  %6138 = vrcp.f32 %v3812_v30  ;;  %v6135_v6 = vpop.eup %6134 }
 0x230   : > { %v4430_v58 = vrot.slane %v4428_v26, 6  ;;  %v4433_v34 = vrot.slane %v4431_v47, 7  ;;  %v7567_v25 = vpop.f32.mrb[31].mxu0  ;;  %v4415_v44 = vsel %vm7478_vm14, %v4406_v62, %v4414_v42  ;;  %v3811_v9 = vadd.f32 1.0, %v7501_v2  ;;  %v4041_v26 = vpop.permute.xlu0 %4040 }
 0x231   : > { %v5103_v23 = vmul.f32 -1.442695, %v7452_v51  ;;  %4755 = vst.msk [vmem:[%s7203_s24 + $0x20] sm:$0xf] %vm4194_vm8, %v4415_v44  ;;  %v7575_v24 = vor.u32 %v4453_v16, %v4450_v4  ;;  %6140 = vrcp.f32 %v3810_v5  ;;  %v7581_v33 = vadd.f32 %v7438_v56, %v7346_v7 }
 0x232   : > { %v7577_v49 = vor.u32 %v4433_v34, %v4430_v58  ;;  %6142 = vrcp.f32 %v3813_v35  ;;  %v5728_v42 = vadd.f32 %v7440_v12, %v7339_v38  ;;  %v5729_v2 = vadd.f32 %v7442_v19, %v7341_v10  ;;  %v4046_v58 = vpop.permute.xlu1 %4045 }
 0x233   : > { %v5730_v30 = vadd.f32 %v7462_v31, %v7407_v63  ;;  %v4456_v46 = vrot.slane %v7575_v24, 4  ;;  %6144 = vrcp.f32 %v3811_v9  ;;  %v3917_v56 = vmul.f32 %v6135_v6, %v7391_v0 }
 0x234   : > { %v4435_v5 = vsel %vm7478_vm14, %v4426_v18, %v7577_v49  ;;  %6146 = vpow2.f32 %v5103_v23  ;;  %v5101_v38 = vmul.f32 -1.442695, %v7581_v33  ;;  %v7598_v10 = vadd.f32 %v5728_v42, %v7346_v7  ;;  %v7600_v12 = vpop.f32.mrb[32].mxu0 }
 0x235   : > { %4757 = vst.msk [vmem:[%s7203_s24 + $0x28] sm:$0xf] %vm4194_vm8, %v4435_v5  ;;  %v7603_v63 = vadd.f32 %v5729_v2, %v7346_v7  ;;  %v7606_v19 = vadd.f32 %v5730_v30, %v7346_v7  ;;  %v5731_v31 = vadd.f32 %v7472_v50, %v7413_v21  ;;  %v5732_v0 = vadd.f32 %v7483_v32, %v7419_v13  ;;  %v7612_v18 = vpop.f32.mrb[33].mxu0 }
 0x236   : > { %v4169_v47 = vmul.f32 %v4036_v1, %v3917_v56  ;;  %6148 = vpow2.f32 %v5101_v38  ;;  %v5104_v54 = vmul.f32 -1.442695, %v7598_v10  ;;  %v5733_v62 = vadd.f32 %v7490_v3, %v7425_v36  ;;  %v7617_v35 = vpop.f32.mrb[34].mxu0 }
 0x237   : > { %v5102_v4 = vmul.f32 -1.442695, %v7603_v63  ;;  %v5107_v16 = vmul.f32 -1.442695, %v7606_v19  ;;  %v7622_v21 = vadd.f32 %v5731_v31, %v7346_v7  ;;  %v7625_v13 = vadd.f32 %v5732_v0, %v7346_v7  ;;  %v7627_v50 = vpop.f32.mrb[35].mxu0 }
 0x238   : > { %v6137_v32 = vpop.eup %6136  ;;  %v5170_v34 = vpack.c.bf16 %v4169_v47, %v4169_v47  ;;  %6150 = vpow2.f32 %v5104_v54  ;;  %v7630_v36 = vadd.f32 %v5733_v62, %v7346_v7  ;;  %v5734_v3 = vadd.f32 %v7523_v14, %v7444_v11  ;;  %v4051_v14 = vpop.permute.xlu0 %4050 }
 0x239   : > { %v3915_v44 = vmul.f32 %v6137_v32, %v7395_v45  ;;  %6152 = vpow2.f32 %v5102_v4  ;;  %v5105_v9 = vmul.f32 -1.442695, %v7622_v21  ;;  %v5108_v23 = vmul.f32 -1.442695, %v7625_v13  ;;  %v6139_v1 = vpop.eup %6138 }
 0x23a   : > { %v4458_v42 = vshrl.u32 %v5170_v34, 16  ;;  %v4461_v2 = vshll.u32 %v5170_v34, 16  ;;  %6154 = vpow2.f32 %v5107_v16  ;;  %v5106_v30 = vmul.f32 -1.442695, %v7630_v36 }
 0x23b   : > { %v6141_v6 = vpop.eup %6140  ;;  %v4436_v5 = vrot.slane %v7577_v49, 4  ;;  %v4167_v56 = vmul.f32 %v7549_v27, %v3915_v44  ;;  %v3920_v11 = vmul.f32 %v6139_v1, %v7404_v28  ;;  %6156 = vpow2.f32 %v5105_v9  ;;  %v4056_v49 = vpop.permute.xlu1 %4055 }
 0x23c   : > { %v6143_v45 = vpop.eup %6142  ;;  %v4460_v38 = vrot.slane %v4458_v42, 6  ;;  %v4463_v31 = vrot.slane %v4461_v2, 7  ;;  %v3918_v0 = vmul.f32 %v6141_v6, %v7410_v29  ;;  %v7643_v47 = vadd.f32 %v5734_v3, %v7346_v7 }
 0x23d   : > { %v6145_v54 = vpop.eup %6144  ;;  %v5168_v62 = vpack.c.bf16 %v4167_v56, %v4167_v56  ;;  %v4172_v4 = vmul.f32 %v4051_v14, %v3920_v11  ;;  %v3921_v16 = vmul.f32 %v6143_v45, %v7417_v59  ;;  %6158 = vpow2.f32 %v5108_v23 }
 0x23e   : > { %v6147_v27 = vpop.eup %6146  ;;  %v4464_v28 = vor.u32 %v4463_v31, %v4460_v38  ;;  %v4170_v32 = vmul.f32 %v4041_v26, %v3918_v0  ;;  %v3919_v34 = vmul.f32 %v6145_v54, %v7423_v15  ;;  %6160 = vpow2.f32 %v5106_v30 }
 0x23f   : > { %v4438_v44 = vshrl.u32 %v5168_v62, 16  ;;  %v4441_v9 = vshll.u32 %v5168_v62, 16  ;;  %v5173_v29 = vpack.c.bf16 %v4172_v4, %v4172_v4  ;;  %v4173_v1 = vmul.f32 %v4056_v49, %v3921_v16 }
 0x240   : > { %v6149_v3 = vpop.eup %6148  ;;  %v4465_v42 = vsel %vm7478_vm14, %v4456_v46, %v4464_v28  ;;  %v4466_v59 = vrot.slane %v4464_v28, 4  ;;  %v5171_v23 = vpack.c.bf16 %v4170_v32, %v4170_v32  ;;  %v4171_v2 = vmul.f32 %v4046_v58, %v3919_v34 }
 0x241   : > { %4760 = vst.msk [vmem:[%s7203_s24 + $0x34] sm:$0xf] %vm4194_vm8, %v4465_v42  ;;  %v4440_v6 = vrot.slane %v4438_v44, 6  ;;  %v4443_v26 = vrot.slane %v4441_v9, 7  ;;  %v4488_v56 = vshrl.u32 %v5173_v29, 16  ;;  %v4491_v15 = vshll.u32 %v5173_v29, 16 }
 0x242   : > { %v6151_v30 = vpop.eup %6150  ;;  %v4468_v11 = vshrl.u32 %v5171_v23, 16  ;;  %v4471_v45 = vshll.u32 %v5171_v23, 16  ;;  %v5174_v14 = vpack.c.bf16 %v4173_v1, %v4173_v1  ;;  %v5172_v38 = vpack.c.bf16 %v4171_v2, %v4171_v2 }
 0x243   : > { %v6153_v31 = vpop.eup %6152  ;;  %v4444_v0 = vor.u32 %v4443_v26, %v4440_v6  ;;  %v4490_v54 = vrot.slane %v4488_v56, 6  ;;  %v4493_v62 = vrot.slane %v4491_v15, 7  ;;  %v3816_v46 = vadd.f32 1.0, %v6147_v27  ;;  %v7660_v15 = vpop.permute.xlu0 %4060 }
 0x244   : > { %v6155_v4 = vpop.eup %6154  ;;  %v4470_v16 = vrot.slane %v4468_v11, 6  ;;  %v4473_v58 = vrot.slane %v4471_v45, 7  ;;  %v4498_v49 = vshrl.u32 %v5174_v14, 16  ;;  %v4501_v28 = vshll.u32 %v5174_v14, 16 }
 0x245   : > { %v6157_v32 = vpop.eup %6156  ;;  %v4445_v34 = vsel %vm7478_vm14, %v4436_v5, %v4444_v0  ;;  %v4446_v44 = vrot.slane %v4444_v0, 4  ;;  %v4494_v9 = vor.u32 %v4493_v62, %v4490_v54  ;;  %v4478_v29 = vshrl.u32 %v5172_v38, 16 }
 0x246   : > { %4758 = vst.msk [vmem:[%s7203_s24 + $0x2c] sm:$0xf] %vm4194_vm8, %v4445_v34  ;;  %v4474_v1 = vor.u32 %v4473_v58, %v4470_v16  ;;  %v4500_v42 = vrot.slane %v4498_v49, 6  ;;  %v4503_v23 = vrot.slane %v4501_v28, 7  ;;  %v4481_v27 = vshll.u32 %v5172_v38, 16 }
 0x247   : > { %v6159_v2 = vpop.eup %6158  ;;  %v4455_v6 = vsel %vm7478_vm14, %v4446_v44, %v7575_v24  ;;  %v4496_v26 = vrot.slane %v4494_v9, 4  ;;  %v4480_v56 = vrot.slane %v4478_v29, 6  ;;  %6162 = vrcp.f32 %v3816_v46  ;;  %v4071_v44 = vpop.permute.xlu0 %4070 }
 0x248   : > { %v6161_v5 = vpop.eup %6160  ;;  %4759 = vst.msk [vmem:[%s7203_s24 + $0x30] sm:$0xf] %vm4194_vm8, %v4455_v6  ;;  %v4475_v11 = vsel %vm7478_vm14, %v4466_v59, %v4474_v1  ;;  %v4476_v45 = vrot.slane %v4474_v1, 4  ;;  %v7666_v14 = vor.u32 %v4503_v23, %v4500_v42  ;;  %v4483_v38 = vrot.slane %v4481_v27, 7  ;;  %v7901_v1 = vld [vmem:[#allocation2_spill] sm:$0xff]  ;;  %v7902_v23 = vld [vmem:[#allocation3_spill] sm:$0xff] }
 0x249   : > { %4761 = vst.msk [vmem:[%s7203_s24 + $0x38] sm:$0xf] %vm4194_vm8, %v4475_v11  ;;  %v3814_v0 = vadd.f32 1.0, %v6149_v3  ;;  %v3817_v24 = vadd.f32 1.0, %v6151_v30  ;;  %v3815_v54 = vadd.f32 1.0, %v6153_v31  ;;  %v3820_v58 = vadd.f32 1.0, %v6155_v4 }
 0x24a   : > { %v5111_v62 = vmul.f32 -1.442695, %v7643_v47  ;;  %v4505_v46 = vsel %vm7478_vm14, %v4496_v26, %v7666_v14  ;;  %v4484_v16 = vor.u32 %v4483_v38, %v4480_v56  ;;  %v3818_v49 = vadd.f32 1.0, %v6157_v32 }
 0x24b   : > { %4764 = vst.msk [vmem:[%s7203_s24 + $0x44] sm:$0xf] %vm4194_vm8, %v4505_v46  ;;  %6164 = vrcp.f32 %v3814_v0  ;;  %v3821_v59 = vadd.f32 1.0, %v6159_v2  ;;  %v3819_v28 = vadd.f32 1.0, %v6161_v5  ;;  %v5735_v3 = vadd.f32 %v7527_v57, %v7454_v22  ;;  %v4066_v57 = vpop.permute.xlu1 %4065  ;;  %v4081_v11 = vpop.permute.xlu0 %4080 }
 0x24c   : > { %v4485_v30 = vsel %vm7478_vm14, %v4476_v45, %v4484_v16  ;;  %v4486_v31 = vrot.slane %v4484_v16, 4  ;;  %6166 = vrcp.f32 %v3817_v24  ;;  %v5736_v34 = vadd.f32 %v7530_v60, %v7458_v37 }
 0x24d   : > { %4762 = vst.msk [vmem:[%s7203_s24 + $0x3c] sm:$0xf] %vm4194_vm8, %v4485_v30  ;;  %6168 = vrcp.f32 %v3815_v54  ;;  %v7685_v4 = vadd.f32 %v5735_v3, %v7346_v7  ;;  %v5737_v32 = vadd.f32 %v7533_v40, %v7460_v52  ;;  %v5738_v22 = vadd.f32 %v7556_v41, %v7492_v43 }
 0x24e   : > { %v4495_v29 = vsel %vm7478_vm14, %v4486_v31, %v4494_v9  ;;  %6170 = vrcp.f32 %v3820_v58  ;;  %v7694_v37 = vadd.f32 %v5736_v34, %v7346_v7  ;;  %v5739_v60 = vadd.f32 %v7558_v17, %v7499_v20 }
 0x24f   : > { %4763 = vst.msk [vmem:[%s7203_s24 + $0x40] sm:$0xf] %vm4194_vm8, %v4495_v29  ;;  %6172 = vrcp.f32 %v3818_v49  ;;  %v5109_v52 = vmul.f32 -1.442695, %v7685_v4  ;;  %v7702_v40 = vadd.f32 %v5737_v32, %v7346_v7  ;;  %v7705_v43 = vadd.f32 %v5738_v22, %v7346_v7 }
 0x250   : > { %6174 = vrcp.f32 %v3821_v59  ;;  %v5112_v41 = vmul.f32 -1.442695, %v7694_v37  ;;  %v7709_v9 = vadd.f32 %v5739_v60, %v7346_v7  ;;  %v5740_v20 = vadd.f32 %v7563_v8, %v7901_v1 }
 0x251   : > { %v6163_v17 = vpop.eup %6162  ;;  %6176 = vrcp.f32 %v3819_v28  ;;  %v5110_v42 = vmul.f32 -1.442695, %v7702_v40  ;;  %v7716_v27 = vadd.f32 %v7567_v25, %v7902_v23  ;;  %v5115_v6 = vmul.f32 -1.442695, %v7705_v43  ;;  %v4076_v25 = vpop.permute.xlu1 %4075 }
 0x252   : > { %v3924_v2 = vmul.f32 %v6163_v17, %v7452_v51  ;;  %6178 = vpow2.f32 %v5111_v62  ;;  %v7721_v26 = vadd.f32 %v5740_v20, %v7346_v7  ;;  %v5113_v56 = vmul.f32 -1.442695, %v7709_v9  ;;  %v4091_v28 = vpop.permute.xlu0 %4090 }
 0x253   : > { %6180 = vpow2.f32 %v5109_v52  ;;  %v7726_v8 = vadd.f32 %v7600_v12, %v7535_v53  ;;  %v7730_v5 = vadd.f32 %v7612_v18, %v7537_v39  ;;  %v7734_v45 = vadd.f32 %v7617_v35, %v7539_v55 }
 0x254   : > { %v4176_v51 = vmul.f32 %v4071_v44, %v3924_v2  ;;  %6182 = vpow2.f32 %v5112_v41  ;;  %v5116_v38 = vmul.f32 -1.442695, %v7721_v26  ;;  %v4506_v16 = vrot.slane %v7666_v14, 4 }
 0x255   : > { %v6165_v7 = vpop.eup %6164  ;;  %6184 = vpow2.f32 %v5110_v42  ;;  %v7743_v59 = vpop.permute.xlu1 %4085 }
 0x256   : > { %v6167_v0 = vpop.eup %6166  ;;  %v5177_v24 = vpack.c.bf16 %v4176_v51, %v4176_v51  ;;  %v3922_v53 = vmul.f32 %v6165_v7, %v7581_v33  ;;  %6186 = vpow2.f32 %v5115_v6 }
 0x257   : > { %v6169_v12 = vpop.eup %6168  ;;  %v3925_v39 = vmul.f32 %v6167_v0, %v7598_v10  ;;  %6188 = vpow2.f32 %v5113_v56 }
 0x258   : > { %v6171_v18 = vpop.eup %6170  ;;  %v4528_v54 = vshrl.u32 %v5177_v24, 16  ;;  %v4531_v62 = vshll.u32 %v5177_v24, 16  ;;  %v4174_v46 = vmul.f32 %v7660_v15, %v3922_v53  ;;  %v3923_v55 = vmul.f32 %v6169_v12, %v7603_v63 }
 0x259   : > { %v6173_v35 = vpop.eup %6172  ;;  %v4177_v58 = vmul.f32 %v4076_v25, %v3925_v39  ;;  %v3928_v49 = vmul.f32 %v6171_v18, %v7606_v19  ;;  %6190 = vpow2.f32 %v5116_v38  ;;  %v4096_v38 = vpop.permute.xlu1 %4095 }
 0x25a   : > { %v6175_v33 = vpop.eup %6174  ;;  %v4530_v10 = vrot.slane %v4528_v54, 6  ;;  %v4533_v3 = vrot.slane %v4531_v62, 7  ;;  %v5175_v30 = vpack.c.bf16 %v4174_v46, %v4174_v46  ;;  %v4175_v31 = vmul.f32 %v4066_v57, %v3923_v55 }
 0x25b   : > { %v6177_v34 = vpop.eup %6176  ;;  %v5178_v32 = vpack.c.bf16 %v4177_v58, %v4177_v58  ;;  %v4180_v15 = vmul.f32 %v4091_v28, %v3928_v49  ;;  %v3926_v63 = vmul.f32 %v6173_v35, %v7622_v21  ;;  %v3929_v22 = vmul.f32 %v6175_v33, %v7625_v13 }
 0x25c   : > { %v6179_v14 = vpop.eup %6178  ;;  %v4534_v44 = vor.u32 %v4533_v3, %v4530_v10  ;;  %v4508_v29 = vshrl.u32 %v5175_v30, 16  ;;  %v4511_v19 = vshll.u32 %v5175_v30, 16  ;;  %v5176_v60 = vpack.c.bf16 %v4175_v31, %v4175_v31 }
 0x25d   : > { %v6181_v52 = vpop.eup %6180  ;;  %v4538_v41 = vshrl.u32 %v5178_v32, 16  ;;  %v4541_v1 = vshll.u32 %v5178_v32, 16  ;;  %v5181_v20 = vpack.c.bf16 %v4180_v15, %v4180_v15  ;;  %v4178_v17 = vmul.f32 %v4081_v11, %v3926_v63 }
 0x25e   : > { %v6183_v42 = vpop.eup %6182  ;;  %v4536_v23 = vrot.slane %v4534_v44, 4  ;;  %v4510_v57 = vrot.slane %v4508_v29, 6  ;;  %v4513_v2 = vrot.slane %v4511_v19, 7  ;;  %v4518_v6 = vshrl.u32 %v5176_v60, 16 }
 0x25f   : > { %v6185_v56 = vpop.eup %6184  ;;  %v4540_v25 = vrot.slane %v4538_v41, 6  ;;  %v4543_v21 = vrot.slane %v4541_v1, 7  ;;  %v4521_v51 = vshll.u32 %v5176_v60, 16  ;;  %v4568_v13 = vshrl.u32 %v5181_v20, 16 }
 0x260   : > { %v6187_v7 = vpop.eup %6186  ;;  %v4514_v0 = vor.u32 %v4513_v2, %v4510_v57  ;;  %v4520_v24 = vrot.slane %v4518_v6, 6  ;;  %v4571_v53 = vshll.u32 %v5181_v20, 16  ;;  %v5179_v12 = vpack.c.bf16 %v4178_v17, %v4178_v17 }
 0x261   : > { %v6189_v39 = vpop.eup %6188  ;;  %v4544_v11 = vor.u32 %v4543_v21, %v4540_v25  ;;  %v4523_v18 = vrot.slane %v4521_v51, 7  ;;  %v4570_v54 = vrot.slane %v4568_v13, 6  ;;  %v4181_v62 = vmul.f32 %v4096_v38, %v3929_v22 }
 0x262   : > { %v4515_v46 = vsel %vm7478_vm14, %v4506_v16, %v4514_v0  ;;  %v4516_v55 = vrot.slane %v4514_v0, 4  ;;  %v4573_v35 = vrot.slane %v4571_v53, 7  ;;  %v4548_v58 = vshrl.u32 %v5179_v12, 16 }
 0x263   : > { %v6191_v49 = vpop.eup %6190  ;;  %4765 = vst.msk [vmem:[%s7203_s24 + $0x48] sm:$0xf] %vm4194_vm8, %v4515_v46  ;;  %v4545_v33 = vsel %vm7478_vm14, %v4536_v23, %v4544_v11  ;;  %v4546_v28 = vrot.slane %v4544_v11, 4  ;;  %v4524_v10 = vor.u32 %v4523_v18, %v4520_v24  ;;  %v4551_v3 = vshll.u32 %v5179_v12, 16 }
 0x264   : > { %4768 = vst.msk [vmem:[%s7203_s24 + $0x54] sm:$0xf] %vm4194_vm8, %v4545_v33  ;;  %v4574_v30 = vor.u32 %v4573_v35, %v4570_v54  ;;  %v4550_v31 = vrot.slane %v4548_v58, 6  ;;  %v5182_v32 = vpack.c.bf16 %v4181_v62, %v4181_v62  ;;  %v3927_v16 = vmul.f32 %v6177_v34, %v7630_v36  ;;  %v4101_v34 = vpop.permute.xlu0 %4100  ;;  %v4106_v54 = vpop.permute.xlu1 %4105 }
 0x265   : > { %v4525_v15 = vsel %vm7478_vm14, %v4516_v55, %v4524_v10  ;;  %v4526_v63 = vrot.slane %v4524_v10, 4  ;;  %v4553_v22 = vrot.slane %v4551_v3, 7  ;;  %v3824_v29 = vadd.f32 1.0, %v6179_v14 }
 0x266   : > { %4766 = vst.msk [vmem:[%s7203_s24 + $0x4c] sm:$0xf] %vm4194_vm8, %v4525_v15  ;;  %v4576_v19 = vrot.slane %v4574_v30, 4  ;;  %v4578_v60 = vshrl.u32 %v5182_v32, 16  ;;  %v4581_v41 = vshll.u32 %v5182_v32, 16  ;;  %v4179_v1 = vmul.f32 %v7743_v59, %v3927_v16 }
 0x267   : > { %v4535_v20 = vsel %vm7478_vm14, %v4526_v63, %v4534_v44  ;;  %v4554_v17 = vor.u32 %v4553_v22, %v4550_v31  ;;  %6192 = vrcp.f32 %v3824_v29  ;;  %v3822_v36 = vadd.f32 1.0, %v6181_v52 }
 0x268   : > { %4767 = vst.msk [vmem:[%s7203_s24 + $0x50] sm:$0xf] %vm4194_vm8, %v4535_v20  ;;  %v4580_v23 = vrot.slane %v4578_v60, 6  ;;  %v4583_v57 = vrot.slane %v4581_v41, 7  ;;  %v5180_v14 = vpack.c.bf16 %v4179_v1, %v4179_v1  ;;  %v3825_v2 = vadd.f32 1.0, %v6183_v42  ;;  %v4116_v16 = vpop.permute.xlu1 %4115 }
 0x269   : > { %v4555_v6 = vsel %vm7478_vm14, %v4546_v28, %v4554_v17  ;;  %6194 = vrcp.f32 %v3822_v36  ;;  %v3823_v25 = vadd.f32 1.0, %v6185_v56  ;;  %v3828_v52 = vadd.f32 1.0, %v6187_v7  ;;  %v6237_v42 = vld [vmem:[%s7891_s2] ss:$0 sm:$0xff] }
 0x26a   : > { %4769 = vst.msk [vmem:[%s7203_s24 + $0x58] sm:$0xf] %vm4194_vm8, %v4555_v6  ;;  %v7769_v59 = vor.u32 %v4583_v57, %v4580_v23  ;;  %v4558_v44 = vshrl.u32 %v5180_v14, 16  ;;  %v4561_v21 = vshll.u32 %v5180_v14, 16  ;;  %6196 = vrcp.f32 %v3825_v2 }
 0x26b   : > { %6198 = vrcp.f32 %v3823_v25  ;;  %v3826_v51 = vadd.f32 1.0, %v6189_v39  ;;  %v7775_v13 = vadd.f32 %v6237_v42, %v7716_v27  ;;  %v4556_v38 = vrot.slane %v4554_v17, 4  ;;  %v4111_v27 = vpop.permute.xlu0 %4110 }
 0x26c   : > { %v4585_v56 = vsel %vm7478_vm14, %v4576_v19, %v7769_v59  ;;  %v4560_v0 = vrot.slane %v4558_v44, 6  ;;  %v4563_v24 = vrot.slane %v4561_v21, 7  ;;  %6200 = vrcp.f32 %v3828_v52  ;;  %v7817_v6 = vpop.permute.xlu1 %4125 }
 0x26d   : > { %4772 = vst.msk [vmem:[%s7203_s24 + $0x64] sm:$0xf] %vm4194_vm8, %v4585_v56  ;;  %v7783_v7 = vadd.f32 %v6237_v42, %v7726_v8  ;;  %v5745_v53 = vadd.f32 %v7627_v50, %v7543_v48  ;;  %6202 = vrcp.f32 %v3826_v51  ;;  %v3829_v39 = vadd.f32 1.0, %v6191_v49 }
 0x26e   : > { %v4564_v12 = vor.u32 %v4563_v24, %v4560_v0  ;;  %v7788_v11 = vadd.f32 %v6237_v42, %v7730_v5  ;;  %v7903_v18 = vmov 0   ;;  %v7793_v62 = vadd.f32 %v6237_v42, %v7734_v45 }
 0x26f   : > { %4236 = vst.msk [vmem:[%s7203_s24 + $0xa0] sm:$0x7] %vm4235_vm15, %v7903_v18  ;;  %v5114_v48 = vmul.f32 -1.442695, %v7775_v13  ;;  %v5119_v55 = vmul.f32 -1.442695, %v7783_v7  ;;  %v7801_v5 = vadd.f32 %v6237_v42, %v5745_v53  ;;  %6204 = vrcp.f32 %v3829_v39  ;;  %v4121_v10 = vpop.permute.xlu0 %4120 }
 0x270   : > { %v4565_v8 = vsel %vm7478_vm14, %v4556_v38, %v4564_v12  ;;  %v4566_v46 = vrot.slane %v4564_v12, 4  ;;  %v5117_v45 = vmul.f32 -1.442695, %v7788_v11  ;;  %v5120_v33 = vmul.f32 -1.442695, %v7793_v62 }
 0x271   : > { %v6193_v50 = vpop.eup %6192  ;;  %4770 = vst.msk [vmem:[%s7203_s24 + $0x5c] sm:$0xf] %vm4194_vm8, %v4565_v8  ;;  %6206 = vpow2.f32 %v5114_v48  ;;  %v4586_v19 = vrot.slane %v7769_v59, 4 }
 0x272   : > { %v4575_v35 = vsel %vm7478_vm14, %v4566_v46, %v4574_v30  ;;  %v3932_v58 = vmul.f32 %v6193_v50, %v7643_v47  ;;  %6208 = vpow2.f32 %v5119_v55  ;;  %v5118_v47 = vmul.f32 -1.442695, %v7801_v5 }
 0x273   : > { %v6195_v49 = vpop.eup %6194  ;;  %4771 = vst.msk [vmem:[%s7203_s24 + $0x60] sm:$0xf] %vm4194_vm8, %v4575_v35  ;;  %6210 = vpow2.f32 %v5117_v45 }
 0x274   : > { %v6197_v28 = vpop.eup %6196  ;;  %v4184_v3 = vmul.f32 %v4111_v27, %v3932_v58  ;;  %v3930_v31 = vmul.f32 %v6195_v49, %v7685_v4  ;;  %6212 = vpow2.f32 %v5120_v33 }
 0x275   : > { %v6199_v32 = vpop.eup %6198  ;;  %v3933_v30 = vmul.f32 %v6197_v28, %v7694_v37  ;;  %6214 = vpow2.f32 %v5118_v47  ;;  %v4136_v28 = vpop.permute.xlu1 %4135 }
 0x276   : > { %v5185_v15 = vpack.c.bf16 %v4184_v3, %v4184_v3  ;;  %v4182_v63 = vmul.f32 %v4101_v34, %v3930_v31  ;;  %v3931_v22 = vmul.f32 %v6199_v32, %v7702_v40  ;;  %v6201_v29 = vpop.eup %6200  ;;  %v4131_v34 = vpop.permute.xlu0 %4130 }
 0x277   : > { %v4185_v60 = vmul.f32 %v4116_v16, %v3933_v30  ;;  %v6203_v41 = vpop.eup %6202  ;;  %v3936_v37 = vmul.f32 %v6201_v29, %v7705_v43 }
 0x278   : > { %v4608_v4 = vshrl.u32 %v5185_v15, 16  ;;  %v4611_v1 = vshll.u32 %v5185_v15, 16  ;;  %v5183_v20 = vpack.c.bf16 %v4182_v63, %v4182_v63  ;;  %v4183_v17 = vmul.f32 %v4106_v54, %v3931_v22 }
 0x279   : > { %v5186_v36 = vpack.c.bf16 %v4185_v60, %v4185_v60  ;;  %v3934_v23 = vmul.f32 %v6203_v41, %v7709_v9  ;;  %v4188_v21 = vmul.f32 %v4131_v34, %v3936_v37  ;;  %v6205_v52 = vpop.eup %6204 }
 0x27a   : > { %v4610_v57 = vrot.slane %v4608_v4, 6  ;;  %v4613_v40 = vrot.slane %v4611_v1, 7  ;;  %v4588_v14 = vshrl.u32 %v5183_v20, 16  ;;  %v4591_v2 = vshll.u32 %v5183_v20, 16 }
 0x27b   : > { %v4618_v25 = vshrl.u32 %v5186_v36, 16  ;;  %v4621_v59 = vshll.u32 %v5186_v36, 16  ;;  %v5184_v44 = vpack.c.bf16 %v4183_v17, %v4183_v17  ;;  %v4186_v56 = vmul.f32 %v4121_v10, %v3934_v23  ;;  %v6207_v53 = vpop.eup %6206 }
 0x27c   : > { %v4614_v51 = vor.u32 %v4613_v40, %v4610_v57  ;;  %v4590_v42 = vrot.slane %v4588_v14, 6  ;;  %v4593_v38 = vrot.slane %v4591_v2, 7  ;;  %v5189_v39 = vpack.c.bf16 %v4188_v21, %v4188_v21  ;;  %v6209_v54 = vpop.eup %6208  ;;  %v4141_v21 = vpop.permute.xlu0 %4140 }
 0x27d   : > { %v4620_v43 = vrot.slane %v4618_v25, 6  ;;  %v4623_v0 = vrot.slane %v4621_v59, 7  ;;  %v4598_v9 = vshrl.u32 %v5184_v44, 16  ;;  %v4601_v24 = vshll.u32 %v5184_v44, 16  ;;  %v6211_v55 = vpop.eup %6210 }
 0x27e   : > { %v4616_v27 = vrot.slane %v4614_v51, 4  ;;  %v4594_v12 = vor.u32 %v4593_v38, %v4590_v42  ;;  %v5187_v18 = vpack.c.bf16 %v4186_v56, %v4186_v56  ;;  %v3937_v50 = vmul.f32 %v6205_v52, %v7721_v26  ;;  %v6213_v33 = vpop.eup %6212 }
 0x27f   : > { %v4624_v8 = vor.u32 %v4623_v0, %v4620_v43  ;;  %v4600_v46 = vrot.slane %v4598_v9, 6  ;;  %v4603_v48 = vrot.slane %v4601_v24, 7  ;;  %v4648_v45 = vshrl.u32 %v5189_v39, 16  ;;  %v6215_v47 = vpop.eup %6214 }
 0x280   : > { %v4595_v35 = vsel %vm7478_vm14, %v4586_v19, %v4594_v12  ;;  %v4596_v58 = vrot.slane %v4594_v12, 4  ;;  %v4651_v49 = vshll.u32 %v5189_v39, 16  ;;  %v4628_v31 = vshrl.u32 %v5187_v18, 16  ;;  %v4151_v9 = vpop.permute.xlu0 %4150 }
 0x281   : > { %4773 = vst.msk [vmem:[%s7203_s24 + $0x68] sm:$0xf] %vm4194_vm8, %v4595_v35  ;;  %v4625_v10 = vsel %vm7478_vm14, %v4616_v27, %v4624_v8  ;;  %v4604_v3 = vor.u32 %v4603_v48, %v4600_v46  ;;  %v4650_v26 = vrot.slane %v4648_v45, 6  ;;  %v4631_v16 = vshll.u32 %v5187_v18, 16 }
 0x282   : > { %4776 = vst.msk [vmem:[%s7203_s24 + $0x74] sm:$0xf] %vm4194_vm8, %v4625_v10  ;;  %v4653_v32 = vrot.slane %v4651_v49, 7  ;;  %v4189_v30 = vmul.f32 %v4136_v28, %v3937_v50  ;;  %v4630_v22 = vrot.slane %v4628_v31, 6  ;;  %v3827_v29 = vadd.f32 1.0, %v6207_v53 }
 0x283   : > { %v4605_v15 = vsel %vm7478_vm14, %v4596_v58, %v4604_v3  ;;  %v4606_v63 = vrot.slane %v4604_v3, 4  ;;  %v4633_v60 = vrot.slane %v4631_v16, 7  ;;  %v3832_v4 = vadd.f32 1.0, %v6209_v54 }
 0x284   : > { %4774 = vst.msk [vmem:[%s7203_s24 + $0x6c] sm:$0xf] %vm4194_vm8, %v4605_v15  ;;  %v7832_v19 = vor.u32 %v4653_v32, %v4650_v26  ;;  %v5190_v41 = vpack.c.bf16 %v4189_v30, %v4189_v30  ;;  %v4626_v1 = vrot.slane %v4624_v8, 4  ;;  %6216 = vrcp.f32 %v3827_v29 }
 0x285   : > { %v4615_v20 = vsel %vm7478_vm14, %v4606_v63, %v4614_v51  ;;  %v3830_v17 = vadd.f32 1.0, %v6211_v55  ;;  %v4634_v36 = vor.u32 %v4633_v60, %v4630_v22  ;;  %v3833_v34 = vadd.f32 1.0, %v6213_v33  ;;  %v4146_v51 = vpop.permute.xlu1 %4145 }
 0x286   : > { %4775 = vst.msk [vmem:[%s7203_s24 + $0x70] sm:$0xf] %vm4194_vm8, %v4615_v20  ;;  %v4658_v37 = vshrl.u32 %v5190_v41, 16  ;;  %v4661_v23 = vshll.u32 %v5190_v41, 16  ;;  %6218 = vrcp.f32 %v3832_v4  ;;  %v3831_v57 = vadd.f32 1.0, %v6215_v47 }
 0x287   : > { %v4656_v40 = vrot.slane %v7832_v19, 4  ;;  %v4635_v14 = vsel %vm7478_vm14, %v4626_v1, %v4634_v36  ;;  %6220 = vrcp.f32 %v3830_v17  ;;  %v4636_v50 = vrot.slane %v4634_v36, 4 }
 0x288   : > { %v4660_v2 = vrot.slane %v4658_v37, 6  ;;  %v4663_v25 = vrot.slane %v4661_v23, 7  ;;  %4777 = vst.msk [vmem:[%s7203_s24 + $0x78] sm:$0xf] %vm4194_vm8, %v4635_v14  ;;  %6222 = vrcp.f32 %v3833_v34  ;;  %v4787_v37 = vld [vmem:[%s7203_s24 + $0x98] sm:$0x3] }
 0x289   : > { %6224 = vrcp.f32 %v3831_v57  ;;  %v4156_v54 = vpop.permute.xlu1 %4155 }
 0x28a   : > { %v7843_v59 = vor.u32 %v4663_v25, %v4660_v2 }
 0x28c   : > { %v4665_v44 = vsel %vm7478_vm14, %v4656_v40, %v7843_v59  ;;  %v4666_v20 = vrot.slane %v7843_v59, 4 }
 0x28d   : > { %4780 = vst.msk [vmem:[%s7203_s24 + $0x84] sm:$0xf] %vm4194_vm8, %v4665_v44 }
 0x28e   : > { %v6217_v52 = vpop.eup %6216 }
 0x28f   : > { %v3935_v42 = vmul.f32 %v6217_v52, %v7775_v13 }
 0x290   : > { %v6219_v38 = vpop.eup %6218 }
 0x291   : > { %v4187_v56 = vmul.f32 %v7817_v6, %v3935_v42  ;;  %v3940_v43 = vmul.f32 %v6219_v38, %v7783_v7  ;;  %v6221_v0 = vpop.eup %6220 }
 0x292   : > { %v6223_v24 = vpop.eup %6222  ;;  %v3938_v12 = vmul.f32 %v6221_v0, %v7788_v11 }
 0x293   : > { %v5188_v53 = vpack.c.bf16 %v4187_v56, %v4187_v56  ;;  %v4192_v27 = vmul.f32 %v4151_v9, %v3940_v43  ;;  %v6225_v39 = vpop.eup %6224  ;;  %v3941_v18 = vmul.f32 %v6223_v24, %v7793_v62 }
 0x294   : > { %v4190_v13 = vmul.f32 %v4141_v21, %v3938_v12  ;;  %v3939_v6 = vmul.f32 %v6225_v39, %v7801_v5 }
 0x295   : > { %v4638_v8 = vshrl.u32 %v5188_v53, 16  ;;  %v4641_v46 = vshll.u32 %v5188_v53, 16  ;;  %v5193_v48 = vpack.c.bf16 %v4192_v27, %v4192_v27  ;;  %v4193_v55 = vmul.f32 %v4156_v54, %v3941_v18 }
 0x296   : > { %v5191_v49 = vpack.c.bf16 %v4190_v13, %v4190_v13  ;;  %v4191_v11 = vmul.f32 %v4146_v51, %v3939_v6 }
 0x297   : > { %v4640_v7 = vrot.slane %v4638_v8, 6  ;;  %v4643_v35 = vrot.slane %v4641_v46, 7  ;;  %v4688_v58 = vshrl.u32 %v5193_v48, 16  ;;  %v4691_v45 = vshll.u32 %v5193_v48, 16 }
 0x298   : > { %v5194_v33 = vpack.c.bf16 %v4193_v55, %v4193_v55  ;;  %v4668_v3 = vshrl.u32 %v5191_v49, 16  ;;  %v4671_v31 = vshll.u32 %v5191_v49, 16  ;;  %v5192_v47 = vpack.c.bf16 %v4191_v11, %v4191_v11 }
 0x299   : > { %v4644_v28 = vor.u32 %v4643_v35, %v4640_v7  ;;  %v4690_v10 = vrot.slane %v4688_v58, 6  ;;  %v4693_v62 = vrot.slane %v4691_v45, 7 }
 0x29a   : > { %v4698_v26 = vshrl.u32 %v5194_v33, 16  ;;  %v4701_v32 = vshll.u32 %v5194_v33, 16  ;;  %v4670_v15 = vrot.slane %v4668_v3, 6  ;;  %v4673_v63 = vrot.slane %v4671_v31, 7 }
 0x29b   : > { %v4645_v5 = vsel %vm7478_vm14, %v4636_v50, %v4644_v28  ;;  %v4646_v16 = vrot.slane %v4644_v28, 4  ;;  %v4694_v30 = vor.u32 %v4693_v62, %v4690_v10  ;;  %v4678_v4 = vshrl.u32 %v5192_v47, 16 }
 0x29c   : > { %4778 = vst.msk [vmem:[%s7203_s24 + $0x7c] sm:$0xf] %vm4194_vm8, %v4645_v5  ;;  %v4700_v22 = vrot.slane %v4698_v26, 6  ;;  %v4703_v29 = vrot.slane %v4701_v32, 7  ;;  %v4681_v1 = vshll.u32 %v5192_v47, 16  ;;  %v4674_v17 = vor.u32 %v4673_v63, %v4670_v15 }
 0x29d   : > { %v4655_v60 = vsel %vm7478_vm14, %v4646_v16, %v7832_v19  ;;  %v4696_v41 = vrot.slane %v4694_v30, 4  ;;  %v4680_v23 = vrot.slane %v4678_v4, 6 }
 0x29e   : > { %4779 = vst.msk [vmem:[%s7203_s24 + $0x80] sm:$0xf] %vm4194_vm8, %v4655_v60  ;;  %v4704_v36 = vor.u32 %v4703_v29, %v4700_v22  ;;  %v4683_v19 = vrot.slane %v4681_v1, 7  ;;  %v4675_v34 = vsel %vm7478_vm14, %v4666_v20, %v4674_v17  ;;  %v4676_v57 = vrot.slane %v4674_v17, 4 }
 0x29f   : > { %4781 = vst.msk [vmem:[%s7203_s24 + $0x88] sm:$0xf] %vm4194_vm8, %v4675_v34 }
 0x2a0   : > { %v4705_v40 = vsel %vm7478_vm14, %v4696_v41, %v4704_v36  ;;  %v4706_v14 = vrot.slane %v4704_v36, 4  ;;  %v4684_v2 = vor.u32 %v4683_v19, %v4680_v23 }
 0x2a1   : > { %4784 = vst.msk [vmem:[%s7203_s24 + $0x94] sm:$0xf] %vm4194_vm8, %v4705_v40 }
 0x2a2   : > { %v4788_v25 = vsel %vm4786_vm1, %v4706_v14, %v4787_v37  ;;  %v4685_v59 = vsel %vm7478_vm14, %v4676_v57, %v4684_v2  ;;  %v4686_v44 = vrot.slane %v4684_v2, 4 }
 0x2a3   : > { %4789 = vst [vmem:[%s7203_s24 + $0x98] sm:$0x3] %v4788_v25  ;;  %4782 = vst.msk [vmem:[%s7203_s24 + $0x8c] sm:$0xf] %vm4194_vm8, %v4685_v59 }
 0x2a4   : > { %v4695_v21 = vsel %vm7478_vm14, %v4686_v44, %v4694_v30 }
 0x2a5   : > { %4783 = vst.msk [vmem:[%s7203_s24 + $0x90] sm:$0xf] %vm4194_vm8, %v4695_v21 }
 0x2a6 PF: > { %s14_s15 = sadd.s32 1, %s6244_s15  }
 0x2a7   : > { %p11_p4 = scmp.ge.s32.totalorder %s14_s15, 4  }
 0x2a9   :  { %13 = sbr.rel (!%p11_p4) target bundleno = 1 (0x1), region = 74 }

// kernel: csp_stage_forward.8
= control target key start
LH: loop header
LB: loop body
LE: loop exit
PB: predicated region body
PF: predicated region fallthrough
CT: control target
= control target key end

     0   :  { %s6680_s18 = smov 0   ;;  %s8538_s0 = inlined_call_operand.vmem [shape: bf16[2,326,4], index: 0, kind: input, shape index: {}]   ;;  %s8539_s1 = inlined_call_operand.vmem [shape: bf16[9,4,4], index: 1, kind: input, shape index: {}]   ;;  %s8540_s2 = inlined_call_operand.vmem [shape: f32[1,4], index: 2, kind: input, shape index: {}]   ;;  %s8541_s3 = inlined_call_operand.vmem [shape: f32[288,1], index: 3, kind: input, shape index: {}]   ;;  %s8542_s4 = inlined_call_operand.vmem [shape: bf16[2,326,4], index: 4, kind: input, shape index: {}]   ;;  %s8543_s5 = inlined_call_operand.vmem [shape: bf16[2,326,4], index: 5, kind: output, shape index: {}]  }
   0x1 LB: > { %s5161_s19 = sadd.s32 4294967295, %s6647_s18   ;;  %p5165_p0 = scmp.ge.s32.totalorder %s6647_s18, 1  ;;  %s6647_s18 = sphi %s6680_s18, %s15_s18  }
   0x2   : > { %p197_p1 = scmp.lt.s32.totalorder %s6647_s18, 3 }
   0x4   : > { %p198_p2 = pnand %p5165_p0, %p197_p1 }
   0x6   : > { %201 = sbr.rel (%p198_p2) target bundleno = 695 (0x2b7), region = 40 }
   0xd   : > { %vm583_vm0 = vcmask 1041408   ;;  %v5283_v0 = vld [vmem:[%s8539_s1 + $0x8] sm:$0x3]  ;;  %v5169_v1 = vld [vmem:[%s8539_s1 + $0x2] sm:$0x3]  ;;  %p230_p3 = scmp.lt.s32.totalorder %s5161_s19, 1 }
   0xe   : > { %6404 = vmatprep.subr.msk.bf16.mxu0 %vm583_vm0, %v5283_v0  ;;  %6400 = vmatprep.subr.msk.bf16.mxu1 %vm583_vm0, %v5169_v1  ;;  %v6697_v2 = vsel %vm583_vm0, %v5283_v0, 0  ;;  %v585_v3 = vsel %vm583_vm0, %v5169_v1, 0  ;;  %v5303_v4 = vld [vmem:[%s8539_s1 + $0xa] sm:$0x3]  ;;  %v282_v5 = vld [vmem:[%s8539_s1] sm:$0x3] }
   0xf   : > { %5921 = vmatpush3.bf16.msra.mxu0 %v6697_v2  ;;  %5769 = vmatpush3.bf16.msra.mxu1 %v585_v3  ;;  %s8608_s19 = smov (!%p230_p3, %s5161_s19), 1  ;;  %vm379_vm1 = vsmask.f32 7424  ;;  %vm528_vm2 = vcmask 31744   ;;  %v6718_v6 = vsel %vm583_vm0, %v5303_v4, 0  ;;  %v801_v12 = vsel %vm583_vm0, %v282_v5, 0 }
  0x10   : > { %6406 = vmatprep.subr.msk.bf16.mxu0 %vm583_vm0, %v5303_v4  ;;  %s6708_s28 = smul.u32 164, %s8608_s19  ;;  %6401 = vmatprep.subr.msk.bf16.mxu1 %vm583_vm0, %v282_v5  ;;  %vm1739_vm3 = vsmask.f32 6400  ;;  %v6766_v39 = vld [vmem:[%s8539_s1 + $0x4] sm:$0x3]  ;;  %vm2186_vm4 = vcmask 1045504  }
  0x11   : > { %v6800_v1 = vld [vmem:[%s8539_s1 + $0xc] sm:$0x3]  ;;  %vm986_vm5 = vcmask 1046528   ;;  %vm2939_vm6 = vsmask.f32 5376  ;;  %vm3386_vm7 = vcmask 1044480  }
  0x12   : > { %s6715_s6 = scalar_lea.vmem %s8538_s0, %s6708_s28  ;;  %s7608_s27 = scalar_lea.vmem %s8543_s5, %s6708_s28  ;;  %vm4498_vm8 = vcmask 27648   ;;  %vm5048_vm9 = vcmask 27649   ;;  %vm5049_vm10 = vsmask.f32 7942  ;;  %vm4649_vm11 = vsmask.f32 1280 }
  0x13   : > { %v246_v7 = vld [vmem:[%s6715_s6] sm:$0xf]  ;;  %v6722_v8 = vld [vmem:[%s6715_s6 + $0x4] sm:$0xf]  ;;  %v6728_v10 = vld [vmem:[%s6715_s6 + $0x8] sm:$0xff]   ;;  %s7766_s7 = scalar_lea.vmem %s8542_s4, %s6708_s28  ;;  %vm4539_vm15 = vcmask 26624  }
  0x14   : > { %v6725_v9 = vcombine.low %v246_v7, %v6722_v8  ;;  %v1294_v11 = vld [vmem:[%s6715_s6 + $0x8] sm:$0xe]  ;;  %v6733_v13 = vld [vmem:[%s6715_s6 + $0xc] sm:$0xf]  ;;  %v388_v16 = vshll.u32 %v6728_v10, 16  ;;  %v392_v17 = vshrl.u32 %v6728_v10, 16  ;;  %vm8035_vm13 = vmand %vm5048_vm9, %vm5049_vm10 }
  0x15   : > { %v6740_v18 = vld [vmem:[%s6715_s6 + $0x10] sm:$0xff]   ;;  %v6746_v20 = vcombine.low %v1294_v11, %v6733_v13  ;;  %v6754_v28 = vld [vmem:[%s6715_s6 + $0x18] sm:$0xff]   ;;  %v6760_v34 = vld [vmem:[%s6715_s6 + $0x20] sm:$0xff]   ;;  %vm4650_vm12 = vsmask.f32 5392 }
  0x16   : > { %v381_v14 = vshrl.u32 %v6725_v9, 16  ;;  %v383_v15 = vshll.u32 %v6725_v9, 16  ;;  %v6743_v19 = vld [vmem:[%s6715_s6 + $0x10] sm:$0xff]   ;;  %v390_v22 = vrot.slane %v388_v16, 1  ;;  %v1749_v23 = vshrl.u32 %v6740_v18, 16  ;;  %v6757_v33 = vld [vmem:[%s6715_s6 + $0x18] sm:$0xff]   ;;  %vm8049_vm14 = vmor %vm4649_vm11, %vm4650_vm12 }
  0x17   : > { %v1752_v24 = vshll.u32 %v6740_v18, 16  ;;  %v1741_v25 = vshrl.u32 %v6746_v20, 16  ;;  %v1744_v26 = vshll.u32 %v6746_v20, 16  ;;  %v396_v27 = vshll.u32 %v6743_v19, 16  ;;  %v6775_v48 = vld [vmem:[%s6715_s6 + $0x20] sm:$0xff]   ;;  %v6778_v49 = vld [vmem:[%s6715_s6 + $0x28] sm:$0xff]  }
  0x18   : > { %v385_v21 = vrot.slane %v383_v15, 1  ;;  %v394_v30 = vor.u32 %v392_v17, %v390_v22  ;;  %v1751_v31 = vrot.slane %v1749_v23, 1  ;;  %v1758_v38 = vshrl.u32 %v6754_v28, 16  ;;  %v6784_v54 = vld [vmem:[%s6715_s6 + $0x28] sm:$0xff]   ;;  %v6790_v59 = vld [vmem:[%s6715_s6 + $0x30] sm:$0xff]   ;;  %v6814_v23 = vld [vmem:[%s6715_s6 + $0x38] sm:$0xff]  }
  0x19   : > { %v1754_v32 = vrot.slane %v1752_v24, 2  ;;  %v1743_v35 = vrot.slane %v1741_v25, 1  ;;  %v1746_v36 = vrot.slane %v1744_v26, 2  ;;  %v398_v37 = vrot.slane %v396_v27, 1  ;;  %v6795_v0 = vld [vmem:[%s6715_s6 + $0x30] sm:$0xff]  }
  0x1a   : > { %v386_v29 = vor.u32 %v385_v21, %v381_v14  ;;  %v1761_v42 = vshll.u32 %v6754_v28, 16  ;;  %v400_v43 = vshrl.u32 %v6743_v19, 16  ;;  %v1760_v46 = vrot.slane %v1758_v38, 1 }
  0x1b   : > { %v1755_v41 = vor.u32 %v1754_v32, %v1751_v31  ;;  %v1747_v44 = vor.u32 %v1746_v36, %v1743_v35  ;;  %v399_v45 = vsel %vm379_vm1, %v394_v30, %v398_v37  ;;  %v404_v47 = vshll.u32 %v6757_v33, 16  ;;  %v6823_v35 = vld [vmem:[%s6715_s6 + $0x38] sm:$0xff]  }
  0x1c   : > { %v391_v40 = vsel %vm379_vm1, %v386_v29, %v390_v22  ;;  %v1763_v50 = vrot.slane %v1761_v42, 2  ;;  %v402_v51 = vor.u32 %v400_v43, %v398_v37  ;;  %v1767_v52 = vshrl.u32 %v6760_v34, 16 }
  0x1d   : > { %5770 = vmatprep.mubr.msk.bf16.mxu1 %vm528_vm2, %v391_v40  ;;  %v1770_v53 = vshll.u32 %v6760_v34, 16  ;;  %v1756_v55 = vsel %vm1739_vm3, %v1747_v44, %v1755_v41  ;;  %v406_v56 = vrot.slane %v404_v47, 1  ;;  %v408_v57 = vshrl.u32 %v6757_v33, 16  ;;  %v6834_v44 = vld [vmem:[%s6715_s6 + $0x40] sm:$0xff]  }
  0x1e   : > { %5771 = vmatmul.mubr.msk.bf16.vlgmr.msra.gmra.mrb[0].mxu1 %vm528_vm2, %v399_v45  ;;  %v412_v58 = vshll.u32 %v6775_v48, 16  ;;  %5922 = vmatprep.mubr.msk.bf16.mxu0 %vm528_vm2, %v1756_v55  ;;  %v1764_v60 = vor.u32 %v1763_v50, %v1760_v46  ;;  %v1769_v61 = vrot.slane %v1767_v52, 1  ;;  %v1776_v63 = vshrl.u32 %v6778_v49, 16 }
  0x1f   : > { %5807 = vmatpush3.bf16.msra.mxu1 %v801_v12  ;;  %v1772_v62 = vrot.slane %v1770_v53, 2  ;;  %v407_v3 = vsel %vm379_vm1, %v402_v51, %v406_v56  ;;  %v410_v4 = vor.u32 %v408_v57, %v406_v56  ;;  %v1779_v7 = vshll.u32 %v6778_v49, 16  ;;  %v6839_v51 = vld [vmem:[%s6715_s6 + $0x40] sm:$0xff]  }
  0x20   : > { %6402 = vmatprep.subr.msk.bf16.mxu1 %vm583_vm0, %v6766_v39  ;;  %v414_v5 = vrot.slane %v412_v58, 1  ;;  %v1765_v11 = vsel %vm1739_vm3, %v1755_v41, %v1764_v60  ;;  %5774 = vmatprep.mubr.msk.bf16.mxu1 %vm528_vm2, %v407_v3  ;;  %v1778_v14 = vrot.slane %v1776_v63, 1  ;;  %v416_v15 = vshrl.u32 %v6775_v48, 16  ;;  %v6850_v63 = vld [vmem:[%s6715_s6 + $0x48] sm:$0xff]  }
  0x21   : > { %v1773_v12 = vor.u32 %v1772_v62, %v1769_v61  ;;  %5923 = vmatmul.mubr.msk.bf16.vlgmr.msra.gmra.mrb[0].mxu0 %vm528_vm2, %v1765_v11  ;;  %v1781_v17 = vrot.slane %v1779_v7, 2  ;;  %v420_v21 = vshll.u32 %v6784_v54, 16  ;;  %v1785_v22 = vshrl.u32 %v6790_v59, 16  ;;  %v6847_v62 = vld [vmem:[%s6715_s6 + $0x48] sm:$0xff]  }
  0x22   : > { %v415_v16 = vsel %vm379_vm1, %v410_v4, %v414_v5  ;;  %5959 = vmatpush3.bf16.msra.mxu0 %v6718_v6  ;;  %v418_v25 = vor.u32 %v416_v15, %v414_v5  ;;  %v1788_v26 = vshll.u32 %v6790_v59, 16  ;;  %v424_v27 = vshrl.u32 %v6784_v54, 16 }
  0x23   : > { %v1774_v24 = vsel %vm1739_vm3, %v1764_v60, %v1773_v12  ;;  %v1782_v29 = vor.u32 %v1781_v17, %v1778_v14  ;;  %v422_v30 = vrot.slane %v420_v21, 1  ;;  %v1787_v31 = vrot.slane %v1785_v22, 1  ;;  %6407 = vmatprep.subr.msk.bf16.mxu0 %vm583_vm0, %v6800_v1  ;;  %v6859_v14 = vld [vmem:[%s6715_s6 + $0x50] sm:$0xff]  }
  0x24   : > { %5926 = vmatprep.mubr.msk.bf16.mxu0 %vm528_vm2, %v1774_v24  ;;  %v428_v32 = vshll.u32 %v6795_v0, 16  ;;  %v1790_v6 = vrot.slane %v1788_v26, 2  ;;  %v1794_v36 = vshrl.u32 %v6814_v23, 16  ;;  %v1797_v37 = vshll.u32 %v6814_v23, 16 }
  0x25   : > { %v432_v38 = vshrl.u32 %v6795_v0, 16  ;;  %v1783_v40 = vsel %vm1739_vm3, %v1773_v12, %v1782_v29  ;;  %v423_v41 = vsel %vm379_vm1, %v418_v25, %v422_v30  ;;  %v426_v42 = vor.u32 %v424_v27, %v422_v30  ;;  %v6867_v25 = vld [vmem:[%s6715_s6 + $0x50] sm:$0xff]  }
  0x26   : > { %5775 = vmatmul.mubr.msk.bf16.gmra.mrb[4].mxu1 %vm528_vm2, %v415_v16  ;;  %v430_v43 = vrot.slane %v428_v32, 1  ;;  %v1791_v45 = vor.u32 %v1790_v6, %v1787_v31  ;;  %v1796_v46 = vrot.slane %v1794_v36, 1  ;;  %v1799_v47 = vrot.slane %v1797_v37, 2 }
  0x27   : > { %5778 = vmatprep.mubr.msk.bf16.mxu1 %vm528_vm2, %v423_v41  ;;  %v436_v50 = vshll.u32 %v6823_v35, 16  ;;  %v1803_v55 = vshrl.u32 %v6834_v44, 16  ;;  %v1806_v56 = vshll.u32 %v6834_v44, 16  ;;  %v440_v61 = vshrl.u32 %v6823_v35, 16  ;;  %v6877_v41 = vld [vmem:[%s6715_s6 + $0x58] sm:$0xff]  }
  0x28   : > { %v431_v52 = vsel %vm379_vm1, %v426_v42, %v430_v43  ;;  %v434_v53 = vor.u32 %v432_v38, %v430_v43  ;;  %v1792_v57 = vsel %vm1739_vm3, %v1782_v29, %v1791_v45  ;;  %v1800_v58 = vor.u32 %v1799_v47, %v1796_v46  ;;  %v6872_v29 = vld [vmem:[%s6715_s6 + $0x58] sm:$0xff]  }
  0x29   : > { %v438_v60 = vrot.slane %v436_v50, 1  ;;  %5927 = vmatmul.mubr.msk.bf16.gmra.mrb[4].mxu0 %vm528_vm2, %v1783_v40  ;;  %v1805_v3 = vrot.slane %v1803_v55, 1  ;;  %v1808_v4 = vrot.slane %v1806_v56, 2  ;;  %v444_v5 = vshll.u32 %v6839_v51, 16 }
  0x2a   : > { %v448_v7 = vshrl.u32 %v6839_v51, 16  ;;  %5930 = vmatprep.mubr.msk.bf16.mxu0 %vm528_vm2, %v1792_v57  ;;  %v1812_v12 = vshrl.u32 %v6847_v62, 16  ;;  %v1815_v16 = vshll.u32 %v6847_v62, 16  ;;  %v452_v17 = vshll.u32 %v6850_v63, 16  ;;  %v2180_v57 = vld [vmem:[%s6715_s6 + $0x8] sm:$0xc] }
  0x2b   : > { %v439_v11 = vsel %vm379_vm1, %v434_v53, %v438_v60  ;;  %v1809_v15 = vor.u32 %v1808_v4, %v1805_v3  ;;  %v446_v21 = vrot.slane %v444_v5, 1  ;;  %v1821_v22 = vshrl.u32 %v6859_v14, 16 }
  0x2c   : > { %v1824_v24 = vshll.u32 %v6859_v14, 16  ;;  %v1801_v26 = vsel %vm1739_vm3, %v1791_v45, %v1800_v58  ;;  %v442_v27 = vor.u32 %v440_v61, %v438_v60  ;;  %v1814_v30 = vrot.slane %v1812_v12, 1 }
  0x2d   : > { %v1817_v31 = vrot.slane %v1815_v16, 2  ;;  %v450_v32 = vor.u32 %v448_v7, %v446_v21  ;;  %v454_v6 = vrot.slane %v452_v17, 1  ;;  %v1810_v36 = vsel %vm1739_vm3, %v1800_v58, %v1809_v15  ;;  %v6891_v58 = vld [vmem:[%s6715_s6 + $0x60] sm:$0xff]  }
  0x2e   : > { %5779 = vmatmul.mubr.msk.bf16.gmra.mrb[8].mxu1 %vm528_vm2, %v431_v52  ;;  %v1823_v37 = vrot.slane %v1821_v22, 1  ;;  %v1826_v38 = vrot.slane %v1824_v24, 2  ;;  %v460_v40 = vshll.u32 %v6867_v25, 16  ;;  %v447_v42 = vsel %vm379_vm1, %v442_v27, %v446_v21 }
  0x2f   : > { %5782 = vmatprep.mubr.msk.bf16.mxu1 %vm528_vm2, %v439_v11  ;;  %v456_v43 = vshrl.u32 %v6850_v63, 16  ;;  %v1830_v45 = vshrl.u32 %v6872_v29, 16  ;;  %v1833_v46 = vshll.u32 %v6872_v29, 16  ;;  %v1818_v47 = vor.u32 %v1817_v31, %v1814_v30  ;;  %v6896_v11 = vld [vmem:[%s6715_s6 + $0x68] sm:$0xff]  }
  0x30   : > { %v455_v50 = vsel %vm379_vm1, %v450_v32, %v454_v6  ;;  %v464_v52 = vshrl.u32 %v6867_v25, 16  ;;  %v468_v53 = vshll.u32 %v6877_v41, 16  ;;  %v1827_v55 = vor.u32 %v1826_v38, %v1823_v37  ;;  %v6913_v32 = vld [vmem:[%s6715_s6 + $0x70] sm:$0xff]  }
  0x31   : > { %5931 = vmatmul.mubr.msk.bf16.gmra.mrb[8].mxu0 %vm528_vm2, %v1801_v26  ;;  %v462_v56 = vrot.slane %v460_v40, 1  ;;  %v458_v60 = vor.u32 %v456_v43, %v454_v6  ;;  %v1832_v61 = vrot.slane %v1830_v45, 1  ;;  %v1835_v3 = vrot.slane %v1833_v46, 2  ;;  %v6919_v40 = vld [vmem:[%s6715_s6 + $0x78] sm:$0xff]  }
  0x32   : > { %5934 = vmatprep.mubr.msk.bf16.mxu0 %vm528_vm2, %v1810_v36  ;;  %v1819_v4 = vsel %vm1739_vm3, %v1809_v15, %v1818_v47  ;;  %v470_v7 = vrot.slane %v468_v53, 1  ;;  %v1828_v12 = vsel %vm1739_vm3, %v1818_v47, %v1827_v55  ;;  %v5304_v16 = vcombine.low %v2180_v57, %v6733_v13 }
  0x33   : > { %v466_v5 = vor.u32 %v464_v52, %v462_v56  ;;  %v476_v17 = vshll.u32 %v6891_v58, 16  ;;  %v463_v21 = vsel %vm379_vm1, %v458_v60, %v462_v56  ;;  %v472_v22 = vshrl.u32 %v6877_v41, 16  ;;  %v6934_v56 = vld [vmem:[%s6715_s6 + $0x80] sm:$0xff]  }
  0x34   : > { %v6905_v15 = vor.u32 %v1835_v3, %v1832_v61  ;;  %v480_v26 = vshrl.u32 %v6891_v58, 16  ;;  %v484_v27 = vshll.u32 %v6896_v11, 16  ;;  %v2187_v13 = vrot.slane %v5304_v16, 2 }
  0x35   : > { %v471_v24 = vsel %vm379_vm1, %v466_v5, %v470_v7  ;;  %v2188_v30 = vrot.slane %v6740_v18, 2  ;;  %v478_v31 = vrot.slane %v476_v17, 1  ;;  %v474_v6 = vor.u32 %v472_v22, %v470_v7 }
  0x36   : > { %5783 = vmatmul.mubr.msk.bf16.gmra.mrb[12].mxu1 %vm528_vm2, %v447_v42  ;;  %v1837_v36 = vsel %vm1739_vm3, %v1827_v55, %v6905_v15  ;;  %v486_v38 = vrot.slane %v484_v27, 1  ;;  %v492_v18 = vshll.u32 %v6913_v32, 16  ;;  %v2190_v45 = vrot.slane %v6754_v28, 2  ;;  %v6964_v27 = vld [vmem:[%s6715_s6 + $0x90] ss:$0 sps:$4 sm:$0x11]  }
  0x37   : > { %5786 = vmatprep.mubr.msk.bf16.mxu1 %vm528_vm2, %v455_v50  ;;  %v482_v37 = vor.u32 %v480_v26, %v478_v31  ;;  %v2189_v42 = vsel %vm2186_vm4, %v2187_v13, %v2188_v30  ;;  %v479_v43 = vsel %vm379_vm1, %v474_v6, %v478_v31  ;;  %v488_v46 = vshrl.u32 %v6896_v11, 16 }
  0x38   : > { %v496_v50 = vshrl.u32 %v6913_v32, 16  ;;  %v500_v52 = vshll.u32 %v6919_v40, 16  ;;  %v2192_v53 = vrot.slane %v6760_v34, 2  ;;  %v494_v55 = vrot.slane %v492_v18, 1  ;;  %v6947_v34 = vld [vmem:[%s8539_s1 + $0xe] sm:$0x3] }
  0x39   : > { %5935 = vmatmul.mubr.msk.bf16.gmra.mrb[12].mxu0 %vm528_vm2, %v1819_v4  ;;  %v487_v47 = vsel %vm379_vm1, %v482_v37, %v486_v38  ;;  %v2718_v28 = vsel %vm583_vm0, %v6800_v1, 0  ;;  %v490_v57 = vor.u32 %v488_v46, %v486_v38  ;;  %v2191_v60 = vsel %vm2186_vm4, %v2188_v30, %v2190_v45  ;;  %v6941_v4 = vld [vmem:[%s6715_s6 + $0x88] sm:$0xff]  }
  0x3a   : > { %5938 = vmatprep.mubr.msk.bf16.mxu0 %vm528_vm2, %v1828_v12  ;;  %v498_v61 = vor.u32 %v496_v50, %v494_v55  ;;  %v502_v3 = vrot.slane %v500_v52, 1  ;;  %v2193_v5 = vsel %vm2186_vm4, %v2190_v45, %v2192_v53  ;;  %v508_v7 = vshll.u32 %v6934_v56, 16 }
  0x3b   : > { %v495_v1 = vsel %vm379_vm1, %v490_v57, %v494_v55  ;;  %v2194_v12 = vrot.slane %v6778_v49, 2  ;;  %v504_v16 = vshrl.u32 %v6919_v40, 16  ;;  %v516_v22 = vshll.u32 %v6941_v4, 16  ;;  %v6991_v55 = vld [vmem:[%s6715_s6 + $0x60] sm:$0xff]   ;;  %v7010_v57 = vld [vmem:[%s6715_s6 + $0x68] sm:$0xff]  }
  0x3c   : > { %v503_v17 = vsel %vm379_vm1, %v498_v61, %v502_v3  ;;  %v510_v26 = vrot.slane %v508_v7, 1  ;;  %v524_v37 = vshll.u32 %v6964_v27, 16  ;;  %v2198_v38 = vrot.slane %v6814_v23, 2  ;;  %v7028_v7 = vld [vmem:[%s6715_s6 + $0x78] sm:$0xff]  }
  0x3d   : > { %v506_v49 = vor.u32 %v504_v16, %v502_v3  ;;  %v2195_v13 = vsel %vm2186_vm4, %v2192_v53, %v2194_v12  ;;  %v518_v31 = vrot.slane %v516_v22, 1  ;;  %v2200_v18 = vrot.slane %v6834_v44, 2  ;;  %v7044_v22 = vld [vmem:[%s6715_s6 + $0x88] sm:$0xff]  }
  0x3e   : > { %5787 = vmatmul.mubr.msk.bf16.gmra.mrb[16].mxu1 %vm528_vm2, %v463_v21  ;;  %v512_v21 = vshrl.u32 %v6934_v56, 16  ;;  %v526_v45 = vrot.slane %v524_v37, 1  ;;  %v2202_v23 = vrot.slane %v6847_v62, 2  ;;  %v2204_v44 = vrot.slane %v6859_v14, 2 }
  0x3f   : > { %5790 = vmatprep.mubr.msk.bf16.mxu1 %vm528_vm2, %v471_v24  ;;  %v2196_v24 = vrot.slane %v6790_v59, 2  ;;  %v511_v59 = vsel %vm379_vm1, %v506_v49, %v510_v26  ;;  %v2206_v62 = vrot.slane %v6872_v29, 2  ;;  %v1079_v14 = vsel %vm583_vm0, %v6766_v39, 0 }
  0x40   : > { %v514_v30 = vor.u32 %v512_v21, %v510_v26  ;;  %v2203_v52 = vsel %vm2186_vm4, %v2200_v18, %v2202_v23  ;;  %v2205_v53 = vsel %vm2186_vm4, %v2202_v23, %v2204_v44  ;;  %v2210_v61 = vrot.slane %v7010_v57, 2  ;;  %v7048_v26 = vld [vmem:[%s6715_s6 + $0x90] sm:$0xff]  }
  0x41   : > { %5939 = vmatmul.mubr.msk.bf16.gmra.mrb[16].mxu0 %vm528_vm2, %v1837_v36  ;;  %v2197_v6 = vsel %vm2186_vm4, %v2194_v12, %v2196_v24  ;;  %v520_v36 = vshrl.u32 %v6941_v4, 16  ;;  %v2199_v46 = vsel %vm2186_vm4, %v2196_v24, %v2198_v38  ;;  %v2207_v29 = vsel %vm2186_vm4, %v2204_v44, %v2206_v62  ;;  %v7032_v12 = vld [vmem:[%s6715_s6 + $0x80] sm:$0xff]  }
  0x42   : > { %5960 = vmatprep.mubr.msk.bf16.mxu0 %vm528_vm2, %v2189_v42  ;;  %v519_v42 = vsel %vm379_vm1, %v514_v30, %v518_v31  ;;  %v2214_v16 = vrot.slane %v7028_v7, 2  ;;  %v2218_v49 = vrot.slane %v7044_v22, 2  ;;  %v2494_v30 = vld [vmem:[%s6715_s6 + $0x10] sm:$0xc] }
  0x46   : > { %5791 = vmatmul.mubr.msk.bf16.gmra.mrb[20].mxu1 %vm528_vm2, %v479_v43  ;;  %v522_v43 = vor.u32 %v520_v36, %v518_v31  ;;  %v7058_v31 = vld [vmem:[%s6715_s6 + $0x14] sm:$0xf] }
  0x47   : > { %5794 = vmatprep.mubr.msk.bf16.mxu1 %vm528_vm2, %v487_v47  ;;  %v2201_v47 = vsel %vm2186_vm4, %v2198_v38, %v2200_v18  ;;  %v7068_v37 = vcombine.low %v2494_v30, %v7058_v31  ;;  %v7071_v38 = vld [vmem:[%s6715_s6 + $0x18] sm:$0xff]  }
  0x48   : > { %v527_v50 = vsel %vm379_vm1, %v522_v43, %v526_v45  ;;  %v2627_v43 = vrot.slane %v7071_v38, 2 }
  0x49   : > { %5961 = vmatmul.mubr.msk.bf16.vlgmr.msra.gmra.mrb[0].mxu0 %vm528_vm2, %v2191_v60  ;;  %v7016_v60 = vld [vmem:[%s6715_s6 + $0x70] sm:$0xff]   ;;  %v2626_v18 = vrot.slane %v7068_v37, 2 }
  0x4a   : > { %5997 = vmatpush3.bf16.msra.mxu0 %v2718_v28  ;;  %5964 = vmatprep.mubr.msk.bf16.mxu0 %vm528_vm2, %v2193_v5  ;;  %v2208_v28 = vrot.slane %v6991_v55, 2  ;;  %v2212_v3 = vrot.slane %v7016_v60, 2 }
  0x4b   : > { %6408 = vmatprep.subr.msk.bf16.mxu0 %vm583_vm0, %v6947_v34 }
  0x4c   : > { %v2209_v39 = vsel %vm2186_vm4, %v2206_v62, %v2208_v28  ;;  %v2211_v5 = vsel %vm2186_vm4, %v2208_v28, %v2210_v61  ;;  %v2215_v21 = vsel %vm2186_vm4, %v2212_v3, %v2214_v16  ;;  %v3165_v62 = vsel %vm583_vm0, %v6947_v34, 0  ;;  %v7106_v28 = vld [vmem:[%s6715_s6 + $0x38] sm:$0xff]  }
  0x4e   : > { %5795 = vmatmul.mubr.msk.bf16.gmra.mrb[24].mxu1 %vm528_vm2, %v495_v1  ;;  %v2213_v1 = vsel %vm2186_vm4, %v2210_v61, %v2212_v3  ;;  %v2635_v61 = vrot.slane %v7106_v28, 2  ;;  %v7125_v3 = vld [vmem:[%s6715_s6 + $0x40] sm:$0xff]  }
  0x4f   : > { %5798 = vmatprep.mubr.msk.bf16.mxu1 %vm528_vm2, %v503_v17  ;;  %v2216_v17 = vrot.slane %v7032_v12, 2 }
  0x51   : > { %5965 = vmatmul.mubr.msk.bf16.gmra.mrb[4].mxu0 %vm528_vm2, %v2195_v13  ;;  %v2217_v24 = vsel %vm2186_vm4, %v2214_v16, %v2216_v17  ;;  %v2220_v13 = vrot.slane %v7048_v26, 2  ;;  %v980_v16 = vld [vmem:[%s6715_s6] sm:$0xe] }
  0x52   : > { %5968 = vmatprep.mubr.msk.bf16.mxu0 %vm528_vm2, %v2197_v6  ;;  %v2219_v6 = vsel %vm2186_vm4, %v2216_v17, %v2218_v49  ;;  %v2637_v17 = vrot.slane %v7125_v3, 2 }
  0x53   : > { %v2221_v36 = vsel %vm2186_vm4, %v2218_v49, %v2220_v13 }
  0x54   : > { %v2638_v49 = vsel %vm2186_vm4, %v2635_v61, %v2637_v17 }
  0x56   : > { %5799 = vmatmul.mubr.msk.bf16.gmra.mrb[28].mxu1 %vm528_vm2, %v511_v59  ;;  %v7064_v59 = vld [vmem:[%s6715_s6 + $0x98] ss:$0 sps:$4 sm:$0x33]  }
  0x57   : > { %5802 = vmatprep.mubr.msk.bf16.mxu1 %vm528_vm2, %v519_v42  ;;  %v2222_v42 = vrot.slane %v7064_v59, 2 }
  0x59   : > { %5969 = vmatmul.mubr.msk.bf16.gmra.mrb[8].mxu0 %vm528_vm2, %v2199_v46  ;;  %v2223_v45 = vsel %vm2186_vm4, %v2220_v13, %v2222_v42  ;;  %v7084_v46 = vld [vmem:[%s6715_s6 + $0x20] sm:$0xff]   ;;  %v7143_v13 = vld [vmem:[%s6715_s6 + $0x50] sm:$0xff]  }
  0x5a   : > { %5972 = vmatprep.mubr.msk.bf16.mxu0 %vm528_vm2, %v2201_v47  ;;  %v2628_v47 = vsel %vm2186_vm4, %v2626_v18, %v2627_v43  ;;  %v2629_v23 = vrot.slane %v7084_v46, 2  ;;  %v2641_v42 = vrot.slane %v7143_v13, 2 }
  0x5e   : > { %5803 = vmatmul.mubr.msk.bf16.gmra.mrb[32].mxu1 %vm528_vm2, %v527_v50  ;;  %v7088_v50 = vld [vmem:[%s6715_s6 + $0x28] sm:$0xff]  }
  0x5f   : > { %5808 = vmatprep.mubr.msk.bf16.mxu1 %vm528_vm2, %v6725_v9  ;;  %v7002_v9 = vld [vmem:[%s8539_s1 + $0x6] sm:$0x3]  ;;  %v2631_v44 = vrot.slane %v7088_v50, 2 }
  0x61   : > { %5973 = vmatmul.mubr.msk.bf16.gmra.mrb[12].mxu0 %vm528_vm2, %v2203_v52  ;;  %v2630_v52 = vsel %vm2186_vm4, %v2627_v43, %v2629_v23 }
  0x62   : > { %5976 = vmatprep.mubr.msk.bf16.mxu0 %vm528_vm2, %v2205_v53  ;;  %v7100_v53 = vld [vmem:[%s6715_s6 + $0x30] sm:$0xff]  }
  0x66   : > { %5809 = vmatmul.mubr.msk.bf16.vlgmr.msra.gmra.mrb[0].mxu1 %vm528_vm2, %v6728_v10 }
  0x67   : > { %5812 = vmatprep.mubr.msk.bf16.mxu1 %vm528_vm2, %v6743_v19  ;;  %5845 = vmatpush3.bf16.msra.mxu1 %v1079_v14  ;;  %v2632_v14 = vsel %vm2186_vm4, %v2629_v23, %v2631_v44  ;;  %v992_v23 = vrot.slane %v6757_v33, 1 }
  0x68   : > { %6403 = vmatprep.subr.msk.bf16.mxu1 %vm583_vm0, %v7002_v9 }
  0x69   : > { %5977 = vmatmul.mubr.msk.bf16.gmra.mrb[16].mxu0 %vm528_vm2, %v2207_v29  ;;  %v7111_v29 = vld [vmem:[%s8539_s1 + $0x10] sm:$0x3] }
  0x6a   : > { %5980 = vmatprep.mubr.msk.bf16.mxu0 %vm528_vm2, %v2209_v39  ;;  %v2633_v39 = vrot.slane %v7100_v53, 2 }
  0x6c   : > { %v2634_v34 = vsel %vm2186_vm4, %v2631_v44, %v2633_v39 }
  0x6e   : > { %5813 = vmatmul.mubr.msk.bf16.gmra.mrb[4].mxu1 %vm528_vm2, %v6757_v33 }
  0x6f   : > { %5816 = vmatprep.mubr.msk.bf16.mxu1 %vm528_vm2, %v6775_v48 }
  0x71   : > { %5981 = vmatmul.mubr.msk.bf16.gmra.mrb[20].mxu0 %vm528_vm2, %v2211_v5  ;;  %v2636_v5 = vsel %vm2186_vm4, %v2633_v39, %v2635_v61  ;;  %v1518_v39 = vsel %vm583_vm0, %v7002_v9, 0  ;;  %v994_v61 = vrot.slane %v6775_v48, 1  ;;  %v6628_v9 = vld [vmem:[%s8539_s1 + $0x8] sm:$0x3] }
  0x72   : > { %5984 = vmatprep.mubr.msk.bf16.mxu0 %vm528_vm2, %v2213_v1  ;;  %v7129_v1 = vld [vmem:[%s6715_s6 + $0x48] sm:$0xff]  }
  0x73   : > { %v995_v48 = vsel %vm986_vm5, %v992_v23, %v994_v61 }
  0x76   : > { %5817 = vmatmul.mubr.msk.bf16.gmra.mrb[8].mxu1 %vm528_vm2, %v6784_v54 }
  0x77   : > { %5820 = vmatprep.mubr.msk.bf16.mxu1 %vm528_vm2, %v6795_v0 }
  0x79   : > { %5985 = vmatmul.mubr.msk.bf16.gmra.mrb[24].mxu0 %vm528_vm2, %v2215_v21  ;;  %v5226_v21 = vcombine.low %v980_v16, %v6722_v8  ;;  %v7148_v8 = vld [vmem:[%s6715_s6 + $0x58] sm:$0xff]   ;;  %v996_v16 = vrot.slane %v6784_v54, 1 }
  0x7a   : > { %5988 = vmatprep.mubr.msk.bf16.mxu0 %vm528_vm2, %v2217_v24  ;;  %v2639_v24 = vrot.slane %v7129_v1, 2  ;;  %v2643_v43 = vrot.slane %v7148_v8, 2 }
  0x7b   : > { %v987_v30 = vrot.slane %v5226_v21, 1  ;;  %v7190_v21 = vld [vmem:[%s6715_s6 + $0x78] sm:$0xff]   ;;  %v997_v54 = vsel %vm986_vm5, %v994_v61, %v996_v16 }
  0x7c   : > { %v2644_v44 = vsel %vm2186_vm4, %v2641_v42, %v2643_v43 }
  0x7e   : > { %5821 = vmatmul.mubr.msk.bf16.gmra.mrb[12].mxu1 %vm528_vm2, %v6823_v35 }
  0x7f   : > { %5824 = vmatprep.mubr.msk.bf16.mxu1 %vm528_vm2, %v6839_v51 }
  0x81   : > { %5989 = vmatmul.mubr.msk.bf16.gmra.mrb[28].mxu0 %vm528_vm2, %v2219_v6  ;;  %v988_v6 = vrot.slane %v6728_v10, 1  ;;  %v990_v10 = vrot.slane %v6743_v19, 1 }
  0x82   : > { %5992 = vmatprep.mubr.msk.bf16.mxu0 %vm528_vm2, %v2221_v36  ;;  %v2640_v36 = vsel %vm2186_vm4, %v2637_v17, %v2639_v24 }
  0x83   : > { %v989_v18 = vsel %vm986_vm5, %v987_v30, %v988_v6  ;;  %v998_v30 = vrot.slane %v6795_v0, 1 }
  0x86   : > { %5825 = vmatmul.mubr.msk.bf16.gmra.mrb[16].mxu1 %vm528_vm2, %v6850_v63 }
  0x87   : > { %5828 = vmatprep.mubr.msk.bf16.mxu1 %vm528_vm2, %v6867_v25 }
  0x89   : > { %5993 = vmatmul.mubr.msk.bf16.gmra.mrb[32].mxu0 %vm528_vm2, %v2223_v45  ;;  %v2642_v45 = vsel %vm2186_vm4, %v2639_v24, %v2641_v42  ;;  %v1000_v42 = vrot.slane %v6823_v35, 1  ;;  %v1002_v35 = vrot.slane %v6839_v51, 1 }
  0x8a   : > { %5998 = vmatprep.mubr.msk.bf16.mxu0 %vm528_vm2, %v2628_v47  ;;  %v7161_v47 = vld [vmem:[%s6715_s6 + $0x60] sm:$0xff]  }
  0x8b   : > { %v2645_v19 = vrot.slane %v7161_v47, 2 }
  0x8e   : > { %5829 = vmatmul.mubr.msk.bf16.gmra.mrb[20].mxu1 %vm528_vm2, %v6877_v41 }
  0x8f   : > { %5832 = vmatprep.mubr.msk.bf16.mxu1 %vm528_vm2, %v6891_v58 }
  0x91   : > { %5999 = vmatmul.mubr.msk.bf16.vlgmr.msra.gmra.mrb[0].mxu0 %vm528_vm2, %v2630_v52  ;;  %v7166_v52 = vld [vmem:[%s6715_s6 + $0x68] sm:$0xff]  }
  0x92   : > { %6035 = vmatpush3.bf16.msra.mxu0 %v3165_v62  ;;  %6002 = vmatprep.mubr.msk.bf16.mxu0 %vm528_vm2, %v2632_v14  ;;  %v991_v62 = vsel %vm986_vm5, %v988_v6, %v990_v10  ;;  %v993_v14 = vsel %vm986_vm5, %v990_v10, %v992_v23  ;;  %v2647_v33 = vrot.slane %v7166_v52, 2  ;;  %v999_v10 = vsel %vm986_vm5, %v996_v16, %v998_v30 }
  0x93   : > { %6409 = vmatprep.subr.msk.bf16.mxu0 %vm583_vm0, %v7111_v29  ;;  %v2941_v16 = vshrl.u32 %v7068_v37, 16 }
  0x94   : > { %v2648_v17 = vsel %vm2186_vm4, %v2645_v19, %v2647_v33 }
  0x96   : > { %5833 = vmatmul.mubr.msk.bf16.gmra.mrb[24].mxu1 %vm528_vm2, %v6896_v11 }
  0x97   : > { %5836 = vmatprep.mubr.msk.bf16.mxu1 %vm528_vm2, %v6913_v32 }
  0x99   : > { %6003 = vmatmul.mubr.msk.bf16.gmra.mrb[4].mxu0 %vm528_vm2, %v2634_v34  ;;  %v2646_v34 = vsel %vm2186_vm4, %v2643_v43, %v2645_v19  ;;  %v7208_v43 = vld [vmem:[%s6715_s6 + $0x88] sm:$0xff]   ;;  %v1004_v19 = vrot.slane %v6850_v63, 1  ;;  %v2944_v63 = vshll.u32 %v7068_v37, 16 }
  0x9a   : > { %6006 = vmatprep.mubr.msk.bf16.mxu0 %vm528_vm2, %v2636_v5  ;;  %v7181_v5 = vld [vmem:[%s6715_s6 + $0x70] sm:$0xff]   ;;  %v2655_v23 = vrot.slane %v7208_v43, 2 }
  0x9b   : > { %v2649_v24 = vrot.slane %v7181_v5, 2  ;;  %v1005_v51 = vsel %vm986_vm5, %v1002_v35, %v1004_v19 }
  0x9d   : > { %v2650_v6 = vsel %vm2186_vm4, %v2647_v33, %v2649_v24  ;;  %v1003_v33 = vsel %vm986_vm5, %v1000_v42, %v1002_v35 }
  0x9e   : > { %5837 = vmatmul.mubr.msk.bf16.gmra.mrb[28].mxu1 %vm528_vm2, %v6919_v40 }
  0x9f   : > { %5840 = vmatprep.mubr.msk.bf16.mxu1 %vm528_vm2, %v6934_v56 }
  0xa1   : > { %6007 = vmatmul.mubr.msk.bf16.gmra.mrb[8].mxu0 %vm528_vm2, %v2638_v49  ;;  %v2651_v49 = vrot.slane %v7190_v21, 2 }
  0xa2   : > { %6010 = vmatprep.mubr.msk.bf16.mxu0 %vm528_vm2, %v2640_v36  ;;  %v7203_v36 = vld [vmem:[%s6715_s6 + $0x80] sm:$0xff]  }
  0xa3   : > { %v2653_v0 = vrot.slane %v7203_v36, 2 }
  0xa6   : > { %5841 = vmatmul.mubr.msk.bf16.gmra.mrb[32].mxu1 %vm528_vm2, %v6941_v4 }
  0xa7   : > { %5846 = vmatprep.mubr.msk.bf16.mxu1 %vm528_vm2, %v989_v18  ;;  %v2652_v18 = vsel %vm2186_vm4, %v2649_v24, %v2651_v49  ;;  %v6480_v24 = vld [vmem:[%s6715_s6 + $0xa0] ss:$0 sps:$4 sm:$0x33]  }
  0xa9   : > { %6011 = vmatmul.mubr.msk.bf16.gmra.mrb[12].mxu0 %vm528_vm2, %v2642_v45  ;;  %v1001_v45 = vsel %vm986_vm5, %v998_v30, %v1000_v42  ;;  %v1008_v30 = vrot.slane %v6877_v41, 1  ;;  %v2946_v42 = vrot.slane %v2944_v63, 3  ;;  %v2967_v41 = vshrl.u32 %v7088_v50, 16 }
  0xaa   : > { %6014 = vmatprep.mubr.msk.bf16.mxu0 %vm528_vm2, %v2644_v44  ;;  %v2654_v44 = vsel %vm2186_vm4, %v2651_v49, %v2653_v0  ;;  %v1012_v63 = vrot.slane %v6896_v11, 1 }
  0xae   : > { %5847 = vmatmul.mubr.msk.bf16.vlgmr.msra.gmra.mrb[0].mxu1 %vm528_vm2, %v991_v62  ;;  %v7221_v62 = vld [vmem:[%s6715_s6 + $0x90] sm:$0xff]  }
  0xaf   : > { %5850 = vmatprep.mubr.msk.bf16.mxu1 %vm528_vm2, %v993_v14  ;;  %5883 = vmatpush3.bf16.msra.mxu1 %v1518_v39  ;;  %v7225_v14 = vld [vmem:[%s6715_s6 + $0x98] sm:$0xff]   ;;  %v2656_v39 = vsel %vm2186_vm4, %v2653_v0, %v2655_v23  ;;  %v2657_v61 = vrot.slane %v7221_v62, 2  ;;  %v2661_v0 = vrot.slane %v6480_v24, 2 }
  0xb0   : > { %6405 = vmatprep.subr.msk.bf16.mxu1 %vm583_vm0, %v6628_v9  ;;  %v2949_v9 = vshrl.u32 %v7071_v38, 16 }
  0xb1   : > { %6015 = vmatmul.mubr.msk.bf16.gmra.mrb[16].mxu0 %vm528_vm2, %v2646_v34  ;;  %v2659_v34 = vrot.slane %v7225_v14, 2 }
  0xb2   : > { %6018 = vmatprep.mubr.msk.bf16.mxu0 %vm528_vm2, %v2648_v17  ;;  %v2952_v17 = vshll.u32 %v7071_v38, 16  ;;  %v2951_v37 = vrot.slane %v2949_v9, 2 }
  0xb3   : > { %v2660_v49 = vsel %vm2186_vm4, %v2657_v61, %v2659_v34 }
  0xb6   : > { %5851 = vmatmul.mubr.msk.bf16.gmra.mrb[4].mxu1 %vm528_vm2, %v995_v48  ;;  %v1006_v48 = vrot.slane %v6867_v25, 1 }
  0xb7   : > { %5854 = vmatprep.mubr.msk.bf16.mxu1 %vm528_vm2, %v997_v54  ;;  %v2658_v54 = vsel %vm2186_vm4, %v2655_v23, %v2657_v61  ;;  %v2961_v23 = vshll.u32 %v7084_v46, 16  ;;  %v2662_v61 = vsel %vm2186_vm4, %v2659_v34, %v2661_v0  ;;  %v1014_v0 = vrot.slane %v6913_v32, 1 }
  0xb8   : > { %v1009_v25 = vsel %vm986_vm5, %v1006_v48, %v1008_v30  ;;  %v2994_v32 = vshrl.u32 %v7125_v3, 16 }
  0xb9   : > { %6019 = vmatmul.mubr.msk.bf16.gmra.mrb[20].mxu0 %vm528_vm2, %v2650_v6  ;;  %v2943_v6 = vrot.slane %v2941_v16, 2  ;;  %v2963_v16 = vrot.slane %v2961_v23, 3 }
  0xba   : > { %6022 = vmatprep.mubr.msk.bf16.mxu0 %vm528_vm2, %v2652_v18  ;;  %v2954_v18 = vrot.slane %v2952_v17, 3  ;;  %v2969_v17 = vrot.slane %v2967_v41, 2  ;;  %v3479_v41 = vsel %vm583_vm0, %v7111_v29, 0  ;;  %v4250_v29 = vld [vmem:[%s8541_s3 + $0x20] sm:$0xff]  ;;  %vm5089_vm0 = vcmask 25600  }
  0xbb   : > { %v2947_v35 = vor.u32 %v2946_v42, %v2943_v6  ;;  %v2979_v6 = vshll.u32 %v7100_v53, 16  ;;  %vm5090_vm1 = vmand %vm5089_vm0, %vm4649_vm11 }
  0xbd   : > { %v2981_v23 = vrot.slane %v2979_v6, 3  ;;  %v1020_v6 = vrot.slane %v6941_v4, 1 }
  0xbe   : > { %5855 = vmatmul.mubr.msk.bf16.gmra.mrb[8].mxu1 %vm528_vm2, %v999_v10  ;;  %v1007_v10 = vsel %vm986_vm5, %v1004_v19, %v1006_v48  ;;  %v1010_v19 = vrot.slane %v6891_v58, 1  ;;  %v4246_v58 = vld [vmem:[%s8541_s3] sm:$0xff] }
  0xbf   : > { %5858 = vmatprep.mubr.msk.bf16.mxu1 %vm528_vm2, %v1001_v45  ;;  %v2958_v45 = vshrl.u32 %v7084_v46, 16 }
  0xc0   : > { %v1011_v24 = vsel %vm986_vm5, %v1008_v30, %v1010_v19  ;;  %v1013_v11 = vsel %vm986_vm5, %v1010_v19, %v1012_v63  ;;  %v2985_v30 = vshrl.u32 %v7106_v28, 16 }
  0xc1   : > { %6023 = vmatmul.mubr.msk.bf16.gmra.mrb[24].mxu0 %vm528_vm2, %v2654_v44  ;;  %v2955_v44 = vor.u32 %v2954_v18, %v2951_v37  ;;  %v2988_v37 = vshll.u32 %v7106_v28, 16  ;;  %v4249_v18 = vld [vmem:[%s8541_s3 + $0x18] sm:$0xff] }
  0xc2   : > { %6026 = vmatprep.mubr.msk.bf16.mxu0 %vm528_vm2, %v2656_v39  ;;  %v2970_v39 = vshll.u32 %v7088_v50, 16  ;;  %v2987_v19 = vrot.slane %v2985_v30, 2 }
  0xc3   : > { %v2956_v9 = vsel %vm2939_vm6, %v2947_v35, %v2955_v44  ;;  %v1016_v35 = vrot.slane %v6919_v40, 1  ;;  %v4251_v40 = vld [vmem:[%s8541_s3 + $0x28] sm:$0xff] }
  0xc4   : > { %v2972_v48 = vrot.slane %v2970_v39, 3 }
  0xc6   : > { %5859 = vmatmul.mubr.msk.bf16.gmra.mrb[12].mxu1 %vm528_vm2, %v1003_v33  ;;  %v8544_v33 = vmov 0   ;;  %v2973_v42 = vor.u32 %v2972_v48, %v2969_v17  ;;  %v3006_v48 = vshll.u32 %v7129_v1, 16 }
  0xc7   : > { %5862 = vmatprep.mubr.msk.bf16.mxu1 %vm528_vm2, %v1005_v51  ;;  %6421 = vset.pattern.permute.xlu1 %v8544_v33  ;;  %v2960_v51 = vrot.slane %v2958_v45, 2  ;;  %4501 = vst.msk [vmem:[%s7608_s27 + $0x8] sm:$0xf] %vm4498_vm8, %v8544_v33  ;;  %4499 = vst.msk [vmem:[%s7608_s27] sm:$0xf] %vm4498_vm8, %v8544_v33 }
  0xc8   : > { %6420 = vset.pattern.permute.xlu0 %v8544_v33  ;;  %4500 = vst.msk [vmem:[%s7608_s27 + $0x4] sm:$0xf] %vm4498_vm8, %v8544_v33  ;;  %4502 = vst.msk [vmem:[%s7608_s27 + $0xc] sm:$0xf] %vm4498_vm8, %v8544_v33 }
  0xc9   : > { %6027 = vmatmul.mubr.msk.bf16.gmra.mrb[28].mxu0 %vm528_vm2, %v2658_v54  ;;  %v4248_v54 = vld [vmem:[%s8541_s3 + $0x10] sm:$0xff]  ;;  %v2964_v34 = vor.u32 %v2963_v16, %v2960_v51  ;;  %4284 = vperm.xlu0 %6420, %v4246_v58   ;;  %v1015_v51 = vsel %vm986_vm5, %v1012_v63, %v1014_v0  ;;  %v3003_v63 = vshrl.u32 %v7129_v1, 16  ;;  %v1018_v58 = vrot.slane %v6934_v56, 1  ;;  %v4255_v56 = vld [vmem:[%s8541_s3 + $0x48] sm:$0xff]  ;;  %4503 = vst.msk [vmem:[%s7608_s27 + $0x10] sm:$0xf] %vm4498_vm8, %v8544_v33 }
  0xca   : > { %6030 = vmatprep.mubr.msk.bf16.mxu0 %vm528_vm2, %v2660_v49  ;;  %v2976_v49 = vshrl.u32 %v7100_v53, 16  ;;  %4294 = vperm.xlu1 %6421, %v4248_v54   ;;  %v4252_v54 = vld [vmem:[%s8541_s3 + $0x30] sm:$0xff]  ;;  %4504 = vst.msk [vmem:[%s7608_s27 + $0x14] sm:$0xf] %vm4498_vm8, %v8544_v33  ;;  %4505 = vst.msk [vmem:[%s7608_s27 + $0x18] sm:$0xf] %vm4498_vm8, %v8544_v33 }
  0xcb   : > { %v2974_v39 = vsel %vm2939_vm6, %v2964_v34, %v2973_v42  ;;  %v1021_v4 = vsel %vm986_vm5, %v1018_v58, %v1020_v6  ;;  %4506 = vst.msk [vmem:[%s7608_s27 + $0x1c] sm:$0xf] %vm4498_vm8, %v8544_v33  ;;  %4507 = vst.msk [vmem:[%s7608_s27 + $0x20] sm:$0xf] %vm4498_vm8, %v8544_v33 }
  0xcc   : > { %v2978_v45 = vrot.slane %v2976_v49, 2  ;;  %4508 = vst.msk [vmem:[%s7608_s27 + $0x24] sm:$0xf] %vm4498_vm8, %v8544_v33  ;;  %4509 = vst.msk [vmem:[%s7608_s27 + $0x28] sm:$0xf] %vm4498_vm8, %v8544_v33 }
  0xcd   : > { %4510 = vst.msk [vmem:[%s7608_s27 + $0x2c] sm:$0xf] %vm4498_vm8, %v8544_v33  ;;  %4511 = vst.msk [vmem:[%s7608_s27 + $0x30] sm:$0xf] %vm4498_vm8, %v8544_v33 }
  0xce   : > { %5863 = vmatmul.mubr.msk.bf16.gmra.mrb[16].mxu1 %vm528_vm2, %v1007_v10  ;;  %v4247_v10 = vld [vmem:[%s8541_s3 + $0x8] sm:$0xff]  ;;  %4299 = vperm.xlu1 %6421, %v4249_v18   ;;  %v2982_v16 = vor.u32 %v2981_v23, %v2978_v45  ;;  %v3008_v18 = vrot.slane %v3006_v48, 3  ;;  %v3015_v45 = vshll.u32 %v7143_v13, 16  ;;  %4512 = vst.msk [vmem:[%s7608_s27 + $0x34] sm:$0xf] %vm4498_vm8, %v8544_v33 }
  0xcf   : > { %5866 = vmatprep.mubr.msk.bf16.mxu1 %vm528_vm2, %v1009_v25  ;;  %v2965_v25 = vsel %vm2939_vm6, %v2955_v44, %v2964_v34  ;;  %4289 = vperm.xlu0 %6420, %v4247_v10   ;;  %v2997_v44 = vshll.u32 %v7125_v3, 16  ;;  %v2996_v34 = vrot.slane %v2994_v32, 2  ;;  %v1019_v10 = vsel %vm986_vm5, %v1016_v35, %v1018_v58  ;;  %4513 = vst.msk [vmem:[%s7608_s27 + $0x38] sm:$0xf] %vm4498_vm8, %v8544_v33 }
  0xd0   : > { %v2983_v49 = vsel %vm2939_vm6, %v2973_v42, %v2982_v16  ;;  %v4254_v42 = vld [vmem:[%s8541_s3 + $0x40] sm:$0xff]  ;;  %v3030_v58 = vshrl.u32 %v7161_v47, 16  ;;  %4514 = vst.msk [vmem:[%s7608_s27 + $0x3c] sm:$0xf] %vm4498_vm8, %v8544_v33  ;;  %4515 = vst.msk [vmem:[%s7608_s27 + $0x40] sm:$0xf] %vm4498_vm8, %v8544_v33 }
  0xd1   : > { %6031 = vmatmul.mubr.msk.bf16.gmra.mrb[32].mxu0 %vm528_vm2, %v2662_v61  ;;  %v2990_v61 = vrot.slane %v2988_v37, 3  ;;  %v3005_v37 = vrot.slane %v3003_v63, 2  ;;  %4516 = vst.msk [vmem:[%s7608_s27 + $0x44] sm:$0xf] %vm4498_vm8, %v8544_v33  ;;  %4517 = vst.msk [vmem:[%s7608_s27 + $0x48] sm:$0xf] %vm4498_vm8, %v8544_v33 }
  0xd2   : > { %6036 = vmatprep.mubr.msk.bf16.mxu0 %vm528_vm2, %v2956_v9  ;;  %v1017_v9 = vsel %vm986_vm5, %v1014_v0, %v1016_v35  ;;  %4309 = vperm.xlu1 %6421, %v4251_v40   ;;  %v3021_v35 = vshrl.u32 %v7148_v8, 16  ;;  %v1426_v40 = vrot.slane %v6746_v20, 1  ;;  %4518 = vst.msk [vmem:[%s7608_s27 + $0x4c] sm:$0xf] %vm4498_vm8, %v8544_v33  ;;  %4519 = vst.msk [vmem:[%s7608_s27 + $0x50] sm:$0xf] %vm4498_vm8, %v8544_v33 }
  0xd3   : > { %v2991_v17 = vor.u32 %v2990_v61, %v2987_v19  ;;  %4304 = vperm.xlu0 %6420, %v4250_v29   ;;  %v3009_v23 = vor.u32 %v3008_v18, %v3005_v37  ;;  %v4256_v19 = vld [vmem:[%s8541_s3 + $0x50] sm:$0xff]  ;;  %v6630_v18 = vld [vmem:[%s6715_s6 + $0x18] sm:$0xff]   ;;  %4520 = vst.msk [vmem:[%s7608_s27 + $0x54] sm:$0xf] %vm4498_vm8, %v8544_v33  ;;  %4521 = vst.msk [vmem:[%s7608_s27 + $0x58] sm:$0xf] %vm4498_vm8, %v8544_v33 }
  0xd4   : > { %v6629_v29 = vld [vmem:[%s6715_s6 + $0x10] sm:$0xff]   ;;  %v3023_v63 = vrot.slane %v3021_v35, 2  ;;  %4522 = vst.msk [vmem:[%s7608_s27 + $0x5c] sm:$0xf] %vm4498_vm8, %v8544_v33  ;;  %4523 = vst.msk [vmem:[%s7608_s27 + $0x60] sm:$0xf] %vm4498_vm8, %v8544_v33 }
  0xd5   : > { %v2992_v30 = vsel %vm2939_vm6, %v2982_v16, %v2991_v17  ;;  %v1427_v16 = vrot.slane %v6629_v29, 1  ;;  %v4260_v37 = vld [vmem:[%s8541_s3 + $0x70] sm:$0xff]  ;;  %v3057_v29 = vshrl.u32 %v7190_v21, 16  ;;  %4524 = vst.msk [vmem:[%s7608_s27 + $0x64] sm:$0xf] %vm4498_vm8, %v8544_v33 }
  0xd6   : > { %5867 = vmatmul.mubr.msk.bf16.gmra.mrb[20].mxu1 %vm528_vm2, %v1011_v24  ;;  %v4253_v24 = vld [vmem:[%s8541_s3 + $0x38] sm:$0xff]  ;;  %4525 = vst.msk [vmem:[%s7608_s27 + $0x68] sm:$0xf] %vm4498_vm8, %v8544_v33  ;;  %4526 = vst.msk [vmem:[%s7608_s27 + $0x6c] sm:$0xf] %vm4498_vm8, %v8544_v33 }
  0xd7   : > { %5870 = vmatprep.mubr.msk.bf16.mxu1 %vm528_vm2, %v1013_v11  ;;  %v2999_v11 = vrot.slane %v2997_v44, 3  ;;  %4319 = vperm.xlu1 %6421, %v4253_v24   ;;  %v3017_v44 = vrot.slane %v3015_v45, 3  ;;  %4527 = vst.msk [vmem:[%s7608_s27 + $0x70] sm:$0xf] %vm4498_vm8, %v8544_v33  ;;  %4528 = vst.msk [vmem:[%s7608_s27 + $0x74] sm:$0xf] %vm4498_vm8, %v8544_v33 }
  0xd8   : > { %4314 = vperm.xlu0 %6420, %v4252_v54   ;;  %v1428_v54 = vsel %vm986_vm5, %v1426_v40, %v1427_v16  ;;  %4529 = vst.msk [vmem:[%s7608_s27 + $0x78] sm:$0xf] %vm4498_vm8, %v8544_v33  ;;  %4530 = vst.msk [vmem:[%s7608_s27 + $0x7c] sm:$0xf] %vm4498_vm8, %v8544_v33 }
  0xd9   : > { %6037 = vmatmul.mubr.msk.bf16.vlgmr.msra.gmra.mrb[0].mxu0 %vm528_vm2, %v2965_v25  ;;  %v3000_v0 = vor.u32 %v2999_v11, %v2996_v34  ;;  %v3012_v25 = vshrl.u32 %v7143_v13, 16  ;;  %v3033_v34 = vshll.u32 %v7161_v47, 16  ;;  %4531 = vst.msk [vmem:[%s7608_s27 + $0x80] sm:$0xf] %vm4498_vm8, %v8544_v33  ;;  %4532 = vst.msk [vmem:[%s7608_s27 + $0x84] sm:$0xf] %vm4498_vm8, %v8544_v33 }
  0xda   : > { %6073 = vmatpush3.bf16.msra.mxu0 %v3479_v41  ;;  %6040 = vmatprep.mubr.msk.bf16.mxu0 %vm528_vm2, %v2974_v39  ;;  %v3024_v41 = vshll.u32 %v7148_v8, 16  ;;  %v4257_v39 = vld [vmem:[%s8541_s3 + $0x58] sm:$0xff]  ;;  %4533 = vst.msk [vmem:[%s7608_s27 + $0x88] sm:$0xf] %vm4498_vm8, %v8544_v33  ;;  %4534 = vst.msk [vmem:[%s7608_s27 + $0x8c] sm:$0xf] %vm4498_vm8, %v8544_v33 }
  0xdb   : > { %4329 = vperm.xlu1 %6421, %v4255_v56   ;;  %v3001_v61 = vsel %vm2939_vm6, %v2991_v17, %v3000_v0  ;;  %v3014_v32 = vrot.slane %v3012_v25, 2  ;;  %v4259_v17 = vld [vmem:[%s8541_s3 + $0x68] sm:$0xff]  ;;  %v3032_v56 = vrot.slane %v3030_v58, 2  ;;  %4535 = vst.msk [vmem:[%s7608_s27 + $0x90] sm:$0xf] %vm4498_vm8, %v8544_v33 }
  0xdc   : > { %4324 = vperm.xlu0 %6420, %v4254_v42   ;;  %v3026_v48 = vrot.slane %v3024_v41, 3  ;;  %v3035_v42 = vrot.slane %v3033_v34, 3  ;;  %4536 = vst.msk [vmem:[%s7608_s27 + $0x94] sm:$0xf] %vm4498_vm8, %v8544_v33  ;;  %4537 = vst.msk [vmem:[%s7608_s27 + $0x98] sm:$0xf] %vm4498_vm8, %v8544_v33 }
  0xdd   : > { %v3018_v24 = vor.u32 %v3017_v44, %v3014_v32  ;;  %v3048_v32 = vshrl.u32 %v7181_v5, 16  ;;  %v3051_v44 = vshll.u32 %v7181_v5, 16  ;;  %4538 = vst.msk [vmem:[%s7608_s27 + $0x9c] sm:$0xf] %vm4498_vm8, %v8544_v33 }
  0xde   : > { %5871 = vmatmul.mubr.msk.bf16.gmra.mrb[24].mxu1 %vm528_vm2, %v1015_v51  ;;  %v1022_v51 = vrot.slane %v6964_v27, 1  ;;  %v4258_v27 = vld [vmem:[%s8541_s3 + $0x60] sm:$0xff]  ;;  %v3027_v11 = vor.u32 %v3026_v48, %v3023_v63  ;;  %v4264_v63 = vld [vmem:[%s8541_s3 + $0x90] sm:$0xff]  ;;  %v6632_v48 = vld [vmem:[%s6715_s6 + $0x28] sm:$0xff]  }
  0xdf   : > { %5874 = vmatprep.mubr.msk.bf16.mxu1 %vm528_vm2, %v1017_v9  ;;  %v3010_v9 = vsel %vm2939_vm6, %v3000_v0, %v3009_v23  ;;  %4339 = vperm.xlu1 %6421, %v4257_v39   ;;  %v3019_v0 = vsel %vm2939_vm6, %v3009_v23, %v3018_v24  ;;  %v4263_v39 = vld [vmem:[%s8541_s3 + $0x88] sm:$0xff] }
  0xe0   : > { %4334 = vperm.xlu0 %6420, %v4256_v19   ;;  %v1023_v20 = vsel %vm986_vm5, %v1020_v6, %v1022_v51  ;;  %v4261_v6 = vld [vmem:[%s8541_s3 + $0x78] sm:$0xff]  ;;  %v3028_v45 = vsel %vm2939_vm6, %v3018_v24, %v3027_v11  ;;  %v4262_v19 = vld [vmem:[%s8541_s3 + $0x80] sm:$0xff]  ;;  %v3053_v24 = vrot.slane %v3051_v44, 3 }
  0xe1   : > { %6041 = vmatmul.mubr.msk.bf16.gmra.mrb[4].mxu0 %vm528_vm2, %v2983_v49  ;;  %v3039_v49 = vshrl.u32 %v7166_v52, 16 }
  0xe2   : > { %6044 = vmatprep.mubr.msk.bf16.mxu0 %vm528_vm2, %v2992_v30  ;;  %v3042_v30 = vshll.u32 %v7166_v52, 16 }
  0xe3   : > { %4349 = vperm.xlu1 %6421, %v4259_v17   ;;  %v3041_v35 = vrot.slane %v3039_v49, 2  ;;  %v1433_v17 = vrot.slane %v6632_v48, 1  ;;  %v3059_v49 = vrot.slane %v3057_v29, 2 }
  0xe4   : > { %4344 = vperm.xlu0 %6420, %v4258_v27   ;;  %v3044_v41 = vrot.slane %v3042_v30, 3 }
  0xe6   : > { %5875 = vmatmul.mubr.msk.bf16.gmra.mrb[28].mxu1 %vm528_vm2, %v1019_v10  ;;  %v1429_v10 = vrot.slane %v6630_v18, 1  ;;  %v3045_v40 = vor.u32 %v3044_v41, %v3041_v35  ;;  %v6634_v35 = vld [vmem:[%s6715_s6 + $0x38] sm:$0xff]  }
  0xe7   : > { %5878 = vmatprep.mubr.msk.bf16.mxu1 %vm528_vm2, %v1021_v4  ;;  %v6631_v4 = vld [vmem:[%s6715_s6 + $0x20] sm:$0xff]   ;;  %4359 = vperm.xlu1 %6421, %v4261_v6   ;;  %v4267_v6 = vld [vmem:[%s8541_s3 + $0xa8] sm:$0xff]  ;;  %v1437_v41 = vrot.slane %v6634_v35, 1 }
  0xe8   : > { %v1431_v25 = vrot.slane %v6631_v4, 1  ;;  %4354 = vperm.xlu0 %6420, %v4260_v37   ;;  %v1430_v23 = vsel %vm986_vm5, %v1427_v16, %v1429_v10  ;;  %v4265_v16 = vld [vmem:[%s8541_s3 + $0x98] sm:$0xff]  ;;  %v3078_v4 = vshll.u32 %v7208_v43, 16 }
  0xe9   : > { %6045 = vmatmul.mubr.msk.bf16.gmra.mrb[8].mxu0 %vm528_vm2, %v3001_v61  ;;  %v3036_v61 = vor.u32 %v3035_v42, %v3032_v56  ;;  %v3075_v42 = vshrl.u32 %v7208_v43, 16 }
  0xea   : > { %6048 = vmatprep.mubr.msk.bf16.mxu0 %vm528_vm2, %v3010_v9  ;;  %v1432_v51 = vsel %vm986_vm5, %v1429_v10, %v1431_v25  ;;  %v3060_v9 = vshll.u32 %v7190_v21, 16  ;;  %v3066_v10 = vshrl.u32 %v7203_v36, 16  ;;  %v3080_v29 = vrot.slane %v3078_v4, 3 }
  0xeb   : > { %4369 = vperm.xlu1 %6421, %v4263_v39   ;;  %v3037_v27 = vsel %vm2939_vm6, %v3027_v11, %v3036_v61  ;;  %v3046_v34 = vsel %vm2939_vm6, %v3036_v61, %v3045_v40  ;;  %v1434_v11 = vsel %vm986_vm5, %v1431_v25, %v1433_v17  ;;  %v4269_v25 = vld [vmem:[%s8541_s3 + $0xb8] sm:$0xff]  ;;  %v6635_v61 = vld [vmem:[%s6715_s6 + $0x40] sm:$0xff]   ;;  %v3077_v44 = vrot.slane %v3075_v42, 2 }
  0xec   : > { %4364 = vperm.xlu0 %6420, %v4262_v19   ;;  %v3062_v30 = vrot.slane %v3060_v9, 3  ;;  %v3068_v19 = vrot.slane %v3066_v10, 2  ;;  %v4271_v9 = vld [vmem:[%s8541_s3 + $0xc8] sm:$0xff]  ;;  %v7447_v10 = vld [vmem:[%s6715_s6 + $0xa0] ss:$0 sps:$4 sm:$0x77]  }
  0xee   : > { %5879 = vmatmul.mubr.msk.bf16.gmra.mrb[32].mxu1 %vm528_vm2, %v1023_v20  ;;  %v3050_v20 = vrot.slane %v3048_v32, 2  ;;  %v3063_v56 = vor.u32 %v3062_v30, %v3059_v49  ;;  %v6636_v49 = vld [vmem:[%s6715_s6 + $0x48] sm:$0xff]  }
  0xef   : > { %5884 = vmatprep.mubr.msk.bf16.mxu1 %vm528_vm2, %v1428_v54  ;;  %v6633_v54 = vld [vmem:[%s6715_s6 + $0x30] sm:$0xff]   ;;  %4379 = vperm.xlu1 %6421, %v4265_v16   ;;  %v4270_v16 = vld [vmem:[%s8541_s3 + $0xc0] sm:$0xff]  ;;  %v1441_v30 = vrot.slane %v6636_v49, 1  ;;  %v4281_v49 = vld [vmem:[%s8541_s3 + $0x118] sm:$0xff] }
  0xf0   : > { %v1435_v58 = vrot.slane %v6633_v54, 1  ;;  %4374 = vperm.xlu0 %6420, %v4264_v63   ;;  %v3054_v37 = vor.u32 %v3053_v24, %v3050_v20  ;;  %v3081_v20 = vor.u32 %v3080_v29, %v3077_v44  ;;  %v3093_v24 = vshrl.u32 %v7225_v14, 16  ;;  %v6638_v44 = vld [vmem:[%s6715_s6 + $0x58] sm:$0xff]  }
  0xf1   : > { %6049 = vmatmul.mubr.msk.bf16.gmra.mrb[12].mxu0 %vm528_vm2, %v3019_v0  ;;  %v3069_v0 = vshll.u32 %v7203_v36, 16  ;;  %v3096_v54 = vshll.u32 %v7225_v14, 16  ;;  %v1445_v29 = vrot.slane %v6638_v44, 1  ;;  %v3398_v44 = vrot.slane %v7125_v3, 3 }
  0xf2   : > { %6052 = vmatprep.mubr.msk.bf16.mxu0 %vm528_vm2, %v3028_v45  ;;  %v1436_v18 = vsel %vm986_vm5, %v1433_v17, %v1435_v58  ;;  %v4268_v45 = vld [vmem:[%s8541_s3 + $0xb0] sm:$0xff]  ;;  %v3055_v39 = vsel %vm2939_vm6, %v3045_v40, %v3054_v37  ;;  %v3064_v32 = vsel %vm2939_vm6, %v3054_v37, %v3063_v56  ;;  %v1438_v40 = vsel %vm986_vm5, %v1435_v58, %v1437_v41  ;;  %v4273_v58 = vld [vmem:[%s8541_s3 + $0xd8] sm:$0xff] }
  0xf3   : > { %4389 = vperm.xlu1 %6421, %v4267_v6   ;;  %v3084_v17 = vshrl.u32 %v7221_v62, 16  ;;  %v6637_v37 = vld [vmem:[%s6715_s6 + $0x50] sm:$0xff]   ;;  %v3095_v42 = vrot.slane %v3093_v24, 2  ;;  %v3098_v4 = vrot.slane %v3096_v54, 3  ;;  %v4278_v24 = vld [vmem:[%s8541_s3 + $0x100] sm:$0xff]  ;;  %v1857_v3 = vshrl.u32 %v7016_v60, 16 }
  0xf6   : > { %5885 = vmatmul.mubr.msk.bf16.vlgmr.msra.gmra.mrb[0].mxu1 %vm528_vm2, %v1430_v23  ;;  %v3071_v23 = vrot.slane %v3069_v0, 3 }
  0xf7   : > { %5888 = vmatprep.mubr.msk.bf16.mxu1 %vm528_vm2, %v1432_v51  ;;  %6111 = vmatpush3.bf16.msra.mxu1 %v6697_v2  ;;  %v4266_v2 = vld [vmem:[%s8541_s3 + $0xa0] sm:$0xff]  ;;  %v1439_v51 = vrot.slane %v6635_v61, 1  ;;  %v3380_v61 = vld [vmem:[%s6715_s6 + $0x10] sm:$0x8] }
  0xf8   : > { %4384 = vperm.xlu0 %6420, %v4266_v2   ;;  %4399 = vperm.xlu1 %6421, %v4269_v25   ;;  %v3072_v63 = vor.u32 %v3071_v23, %v3068_v19  ;;  %v3086_v2 = vrot.slane %v3084_v17, 2  ;;  %v4275_v25 = vld [vmem:[%s8541_s3 + $0xe8] sm:$0xff]  ;;  %v3105_v19 = vshll.u32 %v7447_v10, 16  ;;  %v3099_v23 = vor.u32 %v3098_v4, %v3095_v42 }
  0xf9   : > { %6053 = vmatmul.mubr.msk.bf16.gmra.mrb[16].mxu0 %vm528_vm2, %v3037_v27  ;;  %v1440_v48 = vsel %vm986_vm5, %v1437_v41, %v1439_v51  ;;  %v3087_v27 = vshll.u32 %v7221_v62, 16  ;;  %v5382_v17 = vcombine.low %v3380_v61, %v7058_v31  ;;  %v3392_v42 = vrot.slane %v7088_v50, 3 }
  0xfa   : > { %6056 = vmatprep.mubr.msk.bf16.mxu0 %vm528_vm2, %v3046_v34  ;;  %v4272_v34 = vld [vmem:[%s8541_s3 + $0xd0] sm:$0xff]  ;;  %v3073_v6 = vsel %vm2939_vm6, %v3063_v56, %v3072_v63  ;;  %v3082_v0 = vsel %vm2939_vm6, %v3072_v63, %v3081_v20  ;;  %v4274_v56 = vld [vmem:[%s8541_s3 + $0xe0] sm:$0xff]  ;;  %v1447_v63 = vrot.slane %v6991_v55, 1  ;;  %v1453_v4 = vrot.slane %v7028_v7, 1 }
  0xfb   : > { %v3387_v31 = vrot.slane %v5382_v17, 3  ;;  %v3394_v50 = vrot.slane %v7100_v53, 3  ;;  %v1839_v61 = vshrl.u32 %v6991_v55, 16 }
  0xfc   : > { %4394 = vperm.xlu0 %6420, %v4268_v45   ;;  %4409 = vperm.xlu1 %6421, %v4271_v9   ;;  %v1442_v45 = vsel %vm986_vm5, %v1439_v51, %v1441_v30  ;;  %v4276_v51 = vld [vmem:[%s8541_s3 + $0xf0] sm:$0xff] }
  0xfe   : > { %5889 = vmatmul.mubr.msk.bf16.gmra.mrb[4].mxu1 %vm528_vm2, %v1434_v11  ;;  %v3089_v11 = vrot.slane %v3087_v27, 3  ;;  %v4279_v27 = vld [vmem:[%s8541_s3 + $0x108] sm:$0xff] }
  0xff   : > { %5892 = vmatprep.mubr.msk.bf16.mxu1 %vm528_vm2, %v1436_v18  ;;  %v1443_v18 = vrot.slane %v6637_v37, 1 }
 0x100   : > { %4404 = vperm.xlu0 %6420, %v4270_v16   ;;  %4419 = vperm.xlu1 %6421, %v4273_v58   ;;  %v3090_v35 = vor.u32 %v3089_v11, %v3086_v2  ;;  %v1448_v58 = vsel %vm986_vm5, %v1445_v29, %v1447_v63 }
 0x101   : > { %6057 = vmatmul.mubr.msk.bf16.gmra.mrb[20].mxu0 %vm528_vm2, %v3055_v39  ;;  %v1444_v41 = vsel %vm986_vm5, %v1441_v30, %v1443_v18  ;;  %v3102_v39 = vshrl.u32 %v7447_v10, 16  ;;  %v4280_v30 = vld [vmem:[%s8541_s3 + $0x110] sm:$0xff] }
 0x102   : > { %6060 = vmatprep.mubr.msk.bf16.mxu0 %vm528_vm2, %v3064_v32  ;;  %v4277_v32 = vld [vmem:[%s8541_s3 + $0xf8] sm:$0xff]  ;;  %v3091_v9 = vsel %vm2939_vm6, %v3081_v20, %v3090_v35  ;;  %v1446_v20 = vsel %vm986_vm5, %v1443_v18, %v1445_v29  ;;  %v3390_v18 = vrot.slane %v7084_v46, 3 }
 0x103   : > { %v3104_v16 = vrot.slane %v3102_v39, 2  ;;  %v1457_v39 = vrot.slane %v7044_v22, 1 }
 0x104   : > { %4414 = vperm.xlu0 %6420, %v4272_v34   ;;  %4429 = vperm.xlu1 %6421, %v4275_v25   ;;  %v3388_v34 = vrot.slane %v7071_v38, 3  ;;  %v1451_v38 = vrot.slane %v7016_v60, 1 }
 0x106   : > { %5893 = vmatmul.mubr.msk.bf16.gmra.mrb[8].mxu1 %vm528_vm2, %v1438_v40  ;;  %v3107_v40 = vrot.slane %v3105_v19, 3  ;;  %v3389_v11 = vsel %vm3386_vm7, %v3387_v31, %v3388_v34  ;;  %v3391_v25 = vsel %vm3386_vm7, %v3388_v34, %v3390_v18  ;;  %v1454_v46 = vsel %vm986_vm5, %v1451_v38, %v1453_v4 }
 0x107   : > { %5896 = vmatprep.mubr.msk.bf16.mxu1 %vm528_vm2, %v1440_v48  ;;  %v3100_v48 = vsel %vm2939_vm6, %v3090_v35, %v3099_v23  ;;  %v3395_v19 = vsel %vm3386_vm7, %v3392_v42, %v3394_v50  ;;  %v3402_v31 = vrot.slane %v7143_v13, 3  ;;  %v1859_v34 = vrot.slane %v1857_v3, 1 }
 0x108   : > { %4424 = vperm.xlu0 %6420, %v4274_v56   ;;  %4439 = vperm.xlu1 %6421, %v4277_v32   ;;  %v3108_v54 = vor.u32 %v3107_v40, %v3104_v16  ;;  %v1455_v56 = vrot.slane %v7032_v12, 1  ;;  %v1842_v32 = vshll.u32 %v6991_v55, 16  ;;  %v3400_v40 = vrot.slane %v7129_v1, 3 }
 0x109   : > { %6061 = vmatmul.mubr.msk.bf16.gmra.mrb[24].mxu0 %vm528_vm2, %v3073_v6  ;;  %v1449_v6 = vrot.slane %v7010_v57, 1  ;;  %v1875_v13 = vshrl.u32 %v7032_v12, 16 }
 0x10a   : > { %6064 = vmatprep.mubr.msk.bf16.mxu0 %vm528_vm2, %v3082_v0  ;;  %v3109_v2 = vsel %vm2939_vm6, %v3099_v23, %v3108_v54  ;;  %v1456_v35 = vsel %vm986_vm5, %v1453_v4, %v1455_v56  ;;  %v1459_v23 = vrot.slane %v7048_v26, 1  ;;  %v1844_v16 = vrot.slane %v1842_v32, 2 }
 0x10b   : > { %v1450_v37 = vsel %vm986_vm5, %v1447_v63, %v1449_v6  ;;  %v1452_v0 = vsel %vm986_vm5, %v1449_v6, %v1451_v38  ;;  %v1848_v63 = vshrl.u32 %v7010_v57, 16  ;;  %v1866_v6 = vshrl.u32 %v7028_v7, 16 }
 0x10c   : > { %4434 = vperm.xlu0 %6420, %v4276_v51   ;;  %4449 = vperm.xlu1 %6421, %v4279_v27   ;;  %v6483_v51 = vld [vmem:[%s6715_s6 + $0x98] ss:$0 sps:$4 sm:$0x11]   ;;  %v1460_v29 = vsel %vm986_vm5, %v1457_v39, %v1459_v23  ;;  %v3403_v38 = vsel %vm3386_vm7, %v3400_v40, %v3402_v31  ;;  %v1877_v4 = vrot.slane %v1875_v13, 1 }
 0x10d   : > { %v1461_v55 = vrot.slane %v6483_v51, 1  ;;  %v1850_v54 = vrot.slane %v1848_v63, 1  ;;  %v1902_v51 = vshrl.u32 %v7064_v59, 16 }
 0x10e   : > { %5897 = vmatmul.mubr.msk.bf16.gmra.mrb[12].mxu1 %vm528_vm2, %v1442_v45  ;;  %v3393_v45 = vsel %vm3386_vm7, %v3390_v18, %v3392_v42  ;;  %v1868_v18 = vrot.slane %v1866_v6, 1  ;;  %v3406_v42 = vrot.slane %v7161_v47, 3  ;;  %v1893_v47 = vshrl.u32 %v7048_v26, 16 }
 0x10f   : > { %5900 = vmatprep.mubr.msk.bf16.mxu1 %vm528_vm2, %v1444_v41  ;;  %v3396_v41 = vrot.slane %v7106_v28, 3  ;;  %v1458_v28 = vsel %vm986_vm5, %v1455_v56, %v1457_v39  ;;  %v1462_v1 = vsel %vm986_vm5, %v1459_v23, %v1461_v55  ;;  %v3408_v56 = vrot.slane %v7166_v52, 3 }
 0x110   : > { %4444 = vperm.xlu0 %6420, %v4278_v24   ;;  %4459 = vperm.xlu1 %6421, %v4281_v49   ;;  %v1860_v24 = vshll.u32 %v7016_v60, 16  ;;  %v1895_v32 = vrot.slane %v1893_v47, 1  ;;  %v3414_v55 = vrot.slane %v7203_v36, 3  ;;  %v3418_v36 = vrot.slane %v7221_v62, 3  ;;  %v5583_v47 = vld [vmem:[%s7766_s7 + $0x28] sm:$0xff]  }
 0x111   : > { %6065 = vmatmul.mubr.msk.bf16.gmra.mrb[28].mxu0 %vm528_vm2, %v3091_v9  ;;  %v3397_v53 = vsel %vm3386_vm7, %v3394_v50, %v3396_v41  ;;  %v1841_v9 = vrot.slane %v1839_v61, 1  ;;  %v3399_v17 = vsel %vm3386_vm7, %v3396_v41, %v3398_v44  ;;  %v1896_v41 = vshll.u32 %v7048_v26, 16 }
 0x112   : > { %6068 = vmatprep.mubr.msk.bf16.mxu0 %vm528_vm2, %v3100_v48  ;;  %v1851_v48 = vshll.u32 %v7010_v57, 16  ;;  %v1862_v49 = vrot.slane %v1860_v24, 2  ;;  %v3409_v39 = vsel %vm3386_vm7, %v3406_v42, %v3408_v56  ;;  %v3410_v61 = vrot.slane %v7181_v5, 3 }
 0x113   : > { %v1845_v27 = vor.u32 %v1844_v16, %v1841_v9 }
 0x114   : > { %4454 = vperm.xlu0 %6420, %v4280_v30   ;;  %v3404_v30 = vrot.slane %v7148_v8, 3 }
 0x115   : > { %v1846_v57 = vsel %vm1739_vm3, %v6905_v15, %v1845_v27  ;;  %v1878_v15 = vshll.u32 %v7032_v12, 16 }
 0x116   : > { %5901 = vmatmul.mubr.msk.bf16.gmra.mrb[16].mxu1 %vm528_vm2, %v1446_v20  ;;  %v3401_v20 = vsel %vm3386_vm7, %v3398_v44, %v3400_v40  ;;  %v3407_v50 = vsel %vm3386_vm7, %v3404_v30, %v3406_v42  ;;  %v1905_v44 = vshll.u32 %v7064_v59, 16  ;;  %v1904_v40 = vrot.slane %v1902_v51, 1 }
 0x117   : > { %5904 = vmatprep.mubr.msk.bf16.mxu1 %vm528_vm2, %v1448_v58  ;;  %v1853_v58 = vrot.slane %v1851_v48, 2  ;;  %v3416_v48 = vrot.slane %v7208_v43, 3  ;;  %v3420_v43 = vrot.slane %v7225_v14, 3 }
 0x119   : > { %6069 = vmatmul.mubr.msk.bf16.gmra.mrb[32].mxu0 %vm528_vm2, %v3109_v2  ;;  %v1854_v60 = vor.u32 %v1853_v58, %v1850_v54  ;;  %v1869_v2 = vshll.u32 %v7028_v7, 16  ;;  %v3419_v24 = vsel %vm3386_vm7, %v3416_v48, %v3418_v36 }
 0x11a   : > { %6074 = vmatprep.mubr.msk.bf16.mxu0 %vm528_vm2, %v3389_v11  ;;  %v1863_v11 = vor.u32 %v1862_v49, %v1859_v34 }
 0x11b   : > { %v1855_v8 = vsel %vm1739_vm3, %v1845_v27, %v1854_v60  ;;  %v3417_v27 = vsel %vm3386_vm7, %v3414_v55, %v3416_v48 }
 0x11c   : > { %v1864_v7 = vsel %vm1739_vm3, %v1854_v60, %v1863_v11 }
 0x11e   : > { %5905 = vmatmul.mubr.msk.bf16.gmra.mrb[20].mxu1 %vm528_vm2, %v1450_v37  ;;  %v3405_v37 = vsel %vm3386_vm7, %v3402_v31, %v3404_v30 }
 0x11f   : > { %5908 = vmatprep.mubr.msk.bf16.mxu1 %vm528_vm2, %v1452_v0  ;;  %v1871_v0 = vrot.slane %v1869_v2, 2 }
 0x121   : > { %6075 = vmatmul.mubr.msk.bf16.vlgmr.msra.gmra.mrb[0].mxu0 %vm528_vm2, %v3391_v25  ;;  %v1880_v25 = vrot.slane %v1878_v15, 2  ;;  %v1872_v12 = vor.u32 %v1871_v0, %v1868_v18  ;;  %v3989_v18 = vld [vmem:[%s7766_s7 + $0x8] sm:$0xe]  ;;  %v3990_v0 = vld [vmem:[%s7766_s7 + $0xc] sm:$0xf] }
 0x122   : > { %6078 = vmatprep.mubr.msk.bf16.mxu0 %vm528_vm2, %v3393_v45  ;;  %v1884_v45 = vshrl.u32 %v7044_v22, 16 }
 0x123   : > { %v1873_v52 = vsel %vm1739_vm3, %v1863_v11, %v1872_v12 }
 0x126   : > { %5909 = vmatmul.mubr.msk.bf16.gmra.mrb[24].mxu1 %vm528_vm2, %v1454_v46  ;;  %v1887_v46 = vshll.u32 %v7044_v22, 16 }
 0x127   : > { %5912 = vmatprep.mubr.msk.bf16.mxu1 %vm528_vm2, %v1456_v35  ;;  %v1881_v35 = vor.u32 %v1880_v25, %v1877_v4 }
 0x128   : > { %v1889_v23 = vrot.slane %v1887_v46, 2  ;;  %v4026_v46 = vunpack.c.l.bf16 %v3989_v18 }
 0x129   : > { %6079 = vmatmul.mubr.msk.bf16.gmra.mrb[4].mxu0 %vm528_vm2, %v3395_v19  ;;  %v1886_v19 = vrot.slane %v1884_v45, 1  ;;  %v1882_v22 = vsel %vm1739_vm3, %v1872_v12, %v1881_v35 }
 0x12a   : > { %6082 = vmatprep.mubr.msk.bf16.mxu0 %vm528_vm2, %v3397_v53  ;;  %v1898_v53 = vrot.slane %v1896_v41, 2 }
 0x12b   : > { %v1890_v26 = vor.u32 %v1889_v23, %v1886_v19 }
 0x12c   : > { %v1899_v9 = vor.u32 %v1898_v53, %v1895_v32  ;;  %v4101_v32 = vrot.slane %v4026_v46, 3 }
 0x12d   : > { %v1891_v16 = vsel %vm1739_vm3, %v1881_v35, %v1890_v26 }
 0x12e   : > { %5913 = vmatmul.mubr.msk.bf16.gmra.mrb[28].mxu1 %vm528_vm2, %v1458_v28  ;;  %v3412_v28 = vrot.slane %v7190_v21, 3  ;;  %v1907_v21 = vrot.slane %v1905_v44, 2  ;;  %v1900_v63 = vsel %vm1739_vm3, %v1890_v26, %v1899_v9 }
 0x12f   : > { %5916 = vmatprep.mubr.msk.bf16.mxu1 %vm528_vm2, %v1460_v29  ;;  %v3411_v29 = vsel %vm3386_vm7, %v3408_v56, %v3410_v61  ;;  %v5582_v56 = vld [vmem:[%s7766_s7 + $0x20] sm:$0xff]  }
 0x130   : > { %v3413_v5 = vsel %vm3386_vm7, %v3410_v61, %v3412_v28  ;;  %v1908_v59 = vor.u32 %v1907_v21, %v1904_v40  ;;  %v5522_v41 = vunpack.c.l.bf16 %v5582_v56  ;;  %v5585_v61 = vld [vmem:[%s7766_s7 + $0x38] sm:$0xff]   ;;  %v5586_v21 = vld [vmem:[%s7766_s7 + $0x40] sm:$0xff]  }
 0x131   : > { %6083 = vmatmul.mubr.msk.bf16.gmra.mrb[8].mxu0 %vm528_vm2, %v3399_v17  ;;  %v3415_v17 = vsel %vm3386_vm7, %v3412_v28, %v3414_v55  ;;  %v5526_v28 = vunpack.c.l.bf16 %v5583_v47 }
 0x132   : > { %6086 = vmatprep.mubr.msk.bf16.mxu0 %vm528_vm2, %v3401_v20  ;;  %v1909_v3 = vsel %vm1739_vm3, %v1899_v9, %v1908_v59  ;;  %v3421_v20 = vsel %vm3386_vm7, %v3418_v36, %v3420_v43  ;;  %v4112_v9 = vrot.slane %v5522_v41, 3  ;;  %v5587_v36 = vld [vmem:[%s7766_s7 + $0x48] sm:$0xff]  }
 0x133   : > { %v4116_v48 = vrot.slane %v5526_v28, 3 }
 0x136   : > { %5917 = vmatmul.mubr.msk.bf16.gmra.mrb[32].mxu1 %vm528_vm2, %v1462_v1  ;;  %v3422_v1 = vrot.slane %v7447_v10, 3 }
 0x137   : > { %5942 = vmatprep.mubr.msk.bf16.mxu1 %vm528_vm2, %v1846_v57 }
 0x138   : > { %v3423_v54 = vsel %vm3386_vm7, %v3420_v43, %v3422_v1 }
 0x139   : > { %6087 = vmatmul.mubr.msk.bf16.gmra.mrb[12].mxu0 %vm528_vm2, %v3403_v38 }
 0x13a   : > { %6090 = vmatprep.mubr.msk.bf16.mxu0 %vm528_vm2, %v3405_v37  ;;  %v5580_v37 = vld [vmem:[%s7766_s7 + $0x10] sm:$0xff]  }
 0x13b   : > { %v5514_v25 = vunpack.c.l.bf16 %v5580_v37  ;;  %v5515_v45 = vunpack.c.h.bf16 %v5580_v37  ;;  %v5538_v37 = vunpack.c.l.bf16 %v5586_v21 }
 0x13d   : > { %v4104_v19 = vrot.slane %v5514_v25, 3  ;;  %v5539_v25 = vunpack.c.h.bf16 %v5586_v21 }
 0x13e   : > { %5943 = vmatmul.mubr.msk.bf16.vlgmr.msra.gmra.mrb[20].mxu1 %vm528_vm2, %v1855_v8 }
 0x13f   : > { %5946 = vmatprep.mubr.msk.bf16.mxu1 %vm528_vm2, %v1864_v7  ;;  %v5581_v7 = vld [vmem:[%s7766_s7 + $0x18] sm:$0xff]   ;;  %v4130_v28 = vrot.slane %v5539_v25, 3 }
 0x140   : > { %v5518_v35 = vunpack.c.l.bf16 %v5581_v7  ;;  %v5519_v23 = vunpack.c.h.bf16 %v5581_v7 }
 0x141   : > { %6091 = vmatmul.mubr.msk.bf16.gmra.mrb[16].mxu0 %vm528_vm2, %v3407_v50  ;;  %v4027_v50 = vunpack.c.l.bf16 %v3990_v0 }
 0x142   : > { %6094 = vmatprep.mubr.msk.bf16.mxu0 %vm528_vm2, %v3409_v39  ;;  %v5523_v39 = vunpack.c.h.bf16 %v5582_v56  ;;  %v4108_v26 = vrot.slane %v5518_v35, 3  ;;  %v4110_v40 = vrot.slane %v5519_v23, 3  ;;  %v5535_v56 = vunpack.c.h.bf16 %v5585_v61 }
 0x143   : > { %v4102_v53 = vrot.slane %v4027_v50, 3 }
 0x144   : > { %v7808_v7 = vsel %vm3386_vm7, %v4108_v26, %v4110_v40  ;;  %v7815_v35 = vsel %vm3386_vm7, %v4110_v40, %v4112_v9  ;;  %v5543_v40 = vunpack.c.h.bf16 %v5587_v36 }
 0x146   : > { %5947 = vmatmul.mubr.msk.bf16.gmra.mrb[24].mxu1 %vm528_vm2, %v1873_v52  ;;  %v5584_v52 = vld [vmem:[%s7766_s7 + $0x30] sm:$0xff]  }
 0x147   : > { %5950 = vmatprep.mubr.msk.bf16.mxu1 %vm528_vm2, %v1882_v22  ;;  %v4106_v22 = vrot.slane %v5515_v45, 3  ;;  %v5530_v51 = vunpack.c.l.bf16 %v5584_v52  ;;  %v5531_v44 = vunpack.c.h.bf16 %v5584_v52 }
 0x149   : > { %6095 = vmatmul.mubr.msk.bf16.gmra.mrb[20].mxu0 %vm528_vm2, %v3411_v29  ;;  %v5527_v29 = vunpack.c.h.bf16 %v5583_v47  ;;  %v7786_v55 = vsel %vm3386_vm7, %v4104_v19, %v4106_v22  ;;  %v7792_v59 = vsel %vm3386_vm7, %v4106_v22, %v4108_v26  ;;  %v5542_v47 = vunpack.c.l.bf16 %v5587_v36  ;;  %v5590_v36 = vld [vmem:[%s7766_s7 + $0x60] sm:$0xff]  }
 0x14a   : > { %6098 = vmatprep.mubr.msk.bf16.mxu0 %vm528_vm2, %v3413_v5  ;;  %v4114_v5 = vrot.slane %v5523_v39, 3  ;;  %v4126_v26 = vrot.slane %v5535_v56, 3 }
 0x14c   : > { %v7804_v1 = vsel %vm3386_vm7, %v4112_v9, %v4114_v5  ;;  %v7812_v50 = vsel %vm3386_vm7, %v4114_v5, %v4116_v48  ;;  %v4132_v9 = vrot.slane %v5542_v47, 3 }
 0x14e   : > { %5951 = vmatmul.mubr.msk.bf16.gmra.mrb[28].mxu1 %vm528_vm2, %v1891_v16  ;;  %v5534_v16 = vunpack.c.l.bf16 %v5585_v61 }
 0x14f   : > { %5954 = vmatprep.mubr.msk.bf16.mxu1 %vm528_vm2, %v1900_v63  ;;  %v7789_v63 = vsel %vm3386_vm7, %v4101_v32, %v4102_v53  ;;  %v4128_v32 = vrot.slane %v5538_v37, 3 }
 0x151   : > { %6099 = vmatmul.mubr.msk.bf16.gmra.mrb[24].mxu0 %vm528_vm2, %v3415_v17  ;;  %v4120_v17 = vrot.slane %v5530_v51, 3  ;;  %v5589_v51 = vld [vmem:[%s7766_s7 + $0x58] sm:$0xff]  }
 0x152   : > { %6102 = vmatprep.mubr.msk.bf16.mxu0 %vm528_vm2, %v3417_v27  ;;  %v4122_v27 = vrot.slane %v5531_v44, 3 }
 0x154   : > { %v7822_v52 = vsel %vm3386_vm7, %v4120_v17, %v4122_v27 }
 0x156   : > { %5955 = vmatmul.mubr.msk.bf16.gmra.mrb[32].mxu1 %vm528_vm2, %v1909_v3  ;;  %v4118_v3 = vrot.slane %v5527_v29, 3 }
 0x159   : > { %6103 = vmatmul.mubr.msk.bf16.gmra.mrb[28].mxu0 %vm528_vm2, %v3419_v24  ;;  %v7798_v24 = vld [vmem:[%s8540_s2] ss:$0 sm:$0xff] }
 0x15a   : > { %6106 = vmatprep.mubr.msk.bf16.mxu0 %vm528_vm2, %v3421_v20  ;;  %v7801_v20 = vsel %vm3386_vm7, %v4102_v53, %v4104_v19  ;;  %v5588_v19 = vld [vmem:[%s7766_s7 + $0x50] sm:$0xff]  }
 0x161   : > { %6107 = vmatmul.mubr.msk.bf16.gmra.mrb[32].mxu0 %vm528_vm2, %v3423_v54  ;;  %v4124_v54 = vrot.slane %v5534_v16, 3  ;;  %v5547_v16 = vunpack.c.h.bf16 %v5588_v19 }
 0x163   : > { %v7833_v22 = vsel %vm3386_vm7, %v4122_v27, %v4124_v54  ;;  %v7847_v27 = vsel %vm3386_vm7, %v4118_v3, %v4120_v17  ;;  %v7854_v25 = vsel %vm3386_vm7, %v4124_v54, %v4126_v26  ;;  %v7859_v17 = vsel %vm3386_vm7, %v4130_v28, %v4132_v9  ;;  %v7868_v54 = vld [vmem:[%s7766_s7 + $0x68] sm:$0xff]  }
 0x164   : > { %8552 = vst [vmem:[#allocation2_spill] sm:$0xff] %v7854_v25  ;;  %8553 = vst [vmem:[#allocation3_spill] sm:$0xff] %v7859_v17 }
 0x165   : > { %8554 = vst [vmem:[#allocation4_spill] sm:$0xff] %v7868_v54 }
 0x1c9   : > { %v7730_v62 = vpop.f32.mrb[0].mxu1 }
 0x1ca   : > { %v7732_v14 = vpop.f32.mrb[1].mxu1 }
 0x1cb   : > { %v7734_v10 = vpop.f32.mrb[2].mxu1 }
 0x1cc   : > { %v7736_v58 = vpop.f32.mrb[3].mxu1 }
 0x1d1   : > { %v7738_v31 = vpop.f32.mrb[4].mxu1 }
 0x1d2   : > { %v7740_v57 = vpop.f32.mrb[5].mxu1 }
 0x1d3   : > { %v7742_v34 = vpop.f32.mrb[6].mxu1 }
 0x1d4   : > { %v7744_v49 = vpop.f32.mrb[7].mxu1 }
 0x1d9   : > { %v7746_v30 = vpop.f32.mrb[8].mxu1 }
 0x1da   : > { %v7748_v60 = vpop.f32.mrb[9].mxu1 }
 0x1db   : > { %v7750_v6 = vpop.f32.mrb[10].mxu1 }
 0x1dc   : > { %v7752_v2 = vpop.f32.mrb[11].mxu1 }
 0x1e1   : > { %v7754_v38 = vpop.f32.mrb[12].mxu1 }
 0x1e2   : > { %v7756_v11 = vpop.f32.mrb[13].mxu1 }
 0x1e3   : > { %v7758_v13 = vpop.f32.mrb[14].mxu1 }
 0x1e4   : > { %v7760_v15 = vpop.f32.mrb[15].mxu1 }
 0x1e9   : > { %v7769_v8 = vpop.f32.mrb[16].mxu1 }
 0x1ea   : > { %v7773_v42 = vpop.f32.mrb[17].mxu1 }
 0x1eb   : > { %v7776_v4 = vpop.f32.mrb[18].mxu1 }
 0x1ec   : > { %v7779_v12 = vpop.f32.mrb[19].mxu1 }
 0x1f4   : > { %v6076_v43 = vpop.f32.mrb[0].mxu0 }
 0x1f5   : > { %v6112_v18 = vadd.f32 %v6076_v43, %v7730_v62  ;;  %v3515_v0 = vpop.f32.mrb[1].mxu0  ;;  %v5550_v43 = vunpack.c.l.bf16 %v5589_v51 }
 0x1f6   : > { %v6113_v45 = vadd.f32 %v3515_v0, %v7732_v14  ;;  %v6077_v46 = vpop.f32.mrb[2].mxu0  ;;  %v7825_v14 = vsel %vm3386_vm7, %v4116_v48, %v4118_v3  ;;  %v7851_v0 = vsel %vm3386_vm7, %v4128_v32, %v4130_v28 }
 0x1f7   : > { %v7818_v41 = vadd.f32 %v6112_v18, %v7798_v24  ;;  %v6114_v62 = vadd.f32 %v6077_v46, %v7734_v10  ;;  %v3518_v39 = vpop.f32.mrb[3].mxu0 }
 0x1f8   : > { %v7829_v23 = vadd.f32 %v6113_v45, %v7798_v24  ;;  %v6115_v61 = vadd.f32 %v3518_v39, %v7736_v58  ;;  %v5546_v58 = vunpack.c.l.bf16 %v5588_v19  ;;  %v4134_v39 = vrot.slane %v5543_v40, 3 }
 0x1f9   : > { %v5404_v53 = vmul.f32 -1.442695, %v7818_v41  ;;  %v7837_v10 = vadd.f32 %v6114_v62, %v7798_v24  ;;  %v4138_v62 = vrot.slane %v5547_v16, 3  ;;  %v7883_v40 = vsel %vm3386_vm7, %v4126_v26, %v4128_v32  ;;  %v5592_v26 = vld [vmem:[%s7766_s7 + $0x70] sm:$0xff]  }
 0x1fa   : > { %v5402_v44 = vmul.f32 -1.442695, %v7829_v23  ;;  %v7842_v29 = vadd.f32 %v6115_v61, %v7798_v24  ;;  %v7861_v3 = vrot.slane %v5546_v58, 3  ;;  %v4140_v61 = vrot.slane %v5550_v43, 3  ;;  %8555 = vst [vmem:[#allocation5_spill] sm:$0xff] %v7883_v40 }
 0x1fb   : > { %6484 = vpow2.f32 %v5404_v53  ;;  %v5405_v5 = vmul.f32 -1.442695, %v7837_v10  ;;  %v5554_v53 = vunpack.c.l.bf16 %v5590_v36  ;;  %v5555_v58 = vunpack.c.h.bf16 %v5590_v36 }
 0x1fc   : > { %6486 = vpow2.f32 %v5402_v44  ;;  %v5403_v21 = vmul.f32 -1.442695, %v7842_v29  ;;  %v6080_v48 = vpop.f32.mrb[4].mxu0  ;;  %v7892_v43 = vsel %vm3386_vm7, %v4132_v9, %v4134_v39 }
 0x1fd   : > { %6488 = vpow2.f32 %v5405_v5  ;;  %v6116_v37 = vadd.f32 %v6080_v48, %v7738_v31  ;;  %v3531_v18 = vpop.f32.mrb[5].mxu0  ;;  %v7889_v48 = vsel %vm3386_vm7, %v7861_v3, %v4138_v62  ;;  %8557 = vst [vmem:[#allocation7_spill] sm:$0xff] %v7892_v43  ;;  %v4144_v32 = vrot.slane %v5554_v53, 3 }
 0x1fe   : > { %6490 = vpow2.f32 %v5403_v21  ;;  %v6117_v56 = vadd.f32 %v3531_v18, %v7740_v57  ;;  %v6081_v45 = vpop.f32.mrb[6].mxu0  ;;  %8556 = vst [vmem:[#allocation6_spill] sm:$0xff] %v7889_v48  ;;  %v7896_v18 = vsel %vm3386_vm7, %v4138_v62, %v4140_v61 }
 0x1ff   : > { %v7864_v46 = vadd.f32 %v6116_v37, %v7798_v24  ;;  %v6118_v31 = vadd.f32 %v6081_v45, %v7742_v34  ;;  %v3534_v47 = vpop.f32.mrb[7].mxu0  ;;  %v5551_v34 = vunpack.c.h.bf16 %v5589_v51  ;;  %8558 = vst [vmem:[#allocation8_spill] sm:$0xff] %v7896_v18 }
 0x200   : > { %v7871_v19 = vadd.f32 %v6117_v56, %v7798_v24  ;;  %v6119_v57 = vadd.f32 %v3534_v47, %v7744_v49  ;;  %v5558_v49 = vunpack.c.l.bf16 %v7868_v54 }
 0x201   : > { %v5408_v28 = vmul.f32 -1.442695, %v7864_v46  ;;  %v7876_v44 = vadd.f32 %v6118_v31, %v7798_v24  ;;  %v4146_v31 = vrot.slane %v5555_v58, 3  ;;  %v4142_v47 = vrot.slane %v5551_v34, 3 }
 0x202   : > { %v5406_v5 = vmul.f32 -1.442695, %v7871_v19  ;;  %v7880_v16 = vadd.f32 %v6119_v57, %v7798_v24  ;;  %v7901_v33 = vrot.slane %v5558_v49, 3 }
 0x203   : > { %6492 = vpow2.f32 %v5408_v28  ;;  %v5409_v21 = vmul.f32 -1.442695, %v7876_v44 }
 0x204   : > { %6494 = vpow2.f32 %v5406_v5  ;;  %v5407_v51 = vmul.f32 -1.442695, %v7880_v16  ;;  %v6084_v37 = vpop.f32.mrb[8].mxu0  ;;  %8559 = vst [vmem:[#allocation9_spill] sm:$0xff] %v7901_v33 }
 0x205   : > { %v6485_v36 = vpop.eup %6484  ;;  %6496 = vpow2.f32 %v5409_v21  ;;  %v6120_v56 = vadd.f32 %v6084_v37, %v7746_v30  ;;  %v3547_v45 = vpop.f32.mrb[9].mxu0  ;;  %v5562_v30 = vunpack.c.l.bf16 %v5592_v26 }
 0x206   : > { %v6487_v57 = vpop.eup %6486  ;;  %v3847_v28 = vadd.f32 1.0, %v6485_v36  ;;  %6498 = vpow2.f32 %v5407_v51  ;;  %v6121_v9 = vadd.f32 %v3547_v45, %v7748_v60  ;;  %v6085_v5 = vpop.f32.mrb[10].mxu0 }
 0x207   : > { %v6489_v43 = vpop.eup %6488  ;;  %v3845_v62 = vadd.f32 1.0, %v6487_v57  ;;  %v7904_v53 = vadd.f32 %v6120_v56, %v7798_v24  ;;  %v6122_v21 = vadd.f32 %v6085_v5, %v7750_v6  ;;  %v3550_v18 = vpop.f32.mrb[11].mxu0  ;;  %v7931_v5 = vsel %vm3386_vm7, %v4140_v61, %v4142_v47 }
 0x208   : > { %v6491_v37 = vpop.eup %6490  ;;  %6500 = vrcp.f32 %v3847_v28  ;;  %v3848_v58 = vadd.f32 1.0, %v6489_v43  ;;  %v7908_v34 = vadd.f32 %v6121_v9, %v7798_v24  ;;  %v6123_v60 = vadd.f32 %v3550_v18, %v7752_v2  ;;  %v7915_v56 = vpop.permute.xlu0 %4284  ;;  %8562 = vst [vmem:[#allocation12_spill] sm:$0xff] %v7931_v5 }
 0x209   : > { %6502 = vrcp.f32 %v3845_v62  ;;  %v3846_v49 = vadd.f32 1.0, %v6491_v37  ;;  %v5412_v51 = vmul.f32 -1.442695, %v7904_v53  ;;  %v7913_v36 = vadd.f32 %v6122_v21, %v7798_v24 }
 0x20a   : > { %6504 = vrcp.f32 %v3848_v58  ;;  %v5410_v6 = vmul.f32 -1.442695, %v7908_v34  ;;  %v7919_v45 = vadd.f32 %v6123_v60, %v7798_v24  ;;  %v5563_v43 = vunpack.c.h.bf16 %v5592_v26 }
 0x20b   : > { %6506 = vrcp.f32 %v3846_v49  ;;  %v5413_v57 = vmul.f32 -1.442695, %v7913_v36  ;;  %v7924_v2 = vsel %vm3386_vm7, %v4134_v39, %v7861_v3  ;;  %v7927_v18 = vsel %vm3386_vm7, %v4144_v32, %v4146_v31 }
 0x20c   : > { %8560 = vst [vmem:[#allocation10_spill] sm:$0xff] %v7924_v2  ;;  %8561 = vst [vmem:[#allocation11_spill] sm:$0xff] %v7927_v18  ;;  %6508 = vpow2.f32 %v5412_v51  ;;  %v5411_v28 = vmul.f32 -1.442695, %v7919_v45  ;;  %v6088_v9 = vpop.f32.mrb[12].mxu0  ;;  %v7935_v26 = vsel %vm3386_vm7, %v4146_v31, %v7901_v33  ;;  %v7939_v39 = vsel %vm3386_vm7, %v4142_v47, %v4144_v32 }
 0x20d   : > { %8563 = vst [vmem:[#allocation13_spill] sm:$0xff] %v7935_v26  ;;  %v6493_v62 = vpop.eup %6492  ;;  %6510 = vpow2.f32 %v5410_v6  ;;  %v6124_v21 = vadd.f32 %v6088_v9, %v7754_v38  ;;  %v3563_v3 = vpop.f32.mrb[13].mxu0  ;;  %8564 = vst [vmem:[#allocation14_spill] sm:$0xff] %v7939_v39  ;;  %v7941_v37 = vrot.slane %v5562_v30, 3  ;;  %v7944_v51 = vrot.slane %v5563_v43, 3 }
 0x20e   : > { %v6495_v58 = vpop.eup %6494  ;;  %v3851_v60 = vadd.f32 1.0, %v6493_v62  ;;  %6512 = vpow2.f32 %v5413_v57  ;;  %v6125_v61 = vadd.f32 %v3563_v3, %v7756_v11  ;;  %v6089_v49 = vpop.f32.mrb[14].mxu0 }
 0x20f   : > { %8565 = vst [vmem:[#allocation15_spill] sm:$0xff] %v7941_v37  ;;  %8566 = vst [vmem:[#allocation16_spill] sm:$0xff] %v7944_v51  ;;  %v6497_v31 = vpop.eup %6496  ;;  %v3849_v33 = vadd.f32 1.0, %v6495_v58  ;;  %6514 = vpow2.f32 %v5411_v28  ;;  %v7947_v38 = vadd.f32 %v6124_v21, %v7798_v24  ;;  %v6126_v32 = vadd.f32 %v6089_v49, %v7758_v13  ;;  %v3566_v47 = vpop.f32.mrb[15].mxu0  ;;  %v7961_v28 = vld [vmem:[%s7766_s7 + $0x78] sm:$0xff]  }
 0x210   : > { %v6499_v6 = vpop.eup %6498  ;;  %v7952_v9 = vpop.permute.xlu0 %4289  ;;  %6516 = vrcp.f32 %v3851_v60  ;;  %v3852_v11 = vadd.f32 1.0, %v6497_v31  ;;  %v7955_v57 = vadd.f32 %v6125_v61, %v7798_v24  ;;  %v6127_v43 = vadd.f32 %v3566_v47, %v7760_v15  ;;  %8567 = vst [vmem:[#allocation17_spill] sm:$0xff] %v7961_v28 }
 0x211   : > { %v7950_v30 = vpop.f32.mrb[20].mxu1  ;;  %6518 = vrcp.f32 %v3849_v33  ;;  %v3850_v21 = vadd.f32 1.0, %v6499_v6  ;;  %v5416_v13 = vmul.f32 -1.442695, %v7947_v38  ;;  %v7965_v3 = vadd.f32 %v6126_v32, %v7798_v24  ;;  %v4295_v49 = vpop.permute.xlu1 %4294 }
 0x212   : > { %v7958_v62 = vpop.f32.mrb[21].mxu1  ;;  %v6501_v60 = vpop.eup %6500  ;;  %6520 = vrcp.f32 %v3852_v11  ;;  %v5414_v61 = vmul.f32 -1.442695, %v7955_v57  ;;  %v7971_v15 = vadd.f32 %v6127_v43, %v7798_v24  ;;  %v7984_v33 = vsel %vm3386_vm7, %v7941_v37, %v7944_v51 }
 0x213   : > { %8568 = vst [vmem:[#allocation18_spill] sm:$0xff] %v7965_v3  ;;  %v7967_v58 = vpop.f32.mrb[22].mxu1  ;;  %v6503_v47 = vpop.eup %6502  ;;  %v3955_v6 = vmul.f32 %v6501_v60, %v7818_v41  ;;  %6522 = vrcp.f32 %v3850_v21  ;;  %v5417_v32 = vmul.f32 -1.442695, %v7965_v3  ;;  %8570 = vst [vmem:[#allocation20_spill] sm:$0xff] %v7984_v33 }
 0x214   : > { %8569 = vst [vmem:[#allocation19_spill] sm:$0xff] %v7971_v15  ;;  %v7973_v31 = vpop.f32.mrb[23].mxu1  ;;  %v6505_v26 = vpop.eup %6504  ;;  %v3953_v11 = vmul.f32 %v6503_v47, %v7829_v23  ;;  %6524 = vpow2.f32 %v5416_v13  ;;  %v5415_v43 = vmul.f32 -1.442695, %v7971_v15 }
 0x215   : > { %v6092_v5 = vpop.f32.mrb[16].mxu0  ;;  %v6507_v41 = vpop.eup %6506  ;;  %v4212_v21 = vadd.f32 %v7786_v55, %v3955_v6  ;;  %v3956_v60 = vmul.f32 %v6505_v26, %v7837_v10  ;;  %6526 = vpow2.f32 %v5414_v61 }
 0x216   : > { %v6128_v23 = vadd.f32 %v6092_v5, %v7769_v8  ;;  %v3579_v47 = vpop.f32.mrb[17].mxu0  ;;  %v6509_v13 = vpop.eup %6508  ;;  %v4210_v18 = vadd.f32 %v7789_v63, %v3953_v11  ;;  %v3954_v2 = vmul.f32 %v6507_v41, %v7842_v29  ;;  %6528 = vpow2.f32 %v5417_v32 }
 0x217   : > { %v7989_v39 = vpop.permute.xlu0 %4304  ;;  %v7994_v33 = vadd.f32 %v3579_v47, %v7773_v42  ;;  %v7996_v55 = vpop.f32.mrb[18].mxu0  ;;  %v4464_v26 = vmul.f32 %v4295_v49, %v4212_v21  ;;  %v4213_v61 = vadd.f32 %v7792_v59, %v3956_v60  ;;  %v3855_v6 = vadd.f32 1.0, %v6509_v13 }
 0x218   : > { %v6511_v10 = vpop.eup %6510  ;;  %6530 = vpow2.f32 %v5415_v43  ;;  %v7999_v8 = vpop.f32.mrb[19].mxu0  ;;  %v4462_v29 = vmul.f32 %v7915_v56, %v4210_v18  ;;  %v4211_v32 = vadd.f32 %v7801_v20, %v3954_v2  ;;  %v8006_v11 = vadd.f32 %v6128_v23, %v7798_v24 }
 0x219   : > { %v8001_v5 = vpop.f32.mrb[24].mxu1  ;;  %v6513_v37 = vpop.eup %6512  ;;  %v3853_v42 = vadd.f32 1.0, %v6511_v10  ;;  %v5478_v59 = vpack.c.bf16 %v4464_v26, %v4464_v26  ;;  %6532 = vrcp.f32 %v3855_v6 }
 0x21a   : > { %v4300_v63 = vpop.permute.xlu1 %4299  ;;  %v8008_v41 = vpop.f32.mrb[25].mxu1  ;;  %v8010_v43 = vadd.f32 1.0, %v6513_v37  ;;  %v5476_v13 = vpack.c.bf16 %v4462_v29, %v4462_v29  ;;  %v4463_v56 = vmul.f32 %v7952_v9, %v4211_v32 }
 0x21b   : > { %8571 = vst [vmem:[#allocation21_spill] sm:$0xff] %v8008_v41  ;;  %v6515_v49 = vpop.eup %6514  ;;  %v4465_v21 = vmul.f32 %v4300_v63, %v4213_v61  ;;  %v8012_v60 = vpop.f32.mrb[26].mxu1  ;;  %6534 = vrcp.f32 %v3853_v42  ;;  %v4672_v23 = vshrl.u32 %v5478_v59, 16  ;;  %v4675_v10 = vshll.u32 %v5478_v59, 16 }
 0x21c   : > { %8572 = vst [vmem:[#allocation22_spill] sm:$0xff] %v8012_v60  ;;  %v6517_v47 = vpop.eup %6516  ;;  %v8015_v20 = vadd.f32 1.0, %v6515_v49  ;;  %v8017_v2 = vpop.f32.mrb[27].mxu1  ;;  %v4653_v6 = vshrl.u32 %v5476_v13, 16  ;;  %v4656_v63 = vshll.u32 %v5476_v13, 16  ;;  %v5477_v28 = vpack.c.bf16 %v4463_v56, %v4463_v56 }
 0x21d   : > { %8573 = vst [vmem:[#allocation23_spill] sm:$0xff] %v8017_v2  ;;  %v6519_v18 = vpop.eup %6518  ;;  %v5479_v51 = vpack.c.bf16 %v4465_v21, %v4465_v21  ;;  %v3959_v26 = vmul.f32 %v6517_v47, %v7864_v46  ;;  %v4315_v37 = vpop.permute.xlu0 %4314  ;;  %v4674_v32 = vrot.slane %v4672_v23, 6  ;;  %v4677_v42 = vrot.slane %v4675_v10, 7 }
 0x21e   : > { %v6521_v61 = vpop.eup %6520  ;;  %v3957_v29 = vmul.f32 %v6519_v18, %v7871_v19  ;;  %v8021_v48 = vpop.f32.mrb[20].mxu0  ;;  %v4655_v21 = vrot.slane %v4653_v6, 6  ;;  %v4658_v47 = vrot.slane %v4656_v63, 7  ;;  %v4662_v13 = vshrl.u32 %v5477_v28, 16 }
 0x21f   : > { %v6523_v9 = vpop.eup %6522  ;;  %v4682_v49 = vshrl.u32 %v5479_v51, 16  ;;  %v4685_v2 = vshll.u32 %v5479_v51, 16  ;;  %v8023_v60 = vpop.f32.mrb[21].mxu0  ;;  %v4665_v56 = vshll.u32 %v5477_v28, 16  ;;  %v4678_v18 = vor.u32 %v4677_v42, %v4674_v32  ;;  %v5051_v51 = vld [vmem:[%s7608_s27 + $0x8] sm:$0xe] }
 0x220   : > { %v8025_v59 = vpop.eup %6524  ;;  %v8027_v46 = vpop.permute.xlu1 %4309  ;;  %v4216_v40 = vadd.f32 %v7804_v1, %v3959_v26  ;;  %v4659_v17 = vor.u32 %v4658_v47, %v4655_v21  ;;  %v4664_v42 = vrot.slane %v4662_v13, 6  ;;  %v3960_v21 = vmul.f32 %v6521_v61, %v7876_v44 }
 0x221   : > { %v8029_v54 = vpop.f32.mrb[22].mxu0  ;;  %v8031_v19 = vpop.eup %6526  ;;  %v4684_v10 = vrot.slane %v4682_v49, 6  ;;  %v4687_v41 = vrot.slane %v4685_v2, 7  ;;  %v4667_v15 = vrot.slane %v4665_v56, 7  ;;  %v4214_v2 = vadd.f32 %v7808_v7, %v3957_v29 }
 0x222   : > { %v8041_v6 = vpop.f32.mrb[23].mxu0  ;;  %v8043_v63 = vpop.f32.mrb[28].mxu1  ;;  %v4680_v26 = vrot.slane %v4678_v18, 4  ;;  %v4468_v3 = vmul.f32 %v4315_v37, %v4216_v40  ;;  %v4660_v13 = vrot.slane %v4659_v17, 4  ;;  %v5052_v56 = vsel %vm8035_vm13, %v4659_v17, %v5051_v51 }
 0x223   : > { %8576 = vst [vmem:[#allocation24_spill] sm:$0xff] %v8043_v63  ;;  %v8045_v28 = vpop.eup %6528  ;;  %v8054_v49 = vpop.f32.mrb[29].mxu1  ;;  %v8058_v63 = vor.u32 %v4687_v41, %v4684_v10  ;;  %v4668_v7 = vor.u32 %v4667_v15, %v4664_v42  ;;  %v4466_v29 = vmul.f32 %v7989_v39, %v4214_v2  ;;  %5053 = vst [vmem:[%s7608_s27 + $0x8] sm:$0xe] %v5052_v56  ;;  %6536 = vrcp.f32 %v8010_v43 }
 0x224   : > { %8579 = vst [vmem:[#allocation25_spill] sm:$0xff] %v8054_v49  ;;  %v8056_v1 = vpop.eup %6530  ;;  %v8061_v47 = vpop.f32.mrb[30].mxu1  ;;  %v5482_v61 = vpack.c.bf16 %v4468_v3, %v4468_v3  ;;  %v4217_v37 = vadd.f32 %v7812_v50, %v3960_v21  ;;  %v3958_v51 = vmul.f32 %v6523_v9, %v7880_v16  ;;  %6538 = vrcp.f32 %v8015_v20 }
 0x225   : > { %v8063_v25 = vpop.permute.xlu0 %4324  ;;  %v8068_v49 = vpop.f32.mrb[31].mxu1  ;;  %v4689_v44 = vsel %vm8049_vm14, %v4680_v26, %v8058_v63  ;;  %v4690_v40 = vrot.slane %v8058_v63, 4  ;;  %v4669_v17 = vsel %vm8049_vm14, %v4660_v13, %v4668_v7  ;;  %v4670_v39 = vrot.slane %v4668_v7, 4 }
 0x226   : > { %v6533_v41 = vpop.eup %6532  ;;  %v4320_v23 = vpop.permute.xlu1 %4319  ;;  %5056 = vst.msk [vmem:[%s7608_s27 + $0x14] sm:$0xf] %vm4498_vm8, %v4689_v44  ;;  %v5480_v15 = vpack.c.bf16 %v4466_v29, %v4466_v29  ;;  %5054 = vst.msk [vmem:[%s7608_s27 + $0xc] sm:$0xf] %vm4498_vm8, %v4669_v17  ;;  %v4712_v63 = vshrl.u32 %v5482_v61, 16  ;;  %v4715_v3 = vshll.u32 %v5482_v61, 16  ;;  %v4215_v7 = vadd.f32 %v7815_v35, %v3958_v51 }
 0x227   : > { %v6535_v10 = vpop.eup %6534  ;;  %v8081_v42 = vpop.f32.mrb[24].mxu0  ;;  %v4469_v2 = vmul.f32 %v4320_v23, %v4217_v37  ;;  %v3963_v50 = vmul.f32 %v6533_v41, %v7904_v53  ;;  %v4679_v21 = vsel %vm8049_vm14, %v4670_v39, %v4678_v18  ;;  %v3857_v20 = vadd.f32 1.0, %v8031_v19 }
 0x228   : > { %v8086_v26 = vpop.f32.mrb[25].mxu0  ;;  %v4692_v13 = vshrl.u32 %v5480_v15, 16  ;;  %v4695_v56 = vshll.u32 %v5480_v15, 16  ;;  %5055 = vst.msk [vmem:[%s7608_s27 + $0x10] sm:$0xf] %vm4498_vm8, %v4679_v21  ;;  %v4714_v16 = vrot.slane %v4712_v63, 6  ;;  %v4467_v17 = vmul.f32 %v8027_v46, %v4215_v7 }
 0x229   : > { %v8091_v29 = vpop.f32.mrb[26].mxu0  ;;  %v4717_v9 = vrot.slane %v4715_v3, 7  ;;  %v5483_v44 = vpack.c.bf16 %v4469_v2, %v4469_v2  ;;  %v4220_v61 = vadd.f32 %v7822_v52, %v3963_v50  ;;  %v8098_v53 = vpop.f32.mrb[32].mxu1  ;;  %v3961_v35 = vmul.f32 %v6535_v10, %v7908_v34 }
 0x22a   : > { %v8096_v37 = vpop.f32.mrb[27].mxu0  ;;  %v4335_v41 = vpop.permute.xlu0 %4334  ;;  %v4694_v23 = vrot.slane %v4692_v13, 6  ;;  %v4697_v18 = vrot.slane %v4695_v56, 7  ;;  %v5481_v50 = vpack.c.bf16 %v4467_v17, %v4467_v17 }
 0x22b   : > { %v8102_v39 = vpop.f32.mrb[33].mxu1  ;;  %v4718_v15 = vor.u32 %v4717_v9, %v4714_v16  ;;  %v4722_v51 = vshrl.u32 %v5483_v44, 16  ;;  %v4725_v63 = vshll.u32 %v5483_v44, 16  ;;  %v4472_v3 = vmul.f32 %v4335_v41, %v4220_v61 }
 0x22c   : > { %v8104_v2 = vpop.f32.mrb[34].mxu1  ;;  %v4698_v52 = vor.u32 %v4697_v18, %v4694_v23  ;;  %v4218_v21 = vadd.f32 %v7825_v14, %v3961_v35  ;;  %v4702_v9 = vshrl.u32 %v5481_v50, 16  ;;  %v4705_v44 = vshll.u32 %v5481_v50, 16  ;;  %v8112_v61 = vpop.f32.mrb[28].mxu0 }
 0x22d   : > { %v8108_v13 = vpop.f32.mrb[35].mxu1  ;;  %v4720_v46 = vrot.slane %v4718_v15, 4  ;;  %v4724_v56 = vrot.slane %v4722_v51, 6  ;;  %v4727_v34 = vrot.slane %v4725_v63, 7  ;;  %v5486_v10 = vpack.c.bf16 %v4472_v3, %v4472_v3  ;;  %v8117_v18 = vpop.f32.mrb[29].mxu0 }
 0x22e   : > { %v4699_v7 = vsel %vm8049_vm14, %v4690_v40, %v4698_v52  ;;  %v4700_v16 = vrot.slane %v4698_v52, 4  ;;  %v4470_v23 = vmul.f32 %v8063_v25, %v4218_v21  ;;  %v4704_v17 = vrot.slane %v4702_v9, 6  ;;  %v8121_v51 = vpop.f32.mrb[30].mxu0 }
 0x22f   : > { %5057 = vst.msk [vmem:[%s7608_s27 + $0x18] sm:$0xf] %vm4498_vm8, %v4699_v7  ;;  %v4728_v14 = vor.u32 %v4727_v34, %v4724_v56  ;;  %v4752_v41 = vshrl.u32 %v5486_v10, 16  ;;  %v4755_v43 = vshll.u32 %v5486_v10, 16  ;;  %v4707_v35 = vrot.slane %v4705_v44, 7  ;;  %v8125_v56 = vpop.f32.mrb[31].mxu0  ;;  %v8130_v34 = vpop.permute.xlu1 %4329 }
 0x230   : > { %v3859_v40 = vadd.f32 1.0, %v8025_v59  ;;  %v5484_v21 = vpack.c.bf16 %v4470_v23, %v4470_v23  ;;  %v3860_v10 = vadd.f32 1.0, %v8045_v28  ;;  %v5420_v7 = vmul.f32 -1.442695, %v8006_v11 }
 0x231   : > { %v4729_v63 = vsel %vm8049_vm14, %v4720_v46, %v4728_v14  ;;  %v4730_v3 = vrot.slane %v4728_v14, 4  ;;  %v4754_v52 = vrot.slane %v4752_v41, 6  ;;  %v4757_v50 = vrot.slane %v4755_v43, 7 }
 0x232   : > { %5060 = vst.msk [vmem:[%s7608_s27 + $0x24] sm:$0xf] %vm4498_vm8, %v4729_v63  ;;  %v4708_v25 = vor.u32 %v4707_v35, %v4704_v17  ;;  %6540 = vrcp.f32 %v3859_v40  ;;  %v3858_v46 = vadd.f32 1.0, %v8056_v1  ;;  %v4732_v14 = vshrl.u32 %v5484_v21, 16  ;;  %v6537_v1 = vpop.eup %6536 }
 0x233   : > { %v8132_v59 = vor.u32 %v4757_v50, %v4754_v52  ;;  %v4735_v41 = vshll.u32 %v5484_v21, 16  ;;  %6542 = vrcp.f32 %v3857_v20  ;;  %v8144_v43 = vadd.f32 %v7994_v33, %v7798_v24 }
 0x234   : > { %v4709_v9 = vsel %vm8049_vm14, %v4700_v16, %v4708_v25  ;;  %v4710_v44 = vrot.slane %v4708_v25, 4  ;;  %v6130_v28 = vadd.f32 %v7996_v55, %v7776_v4  ;;  %v4734_v16 = vrot.slane %v4732_v14, 6  ;;  %v8150_v35 = vpop.f32.mrb[32].mxu0 }
 0x235   : > { %5058 = vst.msk [vmem:[%s7608_s27 + $0x1c] sm:$0xf] %vm4498_vm8, %v4709_v9  ;;  %v4760_v19 = vrot.slane %v8132_v59, 4  ;;  %v4737_v17 = vrot.slane %v4735_v41, 7  ;;  %6544 = vrcp.f32 %v3860_v10  ;;  %v3964_v40 = vmul.f32 %v6537_v1, %v7913_v36  ;;  %v8159_v4 = vpop.f32.mrb[33].mxu0  ;;  %v4340_v36 = vpop.permute.xlu1 %4339 }
 0x236   : > { %v4719_v23 = vsel %vm8049_vm14, %v4710_v44, %v4718_v15  ;;  %6546 = vrcp.f32 %v3858_v46  ;;  %v5418_v33 = vmul.f32 -1.442695, %v8144_v43  ;;  %v8157_v63 = vadd.f32 %v6130_v28, %v7798_v24  ;;  %v8167_v50 = vpop.f32.mrb[34].mxu0  ;;  %v6539_v46 = vpop.eup %6538 }
 0x237   : > { %5059 = vst.msk [vmem:[%s7608_s27 + $0x20] sm:$0xf] %vm4498_vm8, %v4719_v23  ;;  %v8161_v55 = vor.u32 %v4737_v17, %v4734_v16  ;;  %6548 = vpow2.f32 %v5420_v7  ;;  %v6131_v15 = vadd.f32 %v7999_v8, %v7779_v12  ;;  %v6132_v52 = vadd.f32 %v8021_v48, %v7950_v30  ;;  %v8173_v10 = vpop.f32.mrb[35].mxu0  ;;  %v4345_v7 = vpop.permute.xlu0 %4344 }
 0x238   : > { %v4221_v25 = vadd.f32 %v7833_v22, %v3964_v40  ;;  %6550 = vpow2.f32 %v5418_v33  ;;  %v5421_v21 = vmul.f32 -1.442695, %v8157_v63  ;;  %v6133_v20 = vadd.f32 %v8023_v60, %v7958_v62 }
 0x239   : > { %v4739_v12 = vsel %vm8049_vm14, %v4730_v3, %v8161_v55  ;;  %v4740_v48 = vrot.slane %v8161_v55, 4  ;;  %v8180_v30 = vadd.f32 %v6131_v15, %v7798_v24  ;;  %v8183_v22 = vadd.f32 %v6132_v52, %v7798_v24 }
 0x23a   : > { %5061 = vst.msk [vmem:[%s7608_s27 + $0x28] sm:$0xf] %vm4498_vm8, %v4739_v12  ;;  %v4473_v8 = vmul.f32 %v4340_v36, %v4221_v25  ;;  %v3962_v62 = vmul.f32 %v6539_v46, %v7919_v45  ;;  %6552 = vpow2.f32 %v5421_v21  ;;  %v8189_v60 = vadd.f32 %v6133_v20, %v7798_v24 }
 0x23b   : > { %v5419_v3 = vmul.f32 -1.442695, %v8180_v30  ;;  %v5424_v44 = vmul.f32 -1.442695, %v8183_v22  ;;  %v6134_v14 = vadd.f32 %v8029_v54, %v7967_v58  ;;  %v6135_v41 = vadd.f32 %v8041_v6, %v7973_v31  ;;  %v4350_v31 = vpop.permute.xlu1 %4349  ;;  %v4355_v15 = vpop.permute.xlu0 %4354 }
 0x23c   : > { %v6541_v9 = vpop.eup %6540  ;;  %v5487_v28 = vpack.c.bf16 %v4473_v8, %v4473_v8  ;;  %v4219_v1 = vadd.f32 %v7847_v27, %v3962_v62  ;;  %v5422_v23 = vmul.f32 -1.442695, %v8189_v60  ;;  %v8208_v54 = vadd.f32 %v8081_v42, %v8001_v5 }
 0x23d   : > { %v3967_v45 = vmul.f32 %v6541_v9, %v7947_v38  ;;  %6554 = vpow2.f32 %v5419_v3  ;;  %v8201_v16 = vadd.f32 %v6134_v14, %v7798_v24  ;;  %v8204_v17 = vadd.f32 %v6135_v41, %v7798_v24  ;;  %v6543_v58 = vpop.eup %6542  ;;  %v8582_v9 = vld [vmem:[#allocation19_spill] sm:$0xff] }
 0x23e   : > { %v4762_v6 = vshrl.u32 %v5487_v28, 16  ;;  %v4765_v40 = vshll.u32 %v5487_v28, 16  ;;  %v4471_v27 = vmul.f32 %v8130_v34, %v4219_v1  ;;  %v3965_v52 = vmul.f32 %v6543_v58, %v7955_v57  ;;  %v8580_v34 = vld [vmem:[#allocation2_spill] sm:$0xff] }
 0x23f   : > { %v4224_v38 = vadd.f32 %v7851_v0, %v3967_v45  ;;  %v6545_v33 = vpop.eup %6544  ;;  %6556 = vpow2.f32 %v5424_v44  ;;  %v8214_v36 = vmul.f32 -1.442695, %v8201_v16  ;;  %v8217_v25 = vmul.f32 -1.442695, %v8204_v17  ;;  %v8581_v0 = vld [vmem:[#allocation18_spill] sm:$0xff]  ;;  %v8583_v45 = vld [vmem:[#allocation3_spill] sm:$0xff] }
 0x240   : > { %v6547_v5 = vpop.eup %6546  ;;  %v4764_v42 = vrot.slane %v4762_v6, 6  ;;  %v4767_v21 = vrot.slane %v4765_v40, 7  ;;  %v5485_v20 = vpack.c.bf16 %v4471_v27, %v4471_v27  ;;  %v4222_v8 = vadd.f32 %v8580_v34, %v3965_v52  ;;  %v8584_v6 = vld [vmem:[#allocation5_spill] sm:$0xff] }
 0x241   : > { %v4476_v46 = vmul.f32 %v4355_v15, %v4224_v38  ;;  %v6549_v12 = vpop.eup %6548  ;;  %v3968_v62 = vmul.f32 %v6545_v33, %v8581_v0  ;;  %v3966_v3 = vmul.f32 %v6547_v5, %v8582_v9  ;;  %6558 = vpow2.f32 %v5422_v23  ;;  %v4360_v15 = vpop.permute.xlu1 %4359 }
 0x242   : > { %v6551_v57 = vpop.eup %6550  ;;  %v4768_v44 = vor.u32 %v4767_v21, %v4764_v42  ;;  %v4742_v14 = vshrl.u32 %v5485_v20, 16  ;;  %v4745_v41 = vshll.u32 %v5485_v20, 16  ;;  %v4474_v1 = vmul.f32 %v4345_v7, %v4222_v8 }
 0x243   : > { %v5490_v28 = vpack.c.bf16 %v4476_v46, %v4476_v46  ;;  %v4225_v58 = vadd.f32 %v8583_v45, %v3968_v62  ;;  %v4223_v40 = vadd.f32 %v8584_v6, %v3966_v3  ;;  %v3863_v27 = vadd.f32 1.0, %v6549_v12 }
 0x244   : > { %v6553_v38 = vpop.eup %6552  ;;  %v4769_v33 = vsel %vm8049_vm14, %v4760_v19, %v4768_v44  ;;  %v4770_v23 = vrot.slane %v4768_v44, 4  ;;  %v4744_v52 = vrot.slane %v4742_v14, 6  ;;  %v4747_v5 = vrot.slane %v4745_v41, 7 }
 0x245   : > { %5064 = vst.msk [vmem:[%s7608_s27 + $0x34] sm:$0xf] %vm4498_vm8, %v4769_v33  ;;  %v4792_v42 = vshrl.u32 %v5490_v28, 16  ;;  %v4795_v21 = vshll.u32 %v5490_v28, 16  ;;  %v5488_v7 = vpack.c.bf16 %v4474_v1, %v4474_v1  ;;  %v4477_v20 = vmul.f32 %v4360_v15, %v4225_v58 }
 0x246   : > { %v4748_v46 = vor.u32 %v4747_v5, %v4744_v52  ;;  %v4475_v34 = vmul.f32 %v4350_v31, %v4223_v40  ;;  %6560 = vrcp.f32 %v3863_v27  ;;  %v3861_v12 = vadd.f32 1.0, %v6551_v57  ;;  %v4365_v52 = vpop.permute.xlu0 %4364 }
 0x247   : > { %v6555_v8 = vpop.eup %6554  ;;  %v4794_v0 = vrot.slane %v4792_v42, 6  ;;  %v4797_v62 = vrot.slane %v4795_v21, 7  ;;  %v4772_v9 = vshrl.u32 %v5488_v7, 16  ;;  %v4775_v3 = vshll.u32 %v5488_v7, 16 }
 0x248   : > { %v4749_v19 = vsel %vm8049_vm14, %v4740_v48, %v4748_v46  ;;  %v4750_v44 = vrot.slane %v4748_v46, 4  ;;  %v5491_v14 = vpack.c.bf16 %v4477_v20, %v4477_v20  ;;  %v5489_v41 = vpack.c.bf16 %v4475_v34, %v4475_v34 }
 0x249   : > { %v6557_v28 = vpop.eup %6556  ;;  %5062 = vst.msk [vmem:[%s7608_s27 + $0x2c] sm:$0xf] %vm4498_vm8, %v4749_v19  ;;  %v4798_v31 = vor.u32 %v4797_v62, %v4794_v0  ;;  %v4774_v1 = vrot.slane %v4772_v9, 6  ;;  %v4777_v57 = vrot.slane %v4775_v3, 7  ;;  %6562 = vrcp.f32 %v3861_v12  ;;  %v8586_v19 = vld [vmem:[#allocation4_spill] sm:$0xff] }
 0x24a   : > { %v4759_v45 = vsel %vm8049_vm14, %v4750_v44, %v8132_v59  ;;  %v4802_v58 = vshrl.u32 %v5491_v14, 16  ;;  %v4805_v55 = vshll.u32 %v5491_v14, 16  ;;  %v4782_v6 = vshrl.u32 %v5489_v41, 16 }
 0x24b   : > { %v6559_v40 = vpop.eup %6558  ;;  %5063 = vst.msk [vmem:[%s7608_s27 + $0x30] sm:$0xf] %vm4498_vm8, %v4759_v45  ;;  %v4800_v48 = vrot.slane %v4798_v31, 4  ;;  %v4778_v27 = vor.u32 %v4777_v57, %v4774_v1  ;;  %v4785_v15 = vshll.u32 %v5489_v41, 16  ;;  %v3864_v33 = vadd.f32 1.0, %v6553_v38  ;;  %v8588_v41 = vld [vmem:[#allocation22_spill] sm:$0xff]  ;;  %v4375_v1 = vpop.permute.xlu0 %4374 }
 0x24c   : > { %v4804_v5 = vrot.slane %v4802_v58, 6  ;;  %v4807_v42 = vrot.slane %v4805_v55, 7  ;;  %v4784_v21 = vrot.slane %v4782_v6, 6  ;;  %v3862_v7 = vadd.f32 1.0, %v6555_v8  ;;  %v8589_v6 = vld [vmem:[#allocation6_spill] sm:$0xff] }
 0x24d   : > { %v4779_v20 = vsel %vm8049_vm14, %v4770_v23, %v4778_v27  ;;  %v4780_v59 = vrot.slane %v4778_v27, 4  ;;  %v4787_v46 = vrot.slane %v4785_v15, 7  ;;  %6564 = vrcp.f32 %v3864_v33  ;;  %v8585_v23 = vld [vmem:[#allocation21_spill] sm:$0xff]  ;;  %v8591_v27 = vld [vmem:[#allocation24_spill] sm:$0xff] }
 0x24e   : > { %5065 = vst.msk [vmem:[%s7608_s27 + $0x38] sm:$0xf] %vm4498_vm8, %v4779_v20  ;;  %v8245_v34 = vor.u32 %v4807_v42, %v4804_v5  ;;  %6566 = vrcp.f32 %v3862_v7  ;;  %v3867_v12 = vadd.f32 1.0, %v6557_v28  ;;  %v3865_v0 = vadd.f32 1.0, %v6559_v40  ;;  %v8592_v42 = vld [vmem:[#allocation17_spill] sm:$0xff] }
 0x24f   : > { %v4788_v38 = vor.u32 %v4787_v46, %v4784_v21  ;;  %6568 = vpow2.f32 %v8214_v36  ;;  %v8250_v8 = vadd.f32 %v8208_v54, %v7798_v24  ;;  %v6137_v62 = vadd.f32 %v8086_v26, %v8585_v23 }
 0x250   : > { %v6561_v9 = vpop.eup %6560  ;;  %v4809_v3 = vsel %vm8049_vm14, %v4800_v48, %v8245_v34  ;;  %6570 = vrcp.f32 %v3867_v12  ;;  %v8587_v44 = vunpack.c.h.bf16 %v8586_v19  ;;  %v6138_v36 = vadd.f32 %v8091_v29, %v8588_v41  ;;  %v8278_v29 = vld [vmem:[%s8540_s2] ss:$0 sm:$0xff]  ;;  %v4385_v19 = vpop.permute.xlu0 %4384 }
 0x251   : > { %5068 = vst.msk [vmem:[%s7608_s27 + $0x44] sm:$0xf] %vm4498_vm8, %v4809_v3  ;;  %v4789_v54 = vsel %vm8049_vm14, %v4780_v59, %v4788_v38  ;;  %v4790_v26 = vrot.slane %v4788_v38, 4  ;;  %v3971_v28 = vmul.f32 %v6561_v9, %v8006_v11  ;;  %6572 = vrcp.f32 %v3865_v0 }
 0x252   : > { %v8259_v14 = vrot.slane %v8587_v44, 3  ;;  %5066 = vst.msk [vmem:[%s7608_s27 + $0x3c] sm:$0xf] %vm4498_vm8, %v4789_v54  ;;  %6574 = vpow2.f32 %v8217_v25  ;;  %v5428_v57 = vmul.f32 -1.442695, %v8250_v8  ;;  %v8273_v45 = vadd.f32 %v6137_v62, %v7798_v24  ;;  %v8590_v25 = vld [vmem:[#allocation23_spill] sm:$0xff] }
 0x253   : > { %v8281_v58 = vadd.f32 %v8278_v29, %v6138_v36  ;;  %v6563_v11 = vpop.eup %6562  ;;  %v4799_v55 = vsel %vm8049_vm14, %v4790_v26, %v4798_v31  ;;  %v4228_v40 = vadd.f32 %v8589_v6, %v3971_v28  ;;  %v6139_v48 = vadd.f32 %v8096_v37, %v8590_v25  ;;  %v4370_v31 = vpop.permute.xlu1 %4369  ;;  %v8596_v28 = vld [vmem:[#allocation8_spill] sm:$0xff] }
 0x254   : > { %v6140_v24 = vadd.f32 %v8112_v61, %v8591_v27  ;;  %5067 = vst.msk [vmem:[%s7608_s27 + $0x40] sm:$0xf] %vm4498_vm8, %v4799_v55  ;;  %v3969_v15 = vmul.f32 %v6563_v11, %v8144_v43  ;;  %v5426_v33 = vmul.f32 -1.442695, %v8273_v45  ;;  %v8593_v21 = vunpack.c.l.bf16 %v8592_v42  ;;  %v8594_v61 = vld [vmem:[#allocation25_spill] sm:$0xff]  ;;  %v8595_v43 = vld [vmem:[#allocation7_spill] sm:$0xff] }
 0x255   : > { %v5429_v5 = vmul.f32 -1.442695, %v8281_v58  ;;  %v4480_v20 = vmul.f32 %v4375_v1, %v4228_v40  ;;  %v8300_v59 = vadd.f32 %v8278_v29, %v6139_v48  ;;  %v8307_v46 = vadd.f32 %v8117_v18, %v8594_v61 }
 0x256   : > { %v8297_v7 = vrot.slane %v8593_v21, 3  ;;  %v8303_v37 = vadd.f32 %v8278_v29, %v6140_v24  ;;  %v4226_v12 = vadd.f32 %v8595_v43, %v3969_v15  ;;  %6576 = vpow2.f32 %v5428_v57  ;;  %v4395_v21 = vpop.permute.xlu0 %4394 }
 0x257   : > { %v8312_v0 = vadd.f32 %v8121_v51, %v8061_v47  ;;  %v8316_v38 = vadd.f32 %v8125_v56, %v8068_v49  ;;  %v6565_v23 = vpop.eup %6564  ;;  %v5494_v62 = vpack.c.bf16 %v4480_v20, %v4480_v20  ;;  %6578 = vpow2.f32 %v5426_v33  ;;  %v4380_v55 = vpop.permute.xlu1 %4379 }
 0x258   : > { %v5427_v9 = vmul.f32 -1.442695, %v8300_v59  ;;  %v5432_v3 = vmul.f32 -1.442695, %v8303_v37  ;;  %v6567_v18 = vpop.eup %6566  ;;  %v4810_v44 = vrot.slane %v8245_v34, 4  ;;  %v4478_v41 = vmul.f32 %v4365_v52, %v4226_v12  ;;  %v8597_v52 = vld [vmem:[#allocation10_spill] sm:$0xff] }
 0x259   : > { %v3972_v36 = vmul.f32 %v6565_v23, %v8157_v63  ;;  %6580 = vpow2.f32 %v5429_v5  ;;  %v6569_v47 = vpop.eup %6568  ;;  %v4832_v51 = vshrl.u32 %v5494_v62, 16  ;;  %v4835_v54 = vshll.u32 %v5494_v62, 16  ;;  %v8598_v5 = vld [vmem:[#allocation11_spill] sm:$0xff]  ;;  %v8599_v12 = vld [vmem:[#allocation12_spill] sm:$0xff] }
 0x25a   : > { %v3970_v49 = vmul.f32 %v6567_v18, %v8180_v30  ;;  %6582 = vpow2.f32 %v5427_v9  ;;  %v6571_v56 = vpop.eup %6570  ;;  %v5492_v26 = vpack.c.bf16 %v4478_v41, %v4478_v41  ;;  %v3868_v57 = vadd.f32 1.0, %v6569_v47 }
 0x25b   : > { %v4229_v1 = vadd.f32 %v8596_v28, %v3972_v36  ;;  %6584 = vpow2.f32 %v5432_v3  ;;  %v6573_v11 = vpop.eup %6572  ;;  %v4834_v6 = vrot.slane %v4832_v51, 6  ;;  %v4837_v34 = vrot.slane %v4835_v54, 7 }
 0x25c   : > { %v4227_v40 = vadd.f32 %v8597_v52, %v3970_v49  ;;  %v3975_v63 = vmul.f32 %v6571_v56, %v8183_v22  ;;  %v6575_v25 = vpop.eup %6574  ;;  %v4812_v48 = vshrl.u32 %v5492_v26, 16  ;;  %v4815_v27 = vshll.u32 %v5492_v26, 16 }
 0x25d   : > { %v4481_v24 = vmul.f32 %v4380_v55, %v4229_v1  ;;  %v3973_v30 = vmul.f32 %v6573_v11, %v8189_v60  ;;  %v4838_v15 = vor.u32 %v4837_v34, %v4834_v6  ;;  %6586 = vrcp.f32 %v3868_v57 }
 0x25e   : > { %v4479_v33 = vmul.f32 %v4370_v31, %v4227_v40  ;;  %v4232_v42 = vadd.f32 %v8598_v5, %v3975_v63  ;;  %v4814_v20 = vrot.slane %v4812_v48, 6  ;;  %v4817_v61 = vrot.slane %v4815_v27, 7  ;;  %v4390_v27 = vpop.permute.xlu1 %4389 }
 0x25f   : > { %v5495_v43 = vpack.c.bf16 %v4481_v24, %v4481_v24  ;;  %v4230_v23 = vadd.f32 %v8599_v12, %v3973_v30  ;;  %v4840_v62 = vrot.slane %v4838_v15, 4  ;;  %v3866_v3 = vadd.f32 1.0, %v6575_v25 }
 0x260   : > { %v5493_v9 = vpack.c.bf16 %v4479_v33, %v4479_v33  ;;  %v4484_v22 = vmul.f32 %v4395_v21, %v4232_v42  ;;  %v6577_v18 = vpop.eup %6576  ;;  %v4818_v41 = vor.u32 %v4817_v61, %v4814_v20  ;;  %v8335_v30 = vadd.f32 %v8278_v29, %v8307_v46 }
 0x261   : > { %v4842_v36 = vshrl.u32 %v5495_v43, 16  ;;  %v4845_v60 = vshll.u32 %v5495_v43, 16  ;;  %v4482_v47 = vmul.f32 %v4385_v19, %v4230_v23  ;;  %v6579_v31 = vpop.eup %6578  ;;  %6588 = vrcp.f32 %v3866_v3 }
 0x262   : > { %v4822_v51 = vshrl.u32 %v5493_v9, 16  ;;  %v4825_v54 = vshll.u32 %v5493_v9, 16  ;;  %v5498_v49 = vpack.c.bf16 %v4484_v22, %v4484_v22  ;;  %v4819_v26 = vsel %vm8049_vm14, %v4810_v44, %v4818_v41 }
 0x263   : > { %v6581_v56 = vpop.eup %6580  ;;  %v4820_v28 = vrot.slane %v4818_v41, 4  ;;  %v4844_v1 = vrot.slane %v4842_v36, 6  ;;  %v4847_v57 = vrot.slane %v4845_v60, 7  ;;  %5069 = vst.msk [vmem:[%s7608_s27 + $0x48] sm:$0xf] %vm4498_vm8, %v4819_v26  ;;  %v5496_v63 = vpack.c.bf16 %v4482_v47, %v4482_v47  ;;  %v8600_v36 = vld [vmem:[#allocation13_spill] sm:$0xff] }
 0x264   : > { %v6583_v11 = vpop.eup %6582  ;;  %v4824_v55 = vrot.slane %v4822_v51, 6  ;;  %v4827_v6 = vrot.slane %v4825_v54, 7  ;;  %v4872_v34 = vshrl.u32 %v5498_v49, 16  ;;  %v4875_v52 = vshll.u32 %v5498_v49, 16  ;;  %v8601_v54 = vld [vmem:[#allocation9_spill] sm:$0xff] }
 0x265   : > { %v6585_v19 = vpop.eup %6584  ;;  %v4848_v40 = vor.u32 %v4847_v57, %v4844_v1  ;;  %v3871_v25 = vadd.f32 1.0, %v6577_v18  ;;  %v3869_v48 = vadd.f32 1.0, %v6579_v31  ;;  %v3872_v44 = vadd.f32 1.0, %v6581_v56 }
 0x266   : > { %v4828_v24 = vor.u32 %v4827_v6, %v4824_v55  ;;  %v8339_v33 = vadd.f32 %v8278_v29, %v8312_v0  ;;  %v4874_v42 = vrot.slane %v4872_v34, 6  ;;  %v4852_v21 = vshrl.u32 %v5496_v63, 16  ;;  %v8602_v6 = vld [vmem:[#allocation14_spill] sm:$0xff] }
 0x267   : > { %v4849_v5 = vsel %vm8049_vm14, %v4840_v62, %v4848_v40  ;;  %v4855_v20 = vshll.u32 %v5496_v63, 16  ;;  %v6587_v61 = vpop.eup %6586  ;;  %v4877_v12 = vrot.slane %v4875_v52, 7  ;;  %6590 = vrcp.f32 %v3871_v25  ;;  %v5594_v62 = vld [vmem:[%s7766_s7 + $0x80] sm:$0xff]   ;;  %v8603_v52 = vld [vmem:[#allocation16_spill] sm:$0xff] }
 0x268   : > { %5072 = vst.msk [vmem:[%s7608_s27 + $0x54] sm:$0xf] %vm4498_vm8, %v4849_v5  ;;  %v4829_v43 = vsel %vm8049_vm14, %v4820_v28, %v4828_v24  ;;  %v4830_v46 = vrot.slane %v4828_v24, 4  ;;  %v4854_v0 = vrot.slane %v4852_v21, 6  ;;  %v3976_v9 = vmul.f32 %v6587_v61, %v8201_v16  ;;  %v4400_v16 = vpop.permute.xlu1 %4399 }
 0x269   : > { %5070 = vst.msk [vmem:[%s7608_s27 + $0x4c] sm:$0xf] %vm4498_vm8, %v4829_v43  ;;  %v4857_v23 = vrot.slane %v4855_v20, 7  ;;  %6592 = vrcp.f32 %v3869_v48  ;;  %v4850_v22 = vrot.slane %v4848_v40, 4  ;;  %v3870_v18 = vadd.f32 1.0, %v6583_v11  ;;  %v4405_v48 = vpop.permute.xlu0 %4404 }
 0x26a   : > { %v4839_v3 = vsel %vm8049_vm14, %v4830_v46, %v4838_v15  ;;  %6594 = vrcp.f32 %v3872_v44  ;;  %v4233_v60 = vadd.f32 %v8600_v36, %v3976_v9  ;;  %v3875_v47 = vadd.f32 1.0, %v6585_v19 }
 0x26b   : > { %5071 = vst.msk [vmem:[%s7608_s27 + $0x50] sm:$0xf] %vm4498_vm8, %v4839_v3  ;;  %v8355_v41 = vor.u32 %v4857_v23, %v4854_v0  ;;  %v5430_v31 = vmul.f32 -1.442695, %v8335_v30  ;;  %v6589_v51 = vpop.eup %6588  ;;  %v4151_v49 = vsel %vm3386_vm7, %v8601_v54, %v8259_v14  ;;  %6596 = vrcp.f32 %v3870_v18 }
 0x26c   : > { %v5570_v15 = vunpack.c.l.bf16 %v5594_v62  ;;  %v6144_v56 = vadd.f32 %v8150_v35, %v8098_v53  ;;  %v8364_v26 = vor.u32 %v4877_v12, %v4874_v42  ;;  %v4485_v1 = vmul.f32 %v4400_v16, %v4233_v60  ;;  %v4410_v46 = vpop.permute.xlu1 %4409  ;;  %v8605_v60 = vld [vmem:[#allocation20_spill] sm:$0xff] }
 0x26d   : > { %v4859_v28 = vsel %vm8049_vm14, %v4850_v22, %v8355_v41  ;;  %v3974_v57 = vmul.f32 %v6589_v51, %v8204_v17  ;;  %6598 = vrcp.f32 %v3875_v47  ;;  %v5433_v11 = vmul.f32 -1.442695, %v8339_v33  ;;  %v8604_v17 = vld [vmem:[#allocation15_spill] sm:$0xff]  ;;  %v4415_v16 = vpop.permute.xlu0 %4414 }
 0x26e   : > { %5073 = vst.msk [vmem:[%s7608_s27 + $0x58] sm:$0xf] %vm4498_vm8, %v4859_v28  ;;  %v8375_v55 = vadd.f32 %v8278_v29, %v8316_v38  ;;  %v8378_v53 = vadd.f32 %v8278_v29, %v6144_v56  ;;  %v5499_v35 = vpack.c.bf16 %v4485_v1, %v4485_v1  ;;  %v4157_v19 = vsel %vm3386_vm7, %v8603_v52, %v8297_v7 }
 0x26f   : > { %v4231_v34 = vadd.f32 %v8602_v6, %v3974_v57  ;;  %6600 = vpow2.f32 %v5430_v31  ;;  %v4153_v40 = vsel %vm3386_vm7, %v8259_v14, %v8604_v17  ;;  %v5571_v63 = vunpack.c.h.bf16 %v5594_v62 }
 0x270   : > { %v8387_v25 = vrot.slane %v5570_v15, 3  ;;  %v6145_v38 = vadd.f32 %v8159_v4, %v8102_v39  ;;  %v4880_v24 = vrot.slane %v8364_v26, 4  ;;  %v4882_v44 = vshrl.u32 %v5499_v35, 16 }
 0x271   : > { %v4885_v5 = vshll.u32 %v5499_v35, 16  ;;  %v4483_v42 = vmul.f32 %v4390_v27, %v4231_v34  ;;  %v6591_v21 = vpop.eup %6590  ;;  %6602 = vpow2.f32 %v5433_v11  ;;  %v5431_v20 = vmul.f32 -1.442695, %v8375_v55  ;;  %v6640_v35 = vld [vmem:[%s7766_s7 + $0x78] sm:$0xff]  }
 0x272   : > { %v5436_v61 = vmul.f32 -1.442695, %v8378_v53  ;;  %v8395_v14 = vadd.f32 %v8278_v29, %v6145_v38  ;;  %v4884_v12 = vrot.slane %v4882_v44, 6  ;;  %v3979_v4 = vmul.f32 %v6591_v21, %v8250_v8 }
 0x273   : > { %v6593_v43 = vpop.eup %6592  ;;  %v4887_v0 = vrot.slane %v4885_v5, 7  ;;  %v5497_v39 = vpack.c.bf16 %v4483_v42, %v4483_v42  ;;  %v8399_v27 = vrot.slane %v5571_v63, 3  ;;  %v8404_v22 = vadd.f32 %v8167_v50, %v8104_v2 }
 0x274   : > { %v6595_v23 = vpop.eup %6594  ;;  %v3977_v9 = vmul.f32 %v6593_v43, %v8273_v45  ;;  %v5434_v62 = vmul.f32 -1.442695, %v8395_v14  ;;  %v4236_v47 = vadd.f32 %v8605_v60, %v3979_v4  ;;  %v4860_v8 = vrot.slane %v8355_v41, 4 }
 0x275   : > { %v8406_v3 = vor.u32 %v4887_v0, %v4884_v12  ;;  %v4862_v18 = vshrl.u32 %v5497_v39, 16  ;;  %v4865_v36 = vshll.u32 %v5497_v39, 16  ;;  %v6597_v31 = vpop.eup %6596  ;;  %v3980_v45 = vmul.f32 %v6595_v23, %v8281_v58  ;;  %v4420_v58 = vpop.permute.xlu1 %4419 }
 0x276   : > { %v4234_v51 = vadd.f32 %v4151_v49, %v3977_v9  ;;  %6604 = vpow2.f32 %v5431_v20  ;;  %v4488_v56 = vmul.f32 %v4415_v16, %v4236_v47  ;;  %v3978_v41 = vmul.f32 %v6597_v31, %v8300_v59  ;;  %v8426_v20 = vpop.permute.xlu0 %4424 }
 0x277   : > { %v4889_v2 = vsel %vm8049_vm14, %v4880_v24, %v8406_v3  ;;  %v4864_v50 = vrot.slane %v4862_v18, 6  ;;  %v4867_v54 = vrot.slane %v4865_v36, 7  ;;  %6606 = vpow2.f32 %v5436_v61  ;;  %v6599_v15 = vpop.eup %6598 }
 0x278   : > { %5076 = vst.msk [vmem:[%s7608_s27 + $0x64] sm:$0xf] %vm4498_vm8, %v4889_v2  ;;  %v4486_v28 = vmul.f32 %v4405_v48, %v4234_v51  ;;  %v4237_v1 = vadd.f32 %v4157_v19, %v3980_v45  ;;  %v4163_v11 = vsel %vm3386_vm7, %v8387_v25, %v8399_v27  ;;  %v5567_v6 = vunpack.c.h.bf16 %v6640_v35 }
 0x279   : > { %v6601_v49 = vpop.eup %6600  ;;  %v4868_v57 = vor.u32 %v4867_v54, %v4864_v50  ;;  %6608 = vpow2.f32 %v5434_v62  ;;  %v5502_v34 = vpack.c.bf16 %v4488_v56, %v4488_v56  ;;  %v4235_v63 = vadd.f32 %v4153_v40, %v3978_v41 }
 0x27a   : > { %v5500_v52 = vpack.c.bf16 %v4486_v28, %v4486_v28  ;;  %v4489_v17 = vmul.f32 %v4420_v58, %v4237_v1  ;;  %v3983_v38 = vmul.f32 %v6599_v15, %v8303_v37  ;;  %v3873_v48 = vadd.f32 1.0, %v6601_v49  ;;  %v4435_v15 = vpop.permute.xlu0 %4434  ;;  %v5595_v49 = vld [vmem:[%s7766_s7 + $0x88] sm:$0xff]  }
 0x27b   : > { %v4869_v19 = vsel %vm8049_vm14, %v4860_v8, %v4868_v57  ;;  %v4870_v59 = vrot.slane %v4868_v57, 4  ;;  %v6603_v24 = vpop.eup %6602  ;;  %v4912_v44 = vshrl.u32 %v5502_v34, 16  ;;  %v4915_v5 = vshll.u32 %v5502_v34, 16  ;;  %v5596_v34 = vld [vmem:[%s7766_s7 + $0x90] sm:$0xff]  }
 0x27c   : > { %5074 = vst.msk [vmem:[%s7608_s27 + $0x5c] sm:$0xf] %vm4498_vm8, %v4869_v19  ;;  %v4892_v42 = vshrl.u32 %v5500_v52, 16  ;;  %v4895_v21 = vshll.u32 %v5500_v52, 16  ;;  %v4890_v61 = vrot.slane %v8406_v3, 4  ;;  %v5503_v43 = vpack.c.bf16 %v4489_v17, %v4489_v17 }
 0x27d   : > { %v4879_v40 = vsel %vm8049_vm14, %v4870_v59, %v8364_v26  ;;  %v4487_v12 = vmul.f32 %v4410_v46, %v4235_v63  ;;  %v4914_v37 = vrot.slane %v4912_v44, 6  ;;  %v4917_v0 = vrot.slane %v4915_v5, 7 }
 0x27e   : > { %5075 = vst.msk [vmem:[%s7608_s27 + $0x60] sm:$0xf] %vm4498_vm8, %v4879_v40  ;;  %v4894_v39 = vrot.slane %v4892_v42, 6  ;;  %v4897_v4 = vrot.slane %v4895_v21, 7  ;;  %v4922_v23 = vshrl.u32 %v5503_v43, 16  ;;  %v4925_v9 = vshll.u32 %v5503_v43, 16 }
 0x27f   : > { %v5501_v62 = vpack.c.bf16 %v4487_v12, %v4487_v12  ;;  %v4240_v18 = vadd.f32 %v4163_v11, %v3983_v38  ;;  %v4918_v60 = vor.u32 %v4917_v0, %v4914_v37  ;;  %6610 = vrcp.f32 %v3873_v48 }
 0x280   : > { %v6605_v36 = vpop.eup %6604  ;;  %v4898_v3 = vor.u32 %v4897_v4, %v4894_v39  ;;  %v3876_v47 = vadd.f32 1.0, %v6603_v24  ;;  %v4924_v26 = vrot.slane %v4922_v23, 6  ;;  %v4927_v46 = vrot.slane %v4925_v9, 7 }
 0x281   : > { %v6607_v31 = vpop.eup %6606  ;;  %v4902_v8 = vshrl.u32 %v5501_v62, 16  ;;  %v4905_v51 = vshll.u32 %v5501_v62, 16  ;;  %v4920_v45 = vrot.slane %v4918_v60, 4  ;;  %v4158_v2 = vrot.slane %v5567_v6, 3 }
 0x282   : > { %v4899_v16 = vsel %vm8049_vm14, %v4890_v61, %v4898_v3  ;;  %v8438_v50 = vadd.f32 %v8278_v29, %v8404_v22  ;;  %v4900_v56 = vrot.slane %v4898_v3, 4  ;;  %v8442_v28 = vor.u32 %v4927_v46, %v4924_v26 }
 0x283   : > { %v6609_v54 = vpop.eup %6608  ;;  %5077 = vst.msk [vmem:[%s7608_s27 + $0x68] sm:$0xf] %vm4498_vm8, %v4899_v16  ;;  %v4904_v1 = vrot.slane %v4902_v8, 6  ;;  %v4907_v41 = vrot.slane %v4905_v51, 7  ;;  %v4492_v58 = vmul.f32 %v4435_v15, %v4240_v18  ;;  %6612 = vrcp.f32 %v3876_v47 }
 0x284   : > { %v3874_v57 = vadd.f32 1.0, %v6605_v36  ;;  %v3879_v11 = vadd.f32 1.0, %v6607_v31  ;;  %v4929_v22 = vsel %vm8049_vm14, %v4920_v45, %v8442_v28  ;;  %v5574_v6 = vunpack.c.l.bf16 %v5595_v49 }
 0x285   : > { %v4908_v35 = vor.u32 %v4907_v41, %v4904_v1  ;;  %5080 = vst.msk [vmem:[%s7608_s27 + $0x74] sm:$0xf] %vm4498_vm8, %v4929_v22  ;;  %v3877_v52 = vadd.f32 1.0, %v6609_v54  ;;  %v5437_v17 = vmul.f32 -1.442695, %v8438_v50  ;;  %v5506_v59 = vpack.c.bf16 %v4492_v58, %v4492_v58 }
 0x286   : > { %6614 = vrcp.f32 %v3874_v57  ;;  %v4159_v38 = vsel %vm3386_vm7, %v8297_v7, %v4158_v2  ;;  %v6147_v48 = vadd.f32 %v8173_v10, %v8108_v13  ;;  %v5578_v44 = vunpack.c.l.bf16 %v5596_v34  ;;  %v4430_v13 = vpop.permute.xlu1 %4429 }
 0x287   : > { %v4909_v63 = vsel %vm8049_vm14, %v4900_v56, %v4908_v35  ;;  %v4910_v19 = vrot.slane %v4908_v35, 4  ;;  %6616 = vrcp.f32 %v3879_v11  ;;  %v5579_v5 = vunpack.c.h.bf16 %v5596_v34 }
 0x288   : > { %5078 = vst.msk [vmem:[%s7608_s27 + $0x6c] sm:$0xf] %vm4498_vm8, %v4909_v63  ;;  %6618 = vrcp.f32 %v3877_v52  ;;  %v4164_v21 = vrot.slane %v5574_v6, 3  ;;  %v5575_v61 = vunpack.c.h.bf16 %v5595_v49  ;;  %v8465_v40 = vadd.f32 %v8278_v29, %v6147_v48 }
 0x289   : > { %v4919_v24 = vsel %vm8049_vm14, %v4910_v19, %v4918_v60  ;;  %6620 = vpow2.f32 %v5437_v17  ;;  %v6611_v42 = vpop.eup %6610  ;;  %v8606_v43 = vmov 0   ;;  %v4952_v10 = vshrl.u32 %v5506_v59, 16 }
 0x28a   : > { %5079 = vst.msk [vmem:[%s7608_s27 + $0x70] sm:$0xf] %vm4498_vm8, %v4919_v24  ;;  %v3981_v7 = vmul.f32 %v6611_v42, %v8335_v30  ;;  %v4955_v12 = vshll.u32 %v5506_v59, 16  ;;  %v5435_v37 = vmul.f32 -1.442695, %v8465_v40  ;;  %v8471_v39 = vrot.slane %v5578_v44, 3  ;;  %v4445_v30 = vpop.permute.xlu0 %4444  ;;  %v4440_v45 = vpop.permute.xlu1 %4439 }
 0x28b   : > { %4540 = vst.msk [vmem:[%s7608_s27 + $0xa0] sm:$0x7] %vm4539_vm15, %v8606_v43  ;;  %v8473_v4 = vrot.slane %v5579_v5, 3  ;;  %v4165_v29 = vsel %vm3386_vm7, %v8399_v27, %v4164_v21  ;;  %v8477_v9 = vrot.slane %v5575_v61, 3  ;;  %v4954_v60 = vrot.slane %v4952_v10, 6 }
 0x28c   : > { %v4238_v0 = vadd.f32 %v4159_v38, %v3981_v7  ;;  %6622 = vpow2.f32 %v5435_v37  ;;  %v4957_v3 = vrot.slane %v4955_v12, 7  ;;  %v4161_v47 = vsel %vm3386_vm7, %v4158_v2, %v8387_v25 }
 0x28d   : > { %v6613_v23 = vpop.eup %6612  ;;  %v4171_v27 = vsel %vm3386_vm7, %v8471_v39, %v8473_v4  ;;  %v4930_v35 = vrot.slane %v8442_v28, 4 }
 0x28e   : > { %v4490_v62 = vmul.f32 %v8426_v20, %v4238_v0  ;;  %v3984_v18 = vmul.f32 %v6613_v23, %v8339_v33  ;;  %v4167_v33 = vsel %vm3386_vm7, %v4164_v21, %v8477_v9  ;;  %v4958_v56 = vor.u32 %v4957_v3, %v4954_v60  ;;  %v4455_v49 = vpop.permute.xlu0 %4454 }
 0x290   : > { %v6615_v36 = vpop.eup %6614  ;;  %v5504_v26 = vpack.c.bf16 %v4490_v62, %v4490_v62  ;;  %v4241_v46 = vadd.f32 %v4165_v29, %v3984_v18  ;;  %v4960_v48 = vrot.slane %v4958_v56, 4 }
 0x291   : > { %v6617_v31 = vpop.eup %6616  ;;  %v3982_v8 = vmul.f32 %v6615_v36, %v8375_v55 }
 0x292   : > { %v6619_v51 = vpop.eup %6618  ;;  %v3987_v20 = vmul.f32 %v6617_v31, %v8378_v53  ;;  %v4932_v54 = vshrl.u32 %v5504_v26, 16  ;;  %v4935_v25 = vshll.u32 %v5504_v26, 16  ;;  %v4493_v2 = vmul.f32 %v4440_v45, %v4241_v46  ;;  %v4025_v53 = vld [vmem:[%s7766_s7 + $0x98] sm:$0x3] }
 0x293   : > { %v6621_v16 = vpop.eup %6620  ;;  %v4239_v15 = vadd.f32 %v4161_v47, %v3982_v8  ;;  %v3985_v55 = vmul.f32 %v6619_v51, %v8395_v14  ;;  %v4062_v14 = vunpack.c.l.bf16 %v4025_v53 }
 0x294   : > { %v4244_v1 = vadd.f32 %v4171_v27, %v3987_v20  ;;  %v3880_v41 = vadd.f32 1.0, %v6621_v16  ;;  %v4934_v58 = vrot.slane %v4932_v54, 6  ;;  %v4937_v57 = vrot.slane %v4935_v25, 7 }
 0x295   : > { %v5507_v11 = vpack.c.bf16 %v4493_v2, %v4493_v2  ;;  %v4491_v22 = vmul.f32 %v4430_v13, %v4239_v15  ;;  %v4242_v34 = vadd.f32 %v4167_v33, %v3985_v55  ;;  %v4172_v37 = vrot.slane %v4062_v14, 3 }
 0x296   : > { %v4496_v6 = vmul.f32 %v4455_v49, %v4244_v1  ;;  %6624 = vrcp.f32 %v3880_v41  ;;  %v4938_v52 = vor.u32 %v4937_v57, %v4934_v58  ;;  %v6623_v59 = vpop.eup %6622 }
 0x297   : > { %v4962_v17 = vshrl.u32 %v5507_v11, 16  ;;  %v4965_v63 = vshll.u32 %v5507_v11, 16  ;;  %v5505_v19 = vpack.c.bf16 %v4491_v22, %v4491_v22  ;;  %v4494_v38 = vmul.f32 %v4445_v30, %v4242_v34  ;;  %v4450_v30 = vpop.permute.xlu1 %4449 }
 0x298   : > { %v4939_v24 = vsel %vm8049_vm14, %v4930_v35, %v4938_v52  ;;  %v5510_v61 = vpack.c.bf16 %v4496_v6, %v4496_v6  ;;  %v3878_v43 = vadd.f32 1.0, %v6623_v59  ;;  %v4940_v13 = vrot.slane %v4938_v52, 4  ;;  %v5091_v35 = vld [vmem:[%s7608_s27 + $0x98] sm:$0x3] }
 0x299   : > { %v4964_v44 = vrot.slane %v4962_v17, 6  ;;  %v4967_v5 = vrot.slane %v4965_v63, 7  ;;  %5081 = vst.msk [vmem:[%s7608_s27 + $0x78] sm:$0xf] %vm4498_vm8, %v4939_v24  ;;  %v4942_v28 = vshrl.u32 %v5505_v19, 16  ;;  %v4945_v42 = vshll.u32 %v5505_v19, 16 }
 0x29a   : > { %v5508_v7 = vpack.c.bf16 %v4494_v38, %v4494_v38  ;;  %6626 = vrcp.f32 %v3878_v43  ;;  %v4992_v18 = vshrl.u32 %v5510_v61, 16  ;;  %v4995_v36 = vshll.u32 %v5510_v61, 16 }
 0x29b   : > { %v4968_v21 = vor.u32 %v4967_v5, %v4964_v44  ;;  %v4944_v10 = vrot.slane %v4942_v28, 6  ;;  %v4947_v12 = vrot.slane %v4945_v42, 7  ;;  %v4173_v46 = vsel %vm3386_vm7, %v8473_v4, %v4172_v37  ;;  %v4460_v25 = vpop.permute.xlu1 %4459 }
 0x29c   : > { %v4972_v23 = vshrl.u32 %v5508_v7, 16  ;;  %v4975_v29 = vshll.u32 %v5508_v7, 16  ;;  %v4994_v20 = vrot.slane %v4992_v18, 6  ;;  %v4997_v33 = vrot.slane %v4995_v36, 7 }
 0x29d   : > { %v4969_v0 = vsel %vm8049_vm14, %v4960_v48, %v4968_v21  ;;  %v4948_v62 = vor.u32 %v4947_v12, %v4944_v10  ;;  %v4970_v8 = vrot.slane %v4968_v21, 4 }
 0x29e   : > { %5084 = vst.msk [vmem:[%s7608_s27 + $0x84] sm:$0xf] %vm4498_vm8, %v4969_v0  ;;  %v4974_v60 = vrot.slane %v4972_v23, 6  ;;  %v4977_v3 = vrot.slane %v4975_v29, 7  ;;  %v4998_v2 = vor.u32 %v4997_v33, %v4994_v20 }
 0x29f   : > { %v4949_v31 = vsel %vm8049_vm14, %v4940_v13, %v4948_v62  ;;  %v4950_v26 = vrot.slane %v4948_v62, 4 }
 0x2a0   : > { %v6625_v47 = vpop.eup %6624  ;;  %5082 = vst.msk [vmem:[%s7608_s27 + $0x7c] sm:$0xf] %vm4498_vm8, %v4949_v31  ;;  %v4978_v27 = vor.u32 %v4977_v3, %v4974_v60  ;;  %v5000_v49 = vrot.slane %v4998_v2, 4 }
 0x2a1   : > { %v3988_v51 = vmul.f32 %v6625_v47, %v8438_v50  ;;  %v4959_v45 = vsel %vm8049_vm14, %v4950_v26, %v4958_v56  ;;  %v4169_v50 = vsel %vm3386_vm7, %v8477_v9, %v8471_v39 }
 0x2a2   : > { %5083 = vst.msk [vmem:[%s7608_s27 + $0x80] sm:$0xf] %vm4498_vm8, %v4959_v45  ;;  %v4979_v16 = vsel %vm8049_vm14, %v4970_v8, %v4978_v27  ;;  %v4980_v17 = vrot.slane %v4978_v27, 4 }
 0x2a3   : > { %v4245_v54 = vadd.f32 %v4173_v46, %v3988_v51  ;;  %5085 = vst.msk [vmem:[%s7608_s27 + $0x88] sm:$0xf] %vm4498_vm8, %v4979_v16 }
 0x2a4   : > { %v6627_v1 = vpop.eup %6626 }
 0x2a5   : > { %v4497_v4 = vmul.f32 %v4460_v25, %v4245_v54  ;;  %v3986_v41 = vmul.f32 %v6627_v1, %v8465_v40 }
 0x2a7   : > { %v5511_v15 = vpack.c.bf16 %v4497_v4, %v4497_v4  ;;  %v4243_v11 = vadd.f32 %v4169_v50, %v3986_v41 }
 0x2a9   : > { %v5002_v56 = vshrl.u32 %v5511_v15, 16  ;;  %v5005_v55 = vshll.u32 %v5511_v15, 16  ;;  %v4495_v53 = vmul.f32 %v4450_v30, %v4243_v11 }
 0x2ab   : > { %v5004_v58 = vrot.slane %v5002_v56, 6  ;;  %v5007_v57 = vrot.slane %v5005_v55, 7  ;;  %v5509_v6 = vpack.c.bf16 %v4495_v53, %v4495_v53 }
 0x2ad   : > { %v5008_v22 = vor.u32 %v5007_v57, %v5004_v58  ;;  %v4982_v34 = vshrl.u32 %v5509_v6, 16  ;;  %v4985_v52 = vshll.u32 %v5509_v6, 16 }
 0x2af   : > { %v5009_v39 = vsel %vm8049_vm14, %v5000_v49, %v5008_v22  ;;  %v5010_v9 = vrot.slane %v5008_v22, 4  ;;  %v4984_v63 = vrot.slane %v4982_v34, 6  ;;  %v4987_v19 = vrot.slane %v4985_v52, 7 }
 0x2b0   : > { %5088 = vst.msk [vmem:[%s7608_s27 + $0x94] sm:$0xf] %vm4498_vm8, %v5009_v39 }
 0x2b1   : > { %v5092_v40 = vsel %vm5090_vm1, %v5010_v9, %v5091_v35  ;;  %v4988_v59 = vor.u32 %v4987_v19, %v4984_v63 }
 0x2b2   : > { %5093 = vst [vmem:[%s7608_s27 + $0x98] sm:$0x3] %v5092_v40 }
 0x2b3   : > { %v4989_v38 = vsel %vm8049_vm14, %v4980_v17, %v4988_v59  ;;  %v4990_v14 = vrot.slane %v4988_v59, 4 }
 0x2b4   : > { %5086 = vst.msk [vmem:[%s7608_s27 + $0x8c] sm:$0xf] %vm4498_vm8, %v4989_v38 }
 0x2b5   : > { %v4999_v48 = vsel %vm8049_vm14, %v4990_v14, %v4998_v2 }
 0x2b6   : > { %5087 = vst.msk [vmem:[%s7608_s27 + $0x90] sm:$0xf] %vm4498_vm8, %v4999_v48 }
 0x2b7 PF: > { %s15_s18 = sadd.s32 1, %s6647_s18  }
 0x2b8   : > { %p12_p4 = scmp.ge.s32.totalorder %s15_s18, 4  }
 0x2ba   :  { %14 = sbr.rel (!%p12_p4) target bundleno = 1 (0x1), region = 81 }

</bundles_post_ra>
